<compile_context>
chip_gen: v6e
topology: v6e:2x2x1
jax: 0.10.0
libtpu: 0.0.40
codegen_flags: <defaults>
</compile_context>

<pallas_src>
import functools
import math

import jax
import jax.numpy as jnp
from jax import lax
from jax.experimental import pallas as pl
from jax.experimental.pallas import tpu as pltpu

_TM = 512            # voxels (rows) per grid step
_EPS = 1e-5          # LayerNorm eps (PyTorch default)
_INV_SQRT2 = 1.0 / math.sqrt(2.0)


# ----------------------------- Pallas kernels ------------------------------

def _conv_gelu_ln_kernel(a_ref, w_ref, b_ref, g_ref, beta_ref, o_ref):
    """(TM, K) patches @ (K, C) + bias -> exact GELU -> LayerNorm(C) -> affine."""
    y = jnp.dot(a_ref[...], w_ref[...], preferred_element_type=jnp.float32)
    y = y + b_ref[...]
    y = 0.5 * y * (1.0 + lax.erf(y * _INV_SQRT2))            # erf-GELU (EUP)
    mean = jnp.mean(y, axis=-1, keepdims=True)
    var = jnp.mean(jnp.square(y - mean), axis=-1, keepdims=True)
    yn = (y - mean) * lax.rsqrt(var + _EPS)
    # TODO(synk): with Cout=32 the store is lane-sparse (32/128 lanes); folding
    # 4 voxels per output row into a (TM/4, 128) lane-dense slab would unmask
    # the stores, at the cost of an in-kernel relayout. Kept simple for
    # lowering robustness.
    o_ref[...] = yn * g_ref[...] + beta_ref[...]


def _conv_bias_kernel(a_ref, w_ref, b_ref, o_ref):
    """(TM, K) patches @ (K, C) + bias (used for conv2 when last=True)."""
    o_ref[...] = (
        jnp.dot(a_ref[...], w_ref[...], preferred_element_type=jnp.float32)
        + b_ref[...]
    )


# ----------------------------- Pallas wrappers ------------------------------

def conv_gelu_ln(patches, wmat, bias, gamma, beta):
    """Fused conv-as-matmul + bias + GELU + channel LayerNorm, tiled over rows."""
    m, k = patches.shape
    cout = wmat.shape[1]
    return pl.pallas_call(
        _conv_gelu_ln_kernel,
        out_shape=jax.ShapeDtypeStruct((m, cout), jnp.float32),
        grid=(pl.cdiv(m, _TM),),
        in_specs=[
            pl.BlockSpec((_TM, k), lambda i: (i, 0)),
            pl.BlockSpec((k, cout), lambda i: (0, 0)),
            pl.BlockSpec((1, cout), lambda i: (0, 0)),
            pl.BlockSpec((1, cout), lambda i: (0, 0)),
            pl.BlockSpec((1, cout), lambda i: (0, 0)),
        ],
        out_specs=pl.BlockSpec((_TM, cout), lambda i: (i, 0)),
        compiler_params=pltpu.CompilerParams(
            dimension_semantics=("parallel",)),
    )(patches, wmat, bias.reshape(1, cout), gamma.reshape(1, cout),
      beta.reshape(1, cout))


def conv_bias(patches, wmat, bias):
    """Conv-as-matmul + bias only (second stage when last=True)."""
    m, k = patches.shape
    cout = wmat.shape[1]
    return pl.pallas_call(
        _conv_bias_kernel,
        out_shape=jax.ShapeDtypeStruct((m, cout), jnp.float32),
        grid=(pl.cdiv(m, _TM),),
        in_specs=[
            pl.BlockSpec((_TM, k), lambda i: (i, 0)),
            pl.BlockSpec((k, cout), lambda i: (0, 0)),
            pl.BlockSpec((1, cout), lambda i: (0, 0)),
        ],
        out_specs=pl.BlockSpec((_TM, cout), lambda i: (i, 0)),
        compiler_params=pltpu.CompilerParams(
            dimension_semantics=("parallel",)),
    )(patches, wmat, bias.reshape(1, cout))


# ------------------------------- JAX glue -----------------------------------

def im2col3d_ndhwc(x, stride, padding):
    """x: (N, D, H, W, C) -> patches (N*Do*Ho*Wo, 27*C), K ordered (kd,kh,kw,c)."""
    n, d, h, w, c = x.shape
    sd, sh, sw = stride
    pd, ph, pw = padding
    xp = jnp.pad(x, ((0, 0), (pd, pd), (ph, ph), (pw, pw), (0, 0)))
    do = (d + 2 * pd - 3) // sd + 1
    ho = (h + 2 * ph - 3) // sh + 1
    wo = (w + 2 * pw - 3) // sw + 1
    cols = []
    for kd in range(3):
        for kh in range(3):
            for kw in range(3):
                cols.append(
                    xp[:, kd:kd + sd * do:sd, kh:kh + sh * ho:sh,
                       kw:kw + sw * wo:sw, :])
    # TODO(synk): at production spatial sizes, skip materializing this 27x slab
    # and gather the halo in-kernel from an NDHWC HBM ref (memory_space=pl.ANY)
    # with a VMEM accumulator over kd taps.
    p = jnp.concatenate(cols, axis=-1)               # (N, Do, Ho, Wo, 27*C)
    return p.reshape(n * do * ho * wo, 27 * c), (do, ho, wo)


def _flatten_weight(w):
    """OIDHW conv weight -> (27*Cin, Cout) matching the (kd,kh,kw,c) K order."""
    cout = w.shape[0]
    return w.transpose(2, 3, 4, 1, 0).reshape(-1, cout)


def init_project_params(key, in_dim, out_dim):
    k1, k2, k3, k4 = jax.random.split(key, 4)
    scale1 = 1.0 / math.sqrt(in_dim * 27)
    scale2 = 1.0 / math.sqrt(out_dim * 27)
    return {
        "w1": jax.random.normal(k1, (out_dim, in_dim, 3, 3, 3), jnp.float32) * scale1,
        "b1": jax.random.normal(k2, (out_dim,), jnp.float32) * 0.01,
        "w2": jax.random.normal(k3, (out_dim, out_dim, 3, 3, 3), jnp.float32) * scale2,
        "b2": jax.random.normal(k4, (out_dim,), jnp.float32) * 0.01,
        "g1": jnp.ones((out_dim,), jnp.float32),
        "beta1": jnp.zeros((out_dim,), jnp.float32),
        "g2": jnp.ones((out_dim,), jnp.float32),
        "beta2": jnp.zeros((out_dim,), jnp.float32),
    }


@functools.partial(jax.jit, static_argnames=("stride", "padding", "last"))
def project_forward(x, params, stride, padding, last=False):
    """Pallas-backed forward matching project.forward (NCDHW in / NCDHW out)."""
    n = x.shape[0]
    cout = params["w1"].shape[0]

    x_cl = jnp.transpose(x, (0, 2, 3, 4, 1))                      # NDHWC, once

    # conv1 + GELU + LayerNorm(channel), fused in one Pallas kernel
    p1, (d1, h1, w1) = im2col3d_ndhwc(x_cl, stride, padding)
    y1 = conv_gelu_ln(p1, _flatten_weight(params["w1"]), params["b1"],
                      params["g1"], params["beta1"])              # (M1, Cout)
    x2 = y1.reshape(n, d1, h1, w1, cout)                          # stays NDHWC

    # conv2 (stride 1, pad 1) [+ GELU + LayerNorm unless last], fused
    p2, (d2, h2, w2) = im2col3d_ndhwc(x2, (1, 1, 1), (1, 1, 1))
    wm2 = _flatten_weight(params["w2"])
    if last:
        y2 = conv_bias(p2, wm2, params["b2"])
    else:
        y2 = conv_gelu_ln(p2, wm2, params["b2"], params["g2"], params["beta2"])

    out_cl = y2.reshape(n, d2, h2, w2, cout)
    return jnp.transpose(out_cl, (0, 4, 1, 2, 3))                 # back to NCDHW


# --------------------------- pure-JAX reference ------------------------------

def _ref_forward(x, params, stride, padding, last=False):
    def conv3d(x, w, b, s, p):
        out = lax.conv_general_dilated(
            x, w, window_strides=s, padding=[(q, q) for q in p],
            dimension_numbers=("NCDHW", "OIDHW", "NCDHW"))
        return out + b.reshape(1, -1, 1, 1, 1)

    def ln(x, g, b):
        xt = jnp.moveaxis(x, 1, -1)
        mean = xt.mean(-1, keepdims=True)
        var = jnp.square(xt - mean).mean(-1, keepdims=True)
        xn = (xt - mean) / jnp.sqrt(var + _EPS) * g + b
        return jnp.moveaxis(xn, -1, 1)

    gelu = lambda v: jax.nn.gelu(v, approximate=False)
    y = conv3d(x, params["w1"], params["b1"], stride, padding)
    y = ln(gelu(y), params["g1"], params["beta1"])
    y = conv3d(y, params["w2"], params["b2"], (1, 1, 1), (1, 1, 1))
    if not last:
        y = ln(gelu(y), params["g2"], params["beta2"])
    return y


# ---------------------------------- main -------------------------------------

if __name__ == "__main__":
    in_dim, out_dim = 4, 32
    stride, padding = (1, 2, 2), (1, 1, 1)

    key = jax.random.PRNGKey(0)
    kx, kp = jax.random.split(key)
    x = jax.random.normal(kx, (2, in_dim, 8, 16, 16), jnp.float32)   # NCDHW
    params = init_project_params(kp, in_dim, out_dim)

    for last in (False, True):
        out = jax.block_until_ready(
            project_forward(x, params, stride, padding, last=last))
        ref = jax.block_until_ready(
            _ref_forward(x, params, stride, padding, last=last))
        assert out.shape == ref.shape, (out.shape, ref.shape)
        err = float(jnp.max(jnp.abs(out - ref)))
        assert err < 2e-3, f"last={last}: max abs err {err}"

    print("KERNEL_OK")
</pallas_src>

<mosaic_0001>
module attributes {stable_mosaic.version = 11 : i64} {
  func.func @_conv_gelu_ln_kernel(%arg0: i32, %arg1: memref<512x108xf32, #tpu.memory_space<vmem>>, %arg2: memref<108x32xf32, #tpu.memory_space<vmem>>, %arg3: memref<1x32xf32, #tpu.memory_space<vmem>>, %arg4: memref<1x32xf32, #tpu.memory_space<vmem>>, %arg5: memref<1x32xf32, #tpu.memory_space<vmem>>, %arg6: memref<512x32xf32, #tpu.memory_space<vmem>>) attributes {dimension_semantics = [#tpu.dimension_semantics<parallel>], iteration_bounds = array<i64: 2>, scalar_prefetch = 0 : i64, scratch_operands = 0 : i64, tpu.core_type = #tpu.core_type<tc>, window_params = [{transform_indices = @transform_0, window_bounds = array<i64: 512, 108>}, {pipeline_mode = #tpu.pipeline_mode<synchronous>, transform_indices = @transform_1, window_bounds = array<i64: 108, 32>}, {pipeline_mode = #tpu.pipeline_mode<synchronous>, transform_indices = @transform_2, window_bounds = array<i64: 1, 32>}, {pipeline_mode = #tpu.pipeline_mode<synchronous>, transform_indices = @transform_3, window_bounds = array<i64: 1, 32>}, {pipeline_mode = #tpu.pipeline_mode<synchronous>, transform_indices = @transform_4, window_bounds = array<i64: 1, 32>}, {transform_indices = @transform_5, window_bounds = array<i64: 512, 32>}]} {
    %c0 = arith.constant 0 : index
    %c0_0 = arith.constant 0 : index
    %0 = vector.load %arg1[%c0, %c0_0] : memref<512x108xf32, #tpu.memory_space<vmem>>, vector<512x108xf32>
    %c0_1 = arith.constant 0 : index
    %c0_2 = arith.constant 0 : index
    %1 = vector.load %arg2[%c0_1, %c0_2] : memref<108x32xf32, #tpu.memory_space<vmem>>, vector<108x32xf32>
    %cst = arith.constant dense<0.000000e+00> : vector<512x32xf32>
    %2 = tpu.matmul %0, %1, %cst {dimension_numbers = #tpu.dot_dimension_numbers<[1], [0], [0], [1], [0, 0, 1, 1], [], []>} : vector<512x108xf32>, vector<108x32xf32>, vector<512x32xf32> -> vector<512x32xf32>
    %c0_3 = arith.constant 0 : index
    %c0_4 = arith.constant 0 : index
    %3 = vector.load %arg3[%c0_3, %c0_4] : memref<1x32xf32, #tpu.memory_space<vmem>>, vector<1x32xf32>
    %4 = vector.broadcast %3 : vector<1x32xf32> to vector<512x32xf32>
    %5 = arith.addf %2, %4 : vector<512x32xf32>
    %cst_5 = arith.constant 5.000000e-01 : f32
    %6 = vector.broadcast %cst_5 : f32 to vector<512x32xf32>
    %7 = arith.mulf %6, %5 : vector<512x32xf32>
    %cst_6 = arith.constant 0.707106769 : f32
    %8 = vector.broadcast %cst_6 : f32 to vector<512x32xf32>
    %9 = arith.mulf %5, %8 : vector<512x32xf32>
    %10 = math.erf %9 : vector<512x32xf32>
    %cst_7 = arith.constant 1.000000e+00 : f32
    %11 = vector.broadcast %cst_7 : f32 to vector<512x32xf32>
    %12 = arith.addf %11, %10 : vector<512x32xf32>
    %13 = arith.mulf %7, %12 : vector<512x32xf32>
    %cst_8 = arith.constant dense<0.000000e+00> : vector<512xf32>
    %14 = vector.multi_reduction <add>, %13, %cst_8 [1] : vector<512x32xf32> to vector<512xf32>
    %15 = vector.shape_cast %14 : vector<512xf32> to vector<512x1xf32>
    %cst_9 = arith.constant 3.200000e+01 : f32
    %16 = vector.broadcast %cst_9 : f32 to vector<512x1xf32>
    %17 = arith.divf %15, %16 : vector<512x1xf32>
    %18 = vector.broadcast %17 : vector<512x1xf32> to vector<512x32xf32>
    %19 = arith.subf %13, %18 : vector<512x32xf32>
    %20 = arith.mulf %19, %19 : vector<512x32xf32>
    %cst_10 = arith.constant dense<0.000000e+00> : vector<512xf32>
    %21 = vector.multi_reduction <add>, %20, %cst_10 [1] : vector<512x32xf32> to vector<512xf32>
    %22 = vector.shape_cast %21 : vector<512xf32> to vector<512x1xf32>
    %cst_11 = arith.constant 3.200000e+01 : f32
    %23 = vector.broadcast %cst_11 : f32 to vector<512x1xf32>
    %24 = arith.divf %22, %23 : vector<512x1xf32>
    %25 = vector.broadcast %17 : vector<512x1xf32> to vector<512x32xf32>
    %26 = arith.subf %13, %25 : vector<512x32xf32>
    %cst_12 = arith.constant 9.99999974E-6 : f32
    %27 = vector.broadcast %cst_12 : f32 to vector<512x1xf32>
    %28 = arith.addf %24, %27 : vector<512x1xf32>
    %29 = math.rsqrt %28 : vector<512x1xf32>
    %30 = vector.broadcast %29 : vector<512x1xf32> to vector<512x32xf32>
    %31 = arith.mulf %26, %30 : vector<512x32xf32>
    %c0_13 = arith.constant 0 : index
    %c0_14 = arith.constant 0 : index
    %32 = vector.load %arg4[%c0_13, %c0_14] : memref<1x32xf32, #tpu.memory_space<vmem>>, vector<1x32xf32>
    %33 = vector.broadcast %32 : vector<1x32xf32> to vector<512x32xf32>
    %34 = arith.mulf %31, %33 : vector<512x32xf32>
    %c0_15 = arith.constant 0 : index
    %c0_16 = arith.constant 0 : index
    %35 = vector.load %arg5[%c0_15, %c0_16] : memref<1x32xf32, #tpu.memory_space<vmem>>, vector<1x32xf32>
    %36 = vector.broadcast %35 : vector<1x32xf32> to vector<512x32xf32>
    %37 = arith.addf %34, %36 : vector<512x32xf32>
    %c0_17 = arith.constant 0 : index
    %c0_18 = arith.constant 0 : index
    %38 = vector.load %arg6[%c0_17, %c0_18] : memref<512x32xf32, #tpu.memory_space<vmem>>, vector<512x32xf32>
    tpu.vector_store %arg6[%c0_17, %c0_18], %37 {strides = array<i32>} : memref<512x32xf32, #tpu.memory_space<vmem>>, vector<512x32xf32>,
    return
  }
  func.func @transform_0(%arg0: i32) -> (i32, i32) {
    %c0_i32 = arith.constant 0 : i32
    %c0_i32_0 = arith.constant 0 : i32
    return %arg0, %c0_i32 : i32, i32
  }
  func.func @transform_1(%arg0: i32) -> (i32, i32) {
    %c0_i32 = arith.constant 0 : i32
    %c0_i32_0 = arith.constant 0 : i32
    %c0_i32_1 = arith.constant 0 : i32
    return %c0_i32, %c0_i32_0 : i32, i32
  }
  func.func @transform_2(%arg0: i32) -> (i32, i32) {
    %c0_i32 = arith.constant 0 : i32
    %c0_i32_0 = arith.constant 0 : i32
    %c0_i32_1 = arith.constant 0 : i32
    return %c0_i32, %c0_i32_0 : i32, i32
  }
  func.func @transform_3(%arg0: i32) -> (i32, i32) {
    %c0_i32 = arith.constant 0 : i32
    %c0_i32_0 = arith.constant 0 : i32
    %c0_i32_1 = arith.constant 0 : i32
    return %c0_i32, %c0_i32_0 : i32, i32
  }
  func.func @transform_4(%arg0: i32) -> (i32, i32) {
    %c0_i32 = arith.constant 0 : i32
    %c0_i32_0 = arith.constant 0 : i32
    %c0_i32_1 = arith.constant 0 : i32
    return %c0_i32, %c0_i32_0 : i32, i32
  }
  func.func @transform_5(%arg0: i32) -> (i32, i32) {
    %c0_i32 = arith.constant 0 : i32
    %c0_i32_0 = arith.constant 0 : i32
    return %arg0, %c0_i32 : i32, i32
  }
}

module attributes {stable_mosaic.version = 11 : i64} {
  func.func @_conv_gelu_ln_kernel(%arg0: i32, %arg1: memref<512x864xf32, #tpu.memory_space<vmem>>, %arg2: memref<864x32xf32, #tpu.memory_space<vmem>>, %arg3: memref<1x32xf32, #tpu.memory_space<vmem>>, %arg4: memref<1x32xf32, #tpu.memory_space<vmem>>, %arg5: memref<1x32xf32, #tpu.memory_space<vmem>>, %arg6: memref<512x32xf32, #tpu.memory_space<vmem>>) attributes {dimension_semantics = [#tpu.dimension_semantics<parallel>], iteration_bounds = array<i64: 2>, scalar_prefetch = 0 : i64, scratch_operands = 0 : i64, tpu.core_type = #tpu.core_type<tc>, window_params = [{transform_indices = @transform_0, window_bounds = array<i64: 512, 864>}, {pipeline_mode = #tpu.pipeline_mode<synchronous>, transform_indices = @transform_1, window_bounds = array<i64: 864, 32>}, {pipeline_mode = #tpu.pipeline_mode<synchronous>, transform_indices = @transform_2, window_bounds = array<i64: 1, 32>}, {pipeline_mode = #tpu.pipeline_mode<synchronous>, transform_indices = @transform_3, window_bounds = array<i64: 1, 32>}, {pipeline_mode = #tpu.pipeline_mode<synchronous>, transform_indices = @transform_4, window_bounds = array<i64: 1, 32>}, {transform_indices = @transform_5, window_bounds = array<i64: 512, 32>}]} {
    %c0 = arith.constant 0 : index
    %c0_0 = arith.constant 0 : index
    %0 = vector.load %arg1[%c0, %c0_0] : memref<512x864xf32, #tpu.memory_space<vmem>>, vector<512x864xf32>
    %c0_1 = arith.constant 0 : index
    %c0_2 = arith.constant 0 : index
    %1 = vector.load %arg2[%c0_1, %c0_2] : memref<864x32xf32, #tpu.memory_space<vmem>>, vector<864x32xf32>
    %cst = arith.constant dense<0.000000e+00> : vector<512x32xf32>
    %2 = tpu.matmul %0, %1, %cst {dimension_numbers = #tpu.dot_dimension_numbers<[1], [0], [0], [1], [0, 0, 1, 1], [], []>} : vector<512x864xf32>, vector<864x32xf32>, vector<512x32xf32> -> vector<512x32xf32>
    %c0_3 = arith.constant 0 : index
    %c0_4 = arith.constant 0 : index
    %3 = vector.load %arg3[%c0_3, %c0_4] : memref<1x32xf32, #tpu.memory_space<vmem>>, vector<1x32xf32>
    %4 = vector.broadcast %3 : vector<1x32xf32> to vector<512x32xf32>
    %5 = arith.addf %2, %4 : vector<512x32xf32>
    %cst_5 = arith.constant 5.000000e-01 : f32
    %6 = vector.broadcast %cst_5 : f32 to vector<512x32xf32>
    %7 = arith.mulf %6, %5 : vector<512x32xf32>
    %cst_6 = arith.constant 0.707106769 : f32
    %8 = vector.broadcast %cst_6 : f32 to vector<512x32xf32>
    %9 = arith.mulf %5, %8 : vector<512x32xf32>
    %10 = math.erf %9 : vector<512x32xf32>
    %cst_7 = arith.constant 1.000000e+00 : f32
    %11 = vector.broadcast %cst_7 : f32 to vector<512x32xf32>
    %12 = arith.addf %11, %10 : vector<512x32xf32>
    %13 = arith.mulf %7, %12 : vector<512x32xf32>
    %cst_8 = arith.constant dense<0.000000e+00> : vector<512xf32>
    %14 = vector.multi_reduction <add>, %13, %cst_8 [1] : vector<512x32xf32> to vector<512xf32>
    %15 = vector.shape_cast %14 : vector<512xf32> to vector<512x1xf32>
    %cst_9 = arith.constant 3.200000e+01 : f32
    %16 = vector.broadcast %cst_9 : f32 to vector<512x1xf32>
    %17 = arith.divf %15, %16 : vector<512x1xf32>
    %18 = vector.broadcast %17 : vector<512x1xf32> to vector<512x32xf32>
    %19 = arith.subf %13, %18 : vector<512x32xf32>
    %20 = arith.mulf %19, %19 : vector<512x32xf32>
    %cst_10 = arith.constant dense<0.000000e+00> : vector<512xf32>
    %21 = vector.multi_reduction <add>, %20, %cst_10 [1] : vector<512x32xf32> to vector<512xf32>
    %22 = vector.shape_cast %21 : vector<512xf32> to vector<512x1xf32>
    %cst_11 = arith.constant 3.200000e+01 : f32
    %23 = vector.broadcast %cst_11 : f32 to vector<512x1xf32>
    %24 = arith.divf %22, %23 : vector<512x1xf32>
    %25 = vector.broadcast %17 : vector<512x1xf32> to vector<512x32xf32>
    %26 = arith.subf %13, %25 : vector<512x32xf32>
    %cst_12 = arith.constant 9.99999974E-6 : f32
    %27 = vector.broadcast %cst_12 : f32 to vector<512x1xf32>
    %28 = arith.addf %24, %27 : vector<512x1xf32>
    %29 = math.rsqrt %28 : vector<512x1xf32>
    %30 = vector.broadcast %29 : vector<512x1xf32> to vector<512x32xf32>
    %31 = arith.mulf %26, %30 : vector<512x32xf32>
    %c0_13 = arith.constant 0 : index
    %c0_14 = arith.constant 0 : index
    %32 = vector.load %arg4[%c0_13, %c0_14] : memref<1x32xf32, #tpu.memory_space<vmem>>, vector<1x32xf32>
    %33 = vector.broadcast %32 : vector<1x32xf32> to vector<512x32xf32>
    %34 = arith.mulf %31, %33 : vector<512x32xf32>
    %c0_15 = arith.constant 0 : index
    %c0_16 = arith.constant 0 : index
    %35 = vector.load %arg5[%c0_15, %c0_16] : memref<1x32xf32, #tpu.memory_space<vmem>>, vector<1x32xf32>
    %36 = vector.broadcast %35 : vector<1x32xf32> to vector<512x32xf32>
    %37 = arith.addf %34, %36 : vector<512x32xf32>
    %c0_17 = arith.constant 0 : index
    %c0_18 = arith.constant 0 : index
    %38 = vector.load %arg6[%c0_17, %c0_18] : memref<512x32xf32, #tpu.memory_space<vmem>>, vector<512x32xf32>
    tpu.vector_store %arg6[%c0_17, %c0_18], %37 {strides = array<i32>} : memref<512x32xf32, #tpu.memory_space<vmem>>, vector<512x32xf32>,
    return
  }
  func.func @transform_0(%arg0: i32) -> (i32, i32) {
    %c0_i32 = arith.constant 0 : i32
    %c0_i32_0 = arith.constant 0 : i32
    return %arg0, %c0_i32 : i32, i32
  }
  func.func @transform_1(%arg0: i32) -> (i32, i32) {
    %c0_i32 = arith.constant 0 : i32
    %c0_i32_0 = arith.constant 0 : i32
    %c0_i32_1 = arith.constant 0 : i32
    return %c0_i32, %c0_i32_0 : i32, i32
  }
  func.func @transform_2(%arg0: i32) -> (i32, i32) {
    %c0_i32 = arith.constant 0 : i32
    %c0_i32_0 = arith.constant 0 : i32
    %c0_i32_1 = arith.constant 0 : i32
    return %c0_i32, %c0_i32_0 : i32, i32
  }
  func.func @transform_3(%arg0: i32) -> (i32, i32) {
    %c0_i32 = arith.constant 0 : i32
    %c0_i32_0 = arith.constant 0 : i32
    %c0_i32_1 = arith.constant 0 : i32
    return %c0_i32, %c0_i32_0 : i32, i32
  }
  func.func @transform_4(%arg0: i32) -> (i32, i32) {
    %c0_i32 = arith.constant 0 : i32
    %c0_i32_0 = arith.constant 0 : i32
    %c0_i32_1 = arith.constant 0 : i32
    return %c0_i32, %c0_i32_0 : i32, i32
  }
  func.func @transform_5(%arg0: i32) -> (i32, i32) {
    %c0_i32 = arith.constant 0 : i32
    %c0_i32_0 = arith.constant 0 : i32
    return %arg0, %c0_i32 : i32, i32
  }
}

</mosaic_0001>

<bundles_post_ra>
// kernel: project_forward.2
= control target key start
LH: loop header
LB: loop body
LE: loop exit
PB: predicated region body
PF: predicated region fallthrough
CT: control target
= control target key end

     0   :  { %s2925_s18 = smov 0   ;;  %s4401_s0 = inlined_call_operand.vmem [shape: f32[1024,108], index: 0, kind: input, shape index: {}]   ;;  %s4402_s1 = inlined_call_operand.vmem [shape: f32[108,32], index: 1, kind: input, shape index: {}]   ;;  %s4403_s2 = inlined_call_operand.vmem [shape: f32[1,32], index: 2, kind: input, shape index: {}]   ;;  %s4404_s3 = inlined_call_operand.vmem [shape: f32[1,32], index: 3, kind: input, shape index: {}]   ;;  %s4405_s4 = inlined_call_operand.vmem [shape: f32[1,32], index: 4, kind: input, shape index: {}]   ;;  %s4406_s5 = inlined_call_operand.vmem [shape: f32[1024,32], index: 5, kind: output, shape index: {}]  }
   0x1 LB: > { %s2311_s19 = sadd.s32 4294967295, %s2893_s18   ;;  %p2315_p0 = scmp.ge.s32.totalorder %s2893_s18, 1  ;;  %s2893_s18 = sphi %s2925_s18, %s15_s18  }
   0x2   : > { %p188_p1 = scmp.lt.s32.totalorder %s2893_s18, 3 }
   0x4   : > { %p189_p2 = pnand %p2315_p0, %p188_p1 }
   0x6   : > { %192 = sbr.rel (%p189_p2) target bundleno = 694 (0x2b6), region = 40 }
   0xb   : > { %v305_v0 = vld [vmem:[%s4402_s1 + $0x68] sm:$0xf]  ;;  %vm506_vm0 = vcmask 1043456   ;;  %v304_v1 = vld [vmem:[%s4402_s1 + $0x60] sm:$0xff]  ;;  %v303_v2 = vld [vmem:[%s4402_s1 + $0x58] sm:$0xff]  ;;  %s2316_s7 = sshll.u32 %s2311_s19, 6 }
   0xc   : > { %2468 = vmatprep.subr.msk.mxu0 %vm506_vm0, %v305_v0  ;;  %2592 = vmatprep.subr.msk.mxu1 %vm506_vm0, %v305_v0  ;;  %v302_v3 = vld [vmem:[%s4402_s1 + $0x50] sm:$0xff]  ;;  %v301_v4 = vld [vmem:[%s4402_s1 + $0x48] sm:$0xff]  ;;  %v300_v5 = vld [vmem:[%s4402_s1 + $0x40] sm:$0xff]  ;;  %p217_p3 = scmp.lt.s32.totalorder %s2316_s7, 127  ;;  %vm313_vm1 = vcmask 883712   ;;  %vm1215_vm2 = vcmask 261120  }
   0xd   : > { %2469 = vmatpush3.msk.msra.mxu0 %vm506_vm0, %v305_v0  ;;  %2606 = vmatpush3.msk.msra.mxu1 %vm506_vm0, %v305_v0  ;;  %v299_v6 = vld [vmem:[%s4402_s1 + $0x38] sm:$0xff]  ;;  %v298_v7 = vld [vmem:[%s4402_s1 + $0x30] sm:$0xff]  ;;  %v297_v8 = vld [vmem:[%s4402_s1 + $0x28] sm:$0xff] }
   0xe   : > { %2470 = vmatprep.subr.mxu0 %v304_v1  ;;  %2593 = vmatprep.subr.mxu1 %v304_v1  ;;  %v296_v9 = vld [vmem:[%s4402_s1 + $0x20] sm:$0xff]  ;;  %s4519_s7 = smov (!%p217_p3, %s2316_s7), 127  ;;  %v295_v10 = vld [vmem:[%s4402_s1 + $0x18] sm:$0xff]  ;;  %v294_v11 = vld [vmem:[%s4402_s1 + $0x10] sm:$0xff] }
   0xf   : > { %2471 = vmatpush3.msra.mxu0 %v304_v1  ;;  %2607 = vmatpush3.msra.mxu1 %v304_v1  ;;  %s2317_s21 = sshll.u32 %s4519_s7, 3  ;;  %v293_v12 = vld [vmem:[%s4402_s1 + $0x8] sm:$0xff]  ;;  %v292_v13 = vld [vmem:[%s4402_s1] sm:$0xff] }
  0x10   : > { %2472 = vmatprep.subr.mxu0 %v303_v2  ;;  %2594 = vmatprep.subr.mxu1 %v303_v2  ;;  %s2980_s26 = scalar_lea.vmem %s4401_s0, %s2317_s21  ;;  %s4086_s15 = scalar_lea.vmem %s4406_s5, %s2317_s21 }
  0x11   : > { %2473 = vmatpush3.msra.mxu0 %v303_v2  ;;  %2608 = vmatpush3.msra.mxu1 %v303_v2  ;;  %v228_v14 = vld [vmem:[%s2980_s26] sm:$0xff]  ;;  %v229_v16 = vld [vmem:[%s2980_s26 + $0x8] sm:$0xff]  ;;  %v230_v18 = vld [vmem:[%s2980_s26 + $0x10] sm:$0xff] }
  0x12   : > { %2474 = vmatprep.subr.mxu0 %v302_v3  ;;  %2595 = vmatprep.subr.mxu1 %v302_v3  ;;  %v260_v15 = vld [vmem:[%s2980_s26 + $0x100] sm:$0xff]  ;;  %v261_v17 = vld [vmem:[%s2980_s26 + $0x108] sm:$0xff]  ;;  %v262_v19 = vld [vmem:[%s2980_s26 + $0x110] sm:$0xff] }
  0x13   : > { %2475 = vmatpush3.msra.mxu0 %v302_v3  ;;  %2609 = vmatpush3.msra.mxu1 %v302_v3  ;;  %v231_v20 = vld [vmem:[%s2980_s26 + $0x18] sm:$0xff]  ;;  %v232_v22 = vld [vmem:[%s2980_s26 + $0x20] sm:$0xff]  ;;  %v233_v24 = vld [vmem:[%s2980_s26 + $0x28] sm:$0xff] }
  0x14   : > { %2476 = vmatprep.subr.mxu0 %v301_v4  ;;  %2596 = vmatprep.subr.mxu1 %v301_v4  ;;  %v263_v21 = vld [vmem:[%s2980_s26 + $0x118] sm:$0xff]  ;;  %v264_v23 = vld [vmem:[%s2980_s26 + $0x120] sm:$0xff]  ;;  %v265_v25 = vld [vmem:[%s2980_s26 + $0x128] sm:$0xff] }
  0x15   : > { %2477 = vmatpush3.msra.mxu0 %v301_v4  ;;  %2610 = vmatpush3.msra.mxu1 %v301_v4  ;;  %v234_v26 = vld [vmem:[%s2980_s26 + $0x30] sm:$0xff]  ;;  %v235_v28 = vld [vmem:[%s2980_s26 + $0x38] sm:$0xff]  ;;  %v236_v30 = vld [vmem:[%s2980_s26 + $0x40] sm:$0xff] }
  0x16   : > { %2478 = vmatprep.subr.mxu0 %v300_v5  ;;  %2597 = vmatprep.subr.mxu1 %v300_v5  ;;  %v266_v27 = vld [vmem:[%s2980_s26 + $0x130] sm:$0xff]  ;;  %v267_v29 = vld [vmem:[%s2980_s26 + $0x138] sm:$0xff]  ;;  %v268_v31 = vld [vmem:[%s2980_s26 + $0x140] sm:$0xff] }
  0x17   : > { %2479 = vmatpush3.msra.mxu0 %v300_v5  ;;  %2611 = vmatpush3.msra.mxu1 %v300_v5  ;;  %v237_v32 = vld [vmem:[%s2980_s26 + $0x48] sm:$0xff]  ;;  %v238_v34 = vld [vmem:[%s2980_s26 + $0x50] sm:$0xff]  ;;  %v239_v36 = vld [vmem:[%s2980_s26 + $0x58] sm:$0xff] }
  0x18   : > { %2480 = vmatprep.subr.mxu0 %v299_v6  ;;  %2598 = vmatprep.subr.mxu1 %v299_v6  ;;  %v269_v33 = vld [vmem:[%s2980_s26 + $0x148] sm:$0xff]  ;;  %v270_v35 = vld [vmem:[%s2980_s26 + $0x150] sm:$0xff]  ;;  %v271_v37 = vld [vmem:[%s2980_s26 + $0x158] sm:$0xff] }
  0x19   : > { %2481 = vmatpush3.msra.mxu0 %v299_v6  ;;  %2612 = vmatpush3.msra.mxu1 %v299_v6  ;;  %v240_v38 = vld [vmem:[%s2980_s26 + $0x60] sm:$0xff]  ;;  %v241_v40 = vld [vmem:[%s2980_s26 + $0x68] sm:$0xff]  ;;  %v242_v42 = vld [vmem:[%s2980_s26 + $0x70] sm:$0xff] }
  0x1a   : > { %2482 = vmatprep.subr.mxu0 %v298_v7  ;;  %2599 = vmatprep.subr.mxu1 %v298_v7  ;;  %v272_v39 = vld [vmem:[%s2980_s26 + $0x160] sm:$0xff]  ;;  %v273_v41 = vld [vmem:[%s2980_s26 + $0x168] sm:$0xff]  ;;  %v274_v43 = vld [vmem:[%s2980_s26 + $0x170] sm:$0xff] }
  0x1b   : > { %2483 = vmatpush3.msra.mxu0 %v298_v7  ;;  %2613 = vmatpush3.msra.mxu1 %v298_v7  ;;  %v243_v44 = vld [vmem:[%s2980_s26 + $0x78] sm:$0xff]  ;;  %v244_v46 = vld [vmem:[%s2980_s26 + $0x80] sm:$0xff]  ;;  %v245_v48 = vld [vmem:[%s2980_s26 + $0x88] sm:$0xff] }
  0x1c   : > { %2484 = vmatprep.subr.mxu0 %v297_v8  ;;  %2600 = vmatprep.subr.mxu1 %v297_v8  ;;  %v275_v45 = vld [vmem:[%s2980_s26 + $0x178] sm:$0xff]  ;;  %v276_v47 = vld [vmem:[%s2980_s26 + $0x180] sm:$0xff]  ;;  %v277_v49 = vld [vmem:[%s2980_s26 + $0x188] sm:$0xff] }
  0x1d   : > { %2485 = vmatpush3.msra.mxu0 %v297_v8  ;;  %2614 = vmatpush3.msra.mxu1 %v297_v8  ;;  %v246_v50 = vld [vmem:[%s2980_s26 + $0x90] sm:$0xff]  ;;  %v247_v52 = vld [vmem:[%s2980_s26 + $0x98] sm:$0xff]  ;;  %v248_v54 = vld [vmem:[%s2980_s26 + $0xa0] sm:$0xff] }
  0x1e   : > { %2486 = vmatprep.subr.mxu0 %v296_v9  ;;  %2601 = vmatprep.subr.mxu1 %v296_v9  ;;  %v278_v51 = vld [vmem:[%s2980_s26 + $0x190] sm:$0xff]  ;;  %v279_v53 = vld [vmem:[%s2980_s26 + $0x198] sm:$0xff]  ;;  %v280_v55 = vld [vmem:[%s2980_s26 + $0x1a0] sm:$0xff] }
  0x1f   : > { %2487 = vmatpush3.msra.mxu0 %v296_v9  ;;  %2615 = vmatpush3.msra.mxu1 %v296_v9  ;;  %v249_v56 = vld [vmem:[%s2980_s26 + $0xa8] sm:$0xff]  ;;  %v250_v58 = vld [vmem:[%s2980_s26 + $0xb0] sm:$0xff]  ;;  %v251_v60 = vld [vmem:[%s2980_s26 + $0xb8] sm:$0xff] }
  0x20   : > { %2488 = vmatprep.subr.mxu0 %v295_v10  ;;  %2602 = vmatprep.subr.mxu1 %v295_v10  ;;  %v281_v57 = vld [vmem:[%s2980_s26 + $0x1a8] sm:$0xff]  ;;  %v282_v59 = vld [vmem:[%s2980_s26 + $0x1b0] sm:$0xff]  ;;  %v283_v61 = vld [vmem:[%s2980_s26 + $0x1b8] sm:$0xff] }
  0x21   : > { %2489 = vmatpush3.msra.mxu0 %v295_v10  ;;  %2616 = vmatpush3.msra.mxu1 %v295_v10  ;;  %v252_v62 = vld [vmem:[%s2980_s26 + $0xc0] sm:$0xff]  ;;  %v253_v0 = vld [vmem:[%s2980_s26 + $0xc8] sm:$0xff]  ;;  %v254_v2 = vld [vmem:[%s2980_s26 + $0xd0] sm:$0xff] }
  0x22   : > { %2490 = vmatprep.subr.mxu0 %v294_v11  ;;  %2603 = vmatprep.subr.mxu1 %v294_v11  ;;  %v284_v63 = vld [vmem:[%s2980_s26 + $0x1c0] sm:$0xff]  ;;  %v285_v1 = vld [vmem:[%s2980_s26 + $0x1c8] sm:$0xff]  ;;  %v286_v3 = vld [vmem:[%s2980_s26 + $0x1d0] sm:$0xff] }
  0x23   : > { %2491 = vmatpush3.msra.mxu0 %v294_v11  ;;  %2617 = vmatpush3.msra.mxu1 %v294_v11  ;;  %v255_v4 = vld [vmem:[%s2980_s26 + $0xd8] sm:$0xff]  ;;  %v256_v6 = vld [vmem:[%s2980_s26 + $0xe0] sm:$0xff]  ;;  %v257_v8 = vld [vmem:[%s2980_s26 + $0xe8] sm:$0xff] }
  0x24   : > { %2492 = vmatprep.subr.mxu0 %v293_v12  ;;  %2604 = vmatprep.subr.mxu1 %v293_v12  ;;  %v287_v5 = vld [vmem:[%s2980_s26 + $0x1d8] sm:$0xff]  ;;  %v288_v7 = vld [vmem:[%s2980_s26 + $0x1e0] sm:$0xff]  ;;  %v289_v9 = vld [vmem:[%s2980_s26 + $0x1e8] sm:$0xff] }
  0x25   : > { %2493 = vmatpush3.msra.mxu0 %v293_v12  ;;  %2618 = vmatpush3.msra.mxu1 %v293_v12  ;;  %v258_v10 = vld [vmem:[%s2980_s26 + $0xf0] sm:$0xff]  ;;  %v259_v12 = vld [vmem:[%s2980_s26 + $0xf8] sm:$0xff] }
  0x26   : > { %2494 = vmatprep.subr.mxu0 %v292_v13  ;;  %2605 = vmatprep.subr.mxu1 %v292_v13  ;;  %v290_v11 = vld [vmem:[%s2980_s26 + $0x1f0] sm:$0xff] }
  0x27   : > { %2495 = vmatpush3.msra.mxu0 %v292_v13  ;;  %2619 = vmatpush3.msra.mxu1 %v292_v13  ;;  %v291_v13 = vld [vmem:[%s2980_s26 + $0x1f8] sm:$0xff] }
  0x28   : > { %2496 = vmatprep.mubr.msk.f32.mxu0 %vm313_vm1, %v228_v14  ;;  %2544 = vmatprep.mubr.msk.f32.mxu1 %vm313_vm1, %v260_v15  ;;  %v3116_v14 = vld [vmem:[%s4403_s2] ss:$0 sm:$0xff] }
  0x29   : > { %2497 = vmatmul.mubr.msk.f32.vlgmr.msra.gmra.mxu0 %vm313_vm1, %v229_v16  ;;  %2545 = vmatmul.mubr.msk.f32.vlgmr.msra.gmra.mxu1 %vm313_vm1, %v261_v17 }
  0x2a   : > { %2499 = vmatprep.mubr.msk.f32.mxu0 %vm313_vm1, %v230_v18  ;;  %2547 = vmatprep.mubr.msk.f32.mxu1 %vm313_vm1, %v262_v19 }
  0x2d   : > { %2500 = vmatmul.mubr.msk.f32.gmra.mxu0 %vm313_vm1, %v231_v20  ;;  %2548 = vmatmul.mubr.msk.f32.gmra.mxu1 %vm313_vm1, %v263_v21 }
  0x2e   : > { %2502 = vmatprep.mubr.msk.f32.mxu0 %vm313_vm1, %v232_v22  ;;  %2550 = vmatprep.mubr.msk.f32.mxu1 %vm313_vm1, %v264_v23 }
  0x31   : > { %2503 = vmatmul.mubr.msk.f32.gmra.mxu0 %vm313_vm1, %v233_v24  ;;  %2551 = vmatmul.mubr.msk.f32.gmra.mxu1 %vm313_vm1, %v265_v25 }
  0x32   : > { %2505 = vmatprep.mubr.msk.f32.mxu0 %vm313_vm1, %v234_v26  ;;  %2553 = vmatprep.mubr.msk.f32.mxu1 %vm313_vm1, %v266_v27 }
  0x35   : > { %2506 = vmatmul.mubr.msk.f32.gmra.mxu0 %vm313_vm1, %v235_v28  ;;  %2554 = vmatmul.mubr.msk.f32.gmra.mxu1 %vm313_vm1, %v267_v29 }
  0x36   : > { %2508 = vmatprep.mubr.msk.f32.mxu0 %vm313_vm1, %v236_v30  ;;  %2556 = vmatprep.mubr.msk.f32.mxu1 %vm313_vm1, %v268_v31 }
  0x39   : > { %2509 = vmatmul.mubr.msk.f32.gmra.mxu0 %vm313_vm1, %v237_v32  ;;  %2557 = vmatmul.mubr.msk.f32.gmra.mxu1 %vm313_vm1, %v269_v33 }
  0x3a   : > { %2511 = vmatprep.mubr.msk.f32.mxu0 %vm313_vm1, %v238_v34  ;;  %2559 = vmatprep.mubr.msk.f32.mxu1 %vm313_vm1, %v270_v35 }
  0x3d   : > { %2512 = vmatmul.mubr.msk.f32.gmra.mxu0 %vm313_vm1, %v239_v36  ;;  %2560 = vmatmul.mubr.msk.f32.gmra.mxu1 %vm313_vm1, %v271_v37 }
  0x3e   : > { %2514 = vmatprep.mubr.msk.f32.mxu0 %vm313_vm1, %v240_v38  ;;  %2562 = vmatprep.mubr.msk.f32.mxu1 %vm313_vm1, %v272_v39 }
  0x41   : > { %2515 = vmatmul.mubr.msk.f32.gmra.mxu0 %vm313_vm1, %v241_v40  ;;  %2563 = vmatmul.mubr.msk.f32.gmra.mxu1 %vm313_vm1, %v273_v41 }
  0x42   : > { %2517 = vmatprep.mubr.msk.f32.mxu0 %vm313_vm1, %v242_v42  ;;  %2565 = vmatprep.mubr.msk.f32.mxu1 %vm313_vm1, %v274_v43 }
  0x45   : > { %2518 = vmatmul.mubr.msk.f32.gmra.mxu0 %vm313_vm1, %v243_v44  ;;  %2566 = vmatmul.mubr.msk.f32.gmra.mxu1 %vm313_vm1, %v275_v45 }
  0x46   : > { %2520 = vmatprep.mubr.msk.f32.mxu0 %vm313_vm1, %v244_v46  ;;  %2568 = vmatprep.mubr.msk.f32.mxu1 %vm313_vm1, %v276_v47 }
  0x49   : > { %2521 = vmatmul.mubr.msk.f32.gmra.mxu0 %vm313_vm1, %v245_v48  ;;  %2569 = vmatmul.mubr.msk.f32.gmra.mxu1 %vm313_vm1, %v277_v49 }
  0x4a   : > { %2523 = vmatprep.mubr.msk.f32.mxu0 %vm313_vm1, %v246_v50  ;;  %2571 = vmatprep.mubr.msk.f32.mxu1 %vm313_vm1, %v278_v51 }
  0x4d   : > { %2524 = vmatmul.mubr.msk.f32.gmra.mxu0 %vm313_vm1, %v247_v52  ;;  %2572 = vmatmul.mubr.msk.f32.gmra.mxu1 %vm313_vm1, %v279_v53 }
  0x4e   : > { %2526 = vmatprep.mubr.msk.f32.mxu0 %vm313_vm1, %v248_v54  ;;  %2574 = vmatprep.mubr.msk.f32.mxu1 %vm313_vm1, %v280_v55 }
  0x51   : > { %2527 = vmatmul.mubr.msk.f32.gmra.mxu0 %vm313_vm1, %v249_v56  ;;  %2575 = vmatmul.mubr.msk.f32.gmra.mxu1 %vm313_vm1, %v281_v57 }
  0x52   : > { %2529 = vmatprep.mubr.msk.f32.mxu0 %vm313_vm1, %v250_v58  ;;  %2577 = vmatprep.mubr.msk.f32.mxu1 %vm313_vm1, %v282_v59 }
  0x55   : > { %2530 = vmatmul.mubr.msk.f32.gmra.mxu0 %vm313_vm1, %v251_v60  ;;  %2578 = vmatmul.mubr.msk.f32.gmra.mxu1 %vm313_vm1, %v283_v61 }
  0x56   : > { %2532 = vmatprep.mubr.msk.f32.mxu0 %vm313_vm1, %v252_v62  ;;  %2580 = vmatprep.mubr.msk.f32.mxu1 %vm313_vm1, %v284_v63 }
  0x59   : > { %2533 = vmatmul.mubr.msk.f32.gmra.mxu0 %vm313_vm1, %v253_v0  ;;  %2581 = vmatmul.mubr.msk.f32.gmra.mxu1 %vm313_vm1, %v285_v1 }
  0x5a   : > { %2535 = vmatprep.mubr.msk.f32.mxu0 %vm313_vm1, %v254_v2  ;;  %2583 = vmatprep.mubr.msk.f32.mxu1 %vm313_vm1, %v286_v3 }
  0x5d   : > { %2536 = vmatmul.mubr.msk.f32.gmra.mxu0 %vm313_vm1, %v255_v4  ;;  %2584 = vmatmul.mubr.msk.f32.gmra.mxu1 %vm313_vm1, %v287_v5 }
  0x5e   : > { %2538 = vmatprep.mubr.msk.f32.mxu0 %vm313_vm1, %v256_v6  ;;  %2586 = vmatprep.mubr.msk.f32.mxu1 %vm313_vm1, %v288_v7 }
  0x61   : > { %2539 = vmatmul.mubr.msk.f32.gmra.mxu0 %vm313_vm1, %v257_v8  ;;  %2587 = vmatmul.mubr.msk.f32.gmra.mxu1 %vm313_vm1, %v289_v9 }
  0x62   : > { %2541 = vmatprep.mubr.msk.f32.mxu0 %vm313_vm1, %v258_v10  ;;  %2589 = vmatprep.mubr.msk.f32.mxu1 %vm313_vm1, %v290_v11 }
  0x65   : > { %2542 = vmatmul.mubr.msk.f32.gmra.mxu0 %vm313_vm1, %v259_v12  ;;  %2590 = vmatmul.mubr.msk.f32.gmra.mxu1 %vm313_vm1, %v291_v13 }
  0xe9   : > { %v2498_v15 = vpop.f32.mrf.mxu0  ;;  %v2546_v16 = vpop.f32.mrf.mxu1 }
  0xea   : > { %v582_v17 = vadd.f32 %v2498_v15, %v3116_v14  ;;  %v742_v18 = vadd.f32 %v2546_v16, %v3116_v14 }
  0xeb   : > { %v576_v19 = vpop.f32.mrf.mxu0  ;;  %v736_v20 = vpop.f32.mrf.mxu1 }
  0xec   : > { %v960_v21 = vmul.f32 0.70710677, %v582_v17  ;;  %v992_v22 = vmul.f32 0.70710677, %v742_v18  ;;  %v3121_v23 = vadd.f32 %v3116_v14, %v576_v19  ;;  %v3130_v28 = vadd.f32 %v3116_v14, %v736_v20 }
  0xed   : > { %v2501_v24 = vpop.f32.mrf.mxu0  ;;  %v2549_v25 = vpop.f32.mrf.mxu1  ;;  %v896_v59 = vmul.f32 0.5, %v582_v17  ;;  %v928_v60 = vmul.f32 0.5, %v742_v18 }
  0xee   : > { %v3124_v26 = vadd.f32 %v2501_v24, %v3116_v14  ;;  %v3127_v27 = vadd.f32 %v2549_v25, %v3116_v14  ;;  %2628 = verf.f32 %v992_v22  ;;  %v959_v32 = vmul.f32 0.70710677, %v3121_v23 }
  0xef   : > { %v586_v29 = vpop.f32.mrf.mxu0  ;;  %v746_v30 = vpop.f32.mrf.mxu1  ;;  %2630 = verf.f32 %v960_v21  ;;  %v991_v37 = vmul.f32 0.70710677, %v3130_v28  ;;  %v895_v12 = vmul.f32 0.5, %v3121_v23  ;;  %v927_v18 = vmul.f32 0.5, %v3130_v28 }
  0xf0   : > { %v962_v31 = vmul.f32 0.70710677, %v3124_v26  ;;  %v994_v34 = vmul.f32 0.70710677, %v3127_v27  ;;  %v3136_v35 = vadd.f32 %v3116_v14, %v586_v29  ;;  %v3140_v39 = vadd.f32 %v3116_v14, %v746_v30 }
  0xf1   : > { %v2504_v33 = vpop.f32.mrf.mxu0  ;;  %v2552_v36 = vpop.f32.mrf.mxu1  ;;  %v898_v13 = vmul.f32 0.5, %v3124_v26  ;;  %v930_v26 = vmul.f32 0.5, %v3127_v27 }
  0xf2   : > { %2632 = verf.f32 %v962_v31  ;;  %v3143_v40 = vadd.f32 %v2504_v33, %v3116_v14  ;;  %v961_v41 = vmul.f32 0.70710677, %v3136_v35  ;;  %v993_v45 = vmul.f32 0.70710677, %v3140_v39 }
  0xf3   : > { %v596_v38 = vpop.f32.mrf.mxu0  ;;  %2634 = verf.f32 %v959_v32  ;;  %v756_v43 = vpop.f32.mrf.mxu1  ;;  %v3151_v46 = vadd.f32 %v2552_v36, %v3116_v14 }
  0xf4   : > { %2636 = verf.f32 %v994_v34  ;;  %v3147_v42 = vadd.f32 %v3116_v14, %v596_v38  ;;  %v964_v47 = vmul.f32 0.70710677, %v3143_v40  ;;  %v3155_v48 = vadd.f32 %v3116_v14, %v756_v43 }
  0xf5   : > { %v2507_v44 = vpop.f32.mrf.mxu0  ;;  %2638 = verf.f32 %v991_v37  ;;  %v2555_v51 = vpop.f32.mrf.mxu1  ;;  %v996_v53 = vmul.f32 0.70710677, %v3151_v46 }
  0xf6   : > { %2640 = verf.f32 %v961_v41  ;;  %v963_v49 = vmul.f32 0.70710677, %v3147_v42  ;;  %v3160_v54 = vadd.f32 %v2507_v44, %v3116_v14  ;;  %v995_v56 = vmul.f32 0.70710677, %v3155_v48 }
  0xf7   : > { %v606_v50 = vpop.f32.mrf.mxu0  ;;  %2642 = verf.f32 %v993_v45  ;;  %v766_v61 = vpop.f32.mrf.mxu1  ;;  %v3168_v1 = vadd.f32 %v2555_v51, %v3116_v14  ;;  %v929_v51 = vmul.f32 0.5, %v3140_v39 }
  0xf8   : > { %2644 = verf.f32 %v964_v47  ;;  %v3164_v57 = vadd.f32 %v3116_v14, %v606_v50  ;;  %v966_v0 = vmul.f32 0.70710677, %v3160_v54  ;;  %v3174_v7 = vadd.f32 %v3116_v14, %v766_v61 }
  0xf9   : > { %2646 = verf.f32 %v963_v49  ;;  %v2510_v58 = vpop.f32.mrf.mxu0  ;;  %v2558_v4 = vpop.f32.mrf.mxu1  ;;  %v998_v19 = vmul.f32 0.70710677, %v3168_v1  ;;  %v897_v50 = vmul.f32 0.5, %v3136_v35 }
  0xfa   : > { %2648 = verf.f32 %v996_v53  ;;  %v965_v3 = vmul.f32 0.70710677, %v3164_v57  ;;  %v3181_v15 = vadd.f32 %v2510_v58, %v3116_v14  ;;  %v997_v28 = vmul.f32 0.70710677, %v3174_v7 }
  0xfb   : > { %v2629_v52 = vpop.eup %2628  ;;  %2650 = verf.f32 %v995_v56  ;;  %v616_v8 = vpop.f32.mrf.mxu0  ;;  %v3197_v29 = vadd.f32 %v2558_v4, %v3116_v14 }
  0xfc   : > { %v2631_v55 = vpop.eup %2630  ;;  %v1120_v62 = vadd.f32 1.0, %v2629_v52  ;;  %2652 = verf.f32 %v966_v0  ;;  %v3190_v21 = vadd.f32 %v3116_v14, %v616_v8  ;;  %v776_v22 = vpop.f32.mrf.mxu1  ;;  %v968_v32 = vmul.f32 0.70710677, %v3181_v15 }
  0xfd   : > { %v1088_v2 = vadd.f32 1.0, %v2631_v55  ;;  %2654 = verf.f32 %v965_v3  ;;  %v2513_v23 = vpop.f32.mrf.mxu0  ;;  %v3205_v37 = vadd.f32 %v3116_v14, %v776_v22  ;;  %v1000_v55 = vmul.f32 0.70710677, %v3197_v29 }
  0xfe   : > { %v3171_v5 = vmul.f32 %v1120_v62, %v928_v60  ;;  %2656 = verf.f32 %v998_v19  ;;  %v967_v41 = vmul.f32 0.70710677, %v3190_v21  ;;  %v2561_v44 = vpop.f32.mrf.mxu1  ;;  %v3218_v56 = vadd.f32 %v2513_v23, %v3116_v14 }
  0xff   : > { %v2633_v63 = vpop.eup %2632  ;;  %v3176_v9 = vmul.f32 %v1088_v2, %v896_v59  ;;  %v626_v43 = vpop.f32.mrf.mxu0  ;;  %2658 = verf.f32 %v997_v28  ;;  %v999_v59 = vmul.f32 0.70710677, %v3205_v37  ;;  %v900_v62 = vmul.f32 0.5, %v3143_v40 }
 0x100   : > { %v2635_v6 = vpop.eup %2634  ;;  %v1090_v10 = vadd.f32 1.0, %v2633_v63  ;;  %v1315_v16 = vsel %vm1215_vm2, %v3171_v5, 0.0  ;;  %2660 = verf.f32 %v968_v32  ;;  %v3224_v60 = vadd.f32 %v3116_v14, %v626_v43  ;;  %v786_v63 = vpop.f32.mrf.mxu1 }
 0x101   : > { %v2637_v11 = vpop.eup %2636  ;;  %1316 = vadd.xlane.f32.xlu1 %v1315_v16  ;;  %v1219_v20 = vsel %vm1215_vm2, %v3176_v9, 0.0  ;;  %v1087_v25 = vadd.f32 1.0, %v2635_v6  ;;  %2662 = verf.f32 %v967_v41  ;;  %v2516_v0 = vpop.f32.mrf.mxu0  ;;  %v932_v6 = vmul.f32 0.5, %v3151_v46 }
 0x102   : > { %v2639_v17 = vpop.eup %2638  ;;  %1220 = vadd.xlane.f32.xlu0 %v1219_v20  ;;  %v3192_v24 = vmul.f32 %v1090_v10, %v898_v13  ;;  %v1122_v30 = vadd.f32 1.0, %v2637_v11  ;;  %v899_v8 = vmul.f32 0.5, %v3147_v42  ;;  %2664 = verf.f32 %v1000_v55 }
 0x103   : > { %v2641_v31 = vpop.eup %2640  ;;  %v3202_v34 = vmul.f32 %v1087_v25, %v895_v12  ;;  %v1119_v36 = vadd.f32 1.0, %v2639_v17  ;;  %v970_v12 = vmul.f32 0.70710677, %v3218_v56  ;;  %v3237_v40 = vadd.f32 %v2561_v44, %v3116_v14 }
 0x104   : > { %v1225_v33 = vsel %vm1215_vm2, %v3192_v24, 0.0  ;;  %v3207_v27 = vmul.f32 %v1122_v30, %v930_v26  ;;  %v2643_v38 = vpop.eup %2642  ;;  %v1089_v52 = vadd.f32 1.0, %v2641_v31  ;;  %2666 = verf.f32 %v999_v59  ;;  %v2564_v30 = vpop.f32.mrf.mxu1 }
 0x105   : > { %1226 = vadd.xlane.f32.xlu1 %v1225_v33  ;;  %v1216_v45 = vsel %vm1215_vm2, %v3202_v34, 0.0  ;;  %v3212_v47 = vmul.f32 %v1119_v36, %v927_v18  ;;  %v2645_v49 = vpop.eup %2644  ;;  %v1121_v39 = vadd.f32 1.0, %v2643_v38  ;;  %v969_v16 = vmul.f32 0.70710677, %v3224_v60  ;;  %v636_v18 = vpop.f32.mrf.mxu0 }
 0x106   : > { %1217 = vadd.xlane.f32.xlu0 %v1216_v45  ;;  %v2647_v53 = vpop.eup %2646  ;;  %v1321_v58 = vsel %vm1215_vm2, %v3207_v27, 0.0  ;;  %v3226_v35 = vmul.f32 %v1089_v52, %v897_v50  ;;  %v1092_v3 = vadd.f32 1.0, %v2645_v49  ;;  %v3243_v46 = vadd.f32 %v3116_v14, %v786_v63 }
 0x107   : > { %v2649_v61 = vpop.eup %2648  ;;  %v1312_v2 = vsel %vm1215_vm2, %v3212_v47, 0.0  ;;  %v3233_v10 = vmul.f32 %v1121_v39, %v929_v51  ;;  %v1091_v11 = vadd.f32 1.0, %v2647_v53  ;;  %v931_v26 = vmul.f32 0.5, %v3155_v48  ;;  %v2519_v43 = vpop.f32.mrf.mxu0 }
 0x108   : > { %v2651_v4 = vpop.eup %2650  ;;  %v1222_v13 = vsel %vm1215_vm2, %v3226_v35, 0.0  ;;  %v3245_v42 = vmul.f32 %v1092_v3, %v900_v62  ;;  %v1124_v22 = vadd.f32 1.0, %v2649_v61  ;;  %v3253_v28 = vadd.f32 %v2516_v0, %v3116_v14  ;;  %v796_v53 = vpop.f32.mrf.mxu1 }
 0x109   : > { %1322 = vadd.xlane.f32.xlu1 %v1321_v58  ;;  %v2653_v17 = vpop.eup %2652  ;;  %v1318_v19 = vsel %vm1215_vm2, %v3233_v10, 0.0  ;;  %v3249_v20 = vmul.f32 %v1091_v11, %v899_v8  ;;  %v1123_v23 = vadd.f32 1.0, %v2651_v4  ;;  %2668 = verf.f32 %v970_v12  ;;  %v646_v63 = vpop.f32.mrf.mxu0 }
 0x10a   : > { %1313 = vadd.xlane.f32.xlu0 %v1312_v2  ;;  %v2655_v25 = vpop.eup %2654  ;;  %v1002_v31 = vmul.f32 0.70710677, %v3237_v40  ;;  %v1231_v32 = vsel %vm1215_vm2, %v3245_v42, 0.0  ;;  %v3258_v33 = vmul.f32 %v1124_v22, %v932_v6  ;;  %v902_v36 = vmul.f32 0.5, %v3160_v54  ;;  %v2567_v0 = vpop.f32.mrf.mxu1 }
 0x10b   : > { %v1001_v38 = vmul.f32 0.70710677, %v3243_v46  ;;  %v3263_v41 = vadd.f32 %v3116_v14, %v636_v18  ;;  %v1094_v48 = vadd.f32 1.0, %v2653_v17  ;;  %2670 = verf.f32 %v969_v16  ;;  %v2657_v50 = vpop.eup %2656 }
 0x10c   : > { %v1228_v44 = vsel %vm1215_vm2, %v3249_v20, 0.0  ;;  %v3267_v45 = vmul.f32 %v1123_v23, %v931_v26  ;;  %v1093_v49 = vadd.f32 1.0, %v2655_v25  ;;  %v934_v51 = vmul.f32 0.5, %v3168_v1  ;;  %v2659_v55 = vpop.eup %2658  ;;  %v806_v25 = vpop.f32.mrf.mxu1 }
 0x10d   : > { %1223 = vadd.xlane.f32.xlu1 %v1222_v13  ;;  %v901_v54 = vmul.f32 0.5, %v3164_v57  ;;  %v972_v52 = vmul.f32 0.70710677, %v3253_v28  ;;  %2672 = verf.f32 %v1002_v31  ;;  %v3273_v58 = vadd.f32 %v2564_v30, %v3116_v14  ;;  %v2661_v61 = vpop.eup %2660 }
 0x10e   : > { %1319 = vadd.xlane.f32.xlu0 %v1318_v19  ;;  %v1327_v59 = vsel %vm1215_vm2, %v3258_v33, 0.0  ;;  %v3277_v39 = vmul.f32 %v1094_v48, %v902_v36  ;;  %v933_v62 = vmul.f32 0.5, %v3174_v7  ;;  %2674 = verf.f32 %v1001_v38  ;;  %v2663_v6 = vpop.eup %2662 }
 0x10f   : > { %v971_v57 = vmul.f32 0.70710677, %v3263_v41  ;;  %v3282_v1 = vadd.f32 %v3116_v14, %v796_v53  ;;  %v1324_v2 = vsel %vm1215_vm2, %v3267_v45, 0.0  ;;  %v3286_v3 = vmul.f32 %v1093_v49, %v901_v54  ;;  %v2665_v18 = vpop.eup %2664 }
 0x110   : > { %v1126_v4 = vadd.f32 1.0, %v2657_v50  ;;  %v904_v8 = vmul.f32 0.5, %v3181_v15  ;;  %2676 = verf.f32 %v972_v52  ;;  %v3290_v7 = vadd.f32 %v2519_v43, %v3116_v14  ;;  %v2570_v52 = vpop.f32.mrf.mxu1 }
 0x111   : > { %1232 = vadd.xlane.f32.xlu1 %v1231_v32  ;;  %v1125_v11 = vadd.f32 1.0, %v2659_v55  ;;  %v1004_v12 = vmul.f32 0.70710677, %v3273_v58  ;;  %v1237_v13 = vsel %vm1215_vm2, %v3277_v39, 0.0  ;;  %v1096_v17 = vadd.f32 1.0, %v2661_v61  ;;  %v2667_v22 = vpop.eup %2666 }
 0x112   : > { %1229 = vadd.xlane.f32.xlu0 %v1228_v44  ;;  %v3295_v16 = vmul.f32 %v1126_v4, %v934_v51  ;;  %v903_v19 = vmul.f32 0.5, %v3190_v21  ;;  %2678 = verf.f32 %v971_v57  ;;  %v3299_v15 = vadd.f32 %v3116_v14, %v646_v63  ;;  %v2522_v21 = vpop.f32.mrf.mxu0 }
 0x113   : > { %v1003_v23 = vmul.f32 0.70710677, %v3282_v1  ;;  %v1234_v26 = vsel %vm1215_vm2, %v3286_v3, 0.0  ;;  %v3304_v30 = vmul.f32 %v1125_v11, %v933_v62  ;;  %v1095_v31 = vadd.f32 1.0, %v2663_v6 }
 0x114   : > { %v974_v32 = vmul.f32 0.70710677, %v3290_v7  ;;  %v3308_v36 = vadd.f32 %v2567_v0, %v3116_v14  ;;  %v936_v38 = vmul.f32 0.5, %v3197_v29  ;;  %2680 = verf.f32 %v1004_v12  ;;  %v656_v62 = vpop.f32.mrf.mxu0  ;;  %v816_v12 = vpop.f32.mrf.mxu1 }
 0x115   : > { %1328 = vadd.xlane.f32.xlu1 %v1327_v59  ;;  %v1333_v48 = vsel %vm1215_vm2, %v3295_v16, 0.0  ;;  %v3313_v43 = vmul.f32 %v1096_v17, %v904_v8  ;;  %v935_v49 = vmul.f32 0.5, %v3205_v37  ;;  %v973_v50 = vmul.f32 0.70710677, %v3299_v15 }
 0x116   : > { %1325 = vadd.xlane.f32.xlu0 %v1324_v2  ;;  %v2669_v44 = vpop.eup %2668  ;;  %v3318_v51 = vadd.f32 %v3116_v14, %v806_v25  ;;  %v1128_v54 = vadd.f32 1.0, %v2665_v18  ;;  %2682 = verf.f32 %v1003_v23  ;;  %v1330_v29 = vsel %vm1215_vm2, %v3304_v30, 0.0 }
 0x117   : > { %v3322_v53 = vmul.f32 %v1095_v31, %v903_v19  ;;  %v1127_v55 = vadd.f32 1.0, %v2667_v22  ;;  %v906_v61 = vmul.f32 0.5, %v3218_v56  ;;  %2684 = verf.f32 %v974_v32 }
 0x118   : > { %v2671_v59 = vpop.eup %2670  ;;  %v1006_v37 = vmul.f32 0.70710677, %v3308_v36  ;;  %v3327_v57 = vadd.f32 %v2522_v21, %v3116_v14  ;;  %v1243_v63 = vsel %vm1215_vm2, %v3313_v43, 0.0  ;;  %v3331_v0 = vmul.f32 %v1128_v54, %v936_v38 }
 0x119   : > { %1238 = vadd.xlane.f32.xlu1 %v1237_v13  ;;  %v1098_v2 = vadd.f32 1.0, %v2669_v44  ;;  %v905_v6 = vmul.f32 0.5, %v3224_v60  ;;  %2686 = verf.f32 %v973_v50  ;;  %v1005_v56 = vmul.f32 0.70710677, %v3318_v51  ;;  %v2525_v13 = vpop.f32.mrf.mxu0 }
 0x11a   : > { %1235 = vadd.xlane.f32.xlu0 %v1234_v26  ;;  %v2673_v4 = vpop.eup %2672  ;;  %v3336_v11 = vadd.f32 %v3116_v14, %v656_v62  ;;  %v1240_v17 = vsel %vm1215_vm2, %v3322_v53, 0.0  ;;  %v3340_v18 = vmul.f32 %v1127_v55, %v935_v49  ;;  %v1097_v19 = vadd.f32 1.0, %v2671_v59  ;;  %v2573_v55 = vpop.f32.mrf.mxu1 }
 0x11b   : > { %v2675_v8 = vpop.eup %2674  ;;  %v938_v22 = vmul.f32 0.5, %v3237_v40  ;;  %2688 = verf.f32 %v1006_v37  ;;  %v3344_v60 = vadd.f32 %v2570_v52, %v3116_v14  ;;  %v976_v25 = vmul.f32 0.70710677, %v3327_v57  ;;  %v666_v44 = vpop.f32.mrf.mxu0 }
 0x11c   : > { %v1339_v26 = vsel %vm1215_vm2, %v3331_v0, 0.0  ;;  %v3349_v31 = vmul.f32 %v1098_v2, %v906_v61  ;;  %v1130_v32 = vadd.f32 1.0, %v2673_v4  ;;  %v937_v21 = vmul.f32 0.5, %v3243_v46 }
 0x11d   : > { %1334 = vadd.xlane.f32.xlu1 %v1333_v48  ;;  %v2677_v23 = vpop.eup %2676  ;;  %2690 = verf.f32 %v1005_v56  ;;  %v3353_v38 = vadd.f32 %v3116_v14, %v816_v12  ;;  %v975_v48 = vmul.f32 0.70710677, %v3336_v11  ;;  %v1336_v49 = vsel %vm1215_vm2, %v3340_v18, 0.0  ;;  %v2528_v4 = vpop.f32.mrf.mxu0 }
 0x11e   : > { %1331 = vadd.xlane.f32.xlu0 %v1330_v29  ;;  %v3358_v50 = vmul.f32 %v1097_v19, %v905_v6  ;;  %v1129_v54 = vadd.f32 1.0, %v2675_v8  ;;  %v908_v52 = vmul.f32 0.5, %v3253_v28  ;;  %v1008_v29 = vmul.f32 0.70710677, %v3344_v60 }
 0x11f   : > { %v2679_v40 = vpop.eup %2678  ;;  %v3363_v46 = vadd.f32 %v2525_v13, %v3116_v14  ;;  %2692 = verf.f32 %v976_v25  ;;  %v1249_v59 = vsel %vm1215_vm2, %v3349_v31, 0.0  ;;  %v3367_v61 = vmul.f32 %v1130_v32, %v938_v22 }
 0x120   : > { %v1100_v37 = vadd.f32 1.0, %v2677_v23  ;;  %v1007_v2 = vmul.f32 0.70710677, %v3353_v38  ;;  %v3372_v28 = vadd.f32 %v3116_v14, %v666_v44  ;;  %2694 = verf.f32 %v975_v48  ;;  %v676_v48 = vpop.f32.mrf.mxu0 }
 0x121   : > { %1244 = vadd.xlane.f32.xlu1 %v1243_v63  ;;  %v2681_v62 = vpop.eup %2680  ;;  %v907_v63 = vmul.f32 0.5, %v3263_v41  ;;  %v1246_v6 = vsel %vm1215_vm2, %v3358_v50, 0.0  ;;  %v3376_v56 = vmul.f32 %v1129_v54, %v937_v21  ;;  %v1099_v8 = vadd.f32 1.0, %v2679_v40 }
 0x122   : > { %1241 = vadd.xlane.f32.xlu0 %v1240_v17  ;;  %v940_v13 = vmul.f32 0.5, %v3273_v58  ;;  %2696 = verf.f32 %v1008_v29  ;;  %v978_v41 = vmul.f32 0.70710677, %v3363_v46  ;;  %v826_v17 = vpop.f32.mrf.mxu1  ;;  %v3381_v22 = vadd.f32 %v2573_v55, %v3116_v14 }
 0x123   : > { %v2683_v12 = vpop.eup %2682  ;;  %v1345_v23 = vsel %vm1215_vm2, %v3367_v61, 0.0  ;;  %v3385_v25 = vmul.f32 %v1100_v37, %v908_v52  ;;  %v939_v32 = vmul.f32 0.5, %v3282_v1  ;;  %2698 = verf.f32 %v1007_v2 }
 0x124   : > { %v2685_v19 = vpop.eup %2684  ;;  %v977_v58 = vmul.f32 0.70710677, %v3372_v28  ;;  %v3390_v40 = vadd.f32 %v3116_v14, %v826_v17  ;;  %v2576_v44 = vpop.f32.mrf.mxu1  ;;  %v3394_v54 = vmul.f32 %v1099_v8, %v907_v63  ;;  %v1131_v52 = vadd.f32 1.0, %v2683_v12 }
 0x125   : > { %1340 = vadd.xlane.f32.xlu1 %v1339_v26  ;;  %v1132_v26 = vadd.f32 1.0, %v2681_v62  ;;  %v910_v29 = vmul.f32 0.5, %v3290_v7  ;;  %2700 = verf.f32 %v978_v41  ;;  %v3398_v1 = vadd.f32 %v2528_v4, %v3116_v14 }
 0x126   : > { %1337 = vadd.xlane.f32.xlu0 %v1336_v49  ;;  %v2687_v21 = vpop.eup %2686  ;;  %v1342_v49 = vsel %vm1215_vm2, %v3376_v56, 0.0  ;;  %v1255_v37 = vsel %vm1215_vm2, %v3385_v25, 0.0  ;;  %v1102_v2 = vadd.f32 1.0, %v2685_v19  ;;  %v909_v63 = vmul.f32 0.5, %v3299_v15  ;;  %v836_v8 = vpop.f32.mrf.mxu1 }
 0x127   : > { %v3403_v62 = vmul.f32 %v1132_v26, %v940_v13  ;;  %2702 = verf.f32 %v977_v58  ;;  %v1009_v4 = vmul.f32 0.70710677, %v3390_v40  ;;  %v1252_v12 = vsel %vm1215_vm2, %v3394_v54, 0.0 }
 0x128   : > { %v2689_v55 = vpop.eup %2688  ;;  %v3412_v41 = vmul.f32 %v1131_v52, %v939_v32  ;;  %v1101_v17 = vadd.f32 1.0, %v2687_v21  ;;  %v942_v13 = vmul.f32 0.5, %v3308_v36  ;;  %v980_v19 = vmul.f32 0.70710677, %v3398_v1 }
 0x129   : > { %1250 = vadd.xlane.f32.xlu1 %v1249_v59  ;;  %v1010_v59 = vmul.f32 0.70710677, %v3381_v22  ;;  %4444 = vst [vmem:[#allocation2_spill] sm:$0xff] %v3403_v62  ;;  %v3417_v15 = vadd.f32 %v2576_v44, %v3116_v14  ;;  %v1351_v26 = vsel %vm1215_vm2, %v3403_v62, 0.0  ;;  %v3421_v58 = vmul.f32 %v1102_v2, %v910_v29  ;;  %v2579_v44 = vpop.f32.mrf.mxu1 }
 0x12a   : > { %1247 = vadd.xlane.f32.xlu0 %v1246_v6  ;;  %v3407_v6 = vadd.f32 %v3116_v14, %v676_v48  ;;  %v2691_v7 = vpop.eup %2690  ;;  %4445 = vst [vmem:[#allocation3_spill] sm:$0xff] %v3412_v41  ;;  %v1134_v48 = vadd.f32 1.0, %v2689_v55  ;;  %v941_v32 = vmul.f32 0.5, %v3318_v51  ;;  %v3426_v36 = vadd.f32 %v3116_v14, %v836_v8 }
 0x12b   : > { %2704 = verf.f32 %v1010_v59  ;;  %4446 = vst [vmem:[#allocation4_spill] sm:$0xff] %v3421_v58  ;;  %v1348_v52 = vsel %vm1215_vm2, %v3412_v41, 0.0  ;;  %v3430_v59 = vmul.f32 %v1101_v17, %v909_v63  ;;  %v912_v55 = vmul.f32 0.5, %v3327_v57 }
 0x12c   : > { %v979_v21 = vmul.f32 0.70710677, %v3407_v6  ;;  %2706 = verf.f32 %v1009_v4  ;;  %v1012_v51 = vmul.f32 0.70710677, %v3417_v15  ;;  %v1261_v4 = vsel %vm1215_vm2, %v3421_v58, 0.0 }
 0x12d   : > { %1346 = vadd.xlane.f32.xlu1 %v1345_v23  ;;  %v2531_v23 = vpop.f32.mrf.mxu0  ;;  %4447 = vst [vmem:[#allocation5_spill] sm:$0xff] %v3430_v59  ;;  %2708 = verf.f32 %v980_v19  ;;  %v1011_v57 = vmul.f32 0.70710677, %v3426_v36 }
 0x12e   : > { %1343 = vadd.xlane.f32.xlu0 %v1342_v49  ;;  %v2693_v49 = vpop.eup %2692  ;;  %v3435_v8 = vadd.f32 %v2531_v23, %v3116_v14  ;;  %2710 = verf.f32 %v979_v21  ;;  %v1258_v23 = vsel %vm1215_vm2, %v3430_v59, 0.0 }
 0x12f   : > { %v2695_v29 = vpop.eup %2694  ;;  %v686_v2 = vpop.f32.mrf.mxu0  ;;  %v1104_v63 = vadd.f32 1.0, %v2693_v49  ;;  %2712 = verf.f32 %v1012_v51 }
 0x130   : > { %v3444_v19 = vadd.f32 %v3116_v14, %v686_v2  ;;  %v982_v21 = vmul.f32 0.70710677, %v3435_v8  ;;  %2714 = verf.f32 %v1011_v57 }
 0x131   : > { %1256 = vadd.xlane.f32.xlu1 %v1255_v37  ;;  %v1133_v37 = vadd.f32 1.0, %v2691_v7  ;;  %v911_v7 = vmul.f32 0.5, %v3336_v11  ;;  %v2534_v41 = vpop.f32.mrf.mxu0  ;;  %v3452_v11 = vadd.f32 %v2579_v44, %v3116_v14 }
 0x132   : > { %1253 = vadd.xlane.f32.xlu0 %v1252_v12  ;;  %v2697_v12 = vpop.eup %2696  ;;  %v981_v44 = vmul.f32 0.70710677, %v3444_v19  ;;  %2716 = verf.f32 %v982_v21 }
 0x133   : > { %v2699_v17 = vpop.eup %2698  ;;  %v3448_v62 = vmul.f32 %v1133_v37, %v941_v32  ;;  %v1136_v58 = vadd.f32 1.0, %v2697_v12  ;;  %v943_v32 = vmul.f32 0.5, %v3353_v38  ;;  %v1014_v12 = vmul.f32 0.70710677, %v3452_v11 }
 0x134   : > { %v2701_v49 = vpop.eup %2700  ;;  %v3471_v38 = vadd.f32 %v2534_v41, %v3116_v14  ;;  %2718 = verf.f32 %v981_v44 }
 0x135   : > { %1352 = vadd.xlane.f32.xlu1 %v1351_v26  ;;  %v3439_v26 = vmul.f32 %v1134_v48, %v942_v13  ;;  %4449 = vst [vmem:[#allocation7_spill] sm:$0xff] %v3448_v62  ;;  %v1103_v13 = vadd.f32 1.0, %v2695_v29  ;;  %v944_v48 = vmul.f32 0.5, %v3344_v60  ;;  %v2703_v60 = vpop.eup %2702  ;;  %v696_v29 = vpop.f32.mrf.mxu0  ;;  %v1354_v51 = vsel %vm1215_vm2, %v3448_v62, 0.0 }
 0x136   : > { %1349 = vadd.xlane.f32.xlu0 %v1348_v52  ;;  %v846_v52 = vpop.f32.mrf.mxu1  ;;  %2720 = verf.f32 %v1014_v12 }
 0x137   : > { %4448 = vst [vmem:[#allocation6_spill] sm:$0xff] %v3439_v26  ;;  %v1357_v2 = vsel %vm1215_vm2, %v3439_v26, 0.0  ;;  %v3461_v37 = vadd.f32 %v3116_v14, %v846_v52  ;;  %v1135_v26 = vadd.f32 1.0, %v2699_v17  ;;  %v3475_v52 = vmul.f32 %v1136_v58, %v944_v48  ;;  %v2537_v41 = vpop.f32.mrf.mxu0 }
 0x138   : > { %v2705_v62 = vpop.eup %2704  ;;  %v946_v48 = vmul.f32 0.5, %v3381_v22 }
 0x139   : > { %1262 = vadd.xlane.f32.xlu1 %v1261_v4  ;;  %v3457_v4 = vmul.f32 %v1104_v63, %v912_v55  ;;  %v914_v55 = vmul.f32 0.5, %v3363_v46  ;;  %v2582_v63 = vpop.f32.mrf.mxu1  ;;  %4452 = vst [vmem:[#allocation10_spill] sm:$0xff] %v3475_v52  ;;  %v1013_v17 = vmul.f32 0.70710677, %v3461_v37  ;;  %v3480_v46 = vadd.f32 %v3116_v14, %v696_v29  ;;  %v2707_v58 = vpop.eup %2706 }
 0x13a   : > { %1259 = vadd.xlane.f32.xlu0 %v1258_v23  ;;  %v3466_v23 = vmul.f32 %v1103_v13, %v911_v7  ;;  %v913_v7 = vmul.f32 0.5, %v3372_v28  ;;  %v3484_v21 = vmul.f32 %v1135_v26, %v943_v32  ;;  %v984_v28 = vmul.f32 0.70710677, %v3471_v38 }
 0x13b   : > { %4450 = vst [vmem:[#allocation8_spill] sm:$0xff] %v3457_v4  ;;  %v1267_v57 = vsel %vm1215_vm2, %v3457_v4, 0.0  ;;  %v2709_v4 = vpop.eup %2708  ;;  %v3489_v29 = vadd.f32 %v2582_v63, %v3116_v14  ;;  %v1363_v44 = vsel %vm1215_vm2, %v3475_v52, 0.0  ;;  %v1138_v26 = vadd.f32 1.0, %v2705_v62 }
 0x13c   : > { %4451 = vst [vmem:[#allocation9_spill] sm:$0xff] %v3466_v23  ;;  %v1264_v13 = vsel %vm1215_vm2, %v3466_v23, 0.0  ;;  %4453 = vst [vmem:[#allocation11_spill] sm:$0xff] %v3484_v21  ;;  %v945_v32 = vmul.f32 0.5, %v3390_v40  ;;  %2722 = verf.f32 %v1013_v17  ;;  %v983_v22 = vmul.f32 0.70710677, %v3480_v46 }
 0x13d   : > { %1358 = vadd.xlane.f32.xlu1 %v1357_v2  ;;  %v1106_v2 = vadd.f32 1.0, %v2701_v49  ;;  %v856_v49 = vpop.f32.mrf.mxu1  ;;  %v1360_v63 = vsel %vm1215_vm2, %v3484_v21, 0.0  ;;  %v916_v62 = vmul.f32 0.5, %v3398_v1  ;;  %2724 = verf.f32 %v984_v28 }
 0x13e   : > { %1355 = vadd.xlane.f32.xlu0 %v1354_v51  ;;  %v1105_v51 = vadd.f32 1.0, %v2703_v60  ;;  %v2711_v60 = vpop.eup %2710  ;;  %v3498_v12 = vadd.f32 %v3116_v14, %v856_v49  ;;  %v3506_v40 = vadd.f32 %v2537_v41, %v3116_v14  ;;  %v1016_v17 = vmul.f32 0.70710677, %v3489_v29 }
 0x13f   : > { %v2585_v23 = vpop.f32.mrf.mxu1  ;;  %v1108_v52 = vadd.f32 1.0, %v2709_v4  ;;  %2726 = verf.f32 %v983_v22 }
 0x140   : > { %v3502_v59 = vmul.f32 %v1105_v51, %v913_v7  ;;  %v915_v7 = vmul.f32 0.5, %v3407_v6  ;;  %v1015_v41 = vmul.f32 0.70710677, %v3498_v12  ;;  %v986_v4 = vmul.f32 0.70710677, %v3506_v40 }
 0x141   : > { %1268 = vadd.xlane.f32.xlu1 %v1267_v57  ;;  %v3493_v57 = vmul.f32 %v1106_v2, %v914_v55  ;;  %v1137_v55 = vadd.f32 1.0, %v2707_v58  ;;  %v2713_v2 = vpop.eup %2712  ;;  %v866_v58 = vpop.f32.mrf.mxu1  ;;  %v3525_v6 = vadd.f32 %v2585_v23, %v3116_v14  ;;  %2728 = verf.f32 %v1016_v17 }
 0x142   : > { %1265 = vadd.xlane.f32.xlu0 %v1264_v13  ;;  %v706_v13 = vpop.f32.mrf.mxu0  ;;  %4455 = vst [vmem:[#allocation13_spill] sm:$0xff] %v3502_v59  ;;  %v2715_v1 = vpop.eup %2714  ;;  %v1270_v28 = vsel %vm1215_vm2, %v3502_v59, 0.0  ;;  %2730 = verf.f32 %v1015_v41 }
 0x143   : > { %4454 = vst [vmem:[#allocation12_spill] sm:$0xff] %v3493_v57  ;;  %v1273_v49 = vsel %vm1215_vm2, %v3493_v57, 0.0  ;;  %v3515_v51 = vadd.f32 %v3116_v14, %v706_v13  ;;  %v1107_v57 = vadd.f32 1.0, %v2711_v60  ;;  %v3529_v13 = vmul.f32 %v1108_v52, %v916_v62  ;;  %v2717_v59 = vpop.eup %2716  ;;  %v2588_v23 = vpop.f32.mrf.mxu1 }
 0x144   : > { %v2719_v52 = vpop.eup %2718  ;;  %v918_v62 = vmul.f32 0.5, %v3435_v8  ;;  %2732 = verf.f32 %v986_v4 }
 0x145   : > { %1364 = vadd.xlane.f32.xlu1 %v1363_v44  ;;  %v3511_v44 = vmul.f32 %v1138_v26, %v946_v48  ;;  %v948_v48 = vmul.f32 0.5, %v3417_v15  ;;  %v2540_v26 = vpop.f32.mrf.mxu0  ;;  %4458 = vst [vmem:[#allocation16_spill] sm:$0xff] %v3529_v13  ;;  %v985_v60 = vmul.f32 0.70710677, %v3515_v51  ;;  %v3534_v15 = vadd.f32 %v3116_v14, %v866_v58 }
 0x146   : > { %1361 = vadd.xlane.f32.xlu0 %v1360_v63  ;;  %v3520_v63 = vmul.f32 %v1137_v55, %v945_v32  ;;  %v947_v32 = vmul.f32 0.5, %v3426_v36  ;;  %v3538_v17 = vmul.f32 %v1107_v57, %v915_v7  ;;  %v1018_v36 = vmul.f32 0.70710677, %v3525_v6 }
 0x147   : > { %4456 = vst [vmem:[#allocation14_spill] sm:$0xff] %v3511_v44  ;;  %v1369_v22 = vsel %vm1215_vm2, %v3511_v44, 0.0  ;;  %v2721_v44 = vpop.eup %2720  ;;  %v3543_v58 = vadd.f32 %v2540_v26, %v3116_v14  ;;  %v1279_v41 = vsel %vm1215_vm2, %v3529_v13, 0.0  ;;  %v1110_v57 = vadd.f32 1.0, %v2717_v59 }
 0x148   : > { %4457 = vst [vmem:[#allocation15_spill] sm:$0xff] %v3520_v63  ;;  %v1366_v55 = vsel %vm1215_vm2, %v3520_v63, 0.0  ;;  %v917_v7 = vmul.f32 0.5, %v3444_v19  ;;  %2734 = verf.f32 %v985_v60  ;;  %v1017_v8 = vmul.f32 0.70710677, %v3534_v15 }
 0x149   : > { %1274 = vadd.xlane.f32.xlu1 %v1273_v49  ;;  %v1140_v49 = vadd.f32 1.0, %v2713_v2  ;;  %v716_v2 = vpop.f32.mrf.mxu0  ;;  %v1276_v26 = vsel %vm1215_vm2, %v3538_v17, 0.0  ;;  %v950_v59 = vmul.f32 0.5, %v3452_v11  ;;  %2736 = verf.f32 %v1018_v36 }
 0x14a   : > { %1271 = vadd.xlane.f32.xlu0 %v1270_v28  ;;  %v1139_v28 = vadd.f32 1.0, %v2715_v1  ;;  %v2723_v1 = vpop.eup %2722  ;;  %v3552_v4 = vadd.f32 %v3116_v14, %v716_v2  ;;  %v3560_v19 = vadd.f32 %v2588_v23, %v3116_v14  ;;  %v988_v60 = vmul.f32 0.70710677, %v3543_v58 }
 0x14b   : > { %v2543_v63 = vpop.f32.mrf.mxu0  ;;  %v1142_v13 = vadd.f32 1.0, %v2721_v44  ;;  %2738 = verf.f32 %v1017_v8 }
 0x14c   : > { %v3556_v21 = vmul.f32 %v1139_v28, %v947_v32  ;;  %v949_v32 = vmul.f32 0.5, %v3461_v37  ;;  %v987_v23 = vmul.f32 0.70710677, %v3552_v4  ;;  %v1020_v44 = vmul.f32 0.70710677, %v3560_v19 }
 0x14d   : > { %1370 = vadd.xlane.f32.xlu1 %v1369_v22  ;;  %v3547_v22 = vmul.f32 %v1140_v49, %v948_v48  ;;  %v1109_v48 = vadd.f32 1.0, %v2719_v52  ;;  %v2725_v49 = vpop.eup %2724  ;;  %v726_v52 = vpop.f32.mrf.mxu0  ;;  %2740 = verf.f32 %v988_v60 }
 0x14e   : > { %1367 = vadd.xlane.f32.xlu0 %v1366_v55  ;;  %v876_v55 = vpop.f32.mrf.mxu1  ;;  %4460 = vst [vmem:[#allocation18_spill] sm:$0xff] %v3556_v21  ;;  %v2727_v11 = vpop.eup %2726  ;;  %v1372_v36 = vsel %vm1215_vm2, %v3556_v21, 0.0  ;;  %2742 = verf.f32 %v987_v23 }
 0x14f   : > { %4459 = vst [vmem:[#allocation17_spill] sm:$0xff] %v3547_v22  ;;  %v1375_v2 = vsel %vm1215_vm2, %v3547_v22, 0.0  ;;  %v3569_v28 = vadd.f32 %v3116_v14, %v876_v55  ;;  %v1141_v22 = vadd.f32 1.0, %v2723_v1  ;;  %v2884_v14 = vld [vmem:[%s4403_s2] ss:$0 sm:$0xff]  ;;  %v3585_v55 = vmul.f32 %v1142_v13, %v950_v59  ;;  %v2729_v1 = vpop.eup %2728 }
 0x150   : > { %v3581_v37 = vadd.f32 %v2884_v14, %v2543_v63  ;;  %v1111_v60 = vadd.f32 1.0, %v2727_v11  ;;  %v2731_v21 = vpop.eup %2730  ;;  %v952_v13 = vmul.f32 0.5, %v3489_v29  ;;  %2744 = verf.f32 %v1020_v44 }
 0x151   : > { %1280 = vadd.xlane.f32.xlu1 %v1279_v41  ;;  %v3565_v41 = vmul.f32 %v1110_v57, %v918_v62  ;;  %v920_v62 = vmul.f32 0.5, %v3471_v38  ;;  %v2591_v57 = vpop.f32.mrf.mxu1  ;;  %4462 = vst [vmem:[#allocation20_spill] sm:$0xff] %v3585_v55  ;;  %v919_v38 = vmul.f32 0.5, %v3480_v46  ;;  %v2733_v46 = vpop.eup %2732  ;;  %v1381_v23 = vsel %vm1215_vm2, %v3585_v55, 0.0 }
 0x152   : > { %1277 = vadd.xlane.f32.xlu0 %v1276_v26  ;;  %v3574_v26 = vmul.f32 %v1109_v48, %v917_v7  ;;  %v1112_v7 = vadd.f32 1.0, %v2725_v49  ;;  %v1019_v48 = vmul.f32 0.70710677, %v3569_v28  ;;  %v990_v59 = vmul.f32 0.70710677, %v3581_v37 }
 0x153   : > { %4461 = vst [vmem:[#allocation19_spill] sm:$0xff] %v3565_v41  ;;  %v1285_v8 = vsel %vm1215_vm2, %v3565_v41, 0.0  ;;  %v886_v49 = vpop.f32.mrf.mxu1  ;;  %v3597_v41 = vadd.f32 %v2884_v14, %v2591_v57  ;;  %v3609_v57 = vmul.f32 %v1111_v60, %v919_v38  ;;  %v922_v55 = vmul.f32 0.5, %v3506_v40 }
 0x154   : > { %v1282_v63 = vsel %vm1215_vm2, %v3574_v26, 0.0  ;;  %2746 = verf.f32 %v1019_v48  ;;  %v3605_v11 = vadd.f32 %v2884_v14, %v886_v49  ;;  %v921_v48 = vmul.f32 0.5, %v3515_v51 }
 0x155   : > { %1376 = vadd.xlane.f32.xlu1 %v1375_v2  ;;  %v3589_v2 = vadd.f32 %v2884_v14, %v726_v52  ;;  %v3601_v52 = vmul.f32 %v1112_v7, %v920_v62  ;;  %v2735_v29 = vpop.eup %2734  ;;  %2748 = verf.f32 %v990_v59  ;;  %v1114_v14 = vadd.f32 1.0, %v2733_v46 }
 0x156   : > { %1373 = vadd.xlane.f32.xlu0 %v1372_v36  ;;  %v3593_v36 = vmul.f32 %v1141_v22, %v949_v32  ;;  %v951_v22 = vmul.f32 0.5, %v3498_v12  ;;  %v2737_v62 = vpop.eup %2736  ;;  %v1022_v12 = vmul.f32 0.70710677, %v3597_v41  ;;  %v1288_v40 = vsel %vm1215_vm2, %v3609_v57, 0.0 }
 0x157   : > { %v989_v32 = vmul.f32 0.70710677, %v3589_v2  ;;  %v1291_v7 = vsel %vm1215_vm2, %v3601_v52, 0.0  ;;  %v1113_v59 = vadd.f32 1.0, %v2735_v29  ;;  %v954_v49 = vmul.f32 0.5, %v3525_v6 }
 0x158   : > { %v1378_v44 = vsel %vm1215_vm2, %v3593_v36, 0.0  ;;  %v2739_v38 = vpop.eup %2738  ;;  %v3626_v46 = vmul.f32 %v1114_v14, %v922_v55  ;;  %v1146_v51 = vadd.f32 1.0, %v2737_v62 }
 0x159   : > { %1286 = vadd.xlane.f32.xlu1 %v1285_v8  ;;  %v1144_v8 = vadd.f32 1.0, %v2729_v1  ;;  %2750 = verf.f32 %v989_v32  ;;  %v3631_v32 = vmul.f32 %v1113_v59, %v921_v48  ;;  %v1145_v29 = vadd.f32 1.0, %v2739_v38 }
 0x15a   : > { %1283 = vadd.xlane.f32.xlu0 %v1282_v63  ;;  %v1143_v63 = vadd.f32 1.0, %v2731_v21  ;;  %v1021_v21 = vmul.f32 0.70710677, %v3605_v11  ;;  %2752 = verf.f32 %v1022_v12  ;;  %v1297_v55 = vsel %vm1215_vm2, %v3626_v46, 0.0 }
 0x15b   : > { %v3615_v1 = vmul.f32 %v1144_v8, %v952_v13  ;;  %v953_v8 = vmul.f32 0.5, %v3534_v15  ;;  %v3636_v62 = vmul.f32 %v1146_v51, %v954_v49  ;;  %v1294_v14 = vsel %vm1215_vm2, %v3631_v32, 0.0 }
 0x15c   : > { %v3621_v60 = vmul.f32 %v1143_v63, %v951_v22  ;;  %2754 = verf.f32 %v1021_v21  ;;  %v924_v63 = vmul.f32 0.5, %v3543_v58  ;;  %v956_v58 = vmul.f32 0.5, %v3560_v19 }
 0x15d   : > { %1382 = vadd.xlane.f32.xlu1 %v1381_v23  ;;  %v1387_v13 = vsel %vm1215_vm2, %v3615_v1, 0.0  ;;  %v2741_v23 = vpop.eup %2740  ;;  %v3641_v48 = vmul.f32 %v1145_v29, %v953_v8 }
 0x15e   : > { %1379 = vadd.xlane.f32.xlu0 %v1378_v44  ;;  %v1384_v22 = vsel %vm1215_vm2, %v3621_v60, 0.0  ;;  %v2743_v6 = vpop.eup %2742  ;;  %v1116_v12 = vadd.f32 1.0, %v2741_v23 }
 0x15f   : > { %v2745_v44 = vpop.eup %2744  ;;  %v1115_v38 = vadd.f32 1.0, %v2743_v6  ;;  %v1390_v51 = vsel %vm1215_vm2, %v3641_v48, 0.0 }
 0x160   : > { %v3646_v59 = vmul.f32 %v1116_v12, %v924_v63  ;;  %v1148_v49 = vadd.f32 1.0, %v2745_v44  ;;  %v925_v63 = vmul.f32 0.5, %v3589_v2 }
 0x161   : > { %1292 = vadd.xlane.f32.xlu1 %v1291_v7  ;;  %v2747_v15 = vpop.eup %2746  ;;  %v923_v7 = vmul.f32 0.5, %v3552_v4  ;;  %v955_v4 = vmul.f32 0.5, %v3569_v28 }
 0x162   : > { %1289 = vadd.xlane.f32.xlu0 %v1288_v40  ;;  %v2749_v21 = vpop.eup %2748  ;;  %v1393_v40 = vsel %vm1215_vm2, %v3636_v62, 0.0  ;;  %v1147_v8 = vadd.f32 1.0, %v2747_v15  ;;  %v1303_v19 = vsel %vm1215_vm2, %v3646_v59, 0.0  ;;  %v3656_v29 = vmul.f32 %v1148_v49, %v956_v58 }
 0x163   : > { %v3651_v23 = vmul.f32 %v1115_v38, %v923_v7  ;;  %v1118_v6 = vadd.f32 1.0, %v2749_v21  ;;  %v957_v21 = vmul.f32 0.5, %v3605_v11 }
 0x164   : > { %v1399_v7 = vsel %vm1215_vm2, %v3656_v29, 0.0 }
 0x165   : > { %1388 = vadd.xlane.f32.xlu1 %v1387_v13  ;;  %v1300_v28 = vsel %vm1215_vm2, %v3651_v23, 0.0 }
 0x166   : > { %1385 = vadd.xlane.f32.xlu0 %v1384_v22  ;;  %v2751_v13 = vpop.eup %2750  ;;  %v926_v22 = vmul.f32 0.5, %v3581_v37  ;;  %v958_v37 = vmul.f32 0.5, %v3597_v41 }
 0x167   : > { %v2753_v44 = vpop.eup %2752  ;;  %v1117_v12 = vadd.f32 1.0, %v2751_v13 }
 0x168   : > { %v1150_v38 = vadd.f32 1.0, %v2753_v44 }
 0x169   : > { %1298 = vadd.xlane.f32.xlu1 %v1297_v55  ;;  %v3661_v55 = vmul.f32 %v1147_v8, %v955_v4  ;;  %v2755_v15 = vpop.eup %2754  ;;  %v3671_v58 = vmul.f32 %v1117_v12, %v925_v63 }
 0x16a   : > { %1295 = vadd.xlane.f32.xlu0 %v1294_v14  ;;  %v3666_v14 = vmul.f32 %v1118_v6, %v926_v22  ;;  %v3675_v41 = vmul.f32 %v1150_v38, %v958_v37 }
 0x16b   : > { %v1396_v2 = vsel %vm1215_vm2, %v3661_v55, 0.0  ;;  %v1306_v13 = vsel %vm1215_vm2, %v3671_v58, 0.0 }
 0x16c   : > { %v1309_v49 = vsel %vm1215_vm2, %v3666_v14, 0.0  ;;  %v1405_v11 = vsel %vm1215_vm2, %v3675_v41, 0.0 }
 0x16d   : > { %1394 = vadd.xlane.f32.xlu1 %v1393_v40  ;;  %v1149_v40 = vadd.f32 1.0, %v2755_v15 }
 0x16e   : > { %1391 = vadd.xlane.f32.xlu0 %v1390_v51 }
 0x16f   : > { %v3679_v4 = vmul.f32 %v1149_v40, %v957_v21 }
 0x171   : > { %1304 = vadd.xlane.f32.xlu1 %v1303_v19  ;;  %v1402_v51 = vsel %vm1215_vm2, %v3679_v4, 0.0 }
 0x172   : > { %1301 = vadd.xlane.f32.xlu0 %v1300_v28 }
 0x175   : > { %1400 = vadd.xlane.f32.xlu1 %v1399_v7 }
 0x176   : > { %1397 = vadd.xlane.f32.xlu0 %v1396_v2 }
 0x179   : > { %1310 = vadd.xlane.f32.xlu1 %v1309_v49 }
 0x17a   : > { %1307 = vadd.xlane.f32.xlu0 %v1306_v13 }
 0x17d   : > { %1406 = vadd.xlane.f32.xlu1 %v1405_v11 }
 0x17e   : > { %1403 = vadd.xlane.f32.xlu0 %v1402_v51 }
 0x18a   : > { %v1317_v8 = vpop.xlane.xlu1 %1316 }
 0x18b   : > { %v1442_v22 = vmul.f32 0.03125, %v1317_v8  ;;  %v1221_v19 = vpop.xlane.xlu0 %1220 }
 0x18c   : > { %v1410_v6 = vmul.f32 0.03125, %v1221_v19 }
 0x18d   : > { %v3686_v44 = vsub.f32 %v3171_v5, %v1442_v22 }
 0x18e   : > { %v3689_v63 = vsub.f32 %v3176_v9, %v1410_v6  ;;  %v1227_v28 = vpop.xlane.xlu1 %1226 }
 0x18f   : > { %v1412_v12 = vmul.f32 0.03125, %v1227_v28  ;;  %v1218_v15 = vpop.xlane.xlu0 %1217  ;;  %v1570_v5 = vmul.f32 %v3686_v44, %v3686_v44 }
 0x190   : > { %v1538_v37 = vmul.f32 %v3689_v63, %v3689_v63  ;;  %v1409_v7 = vmul.f32 0.03125, %v1218_v15 }
 0x191   : > { %v3694_v38 = vsub.f32 %v3192_v24, %v1412_v12  ;;  %v1700_v24 = vsel %vm1215_vm2, %v1570_v5, 0.0 }
 0x192   : > { %v1323_v21 = vpop.xlane.xlu1 %1322  ;;  %v1604_v2 = vsel %vm1215_vm2, %v1538_v37, 0.0  ;;  %v3700_v40 = vsub.f32 %v3202_v34, %v1409_v7 }
 0x193   : > { %v1444_v9 = vmul.f32 0.03125, %v1323_v21  ;;  %1605 = vadd.xlane.f32.xlu1 %v1604_v2  ;;  %v1314_v49 = vpop.xlane.xlu0 %1313  ;;  %v1540_v22 = vmul.f32 %v3694_v38, %v3694_v38 }
 0x194   : > { %v1441_v13 = vmul.f32 0.03125, %v1314_v49  ;;  %v1537_v11 = vmul.f32 %v3700_v40, %v3700_v40 }
 0x195   : > { %v3705_v51 = vsub.f32 %v3207_v27, %v1444_v9  ;;  %v1610_v37 = vsel %vm1215_vm2, %v1540_v22, 0.0 }
 0x196   : > { %v1224_v8 = vpop.xlane.xlu1 %1223  ;;  %v3711_v19 = vsub.f32 %v3212_v47, %v1441_v13  ;;  %v1601_v6 = vsel %vm1215_vm2, %v1537_v11, 0.0 }
 0x197   : > { %1701 = vadd.xlane.f32.xlu1 %v1700_v24  ;;  %v1411_v34 = vmul.f32 0.03125, %v1224_v8  ;;  %1602 = vadd.xlane.f32.xlu0 %v1601_v6  ;;  %v1320_v28 = vpop.xlane.xlu0 %1319  ;;  %v1572_v47 = vmul.f32 %v3705_v51, %v3705_v51 }
 0x198   : > { %v1443_v27 = vmul.f32 0.03125, %v1320_v28  ;;  %v1569_v15 = vmul.f32 %v3711_v19, %v3711_v19 }
 0x199   : > { %v3715_v12 = vsub.f32 %v3226_v35, %v1411_v34  ;;  %v1706_v24 = vsel %vm1215_vm2, %v1572_v47, 0.0 }
 0x19a   : > { %v1233_v7 = vpop.xlane.xlu1 %1232  ;;  %v3723_v21 = vsub.f32 %v3233_v10, %v1443_v27  ;;  %v1697_v5 = vsel %vm1215_vm2, %v1569_v15, 0.0 }
 0x19b   : > { %1611 = vadd.xlane.f32.xlu1 %v1610_v37  ;;  %v1414_v2 = vmul.f32 0.03125, %v1233_v7  ;;  %v1539_v35 = vmul.f32 %v3715_v12, %v3715_v12  ;;  %1698 = vadd.xlane.f32.xlu0 %v1697_v5  ;;  %v1230_v9 = vpop.xlane.xlu0 %1229 }
 0x19c   : > { %v1413_v13 = vmul.f32 0.03125, %v1230_v9  ;;  %v1571_v6 = vmul.f32 %v3723_v21, %v3723_v21 }
 0x19d   : > { %v3729_v49 = vsub.f32 %v3245_v42, %v1414_v2  ;;  %v1607_v11 = vsel %vm1215_vm2, %v1539_v35, 0.0 }
 0x19e   : > { %v1329_v8 = vpop.xlane.xlu1 %1328  ;;  %v3734_v10 = vsub.f32 %v3249_v20, %v1413_v13  ;;  %v1703_v2 = vsel %vm1215_vm2, %v1571_v6, 0.0 }
 0x19f   : > { %1707 = vadd.xlane.f32.xlu1 %v1706_v24  ;;  %v1446_v22 = vmul.f32 0.03125, %v1329_v8  ;;  %v1542_v34 = vmul.f32 %v3729_v49, %v3729_v49  ;;  %1608 = vadd.xlane.f32.xlu0 %v1607_v11  ;;  %v1326_v42 = vpop.xlane.xlu0 %1325 }
 0x1a0   : > { %v1445_v27 = vmul.f32 0.03125, %v1326_v42  ;;  %v1541_v20 = vmul.f32 %v3734_v10, %v3734_v10 }
 0x1a1   : > { %v3741_v28 = vsub.f32 %v3258_v33, %v1446_v22  ;;  %v1616_v15 = vsel %vm1215_vm2, %v1542_v34, 0.0 }
 0x1a2   : > { %v1239_v37 = vpop.xlane.xlu1 %1238  ;;  %v3747_v7 = vsub.f32 %v3267_v45, %v1445_v27  ;;  %v1613_v24 = vsel %vm1215_vm2, %v1541_v20, 0.0 }
 0x1a3   : > { %1617 = vadd.xlane.f32.xlu1 %v1616_v15  ;;  %v1416_v47 = vmul.f32 0.03125, %v1239_v37  ;;  %v1574_v5 = vmul.f32 %v3741_v28, %v3741_v28  ;;  %1704 = vadd.xlane.f32.xlu0 %v1703_v2  ;;  %v1236_v33 = vpop.xlane.xlu0 %1235 }
 0x1a4   : > { %v1415_v9 = vmul.f32 0.03125, %v1236_v33  ;;  %v1573_v34 = vmul.f32 %v3747_v7, %v3747_v7 }
 0x1a5   : > { %v3753_v35 = vsub.f32 %v3277_v39, %v1416_v47  ;;  %v1712_v13 = vsel %vm1215_vm2, %v1574_v5, 0.0 }
 0x1a6   : > { %v1335_v11 = vpop.xlane.xlu1 %1334  ;;  %v3758_v45 = vsub.f32 %v3286_v3, %v1415_v9  ;;  %v1709_v47 = vsel %vm1215_vm2, %v1573_v34, 0.0 }
 0x1a7   : > { %1713 = vadd.xlane.f32.xlu1 %v1712_v13  ;;  %v1448_v8 = vmul.f32 0.03125, %v1335_v11  ;;  %v1544_v22 = vmul.f32 %v3753_v35, %v3753_v35  ;;  %1614 = vadd.xlane.f32.xlu0 %v1613_v24  ;;  %v1332_v39 = vpop.xlane.xlu0 %1331 }
 0x1a8   : > { %v1447_v42 = vmul.f32 0.03125, %v1332_v39  ;;  %v1543_v3 = vmul.f32 %v3758_v45, %v3758_v45 }
 0x1a9   : > { %v3765_v6 = vsub.f32 %v3295_v16, %v1448_v8  ;;  %v1622_v27 = vsel %vm1215_vm2, %v1544_v22, 0.0 }
 0x1aa   : > { %v1245_v15 = vpop.xlane.xlu1 %1244  ;;  %v3771_v37 = vsub.f32 %v3304_v30, %v1447_v42  ;;  %v1619_v11 = vsel %vm1215_vm2, %v1543_v3, 0.0 }
 0x1ab   : > { %1623 = vadd.xlane.f32.xlu1 %v1622_v27  ;;  %v1418_v20 = vmul.f32 0.03125, %v1245_v15  ;;  %v1576_v2 = vmul.f32 %v3765_v6, %v3765_v6  ;;  %1710 = vadd.xlane.f32.xlu0 %v1709_v47  ;;  %v1242_v16 = vpop.xlane.xlu0 %1241 }
 0x1ac   : > { %v1417_v33 = vmul.f32 0.03125, %v1242_v16  ;;  %v1575_v22 = vmul.f32 %v3771_v37, %v3771_v37 }
 0x1ad   : > { %v3777_v5 = vsub.f32 %v3313_v43, %v1418_v20  ;;  %v1718_v9 = vsel %vm1215_vm2, %v1576_v2, 0.0 }
 0x1ae   : > { %v1341_v13 = vpop.xlane.xlu1 %1340  ;;  %v3782_v30 = vsub.f32 %v3322_v53, %v1417_v33  ;;  %v1715_v20 = vsel %vm1215_vm2, %v1575_v22, 0.0 }
 0x1af   : > { %1719 = vadd.xlane.f32.xlu1 %v1718_v9  ;;  %v1450_v24 = vmul.f32 0.03125, %v1341_v13  ;;  %v1546_v8 = vmul.f32 %v3777_v5, %v3777_v5  ;;  %1620 = vadd.xlane.f32.xlu0 %v1619_v11  ;;  %v1338_v43 = vpop.xlane.xlu0 %1337 }
 0x1b0   : > { %v1449_v39 = vmul.f32 0.03125, %v1338_v43  ;;  %v1545_v53 = vmul.f32 %v3782_v30, %v3782_v30 }
 0x1b1   : > { %v3789_v34 = vsub.f32 %v3331_v0, %v1450_v24  ;;  %v1628_v42 = vsel %vm1215_vm2, %v1546_v8, 0.0 }
 0x1b2   : > { %v1251_v27 = vpop.xlane.xlu1 %1250  ;;  %v3795_v15 = vsub.f32 %v3340_v18, %v1449_v39  ;;  %v1625_v13 = vsel %vm1215_vm2, %v1545_v53, 0.0 }
 0x1b3   : > { %1629 = vadd.xlane.f32.xlu1 %v1628_v42  ;;  %v1420_v3 = vmul.f32 0.03125, %v1251_v27  ;;  %v1578_v47 = vmul.f32 %v3789_v34, %v3789_v34  ;;  %1716 = vadd.xlane.f32.xlu0 %v1715_v20  ;;  %v1248_v0 = vpop.xlane.xlu0 %1247 }
 0x1b4   : > { %v1419_v16 = vmul.f32 0.03125, %v1248_v0  ;;  %v1577_v8 = vmul.f32 %v3795_v15, %v3795_v15 }
 0x1b5   : > { %v3801_v2 = vsub.f32 %v3349_v31, %v1420_v3  ;;  %v1724_v33 = vsel %vm1215_vm2, %v1578_v47, 0.0 }
 0x1b6   : > { %v1347_v9 = vpop.xlane.xlu1 %1346  ;;  %v3806_v18 = vsub.f32 %v3358_v50, %v1419_v16  ;;  %v1721_v3 = vsel %vm1215_vm2, %v1577_v8, 0.0  ;;  %v4463_v8 = vld [vmem:[#allocation2_spill] sm:$0xff] }
 0x1b7   : > { %1725 = vadd.xlane.f32.xlu1 %v1724_v33  ;;  %v1452_v11 = vmul.f32 0.03125, %v1347_v9  ;;  %v1548_v24 = vmul.f32 %v3801_v2, %v3801_v2  ;;  %1626 = vadd.xlane.f32.xlu0 %v1625_v13  ;;  %v1344_v31 = vpop.xlane.xlu0 %1343 }
 0x1b8   : > { %v1451_v43 = vmul.f32 0.03125, %v1344_v31  ;;  %v1547_v50 = vmul.f32 %v3806_v18, %v3806_v18 }
 0x1b9   : > { %v3813_v22 = vsub.f32 %v3367_v61, %v1452_v11  ;;  %v1634_v39 = vsel %vm1215_vm2, %v1548_v24, 0.0 }
 0x1ba   : > { %v1257_v42 = vpop.xlane.xlu1 %1256  ;;  %v3819_v27 = vsub.f32 %v3376_v56, %v1451_v43  ;;  %v1631_v9 = vsel %vm1215_vm2, %v1547_v50, 0.0  ;;  %v4464_v50 = vld [vmem:[#allocation3_spill] sm:$0xff] }
 0x1bb   : > { %1635 = vadd.xlane.f32.xlu1 %v1634_v39  ;;  %v1422_v53 = vmul.f32 0.03125, %v1257_v42  ;;  %v1580_v20 = vmul.f32 %v3813_v22, %v3813_v22  ;;  %1722 = vadd.xlane.f32.xlu0 %v1721_v3  ;;  %v1254_v61 = vpop.xlane.xlu0 %1253 }
 0x1bc   : > { %v1421_v0 = vmul.f32 0.03125, %v1254_v61  ;;  %v1579_v24 = vmul.f32 %v3819_v27, %v3819_v27 }
 0x1bd   : > { %v3825_v47 = vsub.f32 %v3385_v25, %v1422_v53  ;;  %v1730_v16 = vsel %vm1215_vm2, %v1580_v20, 0.0 }
 0x1be   : > { %v1353_v33 = vpop.xlane.xlu1 %1352  ;;  %v3830_v56 = vsub.f32 %v3394_v54, %v1421_v0  ;;  %v1727_v20 = vsel %vm1215_vm2, %v1579_v24, 0.0 }
 0x1bf   : > { %1731 = vadd.xlane.f32.xlu1 %v1730_v16  ;;  %v1454_v13 = vmul.f32 0.03125, %v1353_v33  ;;  %v1550_v11 = vmul.f32 %v3825_v47, %v3825_v47  ;;  %1632 = vadd.xlane.f32.xlu0 %v1631_v9  ;;  %v1350_v25 = vpop.xlane.xlu0 %1349  ;;  %v4466_v16 = vld [vmem:[#allocation4_spill] sm:$0xff] }
 0x1c0   : > { %v1453_v43 = vmul.f32 0.03125, %v1350_v25  ;;  %v1549_v54 = vmul.f32 %v3830_v56, %v3830_v56 }
 0x1c1   : > { %v3837_v31 = vsub.f32 %v4463_v8, %v1454_v13  ;;  %v1640_v39 = vsel %vm1215_vm2, %v1550_v11, 0.0  ;;  %v4468_v8 = vld [vmem:[#allocation5_spill] sm:$0xff] }
 0x1c2   : > { %v1263_v42 = vpop.xlane.xlu1 %1262  ;;  %v3843_v53 = vsub.f32 %v4464_v50, %v1453_v43  ;;  %v1637_v25 = vsel %vm1215_vm2, %v1549_v54, 0.0 }
 0x1c3   : > { %1641 = vadd.xlane.f32.xlu1 %v1640_v39  ;;  %v1424_v3 = vmul.f32 0.03125, %v1263_v42  ;;  %v1582_v61 = vmul.f32 %v3837_v31, %v3837_v31  ;;  %1728 = vadd.xlane.f32.xlu0 %v1727_v20  ;;  %v1260_v0 = vpop.xlane.xlu0 %1259 }
 0x1c4   : > { %4465 = vst [vmem:[#allocation2_spill] sm:$0xff] %v3843_v53  ;;  %v1423_v9 = vmul.f32 0.03125, %v1260_v0  ;;  %v1581_v42 = vmul.f32 %v3843_v53, %v3843_v53 }
 0x1c5   : > { %v3849_v33 = vsub.f32 %v4466_v16, %v1424_v3  ;;  %v1736_v13 = vsel %vm1215_vm2, %v1582_v61, 0.0  ;;  %v4470_v3 = vld [vmem:[#allocation6_spill] sm:$0xff] }
 0x1c6   : > { %v1359_v11 = vpop.xlane.xlu1 %1358  ;;  %v3854_v43 = vsub.f32 %v4468_v8, %v1423_v9  ;;  %v4472_v9 = vld [vmem:[#allocation7_spill] sm:$0xff]  ;;  %v1733_v8 = vsel %vm1215_vm2, %v1581_v42, 0.0 }
 0x1c7   : > { %4467 = vst [vmem:[#allocation3_spill] sm:$0xff] %v3849_v33  ;;  %1737 = vadd.xlane.f32.xlu1 %v1736_v13  ;;  %v1456_v39 = vmul.f32 0.03125, %v1359_v11  ;;  %v1552_v24 = vmul.f32 %v3849_v33, %v3849_v33  ;;  %1638 = vadd.xlane.f32.xlu0 %v1637_v25  ;;  %v1356_v50 = vpop.xlane.xlu0 %1355 }
 0x1c8   : > { %4469 = vst [vmem:[#allocation4_spill] sm:$0xff] %v3854_v43  ;;  %v1455_v61 = vmul.f32 0.03125, %v1356_v50  ;;  %v1551_v16 = vmul.f32 %v3854_v43, %v3854_v43 }
 0x1c9   : > { %v3861_v20 = vsub.f32 %v4470_v3, %v1456_v39  ;;  %v1646_v0 = vsel %vm1215_vm2, %v1552_v24, 0.0  ;;  %v4474_v3 = vld [vmem:[#allocation8_spill] sm:$0xff] }
 0x1ca   : > { %v1269_v54 = vpop.xlane.xlu1 %1268  ;;  %v3867_v13 = vsub.f32 %v4472_v9, %v1455_v61  ;;  %v1643_v43 = vsel %vm1215_vm2, %v1551_v16, 0.0  ;;  %v4476_v61 = vld [vmem:[#allocation9_spill] sm:$0xff] }
 0x1cb   : > { %4471 = vst [vmem:[#allocation5_spill] sm:$0xff] %v3861_v20  ;;  %1647 = vadd.xlane.f32.xlu1 %v1646_v0  ;;  %v1426_v11 = vmul.f32 0.03125, %v1269_v54  ;;  %v1584_v25 = vmul.f32 %v3861_v20, %v3861_v20  ;;  %1734 = vadd.xlane.f32.xlu0 %v1733_v8  ;;  %v1266_v39 = vpop.xlane.xlu0 %1265  ;;  %v4478_v8 = vld [vmem:[#allocation10_spill] sm:$0xff] }
 0x1cc   : > { %4473 = vst [vmem:[#allocation6_spill] sm:$0xff] %v3867_v13  ;;  %v1425_v24 = vmul.f32 0.03125, %v1266_v39  ;;  %v1583_v54 = vmul.f32 %v3867_v13, %v3867_v13 }
 0x1cd   : > { %v3873_v50 = vsub.f32 %v4474_v3, %v1426_v11  ;;  %v1742_v53 = vsel %vm1215_vm2, %v1584_v25, 0.0 }
 0x1ce   : > { %v1365_v33 = vpop.xlane.xlu1 %1364  ;;  %v3878_v9 = vsub.f32 %v4476_v61, %v1425_v24 }
 0x1cf   : > { %4475 = vst [vmem:[#allocation7_spill] sm:$0xff] %v3873_v50  ;;  %1743 = vadd.xlane.f32.xlu1 %v1742_v53  ;;  %v1458_v0 = vmul.f32 0.03125, %v1365_v33  ;;  %v1554_v42 = vmul.f32 %v3873_v50, %v3873_v50  ;;  %1644 = vadd.xlane.f32.xlu0 %v1643_v43  ;;  %v1362_v11 = vpop.xlane.xlu0 %1361  ;;  %v4480_v53 = vld [vmem:[#allocation11_spill] sm:$0xff]  ;;  %v1739_v50 = vsel %vm1215_vm2, %v1583_v54, 0.0 }
 0x1d0   : > { %4477 = vst [vmem:[#allocation8_spill] sm:$0xff] %v3878_v9  ;;  %v1457_v25 = vmul.f32 0.03125, %v1362_v11  ;;  %v1553_v24 = vmul.f32 %v3878_v9, %v3878_v9 }
 0x1d1   : > { %v3885_v39 = vsub.f32 %v4478_v8, %v1458_v0  ;;  %v1652_v3 = vsel %vm1215_vm2, %v1554_v42, 0.0  ;;  %v4482_v8 = vld [vmem:[#allocation12_spill] sm:$0xff] }
 0x1d2   : > { %v1275_v16 = vpop.xlane.xlu1 %1274  ;;  %v3891_v33 = vsub.f32 %v4480_v53, %v1457_v25  ;;  %v1649_v9 = vsel %vm1215_vm2, %v1553_v24, 0.0  ;;  %v4484_v25 = vld [vmem:[#allocation13_spill] sm:$0xff] }
 0x1d3   : > { %4479 = vst [vmem:[#allocation9_spill] sm:$0xff] %v3885_v39  ;;  %1653 = vadd.xlane.f32.xlu1 %v1652_v3  ;;  %v1428_v61 = vmul.f32 0.03125, %v1275_v16  ;;  %v1586_v43 = vmul.f32 %v3885_v39, %v3885_v39  ;;  %1740 = vadd.xlane.f32.xlu0 %v1739_v50  ;;  %v1272_v0 = vpop.xlane.xlu0 %1271 }
 0x1d4   : > { %4481 = vst [vmem:[#allocation10_spill] sm:$0xff] %v3891_v33  ;;  %v1427_v42 = vmul.f32 0.03125, %v1272_v0  ;;  %v1585_v50 = vmul.f32 %v3891_v33, %v3891_v33 }
 0x1d5   : > { %v3897_v11 = vsub.f32 %v4482_v8, %v1428_v61  ;;  %v1748_v13 = vsel %vm1215_vm2, %v1586_v43, 0.0  ;;  %v4486_v61 = vld [vmem:[#allocation14_spill] sm:$0xff] }
 0x1d6   : > { %v1371_v20 = vpop.xlane.xlu1 %1370  ;;  %v3902_v53 = vsub.f32 %v4484_v25, %v1427_v42 }
 0x1d7   : > { %4483 = vst [vmem:[#allocation11_spill] sm:$0xff] %v3897_v11  ;;  %1749 = vadd.xlane.f32.xlu1 %v1748_v13  ;;  %v1460_v3 = vmul.f32 0.03125, %v1371_v20  ;;  %v1556_v54 = vmul.f32 %v3897_v11, %v3897_v11  ;;  %1650 = vadd.xlane.f32.xlu0 %v1649_v9  ;;  %v1368_v16 = vpop.xlane.xlu0 %1367  ;;  %v4487_v13 = vld [vmem:[#allocation15_spill] sm:$0xff]  ;;  %v1745_v11 = vsel %vm1215_vm2, %v1585_v50, 0.0 }
 0x1d8   : > { %4485 = vst [vmem:[#allocation12_spill] sm:$0xff] %v3902_v53  ;;  %v1459_v43 = vmul.f32 0.03125, %v1368_v16  ;;  %v1555_v42 = vmul.f32 %v3902_v53, %v3902_v53 }
 0x1d9   : > { %v3909_v0 = vsub.f32 %v4486_v61, %v1460_v3  ;;  %v1658_v8 = vsel %vm1215_vm2, %v1556_v54, 0.0  ;;  %v4489_v61 = vld [vmem:[#allocation16_spill] sm:$0xff] }
 0x1da   : > { %v1281_v24 = vpop.xlane.xlu1 %1280  ;;  %v3915_v20 = vsub.f32 %v4487_v13, %v1459_v43  ;;  %v1655_v53 = vsel %vm1215_vm2, %v1555_v42, 0.0  ;;  %v4492_v13 = vld [vmem:[#allocation17_spill] sm:$0xff] }
 0x1db   : > { %1659 = vadd.xlane.f32.xlu1 %v1658_v8  ;;  %v1430_v25 = vmul.f32 0.03125, %v1281_v24  ;;  %v1588_v9 = vmul.f32 %v3909_v0, %v3909_v0  ;;  %1746 = vadd.xlane.f32.xlu0 %v1745_v11  ;;  %v1278_v3 = vpop.xlane.xlu0 %1277 }
 0x1dc   : > { %4488 = vst [vmem:[#allocation13_spill] sm:$0xff] %v3915_v20  ;;  %v1429_v54 = vmul.f32 0.03125, %v1278_v3  ;;  %v1587_v11 = vmul.f32 %v3915_v20, %v3915_v20 }
 0x1dd   : > { %v3921_v16 = vsub.f32 %v4489_v61, %v1430_v25  ;;  %v1754_v33 = vsel %vm1215_vm2, %v1588_v9, 0.0 }
 0x1de   : > { %v1377_v39 = vpop.xlane.xlu1 %1376  ;;  %v3926_v43 = vsub.f32 %v3538_v17, %v1429_v54  ;;  %v1751_v54 = vsel %vm1215_vm2, %v1587_v11, 0.0 }
 0x1df   : > { %4490 = vst [vmem:[#allocation14_spill] sm:$0xff] %v3921_v16  ;;  %1755 = vadd.xlane.f32.xlu1 %v1754_v33  ;;  %v1462_v8 = vmul.f32 0.03125, %v1377_v39  ;;  %v1558_v50 = vmul.f32 %v3921_v16, %v3921_v16  ;;  %1656 = vadd.xlane.f32.xlu0 %v1655_v53  ;;  %v1374_v24 = vpop.xlane.xlu0 %1373  ;;  %v4493_v33 = vld [vmem:[#allocation18_spill] sm:$0xff] }
 0x1e0   : > { %4491 = vst [vmem:[#allocation15_spill] sm:$0xff] %v3926_v43  ;;  %v1461_v9 = vmul.f32 0.03125, %v1374_v24  ;;  %v1557_v17 = vmul.f32 %v3926_v43, %v3926_v43 }
 0x1e1   : > { %v3933_v25 = vsub.f32 %v4492_v13, %v1462_v8  ;;  %v1664_v3 = vsel %vm1215_vm2, %v1558_v50, 0.0  ;;  %v4494_v13 = vld [vmem:[#allocation19_spill] sm:$0xff] }
 0x1e2   : > { %v1287_v42 = vpop.xlane.xlu1 %1286  ;;  %v3939_v39 = vsub.f32 %v4493_v33, %v1461_v9  ;;  %v1661_v43 = vsel %vm1215_vm2, %v1557_v17, 0.0 }
 0x1e3   : > { %1665 = vadd.xlane.f32.xlu1 %v1664_v3  ;;  %v1432_v61 = vmul.f32 0.03125, %v1287_v42  ;;  %v1590_v53 = vmul.f32 %v3933_v25, %v3933_v25  ;;  %1752 = vadd.xlane.f32.xlu0 %v1751_v54  ;;  %v1284_v8 = vpop.xlane.xlu0 %1283 }
 0x1e4   : > { %v1431_v50 = vmul.f32 0.03125, %v1284_v8  ;;  %v1589_v42 = vmul.f32 %v3939_v39, %v3939_v39 }
 0x1e5   : > { %v3945_v24 = vsub.f32 %v4494_v13, %v1432_v61  ;;  %v1760_v20 = vsel %vm1215_vm2, %v1590_v53, 0.0  ;;  %v4496_v61 = vld [vmem:[#allocation20_spill] sm:$0xff] }
 0x1e6   : > { %v1383_v16 = vpop.xlane.xlu1 %1382  ;;  %v3950_v9 = vsub.f32 %v3574_v26, %v1431_v50  ;;  %v1757_v13 = vsel %vm1215_vm2, %v1589_v42, 0.0 }
 0x1e7   : > { %1761 = vadd.xlane.f32.xlu1 %v1760_v20  ;;  %v1464_v3 = vmul.f32 0.03125, %v1383_v16  ;;  %v1560_v11 = vmul.f32 %v3945_v24, %v3945_v24  ;;  %1662 = vadd.xlane.f32.xlu0 %v1661_v43  ;;  %v1380_v33 = vpop.xlane.xlu0 %1379 }
 0x1e8   : > { %4495 = vst [vmem:[#allocation16_spill] sm:$0xff] %v3950_v9  ;;  %v1463_v53 = vmul.f32 0.03125, %v1380_v33  ;;  %v1559_v26 = vmul.f32 %v3950_v9, %v3950_v9 }
 0x1e9   : > { %v3957_v54 = vsub.f32 %v4496_v61, %v1464_v3  ;;  %v1670_v8 = vsel %vm1215_vm2, %v1560_v11, 0.0 }
 0x1ea   : > { %v1293_v17 = vpop.xlane.xlu1 %1292  ;;  %v3963_v20 = vsub.f32 %v3593_v36, %v1463_v53  ;;  %v1667_v9 = vsel %vm1215_vm2, %v1559_v26, 0.0 }
 0x1eb   : > { %1671 = vadd.xlane.f32.xlu1 %v1670_v8  ;;  %v1434_v16 = vmul.f32 0.03125, %v1293_v17  ;;  %v1592_v43 = vmul.f32 %v3957_v54, %v3957_v54  ;;  %1758 = vadd.xlane.f32.xlu0 %v1757_v13  ;;  %v1290_v50 = vpop.xlane.xlu0 %1289 }
 0x1ec   : > { %v1433_v11 = vmul.f32 0.03125, %v1290_v50  ;;  %v1591_v8 = vmul.f32 %v3963_v20, %v3963_v20 }
 0x1ed   : > { %v3969_v3 = vsub.f32 %v3601_v52, %v1434_v16  ;;  %v1766_v33 = vsel %vm1215_vm2, %v1592_v43, 0.0 }
 0x1ee   : > { %v1389_v61 = vpop.xlane.xlu1 %1388  ;;  %v3974_v36 = vsub.f32 %v3609_v57, %v1433_v11  ;;  %v1763_v11 = vsel %vm1215_vm2, %v1591_v8, 0.0 }
 0x1ef   : > { %1767 = vadd.xlane.f32.xlu1 %v1766_v33  ;;  %v1466_v53 = vmul.f32 0.03125, %v1389_v61  ;;  %v1562_v42 = vmul.f32 %v3969_v3, %v3969_v3  ;;  %1668 = vadd.xlane.f32.xlu0 %v1667_v9  ;;  %v1386_v52 = vpop.xlane.xlu0 %1385 }
 0x1f0   : > { %v1465_v16 = vmul.f32 0.03125, %v1386_v52  ;;  %v1561_v57 = vmul.f32 %v3974_v36, %v3974_v36 }
 0x1f1   : > { %v3981_v17 = vsub.f32 %v3615_v1, %v1466_v53  ;;  %v1676_v13 = vsel %vm1215_vm2, %v1562_v42, 0.0 }
 0x1f2   : > { %v1299_v26 = vpop.xlane.xlu1 %1298  ;;  %v3987_v43 = vsub.f32 %v3621_v60, %v1465_v16  ;;  %v1673_v52 = vsel %vm1215_vm2, %v1561_v57, 0.0 }
 0x1f3   : > { %1677 = vadd.xlane.f32.xlu1 %v1676_v13  ;;  %v1436_v50 = vmul.f32 0.03125, %v1299_v26  ;;  %v1594_v9 = vmul.f32 %v3981_v17, %v3981_v17  ;;  %1764 = vadd.xlane.f32.xlu0 %v1763_v11  ;;  %v1296_v1 = vpop.xlane.xlu0 %1295 }
 0x1f4   : > { %v1435_v61 = vmul.f32 0.03125, %v1296_v1  ;;  %v1593_v13 = vmul.f32 %v3987_v43, %v3987_v43 }
 0x1f5   : > { %v3993_v33 = vsub.f32 %v3626_v46, %v1436_v50  ;;  %v1772_v53 = vsel %vm1215_vm2, %v1594_v9, 0.0 }
 0x1f6   : > { %v1395_v42 = vpop.xlane.xlu1 %1394  ;;  %v3998_v60 = vsub.f32 %v3631_v32, %v1435_v61  ;;  %v1769_v61 = vsel %vm1215_vm2, %v1593_v13, 0.0 }
 0x1f7   : > { %1773 = vadd.xlane.f32.xlu1 %v1772_v53  ;;  %v1468_v16 = vmul.f32 0.03125, %v1395_v42  ;;  %v1564_v8 = vmul.f32 %v3993_v33, %v3993_v33  ;;  %1674 = vadd.xlane.f32.xlu0 %v1673_v52  ;;  %v1392_v46 = vpop.xlane.xlu0 %1391 }
 0x1f8   : > { %v1467_v50 = vmul.f32 0.03125, %v1392_v46  ;;  %v1563_v32 = vmul.f32 %v3998_v60, %v3998_v60 }
 0x1f9   : > { %v4005_v26 = vsub.f32 %v3636_v62, %v1468_v16  ;;  %v1682_v11 = vsel %vm1215_vm2, %v1564_v8, 0.0 }
 0x1fa   : > { %v1305_v57 = vpop.xlane.xlu1 %1304  ;;  %v4011_v9 = vsub.f32 %v3641_v48, %v1467_v50  ;;  %v1679_v46 = vsel %vm1215_vm2, %v1563_v32, 0.0 }
 0x1fb   : > { %1683 = vadd.xlane.f32.xlu1 %v1682_v11  ;;  %v1438_v1 = vmul.f32 0.03125, %v1305_v57  ;;  %v1596_v53 = vmul.f32 %v4005_v26, %v4005_v26  ;;  %1770 = vadd.xlane.f32.xlu0 %v1769_v61  ;;  %v1302_v62 = vpop.xlane.xlu0 %1301 }
 0x1fc   : > { %v1437_v52 = vmul.f32 0.03125, %v1302_v62  ;;  %v1595_v11 = vmul.f32 %v4011_v9, %v4011_v9 }
 0x1fd   : > { %v4017_v42 = vsub.f32 %v3646_v59, %v1438_v1  ;;  %v1778_v16 = vsel %vm1215_vm2, %v1596_v53, 0.0 }
 0x1fe   : > { %v1401_v8 = vpop.xlane.xlu1 %1400  ;;  %v4022_v48 = vsub.f32 %v3651_v23, %v1437_v52  ;;  %v1775_v52 = vsel %vm1215_vm2, %v1595_v11, 0.0 }
 0x1ff   : > { %1779 = vadd.xlane.f32.xlu1 %v1778_v16  ;;  %v1470_v50 = vmul.f32 0.03125, %v1401_v8  ;;  %v1566_v13 = vmul.f32 %v4017_v42, %v4017_v42  ;;  %1680 = vadd.xlane.f32.xlu0 %v1679_v46  ;;  %v1398_v59 = vpop.xlane.xlu0 %1397 }
 0x200   : > { %v1469_v1 = vmul.f32 0.03125, %v1398_v59  ;;  %v1565_v23 = vmul.f32 %v4022_v48, %v4022_v48 }
 0x201   : > { %v4029_v57 = vsub.f32 %v3656_v29, %v1470_v50  ;;  %v1688_v61 = vsel %vm1215_vm2, %v1566_v13, 0.0 }
 0x202   : > { %v1311_v32 = vpop.xlane.xlu1 %1310  ;;  %v4035_v53 = vsub.f32 %v3661_v55, %v1469_v1  ;;  %v1685_v59 = vsel %vm1215_vm2, %v1565_v23, 0.0 }
 0x203   : > { %1689 = vadd.xlane.f32.xlu1 %v1688_v61  ;;  %v1440_v62 = vmul.f32 0.03125, %v1311_v32  ;;  %v1598_v16 = vmul.f32 %v4029_v57, %v4029_v57  ;;  %1776 = vadd.xlane.f32.xlu0 %v1775_v52  ;;  %v1308_v29 = vpop.xlane.xlu0 %1307 }
 0x204   : > { %v1439_v46 = vmul.f32 0.03125, %v1308_v29  ;;  %v1597_v61 = vmul.f32 %v4035_v53, %v4035_v53 }
 0x205   : > { %v4041_v8 = vsub.f32 %v3666_v14, %v1440_v62  ;;  %v1784_v50 = vsel %vm1215_vm2, %v1598_v16, 0.0 }
 0x206   : > { %v1407_v13 = vpop.xlane.xlu1 %1406  ;;  %v4046_v55 = vsub.f32 %v3671_v58, %v1439_v46  ;;  %v1781_v58 = vsel %vm1215_vm2, %v1597_v61, 0.0 }
 0x207   : > { %1785 = vadd.xlane.f32.xlu1 %v1784_v50  ;;  %v1472_v1 = vmul.f32 0.03125, %v1407_v13  ;;  %v1568_v11 = vmul.f32 %v4041_v8, %v4041_v8  ;;  %1686 = vadd.xlane.f32.xlu0 %v1685_v59  ;;  %v1404_v14 = vpop.xlane.xlu0 %1403 }
 0x208   : > { %4497 = vst [vmem:[#allocation17_spill] sm:$0xff] %v4046_v55  ;;  %v1471_v62 = vmul.f32 0.03125, %v1404_v14  ;;  %v1567_v29 = vmul.f32 %v4046_v55, %v4046_v55 }
 0x209   : > { %v4053_v32 = vsub.f32 %v3675_v41, %v1472_v1  ;;  %v1694_v52 = vsel %vm1215_vm2, %v1568_v11, 0.0 }
 0x20a   : > { %v4057_v23 = vsub.f32 %v3679_v4, %v1471_v62  ;;  %v1691_v41 = vsel %vm1215_vm2, %v1567_v29, 0.0 }
 0x20b   : > { %4498 = vst [vmem:[#allocation18_spill] sm:$0xff] %v4053_v32  ;;  %1695 = vadd.xlane.f32.xlu1 %v1694_v52  ;;  %v1600_v16 = vmul.f32 %v4053_v32, %v4053_v32  ;;  %1782 = vadd.xlane.f32.xlu0 %v1781_v58 }
 0x20c   : > { %4499 = vst [vmem:[#allocation19_spill] sm:$0xff] %v4057_v23  ;;  %v1599_v50 = vmul.f32 %v4057_v23, %v4057_v23 }
 0x20d   : > { %v1790_v46 = vsel %vm1215_vm2, %v1600_v16, 0.0 }
 0x20e   : > { %v1787_v4 = vsel %vm1215_vm2, %v1599_v50, 0.0 }
 0x20f   : > { %1791 = vadd.xlane.f32.xlu1 %v1790_v46  ;;  %1692 = vadd.xlane.f32.xlu0 %v1691_v41 }
 0x213   : > { %1788 = vadd.xlane.f32.xlu0 %v1787_v4 }
 0x21c   : > { %v1606_v13 = vpop.xlane.xlu1 %1605 }
 0x21d   : > { %v1794_v59 = vmul.f32 0.03125, %v1606_v13 }
 0x21f   : > { %v1858_v1 = vadd.f32 1e-05, %v1794_v59 }
 0x220   : > { %v1702_v11 = vpop.xlane.xlu1 %1701  ;;  %v1603_v14 = vpop.xlane.xlu0 %1602 }
 0x221   : > { %2756 = vrsqrt.f32 %v1858_v1  ;;  %v1826_v61 = vmul.f32 0.03125, %v1702_v11  ;;  %v1793_v62 = vmul.f32 0.03125, %v1603_v14 }
 0x223   : > { %v1890_v52 = vadd.f32 1e-05, %v1826_v61  ;;  %v1857_v58 = vadd.f32 1e-05, %v1793_v62 }
 0x224   : > { %v1612_v16 = vpop.xlane.xlu1 %1611  ;;  %v1699_v46 = vpop.xlane.xlu0 %1698 }
 0x225   : > { %2758 = vrsqrt.f32 %v1890_v52  ;;  %v1796_v29 = vmul.f32 0.03125, %v1612_v16  ;;  %v1825_v23 = vmul.f32 0.03125, %v1699_v46  ;;  %v4072_v52 = vld [vmem:[%s4404_s3] ss:$0 sm:$0xff] }
 0x226   : > { %2760 = vrsqrt.f32 %v1857_v58 }
 0x227   : > { %v1860_v41 = vadd.f32 1e-05, %v1796_v29  ;;  %v1889_v55 = vadd.f32 1e-05, %v1825_v23 }
 0x228   : > { %v1708_v50 = vpop.xlane.xlu1 %1707  ;;  %v1609_v13 = vpop.xlane.xlu0 %1608 }
 0x229   : > { %2762 = vrsqrt.f32 %v1860_v41  ;;  %v1828_v4 = vmul.f32 0.03125, %v1708_v50  ;;  %v1795_v59 = vmul.f32 0.03125, %v1609_v13 }
 0x22a   : > { %2764 = vrsqrt.f32 %v1889_v55  ;;  %v4078_v55 = vld [vmem:[%s4405_s4] ss:$0 sm:$0xff] }
 0x22b   : > { %v1892_v1 = vadd.f32 1e-05, %v1828_v4  ;;  %v1859_v11 = vadd.f32 1e-05, %v1795_v59 }
 0x22c   : > { %v1618_v32 = vpop.xlane.xlu1 %1617  ;;  %v1705_v14 = vpop.xlane.xlu0 %1704 }
 0x22d   : > { %2766 = vrsqrt.f32 %v1892_v1  ;;  %v1798_v61 = vmul.f32 0.03125, %v1618_v32  ;;  %v1827_v23 = vmul.f32 0.03125, %v1705_v14 }
 0x22e   : > { %v2757_v62 = vpop.eup %2756  ;;  %2768 = vrsqrt.f32 %v1859_v11 }
 0x22f   : > { %v1986_v58 = vmul.f32 %v2757_v62, %v3689_v63  ;;  %v1862_v16 = vadd.f32 1e-05, %v1798_v61  ;;  %v1891_v29 = vadd.f32 1e-05, %v1827_v23 }
 0x230   : > { %v1714_v32 = vpop.xlane.xlu1 %1713  ;;  %v1615_v50 = vpop.xlane.xlu0 %1614 }
 0x231   : > { %v2057_v46 = vmul.f32 %v4072_v52, %v1986_v58  ;;  %2770 = vrsqrt.f32 %v1862_v16  ;;  %v1830_v41 = vmul.f32 0.03125, %v1714_v32  ;;  %v1797_v63 = vmul.f32 0.03125, %v1615_v50 }
 0x232   : > { %v2759_v4 = vpop.eup %2758  ;;  %2772 = vrsqrt.f32 %v1891_v29 }
 0x233   : > { %v2761_v13 = vpop.eup %2760  ;;  %v2128_v59 = vadd.f32 %v4078_v55, %v2057_v46  ;;  %v2018_v1 = vmul.f32 %v2759_v4, %v3686_v44  ;;  %v1894_v11 = vadd.f32 1e-05, %v1830_v41  ;;  %v1861_v14 = vadd.f32 1e-05, %v1797_v63 }
 0x234   : > { %v1985_v61 = vmul.f32 %v2761_v13, %v3700_v40  ;;  %v1624_v62 = vpop.xlane.xlu1 %1623  ;;  %v1711_v16 = vpop.xlane.xlu0 %1710 }
 0x235   : > { %2192 = vst.msk [vmem:[%s4086_s15 + $0x8] sm:$0xff] %vm1215_vm2, %v2128_v59  ;;  %v2089_v23 = vmul.f32 %v4072_v52, %v2018_v1  ;;  %2774 = vrsqrt.f32 %v1894_v11  ;;  %v1800_v58 = vmul.f32 0.03125, %v1624_v62  ;;  %v1829_v46 = vmul.f32 0.03125, %v1711_v16 }
 0x236   : > { %v2763_v29 = vpop.eup %2762  ;;  %v2056_v32 = vmul.f32 %v4072_v52, %v1985_v61  ;;  %2776 = vrsqrt.f32 %v1861_v14 }
 0x237   : > { %v2765_v44 = vpop.eup %2764  ;;  %v2160_v41 = vadd.f32 %v4078_v55, %v2089_v23  ;;  %v1988_v40 = vmul.f32 %v2763_v29, %v3694_v38  ;;  %v1864_v50 = vadd.f32 1e-05, %v1800_v58  ;;  %v1893_v13 = vadd.f32 1e-05, %v1829_v46 }
 0x238   : > { %v2127_v4 = vadd.f32 %v4078_v55, %v2056_v32  ;;  %v2017_v63 = vmul.f32 %v2765_v44, %v3711_v19  ;;  %v1720_v59 = vpop.xlane.xlu1 %1719  ;;  %v1621_v61 = vpop.xlane.xlu0 %1620 }
 0x239   : > { %2224 = vst.msk [vmem:[%s4086_s15 + $0x108] sm:$0xff] %vm1215_vm2, %v2160_v41  ;;  %v2059_v1 = vmul.f32 %v4072_v52, %v1988_v40  ;;  %2778 = vrsqrt.f32 %v1864_v50  ;;  %v1832_v11 = vmul.f32 0.03125, %v1720_v59  ;;  %v1799_v62 = vmul.f32 0.03125, %v1621_v61 }
 0x23a   : > { %v2767_v14 = vpop.eup %2766  ;;  %2191 = vst.msk [vmem:[%s4086_s15] sm:$0xff] %vm1215_vm2, %v2127_v4  ;;  %v2088_v38 = vmul.f32 %v4072_v52, %v2017_v63  ;;  %2780 = vrsqrt.f32 %v1893_v13 }
 0x23b   : > { %v2769_v23 = vpop.eup %2768  ;;  %v2130_v19 = vadd.f32 %v4078_v55, %v2059_v1  ;;  %v2020_v58 = vmul.f32 %v2767_v14, %v3705_v51  ;;  %v1896_v16 = vadd.f32 1e-05, %v1832_v11  ;;  %v1863_v46 = vadd.f32 1e-05, %v1799_v62 }
 0x23c   : > { %v2159_v29 = vadd.f32 %v4078_v55, %v2088_v38  ;;  %v1987_v32 = vmul.f32 %v2769_v23, %v3715_v12  ;;  %v1630_v44 = vpop.xlane.xlu1 %1629  ;;  %v1717_v50 = vpop.xlane.xlu0 %1716 }
 0x23d   : > { %2194 = vst.msk [vmem:[%s4086_s15 + $0x18] sm:$0xff] %vm1215_vm2, %v2130_v19  ;;  %v2091_v41 = vmul.f32 %v4072_v52, %v2020_v58  ;;  %2782 = vrsqrt.f32 %v1896_v16  ;;  %v1802_v40 = vmul.f32 0.03125, %v1630_v44  ;;  %v1831_v63 = vmul.f32 0.03125, %v1717_v50 }
 0x23e   : > { %v2771_v4 = vpop.eup %2770  ;;  %2223 = vst.msk [vmem:[%s4086_s15 + $0x100] sm:$0xff] %vm1215_vm2, %v2159_v29  ;;  %v2058_v51 = vmul.f32 %v4072_v52, %v1987_v32  ;;  %2784 = vrsqrt.f32 %v1863_v46 }
 0x23f   : > { %v2773_v13 = vpop.eup %2772  ;;  %v2162_v12 = vadd.f32 %v4078_v55, %v2091_v41  ;;  %v1990_v59 = vmul.f32 %v2771_v4, %v3729_v49  ;;  %v1866_v1 = vadd.f32 1e-05, %v1802_v40  ;;  %v1895_v14 = vadd.f32 1e-05, %v1831_v63 }
 0x240   : > { %v2129_v11 = vadd.f32 %v4078_v55, %v2058_v51  ;;  %v2019_v61 = vmul.f32 %v2773_v13, %v3723_v21  ;;  %v1726_v38 = vpop.xlane.xlu1 %1725  ;;  %v1627_v19 = vpop.xlane.xlu0 %1626 }
 0x241   : > { %2226 = vst.msk [vmem:[%s4086_s15 + $0x118] sm:$0xff] %vm1215_vm2, %v2162_v12  ;;  %v2061_v62 = vmul.f32 %v4072_v52, %v1990_v59  ;;  %2786 = vrsqrt.f32 %v1866_v1  ;;  %v1834_v23 = vmul.f32 0.03125, %v1726_v38  ;;  %v1801_v16 = vmul.f32 0.03125, %v1627_v19 }
 0x242   : > { %v2775_v58 = vpop.eup %2774  ;;  %2193 = vst.msk [vmem:[%s4086_s15 + $0x10] sm:$0xff] %vm1215_vm2, %v2129_v11  ;;  %v2090_v49 = vmul.f32 %v4072_v52, %v2019_v61  ;;  %2788 = vrsqrt.f32 %v1895_v14 }
 0x243   : > { %v2777_v29 = vpop.eup %2776  ;;  %v2132_v21 = vadd.f32 %v4078_v55, %v2061_v62  ;;  %v2022_v32 = vmul.f32 %v2775_v58, %v3741_v28  ;;  %v1898_v46 = vadd.f32 1e-05, %v1834_v23  ;;  %v1865_v40 = vadd.f32 1e-05, %v1801_v16 }
 0x244   : > { %v2161_v44 = vadd.f32 %v4078_v55, %v2090_v49  ;;  %v1989_v41 = vmul.f32 %v2777_v29, %v3734_v10  ;;  %v1636_v50 = vpop.xlane.xlu1 %1635  ;;  %v1723_v63 = vpop.xlane.xlu0 %1722 }
 0x245   : > { %2196 = vst.msk [vmem:[%s4086_s15 + $0x28] sm:$0xff] %vm1215_vm2, %v2132_v21  ;;  %v2093_v4 = vmul.f32 %v4072_v52, %v2022_v32  ;;  %2790 = vrsqrt.f32 %v1898_v46  ;;  %v1804_v51 = vmul.f32 0.03125, %v1636_v50  ;;  %v1833_v12 = vmul.f32 0.03125, %v1723_v63 }
 0x246   : > { %v2779_v13 = vpop.eup %2778  ;;  %2225 = vst.msk [vmem:[%s4086_s15 + $0x110] sm:$0xff] %vm1215_vm2, %v2161_v44  ;;  %v2060_v28 = vmul.f32 %v4072_v52, %v1989_v41  ;;  %2792 = vrsqrt.f32 %v1865_v40 }
 0x247   : > { %v2781_v59 = vpop.eup %2780  ;;  %v2164_v10 = vadd.f32 %v4078_v55, %v2093_v4  ;;  %v1992_v1 = vmul.f32 %v2779_v13, %v3753_v35  ;;  %v1868_v11 = vadd.f32 1e-05, %v1804_v51  ;;  %v1897_v38 = vadd.f32 1e-05, %v1833_v12 }
 0x248   : > { %v2131_v61 = vadd.f32 %v4078_v55, %v2060_v28  ;;  %v2021_v14 = vmul.f32 %v2781_v59, %v3747_v7  ;;  %v1732_v62 = vpop.xlane.xlu1 %1731  ;;  %v1633_v58 = vpop.xlane.xlu0 %1632 }
 0x249   : > { %2228 = vst.msk [vmem:[%s4086_s15 + $0x128] sm:$0xff] %vm1215_vm2, %v2164_v10  ;;  %v2063_v23 = vmul.f32 %v4072_v52, %v1992_v1  ;;  %2794 = vrsqrt.f32 %v1868_v11  ;;  %v1836_v19 = vmul.f32 0.03125, %v1732_v62  ;;  %v1803_v16 = vmul.f32 0.03125, %v1633_v58 }
 0x24a   : > { %v2783_v49 = vpop.eup %2782  ;;  %2195 = vst.msk [vmem:[%s4086_s15 + $0x20] sm:$0xff] %vm1215_vm2, %v2131_v61  ;;  %v2092_v35 = vmul.f32 %v4072_v52, %v2021_v14  ;;  %2796 = vrsqrt.f32 %v1897_v38 }
 0x24b   : > { %v2785_v29 = vpop.eup %2784  ;;  %v2134_v7 = vadd.f32 %v4078_v55, %v2063_v23  ;;  %v2024_v21 = vmul.f32 %v2783_v49, %v3765_v6  ;;  %v1900_v32 = vadd.f32 1e-05, %v1836_v19  ;;  %v1867_v41 = vadd.f32 1e-05, %v1803_v16 }
 0x24c   : > { %v2163_v46 = vadd.f32 %v4078_v55, %v2092_v35  ;;  %v1991_v44 = vmul.f32 %v2785_v29, %v3758_v45  ;;  %v1642_v40 = vpop.xlane.xlu1 %1641  ;;  %v1729_v51 = vpop.xlane.xlu0 %1728 }
 0x24d   : > { %2198 = vst.msk [vmem:[%s4086_s15 + $0x38] sm:$0xff] %vm1215_vm2, %v2134_v7  ;;  %v2095_v50 = vmul.f32 %v4072_v52, %v2024_v21  ;;  %2798 = vrsqrt.f32 %v1900_v32  ;;  %v1806_v4 = vmul.f32 0.03125, %v1642_v40  ;;  %v1835_v13 = vmul.f32 0.03125, %v1729_v51 }
 0x24e   : > { %v2787_v63 = vpop.eup %2786  ;;  %2227 = vst.msk [vmem:[%s4086_s15 + $0x120] sm:$0xff] %vm1215_vm2, %v2163_v46  ;;  %v2062_v6 = vmul.f32 %v4072_v52, %v1991_v44  ;;  %2800 = vrsqrt.f32 %v1867_v41 }
 0x24f   : > { %v2789_v28 = vpop.eup %2788  ;;  %v2166_v45 = vadd.f32 %v4078_v55, %v2095_v50  ;;  %v1994_v12 = vmul.f32 %v2787_v63, %v3777_v5  ;;  %v1870_v59 = vadd.f32 1e-05, %v1806_v4  ;;  %v1899_v11 = vadd.f32 1e-05, %v1835_v13 }
 0x250   : > { %v2133_v10 = vadd.f32 %v4078_v55, %v2062_v6  ;;  %v2023_v1 = vmul.f32 %v2789_v28, %v3771_v37  ;;  %v1738_v61 = vpop.xlane.xlu1 %1737  ;;  %v1639_v62 = vpop.xlane.xlu0 %1638 }
 0x251   : > { %2230 = vst.msk [vmem:[%s4086_s15 + $0x138] sm:$0xff] %vm1215_vm2, %v2166_v45  ;;  %v2065_v14 = vmul.f32 %v4072_v52, %v1994_v12  ;;  %2802 = vrsqrt.f32 %v1870_v59  ;;  %v1838_v38 = vmul.f32 0.03125, %v1738_v61  ;;  %v1805_v19 = vmul.f32 0.03125, %v1639_v62 }
 0x252   : > { %v2791_v23 = vpop.eup %2790  ;;  %2197 = vst.msk [vmem:[%s4086_s15 + $0x30] sm:$0xff] %vm1215_vm2, %v2133_v10  ;;  %v2094_v5 = vmul.f32 %v4072_v52, %v2023_v1  ;;  %2804 = vrsqrt.f32 %v1899_v11 }
 0x253   : > { %v2793_v58 = vpop.eup %2792  ;;  %v2136_v37 = vadd.f32 %v4078_v55, %v2065_v14  ;;  %v2026_v49 = vmul.f32 %v2791_v23, %v3789_v34  ;;  %v1902_v35 = vadd.f32 1e-05, %v1838_v38  ;;  %v1869_v7 = vadd.f32 1e-05, %v1805_v19 }
 0x254   : > { %v2165_v16 = vadd.f32 %v4078_v55, %v2094_v5  ;;  %v1993_v29 = vmul.f32 %v2793_v58, %v3782_v30  ;;  %v1648_v21 = vpop.xlane.xlu1 %1647  ;;  %v1735_v44 = vpop.xlane.xlu0 %1734 }
 0x255   : > { %2200 = vst.msk [vmem:[%s4086_s15 + $0x48] sm:$0xff] %vm1215_vm2, %v2136_v37  ;;  %v2097_v32 = vmul.f32 %v4072_v52, %v2026_v49  ;;  %2806 = vrsqrt.f32 %v1902_v35  ;;  %v1808_v46 = vmul.f32 0.03125, %v1648_v21  ;;  %v1837_v40 = vmul.f32 0.03125, %v1735_v44 }
 0x256   : > { %v2795_v41 = vpop.eup %2794  ;;  %2229 = vst.msk [vmem:[%s4086_s15 + $0x130] sm:$0xff] %vm1215_vm2, %v2165_v16  ;;  %v2064_v34 = vmul.f32 %v4072_v52, %v1993_v29  ;;  %2808 = vrsqrt.f32 %v1869_v7 }
 0x257   : > { %v2797_v50 = vpop.eup %2796  ;;  %v2168_v30 = vadd.f32 %v4078_v55, %v2097_v32  ;;  %v1996_v4 = vmul.f32 %v2795_v41, %v3801_v2  ;;  %v1872_v51 = vadd.f32 1e-05, %v1808_v46  ;;  %v1901_v13 = vadd.f32 1e-05, %v1837_v40 }
 0x258   : > { %v2135_v63 = vadd.f32 %v4078_v55, %v2064_v34  ;;  %v2025_v6 = vmul.f32 %v2797_v50, %v3795_v15  ;;  %v1744_v28 = vpop.xlane.xlu1 %1743  ;;  %v1645_v59 = vpop.xlane.xlu0 %1644 }
 0x259   : > { %2232 = vst.msk [vmem:[%s4086_s15 + $0x148] sm:$0xff] %vm1215_vm2, %v2168_v30  ;;  %v2067_v45 = vmul.f32 %v4072_v52, %v1996_v4  ;;  %2810 = vrsqrt.f32 %v1872_v51  ;;  %v1840_v12 = vmul.f32 0.03125, %v1744_v28  ;;  %v1807_v1 = vmul.f32 0.03125, %v1645_v59 }
 0x25a   : > { %v2799_v10 = vpop.eup %2798  ;;  %2199 = vst.msk [vmem:[%s4086_s15 + $0x40] sm:$0xff] %vm1215_vm2, %v2135_v63  ;;  %v2096_v2 = vmul.f32 %v4072_v52, %v2025_v6  ;;  %2812 = vrsqrt.f32 %v1901_v13 }
 0x25b   : > { %v2801_v11 = vpop.eup %2800  ;;  %v2138_v15 = vadd.f32 %v4078_v55, %v2067_v45  ;;  %v2028_v61 = vmul.f32 %v2799_v10, %v3813_v22  ;;  %v1904_v14 = vadd.f32 1e-05, %v1840_v12  ;;  %v1871_v23 = vadd.f32 1e-05, %v1807_v1 }
 0x25c   : > { %v2167_v38 = vadd.f32 %v4078_v55, %v2096_v2  ;;  %v1995_v62 = vmul.f32 %v2801_v11, %v3806_v18  ;;  %v1654_v5 = vpop.xlane.xlu1 %1653  ;;  %v1741_v37 = vpop.xlane.xlu0 %1740 }
 0x25d   : > { %2202 = vst.msk [vmem:[%s4086_s15 + $0x58] sm:$0xff] %vm1215_vm2, %v2138_v15  ;;  %v2099_v19 = vmul.f32 %v4072_v52, %v2028_v61  ;;  %2814 = vrsqrt.f32 %v1904_v14  ;;  %v1810_v58 = vmul.f32 0.03125, %v1654_v5  ;;  %v1839_v35 = vmul.f32 0.03125, %v1741_v37  ;;  %v4500_v15 = vld [vmem:[#allocation3_spill] sm:$0xff] }
 0x25e   : > { %v2803_v49 = vpop.eup %2802  ;;  %2231 = vst.msk [vmem:[%s4086_s15 + $0x140] sm:$0xff] %vm1215_vm2, %v2167_v38  ;;  %v2066_v22 = vmul.f32 %v4072_v52, %v1995_v62  ;;  %2816 = vrsqrt.f32 %v1871_v23  ;;  %v4501_v62 = vld [vmem:[#allocation2_spill] sm:$0xff] }
 0x25f   : > { %v2805_v16 = vpop.eup %2804  ;;  %v2170_v18 = vadd.f32 %v4078_v55, %v2099_v19  ;;  %v1998_v29 = vmul.f32 %v2803_v49, %v3825_v47  ;;  %v1874_v7 = vadd.f32 1e-05, %v1810_v58  ;;  %v1903_v46 = vadd.f32 1e-05, %v1839_v35 }
 0x260   : > { %v2137_v21 = vadd.f32 %v4078_v55, %v2066_v22  ;;  %v2027_v32 = vmul.f32 %v2805_v16, %v3819_v27  ;;  %v1750_v44 = vpop.xlane.xlu1 %1749  ;;  %v1651_v40 = vpop.xlane.xlu0 %1650 }
 0x261   : > { %2234 = vst.msk [vmem:[%s4086_s15 + $0x158] sm:$0xff] %vm1215_vm2, %v2170_v18  ;;  %v2069_v41 = vmul.f32 %v4072_v52, %v1998_v29  ;;  %2818 = vrsqrt.f32 %v1874_v7  ;;  %v1842_v34 = vmul.f32 0.03125, %v1750_v44  ;;  %v1809_v30 = vmul.f32 0.03125, %v1651_v40  ;;  %v4502_v7 = vld [vmem:[#allocation5_spill] sm:$0xff]  ;;  %v4503_v44 = vld [vmem:[#allocation4_spill] sm:$0xff] }
 0x262   : > { %v2807_v50 = vpop.eup %2806  ;;  %2201 = vst.msk [vmem:[%s4086_s15 + $0x50] sm:$0xff] %vm1215_vm2, %v2137_v21  ;;  %v2098_v47 = vmul.f32 %v4072_v52, %v2027_v32  ;;  %2820 = vrsqrt.f32 %v1903_v46 }
 0x263   : > { %v2809_v4 = vpop.eup %2808  ;;  %v2140_v27 = vadd.f32 %v4078_v55, %v2069_v41  ;;  %v2030_v51 = vmul.f32 %v2807_v50, %v3837_v31  ;;  %v1906_v63 = vadd.f32 1e-05, %v1842_v34  ;;  %v1873_v28 = vadd.f32 1e-05, %v1809_v30 }
 0x264   : > { %v2169_v6 = vadd.f32 %v4078_v55, %v2098_v47  ;;  %v1997_v13 = vmul.f32 %v2809_v4, %v3830_v56  ;;  %v1660_v45 = vpop.xlane.xlu1 %1659  ;;  %v1747_v10 = vpop.xlane.xlu0 %1746 }
 0x265   : > { %2204 = vst.msk [vmem:[%s4086_s15 + $0x68] sm:$0xff] %vm1215_vm2, %v2140_v27  ;;  %v2101_v12 = vmul.f32 %v4072_v52, %v2030_v51  ;;  %2822 = vrsqrt.f32 %v1906_v63  ;;  %v1812_v59 = vmul.f32 0.03125, %v1660_v45  ;;  %v1841_v1 = vmul.f32 0.03125, %v1747_v10 }
 0x266   : > { %v2811_v2 = vpop.eup %2810  ;;  %2233 = vst.msk [vmem:[%s4086_s15 + $0x150] sm:$0xff] %vm1215_vm2, %v2169_v6  ;;  %v2068_v31 = vmul.f32 %v4072_v52, %v1997_v13  ;;  %2824 = vrsqrt.f32 %v1873_v28  ;;  %v4504_v13 = vld [vmem:[#allocation7_spill] sm:$0xff] }
 0x267   : > { %v2813_v11 = vpop.eup %2812  ;;  %v2172_v56 = vadd.f32 %v4078_v55, %v2101_v12  ;;  %v2000_v61 = vmul.f32 %v2811_v2, %v4500_v15  ;;  %v1876_v14 = vadd.f32 1e-05, %v1812_v59  ;;  %v1905_v5 = vadd.f32 1e-05, %v1841_v1  ;;  %v4505_v59 = vld [vmem:[#allocation6_spill] sm:$0xff] }
 0x268   : > { %v2139_v38 = vadd.f32 %v4078_v55, %v2068_v31  ;;  %v2029_v23 = vmul.f32 %v2813_v11, %v4501_v62  ;;  %v1756_v19 = vpop.xlane.xlu1 %1755  ;;  %v1657_v49 = vpop.xlane.xlu0 %1656 }
 0x269   : > { %2236 = vst.msk [vmem:[%s4086_s15 + $0x168] sm:$0xff] %vm1215_vm2, %v2172_v56  ;;  %v2071_v58 = vmul.f32 %v4072_v52, %v2000_v61  ;;  %2826 = vrsqrt.f32 %v1876_v14  ;;  %v1844_v37 = vmul.f32 0.03125, %v1756_v19  ;;  %v1811_v16 = vmul.f32 0.03125, %v1657_v49 }
 0x26a   : > { %v2815_v22 = vpop.eup %2814  ;;  %2203 = vst.msk [vmem:[%s4086_s15 + $0x60] sm:$0xff] %vm1215_vm2, %v2139_v38  ;;  %v2100_v35 = vmul.f32 %v4072_v52, %v2029_v23  ;;  %2828 = vrsqrt.f32 %v1905_v5  ;;  %v4506_v23 = vld [vmem:[#allocation9_spill] sm:$0xff] }
 0x26b   : > { %v2817_v18 = vpop.eup %2816  ;;  %v2142_v29 = vadd.f32 %v4078_v55, %v2071_v58  ;;  %v2032_v21 = vmul.f32 %v2815_v22, %v4502_v7  ;;  %v1908_v32 = vadd.f32 1e-05, %v1844_v37  ;;  %v1875_v34 = vadd.f32 1e-05, %v1811_v16  ;;  %v4507_v37 = vld [vmem:[#allocation8_spill] sm:$0xff] }
 0x26c   : > { %v2171_v46 = vadd.f32 %v4078_v55, %v2100_v35  ;;  %v1999_v41 = vmul.f32 %v2817_v18, %v4503_v44  ;;  %v1666_v40 = vpop.xlane.xlu1 %1665  ;;  %v1753_v30 = vpop.xlane.xlu0 %1752 }
 0x26d   : > { %2206 = vst.msk [vmem:[%s4086_s15 + $0x78] sm:$0xff] %vm1215_vm2, %v2142_v29  ;;  %v2103_v50 = vmul.f32 %v4072_v52, %v2032_v21  ;;  %2830 = vrsqrt.f32 %v1908_v32  ;;  %v1814_v47 = vmul.f32 0.03125, %v1666_v40  ;;  %v1843_v51 = vmul.f32 0.03125, %v1753_v30 }
 0x26e   : > { %v2819_v4 = vpop.eup %2818  ;;  %2235 = vst.msk [vmem:[%s4086_s15 + $0x160] sm:$0xff] %vm1215_vm2, %v2171_v46  ;;  %v2070_v27 = vmul.f32 %v4072_v52, %v1999_v41  ;;  %2832 = vrsqrt.f32 %v1875_v34  ;;  %v4508_v41 = vld [vmem:[#allocation11_spill] sm:$0xff] }
 0x26f   : > { %v2821_v63 = vpop.eup %2820  ;;  %v2174_v6 = vadd.f32 %v4078_v55, %v2103_v50  ;;  %v2002_v28 = vmul.f32 %v2819_v4, %v4504_v13  ;;  %v1878_v45 = vadd.f32 1e-05, %v1814_v47  ;;  %v1907_v2 = vadd.f32 1e-05, %v1843_v51  ;;  %v4509_v47 = vld [vmem:[#allocation10_spill] sm:$0xff] }
 0x270   : > { %v2141_v12 = vadd.f32 %v4078_v55, %v2070_v27  ;;  %v2031_v10 = vmul.f32 %v2821_v63, %v4505_v59  ;;  %v1762_v31 = vpop.xlane.xlu1 %1761  ;;  %v1663_v56 = vpop.xlane.xlu0 %1662 }
 0x271   : > { %2238 = vst.msk [vmem:[%s4086_s15 + $0x178] sm:$0xff] %vm1215_vm2, %v2174_v6  ;;  %v2073_v1 = vmul.f32 %v4072_v52, %v2002_v28  ;;  %2834 = vrsqrt.f32 %v1878_v45  ;;  %v1846_v11 = vmul.f32 0.03125, %v1762_v31  ;;  %v1813_v14 = vmul.f32 0.03125, %v1663_v56 }
 0x272   : > { %v2823_v15 = vpop.eup %2822  ;;  %2205 = vst.msk [vmem:[%s4086_s15 + $0x70] sm:$0xff] %vm1215_vm2, %v2141_v12  ;;  %v2102_v61 = vmul.f32 %v4072_v52, %v2031_v10  ;;  %2836 = vrsqrt.f32 %v1907_v2 }
 0x273   : > { %v2825_v38 = vpop.eup %2824  ;;  %v2144_v62 = vadd.f32 %v4078_v55, %v2073_v1  ;;  %v2034_v5 = vmul.f32 %v2823_v15, %v4506_v23  ;;  %v1910_v19 = vadd.f32 1e-05, %v1846_v11  ;;  %v1877_v22 = vadd.f32 1e-05, %v1813_v14  ;;  %v4510_v1 = vld [vmem:[#allocation12_spill] sm:$0xff] }
 0x274   : > { %v2173_v58 = vadd.f32 %v4078_v55, %v2102_v61  ;;  %v2001_v49 = vmul.f32 %v2825_v38, %v4507_v37  ;;  %v1672_v35 = vpop.xlane.xlu1 %1671  ;;  %v1759_v29 = vpop.xlane.xlu0 %1758 }
 0x275   : > { %2208 = vst.msk [vmem:[%s4086_s15 + $0x88] sm:$0xff] %vm1215_vm2, %v2144_v62  ;;  %v2105_v16 = vmul.f32 %v4072_v52, %v2034_v5  ;;  %2838 = vrsqrt.f32 %v1910_v19  ;;  %v1816_v18 = vmul.f32 0.03125, %v1672_v35  ;;  %v1845_v32 = vmul.f32 0.03125, %v1759_v29  ;;  %v4512_v35 = vld [vmem:[#allocation13_spill] sm:$0xff] }
 0x276   : > { %v2827_v7 = vpop.eup %2826  ;;  %2237 = vst.msk [vmem:[%s4086_s15 + $0x170] sm:$0xff] %vm1215_vm2, %v2173_v58  ;;  %v2072_v21 = vmul.f32 %v4072_v52, %v2001_v49  ;;  %2840 = vrsqrt.f32 %v1877_v22  ;;  %v4511_v58 = vld [vmem:[#allocation14_spill] sm:$0xff] }
 0x277   : > { %v2829_v46 = vpop.eup %2828  ;;  %v2176_v44 = vadd.f32 %v4078_v55, %v2105_v16  ;;  %v2004_v34 = vmul.f32 %v2827_v7, %v4508_v41  ;;  %v1880_v40 = vadd.f32 1e-05, %v1816_v18  ;;  %v1909_v4 = vadd.f32 1e-05, %v1845_v32 }
 0x278   : > { %v2143_v50 = vadd.f32 %v4078_v55, %v2072_v21  ;;  %v2033_v30 = vmul.f32 %v2829_v46, %v4509_v47  ;;  %v1768_v27 = vpop.xlane.xlu1 %1767  ;;  %v1669_v6 = vpop.xlane.xlu0 %1668 }
 0x279   : > { %2240 = vst.msk [vmem:[%s4086_s15 + $0x188] sm:$0xff] %vm1215_vm2, %v2176_v44  ;;  %v2075_v51 = vmul.f32 %v4072_v52, %v2004_v34  ;;  %2842 = vrsqrt.f32 %v1880_v40  ;;  %v1848_v63 = vmul.f32 0.03125, %v1768_v27  ;;  %v1815_v45 = vmul.f32 0.03125, %v1669_v6 }
 0x27a   : > { %v2831_v13 = vpop.eup %2830  ;;  %2207 = vst.msk [vmem:[%s4086_s15 + $0x80] sm:$0xff] %vm1215_vm2, %v2143_v50  ;;  %v2104_v28 = vmul.f32 %v4072_v52, %v2033_v30  ;;  %2844 = vrsqrt.f32 %v1909_v4  ;;  %v4513_v4 = vld [vmem:[#allocation15_spill] sm:$0xff] }
 0x27b   : > { %v2833_v12 = vpop.eup %2832  ;;  %v2146_v59 = vadd.f32 %v4078_v55, %v2075_v51  ;;  %v2036_v10 = vmul.f32 %v2831_v13, %v3909_v0  ;;  %v1912_v2 = vadd.f32 1e-05, %v1848_v63  ;;  %v1879_v56 = vadd.f32 1e-05, %v1815_v45 }
 0x27c   : > { %v2175_v31 = vadd.f32 %v4078_v55, %v2104_v28  ;;  %v2003_v11 = vmul.f32 %v2833_v12, %v4510_v1  ;;  %v1678_v15 = vpop.xlane.xlu1 %1677  ;;  %v1765_v38 = vpop.xlane.xlu0 %1764 }
 0x27d   : > { %2210 = vst.msk [vmem:[%s4086_s15 + $0x98] sm:$0xff] %vm1215_vm2, %v2146_v59  ;;  %v2107_v61 = vmul.f32 %v4072_v52, %v2036_v10  ;;  %2846 = vrsqrt.f32 %v1912_v2  ;;  %v1818_v14 = vmul.f32 0.03125, %v1678_v15  ;;  %v1847_v23 = vmul.f32 0.03125, %v1765_v38 }
 0x27e   : > { %v2835_v62 = vpop.eup %2834  ;;  %2239 = vst.msk [vmem:[%s4086_s15 + $0x180] sm:$0xff] %vm1215_vm2, %v2175_v31  ;;  %v2074_v0 = vmul.f32 %v4072_v52, %v2003_v11  ;;  %2848 = vrsqrt.f32 %v1879_v56 }
 0x27f   : > { %v2837_v5 = vpop.eup %2836  ;;  %v2178_v19 = vadd.f32 %v4078_v55, %v2107_v61  ;;  %v2006_v37 = vmul.f32 %v2835_v62, %v4511_v58  ;;  %v1882_v49 = vadd.f32 1e-05, %v1818_v14  ;;  %v1911_v18 = vadd.f32 1e-05, %v1847_v23 }
 0x280   : > { %v2145_v22 = vadd.f32 %v4078_v55, %v2074_v0  ;;  %v2035_v16 = vmul.f32 %v2837_v5, %v4512_v35  ;;  %v1774_v29 = vpop.xlane.xlu1 %1773  ;;  %v1675_v32 = vpop.xlane.xlu0 %1674 }
 0x281   : > { %2242 = vst.msk [vmem:[%s4086_s15 + $0x198] sm:$0xff] %vm1215_vm2, %v2178_v19  ;;  %v2077_v7 = vmul.f32 %v4072_v52, %v2006_v37  ;;  %2850 = vrsqrt.f32 %v1882_v49  ;;  %v1850_v21 = vmul.f32 0.03125, %v1774_v29  ;;  %v1817_v41 = vmul.f32 0.03125, %v1675_v32  ;;  %v4514_v37 = vld [vmem:[#allocation16_spill] sm:$0xff] }
 0x282   : > { %v2839_v46 = vpop.eup %2838  ;;  %2209 = vst.msk [vmem:[%s4086_s15 + $0x90] sm:$0xff] %vm1215_vm2, %v2145_v22  ;;  %v2106_v44 = vmul.f32 %v4072_v52, %v2035_v16  ;;  %2852 = vrsqrt.f32 %v1911_v18 }
 0x283   : > { %v2841_v34 = vpop.eup %2840  ;;  %v2148_v40 = vadd.f32 %v4078_v55, %v2077_v7  ;;  %v2038_v50 = vmul.f32 %v2839_v46, %v3933_v25  ;;  %v1914_v47 = vadd.f32 1e-05, %v1850_v21  ;;  %v1881_v51 = vadd.f32 1e-05, %v1817_v41 }
 0x284   : > { %v2177_v30 = vadd.f32 %v4078_v55, %v2106_v44  ;;  %v2005_v27 = vmul.f32 %v2841_v34, %v4513_v4  ;;  %v1684_v63 = vpop.xlane.xlu1 %1683  ;;  %v1771_v28 = vpop.xlane.xlu0 %1770 }
 0x285   : > { %2212 = vst.msk [vmem:[%s4086_s15 + $0xa8] sm:$0xff] %vm1215_vm2, %v2148_v40  ;;  %v2109_v6 = vmul.f32 %v4072_v52, %v2038_v50  ;;  %2854 = vrsqrt.f32 %v1914_v47  ;;  %v1820_v13 = vmul.f32 0.03125, %v1684_v63  ;;  %v1849_v12 = vmul.f32 0.03125, %v1771_v28 }
 0x286   : > { %v2843_v45 = vpop.eup %2842  ;;  %2241 = vst.msk [vmem:[%s4086_s15 + $0x190] sm:$0xff] %vm1215_vm2, %v2177_v30  ;;  %v2076_v25 = vmul.f32 %v4072_v52, %v2005_v27  ;;  %2856 = vrsqrt.f32 %v1881_v51 }
 0x287   : > { %v2845_v59 = vpop.eup %2844  ;;  %v2180_v10 = vadd.f32 %v4078_v55, %v2109_v6  ;;  %v2008_v2 = vmul.f32 %v2843_v45, %v3945_v24  ;;  %v1884_v31 = vadd.f32 1e-05, %v1820_v13  ;;  %v1913_v56 = vadd.f32 1e-05, %v1849_v12 }
 0x288   : > { %v2147_v1 = vadd.f32 %v4078_v55, %v2076_v25  ;;  %v2037_v11 = vmul.f32 %v2845_v59, %v3939_v39  ;;  %v1780_v15 = vpop.xlane.xlu1 %1779  ;;  %v1681_v38 = vpop.xlane.xlu0 %1680 }
 0x289   : > { %2244 = vst.msk [vmem:[%s4086_s15 + $0x1a8] sm:$0xff] %vm1215_vm2, %v2180_v10  ;;  %v2079_v61 = vmul.f32 %v4072_v52, %v2008_v2  ;;  %2858 = vrsqrt.f32 %v1884_v31  ;;  %v1852_v14 = vmul.f32 0.03125, %v1780_v15  ;;  %v1819_v0 = vmul.f32 0.03125, %v1681_v38 }
 0x28a   : > { %v2847_v62 = vpop.eup %2846  ;;  %2211 = vst.msk [vmem:[%s4086_s15 + $0xa0] sm:$0xff] %vm1215_vm2, %v2147_v1  ;;  %v2108_v24 = vmul.f32 %v4072_v52, %v2037_v11  ;;  %2860 = vrsqrt.f32 %v1913_v56 }
 0x28b   : > { %v2849_v23 = vpop.eup %2848  ;;  %v2150_v39 = vadd.f32 %v4078_v55, %v2079_v61  ;;  %v2040_v5 = vmul.f32 %v2847_v62, %v3957_v54  ;;  %v1916_v19 = vadd.f32 1e-05, %v1852_v14  ;;  %v1883_v22 = vadd.f32 1e-05, %v1819_v0 }
 0x28c   : > { %v2179_v58 = vadd.f32 %v4078_v55, %v2108_v24  ;;  %v2007_v49 = vmul.f32 %v2849_v23, %v4514_v37  ;;  %v1690_v35 = vpop.xlane.xlu1 %1689  ;;  %v1777_v29 = vpop.xlane.xlu0 %1776 }
 0x28d   : > { %2214 = vst.msk [vmem:[%s4086_s15 + $0xb8] sm:$0xff] %vm1215_vm2, %v2150_v39  ;;  %v2111_v16 = vmul.f32 %v4072_v52, %v2040_v5  ;;  %2862 = vrsqrt.f32 %v1916_v19  ;;  %v1822_v18 = vmul.f32 0.03125, %v1690_v35  ;;  %v1851_v21 = vmul.f32 0.03125, %v1777_v29 }
 0x28e   : > { %v2851_v7 = vpop.eup %2850  ;;  %2243 = vst.msk [vmem:[%s4086_s15 + $0x1a0] sm:$0xff] %vm1215_vm2, %v2179_v58  ;;  %v2078_v54 = vmul.f32 %v4072_v52, %v2007_v49  ;;  %2864 = vrsqrt.f32 %v1883_v22 }
 0x28f   : > { %v2853_v32 = vpop.eup %2852  ;;  %v2182_v46 = vadd.f32 %v4078_v55, %v2111_v16  ;;  %v2010_v44 = vmul.f32 %v2851_v7, %v3969_v3  ;;  %v1886_v41 = vadd.f32 1e-05, %v1822_v18  ;;  %v1915_v50 = vadd.f32 1e-05, %v1851_v21 }
 0x290   : > { %v2149_v34 = vadd.f32 %v4078_v55, %v2078_v54  ;;  %v2039_v40 = vmul.f32 %v2853_v32, %v3963_v20  ;;  %v1786_v47 = vpop.xlane.xlu1 %1785  ;;  %v1687_v27 = vpop.xlane.xlu0 %1686 }
 0x291   : > { %2246 = vst.msk [vmem:[%s4086_s15 + $0x1b8] sm:$0xff] %vm1215_vm2, %v2182_v46  ;;  %v2081_v30 = vmul.f32 %v4072_v52, %v2010_v44  ;;  %2866 = vrsqrt.f32 %v1886_v41  ;;  %v1854_v4 = vmul.f32 0.03125, %v1786_v47  ;;  %v1821_v63 = vmul.f32 0.03125, %v1687_v27  ;;  %v2885_v27 = vld [vmem:[%s4404_s3] ss:$0 sm:$0xff] }
 0x292   : > { %v2855_v51 = vpop.eup %2854  ;;  %2213 = vst.msk [vmem:[%s4086_s15 + $0xb0] sm:$0xff] %vm1215_vm2, %v2149_v34  ;;  %v2110_v3 = vmul.f32 %v4072_v52, %v2039_v40  ;;  %2868 = vrsqrt.f32 %v1915_v50 }
 0x293   : > { %v2857_v6 = vpop.eup %2856  ;;  %v2152_v20 = vadd.f32 %v4078_v55, %v2081_v30  ;;  %v2042_v13 = vmul.f32 %v2855_v51, %v3981_v17  ;;  %v1918_v28 = vadd.f32 1e-05, %v1854_v4  ;;  %v1885_v12 = vadd.f32 1e-05, %v1821_v63 }
 0x294   : > { %v2181_v45 = vadd.f32 %v4078_v55, %v2110_v3  ;;  %v2009_v25 = vmul.f32 %v2857_v6, %v3974_v36  ;;  %v1696_v59 = vpop.xlane.xlu1 %1695  ;;  %v1783_v31 = vpop.xlane.xlu0 %1782 }
 0x295   : > { %2216 = vst.msk [vmem:[%s4086_s15 + $0xc8] sm:$0xff] %vm1215_vm2, %v2152_v20  ;;  %v2113_v10 = vmul.f32 %v4072_v52, %v2042_v13  ;;  %2870 = vrsqrt.f32 %v1918_v28  ;;  %v1824_v2 = vmul.f32 0.03125, %v1696_v59  ;;  %v1853_v11 = vmul.f32 0.03125, %v1783_v31  ;;  %v4515_v59 = vld [vmem:[#allocation18_spill] sm:$0xff]  ;;  %v4516_v31 = vld [vmem:[#allocation17_spill] sm:$0xff] }
 0x296   : > { %v2859_v1 = vpop.eup %2858  ;;  %2245 = vst.msk [vmem:[%s4086_s15 + $0x1b0] sm:$0xff] %vm1215_vm2, %v2181_v45  ;;  %v2080_v17 = vmul.f32 %v4072_v52, %v2009_v25  ;;  %2872 = vrsqrt.f32 %v1885_v12 }
 0x297   : > { %v2861_v56 = vpop.eup %2860  ;;  %v2184_v36 = vadd.f32 %v4078_v55, %v2113_v10  ;;  %v2012_v15 = vmul.f32 %v2859_v1, %v3993_v33  ;;  %v1888_v61 = vadd.f32 1e-05, %v1824_v2  ;;  %v1917_v62 = vadd.f32 1e-05, %v1853_v11 }
 0x298   : > { %v2151_v14 = vadd.f32 %v4078_v55, %v2080_v17  ;;  %v2041_v38 = vmul.f32 %v2861_v56, %v3987_v43  ;;  %v1792_v24 = vpop.xlane.xlu1 %1791  ;;  %v1693_v39 = vpop.xlane.xlu0 %1692 }
 0x299   : > { %2248 = vst.msk [vmem:[%s4086_s15 + $0x1c8] sm:$0xff] %vm1215_vm2, %v2184_v36  ;;  %v2083_v0 = vmul.f32 %v4072_v52, %v2012_v15  ;;  %2874 = vrsqrt.f32 %v1888_v61  ;;  %v1856_v23 = vmul.f32 0.03125, %v1792_v24  ;;  %v1823_v19 = vmul.f32 0.03125, %v1693_v39  ;;  %v4517_v36 = vld [vmem:[#allocation19_spill] sm:$0xff] }
 0x29a   : > { %v2863_v5 = vpop.eup %2862  ;;  %2215 = vst.msk [vmem:[%s4086_s15 + $0xc0] sm:$0xff] %vm1215_vm2, %v2151_v14  ;;  %v2112_v33 = vmul.f32 %v4072_v52, %v2041_v38  ;;  %2876 = vrsqrt.f32 %v1917_v62 }
 0x29b   : > { %v2865_v58 = vpop.eup %2864  ;;  %v2154_v43 = vadd.f32 %v4078_v55, %v2083_v0  ;;  %v2044_v37 = vmul.f32 %v2863_v5, %v4005_v26  ;;  %v1920_v49 = vadd.f32 1e-05, %v1856_v23  ;;  %v1887_v16 = vadd.f32 1e-05, %v1823_v19 }
 0x29c   : > { %v2183_v22 = vadd.f32 %v4078_v55, %v2112_v33  ;;  %v2011_v35 = vmul.f32 %v2865_v58, %v3998_v60  ;;  %v1789_v29 = vpop.xlane.xlu0 %1788 }
 0x29d   : > { %2218 = vst.msk [vmem:[%s4086_s15 + $0xd8] sm:$0xff] %vm1215_vm2, %v2154_v43  ;;  %v2115_v18 = vmul.f32 %v4072_v52, %v2044_v37  ;;  %2878 = vrsqrt.f32 %v1920_v49  ;;  %v1855_v26 = vmul.f32 0.03125, %v1789_v29 }
 0x29e   : > { %v2867_v7 = vpop.eup %2866  ;;  %2247 = vst.msk [vmem:[%s4086_s15 + $0x1c0] sm:$0xff] %vm1215_vm2, %v2183_v22  ;;  %v2082_v54 = vmul.f32 %v4072_v52, %v2011_v35  ;;  %2880 = vrsqrt.f32 %v1887_v16 }
 0x29f   : > { %v2869_v21 = vpop.eup %2868  ;;  %v2186_v32 = vadd.f32 %v4078_v55, %v2115_v18  ;;  %v2014_v60 = vmul.f32 %v2867_v7, %v4017_v42  ;;  %v1919_v41 = vadd.f32 1e-05, %v1855_v26 }
 0x2a0   : > { %v2153_v46 = vadd.f32 %v4078_v55, %v2082_v54  ;;  %v2043_v44 = vmul.f32 %v2869_v21, %v4011_v9 }
 0x2a1   : > { %2250 = vst.msk [vmem:[%s4086_s15 + $0x1d8] sm:$0xff] %vm1215_vm2, %v2186_v32  ;;  %v2085_v34 = vmul.f32 %v4072_v52, %v2014_v60  ;;  %2882 = vrsqrt.f32 %v1919_v41 }
 0x2a2   : > { %v2871_v40 = vpop.eup %2870  ;;  %2217 = vst.msk [vmem:[%s4086_s15 + $0xd0] sm:$0xff] %vm1215_vm2, %v2153_v46  ;;  %v2114_v50 = vmul.f32 %v4072_v52, %v2043_v44 }
 0x2a3   : > { %v2873_v47 = vpop.eup %2872  ;;  %v2156_v30 = vadd.f32 %v4078_v55, %v2085_v34  ;;  %v2046_v42 = vmul.f32 %v2871_v40, %v4029_v57  ;;  %v2886_v57 = vld [vmem:[%s4405_s4] ss:$0 sm:$0xff] }
 0x2a4   : > { %v2185_v9 = vadd.f32 %v4078_v55, %v2114_v50  ;;  %v2013_v4 = vmul.f32 %v2873_v47, %v4022_v48 }
 0x2a5   : > { %2220 = vst.msk [vmem:[%s4086_s15 + $0xe8] sm:$0xff] %vm1215_vm2, %v2156_v30  ;;  %v2117_v51 = vmul.f32 %v2885_v27, %v2046_v42 }
 0x2a6   : > { %v2875_v52 = vpop.eup %2874  ;;  %2249 = vst.msk [vmem:[%s4086_s15 + $0x1d0] sm:$0xff] %vm1215_vm2, %v2185_v9  ;;  %v2084_v3 = vmul.f32 %v2885_v27, %v2013_v4 }
 0x2a7   : > { %v2877_v63 = vpop.eup %2876  ;;  %v2188_v55 = vadd.f32 %v2886_v57, %v2117_v51  ;;  %v2016_v48 = vmul.f32 %v2875_v52, %v4041_v8 }
 0x2a8   : > { %v2155_v6 = vadd.f32 %v2886_v57, %v2084_v3  ;;  %v2045_v20 = vmul.f32 %v2877_v63, %v4035_v53 }
 0x2a9   : > { %2252 = vst.msk [vmem:[%s4086_s15 + $0x1e8] sm:$0xff] %vm1215_vm2, %v2188_v55  ;;  %v2087_v13 = vmul.f32 %v2885_v27, %v2016_v48 }
 0x2aa   : > { %v2879_v28 = vpop.eup %2878  ;;  %2219 = vst.msk [vmem:[%s4086_s15 + $0xe0] sm:$0xff] %vm1215_vm2, %v2155_v6  ;;  %v2116_v45 = vmul.f32 %v2885_v27, %v2045_v20 }
 0x2ab   : > { %v2881_v25 = vpop.eup %2880  ;;  %v2158_v12 = vadd.f32 %v2886_v57, %v2087_v13  ;;  %v2048_v10 = vmul.f32 %v2879_v28, %v4515_v59 }
 0x2ac   : > { %v2187_v2 = vadd.f32 %v2886_v57, %v2116_v45  ;;  %v2015_v8 = vmul.f32 %v2881_v25, %v4516_v31 }
 0x2ad   : > { %2222 = vst.msk [vmem:[%s4086_s15 + $0xf8] sm:$0xff] %vm1215_vm2, %v2158_v12  ;;  %v2119_v53 = vmul.f32 %v2885_v27, %v2048_v10 }
 0x2ae   : > { %2251 = vst.msk [vmem:[%s4086_s15 + $0x1e0] sm:$0xff] %vm1215_vm2, %v2187_v2  ;;  %v2086_v1 = vmul.f32 %v2885_v27, %v2015_v8  ;;  %v2883_v17 = vpop.eup %2882 }
 0x2af   : > { %v2190_v11 = vadd.f32 %v2886_v57, %v2119_v53  ;;  %v2047_v15 = vmul.f32 %v2883_v17, %v4517_v36 }
 0x2b0   : > { %v2157_v56 = vadd.f32 %v2886_v57, %v2086_v1 }
 0x2b1   : > { %2254 = vst.msk [vmem:[%s4086_s15 + $0x1f8] sm:$0xff] %vm1215_vm2, %v2190_v11  ;;  %v2118_v61 = vmul.f32 %v2885_v27, %v2047_v15 }
 0x2b2   : > { %2221 = vst.msk [vmem:[%s4086_s15 + $0xf0] sm:$0xff] %vm1215_vm2, %v2157_v56 }
 0x2b3   : > { %v2189_v14 = vadd.f32 %v2886_v57, %v2118_v61 }
 0x2b5   : > { %2253 = vst.msk [vmem:[%s4086_s15 + $0x1f0] sm:$0xff] %vm1215_vm2, %v2189_v14 }
 0x2b6 PF: > { %s15_s18 = sadd.s32 1, %s2893_s18  }
 0x2b7   : > { %p12_p4 = scmp.ge.s32.totalorder %s15_s18, 4  }
 0x2b9   :  { %14 = sbr.rel (!%p12_p4) target bundleno = 1 (0x1), region = 70 }

// kernel: project_forward.3
= control target key start
LH: loop header
LB: loop body
LE: loop exit
PB: predicated region body
PF: predicated region fallthrough
CT: control target
= control target key end

     0   :  { %10 = vsyncpa [#allocation3], 0  ;;  %s7600_s0 = inlined_call_operand.vmem [shape: f32[1024,864], index: 0, kind: input, shape index: {}]   ;;  %s7601_s1 = inlined_call_operand.vmem [shape: f32[864,32], index: 1, kind: input, shape index: {}]   ;;  %s7602_s2 = inlined_call_operand.vmem [shape: f32[1,32], index: 2, kind: input, shape index: {}]   ;;  %s7603_s3 = inlined_call_operand.vmem [shape: f32[1,32], index: 3, kind: input, shape index: {}]   ;;  %s7604_s4 = inlined_call_operand.vmem [shape: f32[1,32], index: 4, kind: input, shape index: {}]   ;;  %s7605_s5 = inlined_call_operand.hbm [shape: f32[1024,32], index: 5, kind: output, shape index: {}]  }
   0x1   :  { %12 = vsyncpa [#allocation3 + $0x1], 0  ;;  %s4699_s18 = smov 0   ;;  %s4701_s19 = smov 0  }
   0x2   :  { %s4703_s20 = smov 0   ;;  %s4705_s21 = smov 0  }
   0x3 LB: > { %s4720_s22 = sadd.s32 4294967295, %s4663_s21   ;;  %s3961_s23 = sadd.s32 4294967294, %s4663_s21   ;;  %s4663_s21 = sphi %s4705_s21, %s7796_s21   ;;  %s4659_s20 = sphi %s4703_s20, %s7795_s20   ;;  %s4655_s19 = sphi %s4701_s19, %s7794_s19   ;;  %s4651_s18 = sphi %s4699_s18, %s7793_s18  }
   0x4   : > { %s4724_s24 = sadd.s32 1, %s4663_s21   ;;  %s135_s25 = sadd.s32 1, %s4659_s20 }
   0x5   : > { %s132_s26 = ssub.s32 %s4663_s21, %s4724_s24  ;;  %p145_p0 = scmp.ne.s32.totalorder %s4659_s20, %s4655_s19 }
   0x6   : > { %p133_p1 = scmp.eq.s32.totalorder %s132_s26, 0  ;;  %p146_p2 = scmp.eq.s32.totalorder %s4720_s22, 1 }
   0x7   : > { %p151_p3 = scmp.ne.s32.totalorder %s4655_s19, %s4651_s18  ;;  %p152_p4 = scmp.eq.s32.totalorder %s3961_s23, 1 }
   0x8   : > { %s4735_s27 = scalar_select %p133_p1, %s4659_s20, %s135_s25  }
   0x9   : > { %p4737_p5 = por %p146_p2, %p145_p0  ;;  %p4741_p6 = por %p152_p4, %p151_p3 }
   0xa   : > { %p3964_p7 = scmp.ge.s32.totalorder %s4663_s21, 1  ;;  %p192_p8 = scmp.lt.s32.totalorder %s4663_s21, 3 }
   0xc   : > { %p193_p9 = pnand %p3964_p7, %p192_p8 }
   0xe   : > { %196 = sbr.rel (%p193_p9) target bundleno = 1082 (0x43a), region = 40 }
  0x13   : > { %v692_v0 = vld [vmem:[%s7601_s1 + $0x78] sm:$0xff]  ;;  %v4665_v1 = vmov 0.0   ;;  %v691_v2 = vld [vmem:[%s7601_s1 + $0x70] sm:$0xff]  ;;  %v690_v3 = vld [vmem:[%s7601_s1 + $0x68] sm:$0xff]  ;;  %s3966_s25 = sshll.u32 %s4720_s22, 6  ;;  %vm792_vm0 = vcmask 785408  }
  0x14   : > { %985 = vmatprep.subr.mxu0 %v4665_v1  ;;  %4237 = vmatprep.subr.mxu1 %v4665_v1  ;;  %v689_v4 = vld [vmem:[%s7601_s1 + $0x60] sm:$0xff]  ;;  %v688_v5 = vld [vmem:[%s7601_s1 + $0x58] sm:$0xff]  ;;  %v687_v6 = vld [vmem:[%s7601_s1 + $0x50] sm:$0xff]  ;;  %p222_p10 = scmp.lt.s32.totalorder %s3966_s25, 127  ;;  %vm2845_vm1 = vcmask 261120   ;;  %s4040_s11 = sshll.u32 %s4720_s22, 13 }
  0x15   : > { %986 = vmatpush1.msra.mxu0 %v692_v0  ;;  %4269 = vmatpush1.msra.mxu1 %v692_v0  ;;  %v686_v7 = vld [vmem:[%s7601_s1 + $0x48] sm:$0xff]  ;;  %v685_v8 = vld [vmem:[%s7601_s1 + $0x40] sm:$0xff]  ;;  %v684_v9 = vld [vmem:[%s7601_s1 + $0x38] sm:$0xff]  ;;  %s7550_s15 = scalar_lea.hbm %s7605_s5, %s4040_s11  ;;  %s4666_s17 = smov [#allocation2]  }
  0x16   : > { %987 = vmatprep.subr.mxu0 %v4665_v1  ;;  %4238 = vmatprep.subr.mxu1 %v4665_v1  ;;  %v683_v10 = vld [vmem:[%s7601_s1 + $0x30] sm:$0xff]  ;;  %v682_v11 = vld [vmem:[%s7601_s1 + $0x28] sm:$0xff]  ;;  %v681_v12 = vld [vmem:[%s7601_s1 + $0x20] sm:$0xff]  ;;  %s7798_s25 = smov (!%p222_p10, %s3966_s25), 127 }
  0x17   : > { %988 = vmatpush1.msra.mxu0 %v691_v2  ;;  %4270 = vmatpush1.msra.mxu1 %v691_v2  ;;  %v680_v13 = vld [vmem:[%s7601_s1 + $0x18] sm:$0xff]  ;;  %v679_v14 = vld [vmem:[%s7601_s1 + $0x10] sm:$0xff]  ;;  %v678_v15 = vld [vmem:[%s7601_s1 + $0x8] sm:$0xff]  ;;  %s4301_s16 = smul.u32 56, %s7798_s25 }
  0x18   : > { %989 = vmatprep.subr.mxu0 %v4665_v1  ;;  %4239 = vmatprep.subr.mxu1 %v4665_v1  ;;  %v677_v16 = vld [vmem:[%s7601_s1] sm:$0xff]  ;;  %v708_v17 = vld [vmem:[%s7601_s1 + $0xf8] sm:$0xff]  ;;  %v707_v18 = vld [vmem:[%s7601_s1 + $0xf0] sm:$0xff] }
  0x19   : > { %990 = vmatpush1.msra.mxu0 %v690_v3  ;;  %4271 = vmatpush1.msra.mxu1 %v690_v3  ;;  %v706_v19 = vld [vmem:[%s7601_s1 + $0xe8] sm:$0xff]  ;;  %v705_v20 = vld [vmem:[%s7601_s1 + $0xe0] sm:$0xff]  ;;  %v704_v21 = vld [vmem:[%s7601_s1 + $0xd8] sm:$0xff]  ;;  %s4904_s7 = scalar_lea.vmem %s7600_s0, %s4301_s16 }
  0x1a   : > { %991 = vmatprep.subr.mxu0 %v4665_v1  ;;  %4240 = vmatprep.subr.mxu1 %v4665_v1  ;;  %v703_v22 = vld [vmem:[%s7601_s1 + $0xd0] sm:$0xff]  ;;  %v702_v23 = vld [vmem:[%s7601_s1 + $0xc8] sm:$0xff]  ;;  %v701_v24 = vld [vmem:[%s7601_s1 + $0xc0] sm:$0xff] }
  0x1b   : > { %992 = vmatpush1.msra.mxu0 %v689_v4  ;;  %4272 = vmatpush1.msra.mxu1 %v689_v4  ;;  %v700_v25 = vld [vmem:[%s7601_s1 + $0xb8] sm:$0xff]  ;;  %v699_v26 = vld [vmem:[%s7601_s1 + $0xb0] sm:$0xff]  ;;  %v698_v27 = vld [vmem:[%s7601_s1 + $0xa8] sm:$0xff] }
  0x1c   : > { %993 = vmatprep.subr.mxu0 %v4665_v1  ;;  %4241 = vmatprep.subr.mxu1 %v4665_v1  ;;  %v697_v28 = vld [vmem:[%s7601_s1 + $0xa0] sm:$0xff]  ;;  %v696_v29 = vld [vmem:[%s7601_s1 + $0x98] sm:$0xff]  ;;  %v695_v30 = vld [vmem:[%s7601_s1 + $0x90] sm:$0xff] }
  0x1d   : > { %994 = vmatpush1.msra.mxu0 %v688_v5  ;;  %4273 = vmatpush1.msra.mxu1 %v688_v5  ;;  %v694_v31 = vld [vmem:[%s7601_s1 + $0x88] sm:$0xff]  ;;  %v693_v32 = vld [vmem:[%s7601_s1 + $0x80] sm:$0xff]  ;;  %v724_v37 = vld [vmem:[%s7601_s1 + $0x178] sm:$0xff] }
  0x1e   : > { %995 = vmatprep.subr.mxu0 %v4665_v1  ;;  %4242 = vmatprep.subr.mxu1 %v4665_v1  ;;  %v230_v33 = vld [vmem:[%s4904_s7 + $0x8] sm:$0xff]  ;;  %v229_v35 = vld [vmem:[%s4904_s7] sm:$0xff]  ;;  %v723_v40 = vld [vmem:[%s7601_s1 + $0x170] sm:$0xff] }
  0x1f   : > { %996 = vmatpush1.msra.mxu0 %v687_v6  ;;  %4274 = vmatpush1.msra.mxu1 %v687_v6  ;;  %v566_v34 = vld [vmem:[%s4904_s7 + $0xa88] sm:$0xff]  ;;  %v565_v36 = vld [vmem:[%s4904_s7 + $0xa80] sm:$0xff]  ;;  %v756_v41 = vld [vmem:[%s7601_s1 + $0x278] sm:$0xff] }
  0x20   : > { %997 = vmatprep.subr.mxu0 %v4665_v1  ;;  %4243 = vmatprep.subr.mxu1 %v4665_v1  ;;  %v237_v38 = vld [vmem:[%s4904_s7 + $0x40] sm:$0xff]  ;;  %v236_v42 = vld [vmem:[%s4904_s7 + $0x38] sm:$0xff]  ;;  %v722_v45 = vld [vmem:[%s7601_s1 + $0x168] sm:$0xff] }
  0x21   : > { %998 = vmatpush1.msra.mxu0 %v686_v7  ;;  %4275 = vmatpush1.msra.mxu1 %v686_v7  ;;  %v573_v39 = vld [vmem:[%s4904_s7 + $0xac0] sm:$0xff]  ;;  %v572_v43 = vld [vmem:[%s4904_s7 + $0xab8] sm:$0xff]  ;;  %v243_v48 = vld [vmem:[%s4904_s7 + $0x70] sm:$0xff] }
  0x22   : > { %999 = vmatprep.subr.mxu0 %v4665_v1  ;;  %4244 = vmatprep.subr.mxu1 %v4665_v1  ;;  %v244_v44 = vld [vmem:[%s4904_s7 + $0x78] sm:$0xff]  ;;  %v721_v47 = vld [vmem:[%s7601_s1 + $0x160] sm:$0xff]  ;;  %v579_v49 = vld [vmem:[%s4904_s7 + $0xaf0] sm:$0xff] }
  0x23   : > { %1000 = vmatpush1.msra.mxu0 %v685_v8  ;;  %4276 = vmatpush1.msra.mxu1 %v685_v8  ;;  %v580_v46 = vld [vmem:[%s4904_s7 + $0xaf8] sm:$0xff]  ;;  %v755_v51 = vld [vmem:[%s7601_s1 + $0x270] sm:$0xff]  ;;  %v250_v55 = vld [vmem:[%s4904_s7 + $0xa8] sm:$0xff] }
  0x24   : > { %1001 = vmatprep.subr.mxu0 %v4665_v1  ;;  %4245 = vmatprep.subr.mxu1 %v4665_v1  ;;  %v720_v50 = vld [vmem:[%s7601_s1 + $0x158] sm:$0xff]  ;;  %v251_v52 = vld [vmem:[%s4904_s7 + $0xb0] sm:$0xff]  ;;  %v586_v56 = vld [vmem:[%s4904_s7 + $0xb28] sm:$0xff] }
  0x25   : > { %1002 = vmatpush1.msra.mxu0 %v684_v9  ;;  %4277 = vmatpush1.msra.mxu1 %v684_v9  ;;  %v587_v53 = vld [vmem:[%s4904_s7 + $0xb30] sm:$0xff]  ;;  %v718_v57 = vld [vmem:[%s7601_s1 + $0x148] sm:$0xff]  ;;  %v717_v60 = vld [vmem:[%s7601_s1 + $0x140] sm:$0xff] }
  0x26   : > { %1003 = vmatprep.subr.mxu0 %v4665_v1  ;;  %4246 = vmatprep.subr.mxu1 %v4665_v1  ;;  %v719_v54 = vld [vmem:[%s7601_s1 + $0x150] sm:$0xff]  ;;  %v258_v58 = vld [vmem:[%s4904_s7 + $0xe8] sm:$0xff]  ;;  %v257_v62 = vld [vmem:[%s4904_s7 + $0xe0] sm:$0xff] }
  0x27   : > { %1004 = vmatpush1.msra.mxu0 %v683_v10  ;;  %4278 = vmatpush1.msra.mxu1 %v683_v10  ;;  %v594_v59 = vld [vmem:[%s4904_s7 + $0xb68] sm:$0xff]  ;;  %v593_v63 = vld [vmem:[%s4904_s7 + $0xb60] sm:$0xff]  ;;  %v716_v2 = vld [vmem:[%s7601_s1 + $0x138] sm:$0xff] }
  0x28   : > { %1005 = vmatprep.subr.mxu0 %v4665_v1  ;;  %4247 = vmatprep.subr.mxu1 %v4665_v1  ;;  %v754_v61 = vld [vmem:[%s7601_s1 + $0x268] sm:$0xff]  ;;  %v265_v0 = vld [vmem:[%s4904_s7 + $0x120] sm:$0xff]  ;;  %v715_v4 = vld [vmem:[%s7601_s1 + $0x130] sm:$0xff] }
  0x29   : > { %1006 = vmatpush1.msra.mxu0 %v682_v11  ;;  %4279 = vmatpush1.msra.mxu1 %v682_v11  ;;  %v601_v3 = vld [vmem:[%s4904_s7 + $0xba0] sm:$0xff]  ;;  %v264_v5 = vld [vmem:[%s4904_s7 + $0x118] sm:$0xff]  ;;  %v714_v7 = vld [vmem:[%s7601_s1 + $0x128] sm:$0xff] }
  0x2a   : > { %1007 = vmatprep.subr.mxu0 %v4665_v1  ;;  %4248 = vmatprep.subr.mxu1 %v4665_v1  ;;  %v600_v6 = vld [vmem:[%s4904_s7 + $0xb98] sm:$0xff]  ;;  %v753_v8 = vld [vmem:[%s7601_s1 + $0x260] sm:$0xff] }
  0x2b   : > { %1008 = vmatpush1.msra.mxu0 %v681_v12  ;;  %4280 = vmatpush1.msra.mxu1 %v681_v12  ;;  %v272_v9 = vld [vmem:[%s4904_s7 + $0x158] sm:$0xff]  ;;  %v713_v11 = vld [vmem:[%s7601_s1 + $0x120] sm:$0xff]  ;;  %v271_v12 = vld [vmem:[%s4904_s7 + $0x150] sm:$0xff] }
  0x2c   : > { %1009 = vmatprep.subr.mxu0 %v4665_v1  ;;  %4249 = vmatprep.subr.mxu1 %v4665_v1  ;;  %v608_v10 = vld [vmem:[%s4904_s7 + $0xbd8] sm:$0xff] }
  0x2d   : > { %1010 = vmatpush1.msra.mxu0 %v680_v13  ;;  %4281 = vmatpush1.msra.mxu1 %v680_v13  ;;  %v607_v13 = vld [vmem:[%s4904_s7 + $0xbd0] sm:$0xff] }
  0x2e   : > { %1011 = vmatprep.subr.mxu0 %v4665_v1  ;;  %4250 = vmatprep.subr.mxu1 %v4665_v1 }
  0x2f   : > { %1012 = vmatpush1.msra.mxu0 %v679_v14  ;;  %4282 = vmatpush1.msra.mxu1 %v679_v14  ;;  %v712_v14 = vld [vmem:[%s7601_s1 + $0x118] sm:$0xff] }
  0x30   : > { %1013 = vmatprep.subr.mxu0 %v4665_v1  ;;  %4251 = vmatprep.subr.mxu1 %v4665_v1 }
  0x31   : > { %1014 = vmatpush1.msra.mxu0 %v678_v15  ;;  %4283 = vmatpush1.msra.mxu1 %v678_v15  ;;  %v279_v15 = vld [vmem:[%s4904_s7 + $0x190] sm:$0xff] }
  0x32   : > { %1015 = vmatprep.subr.mxu0 %v4665_v1  ;;  %4252 = vmatprep.subr.mxu1 %v4665_v1 }
  0x33   : > { %1016 = vmatpush1.msra.mxu0 %v677_v16  ;;  %4284 = vmatpush1.msra.mxu1 %v677_v16  ;;  %v615_v16 = vld [vmem:[%s4904_s7 + $0xc10] sm:$0xff] }
  0x34   : > { %1017 = vmatprep.subr.mxu0 %v4665_v1  ;;  %4253 = vmatprep.subr.mxu1 %v4665_v1 }
  0x35   : > { %1018 = vmatpush2.msra.mxu0 %v708_v17  ;;  %4285 = vmatpush2.msra.mxu1 %v708_v17  ;;  %v711_v17 = vld [vmem:[%s7601_s1 + $0x110] sm:$0xff] }
  0x36   : > { %1019 = vmatprep.subr.mxu0 %v4665_v1  ;;  %4254 = vmatprep.subr.mxu1 %v4665_v1 }
  0x37   : > { %1020 = vmatpush2.msra.mxu0 %v707_v18  ;;  %4286 = vmatpush2.msra.mxu1 %v707_v18  ;;  %v752_v18 = vld [vmem:[%s7601_s1 + $0x258] sm:$0xff] }
  0x38   : > { %1021 = vmatprep.subr.mxu0 %v4665_v1  ;;  %4255 = vmatprep.subr.mxu1 %v4665_v1 }
  0x39   : > { %1022 = vmatpush2.msra.mxu0 %v706_v19  ;;  %4287 = vmatpush2.msra.mxu1 %v706_v19  ;;  %v278_v19 = vld [vmem:[%s4904_s7 + $0x188] sm:$0xff] }
  0x3a   : > { %1023 = vmatprep.subr.mxu0 %v4665_v1  ;;  %4256 = vmatprep.subr.mxu1 %v4665_v1 }
  0x3b   : > { %1024 = vmatpush2.msra.mxu0 %v705_v20  ;;  %4288 = vmatpush2.msra.mxu1 %v705_v20  ;;  %v614_v20 = vld [vmem:[%s4904_s7 + $0xc08] sm:$0xff] }
  0x3c   : > { %1025 = vmatprep.subr.mxu0 %v4665_v1  ;;  %4257 = vmatprep.subr.mxu1 %v4665_v1 }
  0x3d   : > { %1026 = vmatpush2.msra.mxu0 %v704_v21  ;;  %4289 = vmatpush2.msra.mxu1 %v704_v21  ;;  %v286_v21 = vld [vmem:[%s4904_s7 + $0x1c8] sm:$0xff] }
  0x3e   : > { %1027 = vmatprep.subr.mxu0 %v4665_v1  ;;  %4258 = vmatprep.subr.mxu1 %v4665_v1 }
  0x3f   : > { %1028 = vmatpush2.msra.mxu0 %v703_v22  ;;  %4290 = vmatpush2.msra.mxu1 %v703_v22  ;;  %v710_v22 = vld [vmem:[%s7601_s1 + $0x108] sm:$0xff] }
  0x40   : > { %1029 = vmatprep.subr.mxu0 %v4665_v1  ;;  %4259 = vmatprep.subr.mxu1 %v4665_v1 }
  0x41   : > { %1030 = vmatpush2.msra.mxu0 %v702_v23  ;;  %4291 = vmatpush2.msra.mxu1 %v702_v23  ;;  %v622_v23 = vld [vmem:[%s4904_s7 + $0xc48] sm:$0xff] }
  0x42   : > { %1031 = vmatprep.subr.mxu0 %v4665_v1  ;;  %4260 = vmatprep.subr.mxu1 %v4665_v1 }
  0x43   : > { %1032 = vmatpush2.msra.mxu0 %v701_v24  ;;  %4292 = vmatpush2.msra.mxu1 %v701_v24  ;;  %v709_v24 = vld [vmem:[%s7601_s1 + $0x100] sm:$0xff] }
  0x44   : > { %1033 = vmatprep.subr.mxu0 %v4665_v1  ;;  %4261 = vmatprep.subr.mxu1 %v4665_v1 }
  0x45   : > { %1034 = vmatpush2.msra.mxu0 %v700_v25  ;;  %4293 = vmatpush2.msra.mxu1 %v700_v25  ;;  %v285_v25 = vld [vmem:[%s4904_s7 + $0x1c0] sm:$0xff] }
  0x46   : > { %1035 = vmatprep.subr.mxu0 %v4665_v1  ;;  %4262 = vmatprep.subr.mxu1 %v4665_v1 }
  0x47   : > { %1036 = vmatpush2.msra.mxu0 %v699_v26  ;;  %4294 = vmatpush2.msra.mxu1 %v699_v26  ;;  %v621_v26 = vld [vmem:[%s4904_s7 + $0xc40] sm:$0xff] }
  0x48   : > { %1037 = vmatprep.subr.mxu0 %v4665_v1  ;;  %4263 = vmatprep.subr.mxu1 %v4665_v1 }
  0x49   : > { %1038 = vmatpush2.msra.mxu0 %v698_v27  ;;  %4295 = vmatpush2.msra.mxu1 %v698_v27  ;;  %v740_v27 = vld [vmem:[%s7601_s1 + $0x1f8] sm:$0xff] }
  0x4a   : > { %1039 = vmatprep.subr.mxu0 %v4665_v1  ;;  %4264 = vmatprep.subr.mxu1 %v4665_v1 }
  0x4b   : > { %1040 = vmatpush2.msra.mxu0 %v697_v28  ;;  %4296 = vmatpush2.msra.mxu1 %v697_v28  ;;  %v751_v28 = vld [vmem:[%s7601_s1 + $0x250] sm:$0xff] }
  0x4c   : > { %1041 = vmatprep.subr.mxu0 %v4665_v1  ;;  %4265 = vmatprep.subr.mxu1 %v4665_v1 }
  0x4d   : > { %1042 = vmatpush2.msra.mxu0 %v696_v29  ;;  %4297 = vmatpush2.msra.mxu1 %v696_v29  ;;  %v293_v29 = vld [vmem:[%s4904_s7 + $0x200] sm:$0xff] }
  0x4e   : > { %1043 = vmatprep.subr.mxu0 %v4665_v1  ;;  %4266 = vmatprep.subr.mxu1 %v4665_v1 }
  0x4f   : > { %1044 = vmatpush2.msra.mxu0 %v695_v30  ;;  %4298 = vmatpush2.msra.mxu1 %v695_v30  ;;  %v629_v30 = vld [vmem:[%s4904_s7 + $0xc80] sm:$0xff] }
  0x50   : > { %1045 = vmatprep.subr.mxu0 %v4665_v1  ;;  %4267 = vmatprep.subr.mxu1 %v4665_v1 }
  0x51   : > { %1046 = vmatpush2.msra.mxu0 %v694_v31  ;;  %4299 = vmatpush2.msra.mxu1 %v694_v31  ;;  %v739_v31 = vld [vmem:[%s7601_s1 + $0x1f0] sm:$0xff] }
  0x52   : > { %1047 = vmatprep.subr.mxu0 %v4665_v1  ;;  %4268 = vmatprep.subr.mxu1 %v4665_v1 }
  0x53   : > { %1048 = vmatpush2.msra.mxu0 %v693_v32  ;;  %4300 = vmatpush2.msra.mxu1 %v693_v32  ;;  %v292_v32 = vld [vmem:[%s4904_s7 + $0x1f8] sm:$0xff] }
  0x54   : > { %1049 = vmatprep.mubr.f32.mxu0 %v230_v33  ;;  %1289 = vmatprep.mubr.f32.mxu1 %v566_v34  ;;  %v628_v33 = vld [vmem:[%s4904_s7 + $0xc78] sm:$0xff]  ;;  %v738_v34 = vld [vmem:[%s7601_s1 + $0x1e8] sm:$0xff] }
  0x55   : > { %1050 = vmatmul.mubr.f32.vlgmr.msra.gmra.mxu0 %v229_v35  ;;  %1290 = vmatmul.mubr.f32.vlgmr.msra.gmra.mxu1 %v565_v36  ;;  %v300_v35 = vld [vmem:[%s4904_s7 + $0x238] sm:$0xff] }
  0x56   : > { %1370 = vmatprep.subr.mxu1 %v4665_v1  ;;  %1755 = vmatprep.subr.mxu0 %v4665_v1  ;;  %v636_v36 = vld [vmem:[%s4904_s7 + $0xcb8] sm:$0xff] }
  0x57   : > { %1371 = vmatpush1.msra.mxu1 %v724_v37  ;;  %1054 = vmatprep.mubr.f32.mxu0 %v237_v38  ;;  %v737_v37 = vld [vmem:[%s7601_s1 + $0x1e0] sm:$0xff]  ;;  %v750_v38 = vld [vmem:[%s7601_s1 + $0x248] sm:$0xff] }
  0x58   : > { %1372 = vmatprep.subr.mxu1 %v4665_v1  ;;  %1294 = vmatprep.mubr.f32.mxu1 %v573_v39  ;;  %v299_v39 = vld [vmem:[%s4904_s7 + $0x230] sm:$0xff] }
  0x59   : > { %1373 = vmatpush1.msra.mxu1 %v723_v40  ;;  %1756 = vmatpush1.msra.mxu0 %v756_v41  ;;  %v635_v40 = vld [vmem:[%s4904_s7 + $0xcb0] sm:$0xff] }
  0x5a   : > { %1055 = vmatmul.mubr.f32.gmra.mxu0 %v236_v42  ;;  %1295 = vmatmul.mubr.f32.gmra.mxu1 %v572_v43  ;;  %v307_v41 = vld [vmem:[%s4904_s7 + $0x270] sm:$0xff]  ;;  %v736_v42 = vld [vmem:[%s7601_s1 + $0x1d8] sm:$0xff] }
  0x5b   : > { %1374 = vmatprep.subr.mxu1 %v4665_v1  ;;  %1059 = vmatprep.mubr.f32.mxu0 %v244_v44  ;;  %v643_v43 = vld [vmem:[%s4904_s7 + $0xcf0] sm:$0xff] }
  0x5c   : > { %1375 = vmatpush1.msra.mxu1 %v722_v45  ;;  %1299 = vmatprep.mubr.f32.mxu1 %v580_v46  ;;  %v735_v44 = vld [vmem:[%s7601_s1 + $0x1d0] sm:$0xff]  ;;  %v306_v45 = vld [vmem:[%s4904_s7 + $0x268] sm:$0xff] }
  0x5d   : > { %1376 = vmatprep.subr.mxu1 %v4665_v1  ;;  %1757 = vmatprep.subr.mxu0 %v4665_v1  ;;  %v642_v46 = vld [vmem:[%s4904_s7 + $0xce8] sm:$0xff] }
  0x5e   : > { %1377 = vmatpush1.msra.mxu1 %v721_v47  ;;  %1060 = vmatmul.mubr.f32.gmra.mxu0 %v243_v48  ;;  %v734_v47 = vld [vmem:[%s7601_s1 + $0x1c8] sm:$0xff]  ;;  %v749_v48 = vld [vmem:[%s7601_s1 + $0x240] sm:$0xff] }
  0x5f   : > { %1300 = vmatmul.mubr.f32.gmra.mxu1 %v579_v49  ;;  %1378 = vmatprep.subr.mxu1 %v4665_v1  ;;  %v314_v49 = vld [vmem:[%s4904_s7 + $0x2a8] sm:$0xff] }
  0x60   : > { %1379 = vmatpush1.msra.mxu1 %v720_v50  ;;  %1758 = vmatpush1.msra.mxu0 %v755_v51  ;;  %v650_v50 = vld [vmem:[%s4904_s7 + $0xd28] sm:$0xff]  ;;  %v733_v51 = vld [vmem:[%s7601_s1 + $0x1c0] sm:$0xff] }
  0x61   : > { %1380 = vmatprep.subr.mxu1 %v4665_v1  ;;  %1064 = vmatprep.mubr.f32.mxu0 %v251_v52  ;;  %v313_v52 = vld [vmem:[%s4904_s7 + $0x2a0] sm:$0xff] }
  0x62   : > { %1304 = vmatprep.mubr.f32.mxu1 %v587_v53  ;;  %1381 = vmatpush1.msra.mxu1 %v719_v54  ;;  %v649_v53 = vld [vmem:[%s4904_s7 + $0xd20] sm:$0xff]  ;;  %v732_v54 = vld [vmem:[%s7601_s1 + $0x1b8] sm:$0xff] }
  0x63   : > { %1065 = vmatmul.mubr.f32.gmra.mxu0 %v250_v55  ;;  %1305 = vmatmul.mubr.f32.gmra.mxu1 %v586_v56  ;;  %v321_v55 = vld [vmem:[%s4904_s7 + $0x2e0] sm:$0xff] }
  0x64   : > { %1382 = vmatprep.subr.mxu1 %v4665_v1  ;;  %1759 = vmatprep.subr.mxu0 %v4665_v1  ;;  %v657_v56 = vld [vmem:[%s4904_s7 + $0xd60] sm:$0xff] }
  0x65   : > { %1383 = vmatpush1.msra.mxu1 %v718_v57  ;;  %1069 = vmatprep.mubr.f32.mxu0 %v258_v58  ;;  %v731_v57 = vld [vmem:[%s7601_s1 + $0x1b0] sm:$0xff]  ;;  %v748_v58 = vld [vmem:[%s7601_s1 + $0x238] sm:$0xff] }
  0x66   : > { %1384 = vmatprep.subr.mxu1 %v4665_v1  ;;  %1309 = vmatprep.mubr.f32.mxu1 %v594_v59  ;;  %v320_v59 = vld [vmem:[%s4904_s7 + $0x2d8] sm:$0xff] }
  0x67   : > { %1385 = vmatpush1.msra.mxu1 %v717_v60  ;;  %1760 = vmatpush1.msra.mxu0 %v754_v61  ;;  %v656_v60 = vld [vmem:[%s4904_s7 + $0xd58] sm:$0xff] }
  0x68   : > { %1070 = vmatmul.mubr.f32.gmra.mxu0 %v257_v62  ;;  %1310 = vmatmul.mubr.f32.gmra.mxu1 %v593_v63  ;;  %v328_v61 = vld [vmem:[%s4904_s7 + $0x318] sm:$0xff]  ;;  %v730_v62 = vld [vmem:[%s7601_s1 + $0x1a8] sm:$0xff] }
  0x69   : > { %1386 = vmatprep.subr.mxu1 %v4665_v1  ;;  %1074 = vmatprep.mubr.f32.mxu0 %v265_v0  ;;  %v664_v63 = vld [vmem:[%s4904_s7 + $0xd98] sm:$0xff]  ;;  %v729_v0 = vld [vmem:[%s7601_s1 + $0x1a0] sm:$0xff] }
  0x6a   : > { %1387 = vmatpush1.msra.mxu1 %v716_v2  ;;  %1314 = vmatprep.mubr.f32.mxu1 %v601_v3  ;;  %v327_v2 = vld [vmem:[%s4904_s7 + $0x310] sm:$0xff] }
  0x6b   : > { %1388 = vmatprep.subr.mxu1 %v4665_v1  ;;  %1761 = vmatprep.subr.mxu0 %v4665_v1  ;;  %v663_v3 = vld [vmem:[%s4904_s7 + $0xd90] sm:$0xff] }
  0x6c   : > { %1389 = vmatpush1.msra.mxu1 %v715_v4  ;;  %1075 = vmatmul.mubr.f32.gmra.mxu0 %v264_v5  ;;  %v728_v4 = vld [vmem:[%s7601_s1 + $0x198] sm:$0xff]  ;;  %v747_v5 = vld [vmem:[%s7601_s1 + $0x230] sm:$0xff] }
  0x6d   : > { %1315 = vmatmul.mubr.f32.gmra.mxu1 %v600_v6  ;;  %1390 = vmatprep.subr.mxu1 %v4665_v1  ;;  %v335_v6 = vld [vmem:[%s4904_s7 + $0x350] sm:$0xff] }
  0x6e   : > { %1391 = vmatpush1.msra.mxu1 %v714_v7  ;;  %1762 = vmatpush1.msra.mxu0 %v753_v8  ;;  %v671_v7 = vld [vmem:[%s4904_s7 + $0xdd0] sm:$0xff] }
  0x6f   : > { %1392 = vmatprep.subr.mxu1 %v4665_v1  ;;  %1079 = vmatprep.mubr.f32.mxu0 %v272_v9  ;;  %v727_v8 = vld [vmem:[%s7601_s1 + $0x190] sm:$0xff]  ;;  %v334_v9 = vld [vmem:[%s4904_s7 + $0x348] sm:$0xff] }
  0x70   : > { %1319 = vmatprep.mubr.f32.mxu1 %v608_v10  ;;  %1393 = vmatpush1.msra.mxu1 %v713_v11  ;;  %v670_v10 = vld [vmem:[%s4904_s7 + $0xdc8] sm:$0xff] }
  0x71   : > { %1080 = vmatmul.mubr.f32.gmra.mxu0 %v271_v12  ;;  %1320 = vmatmul.mubr.f32.gmra.mxu1 %v607_v13  ;;  %v726_v11 = vld [vmem:[%s7601_s1 + $0x188] sm:$0xff]  ;;  %v232_v13 = vld [vmem:[%s4904_s7 + $0x18] sm:$0xff] }
  0x72   : > { %1394 = vmatprep.subr.mxu1 %v4665_v1  ;;  %1763 = vmatprep.subr.mxu0 %v4665_v1  ;;  %v342_v12 = vld [vmem:[%s4904_s7 + $0x388] sm:$0xff] }
  0x73   : > { %1395 = vmatpush1.msra.mxu1 %v712_v14  ;;  %1084 = vmatprep.mubr.f32.mxu0 %v279_v15  ;;  %v725_v14 = vld [vmem:[%s7601_s1 + $0x180] sm:$0xff]  ;;  %v746_v15 = vld [vmem:[%s7601_s1 + $0x228] sm:$0xff] }
  0x74   : > { %1396 = vmatprep.subr.mxu1 %v4665_v1  ;;  %1324 = vmatprep.mubr.f32.mxu1 %v615_v16  ;;  %v341_v16 = vld [vmem:[%s4904_s7 + $0x380] sm:$0xff] }
  0x75   : > { %1397 = vmatpush1.msra.mxu1 %v711_v17  ;;  %1764 = vmatpush1.msra.mxu0 %v752_v18  ;;  %v231_v17 = vld [vmem:[%s4904_s7 + $0x10] sm:$0xff]  ;;  %v784_v18 = vld [vmem:[%s7601_s1 + $0x358] sm:$0xff] }
  0x76   : > { %1085 = vmatmul.mubr.f32.gmra.mxu0 %v278_v19  ;;  %1325 = vmatmul.mubr.f32.gmra.mxu1 %v614_v20  ;;  %v349_v19 = vld [vmem:[%s4904_s7 + $0x3c0] sm:$0xff]  ;;  %v239_v20 = vld [vmem:[%s4904_s7 + $0x50] sm:$0xff] }
  0x77   : > { %1398 = vmatprep.subr.mxu1 %v4665_v1  ;;  %1089 = vmatprep.mubr.f32.mxu0 %v286_v21  ;;  %v783_v21 = vld [vmem:[%s7601_s1 + $0x350] sm:$0xff] }
  0x78   : > { %1399 = vmatpush1.msra.mxu1 %v710_v22  ;;  %1329 = vmatprep.mubr.f32.mxu1 %v622_v23  ;;  %v348_v22 = vld [vmem:[%s4904_s7 + $0x3b8] sm:$0xff]  ;;  %v238_v23 = vld [vmem:[%s4904_s7 + $0x48] sm:$0xff] }
  0x79   : > { %1400 = vmatprep.subr.mxu1 %v4665_v1  ;;  %1765 = vmatprep.subr.mxu0 %v4665_v1 }
  0x7a   : > { %1401 = vmatpush1.msra.mxu1 %v709_v24  ;;  %1090 = vmatmul.mubr.f32.gmra.mxu0 %v285_v25  ;;  %v745_v24 = vld [vmem:[%s7601_s1 + $0x220] sm:$0xff]  ;;  %v356_v25 = vld [vmem:[%s4904_s7 + $0x3f8] sm:$0xff] }
  0x7b   : > { %1330 = vmatmul.mubr.f32.gmra.mxu1 %v621_v26  ;;  %1402 = vmatprep.subr.mxu1 %v4665_v1  ;;  %v246_v26 = vld [vmem:[%s4904_s7 + $0x88] sm:$0xff] }
  0x7c   : > { %1403 = vmatpush2.msra.mxu1 %v740_v27  ;;  %1766 = vmatpush1.msra.mxu0 %v751_v28  ;;  %v744_v27 = vld [vmem:[%s7601_s1 + $0x218] sm:$0xff]  ;;  %v355_v28 = vld [vmem:[%s4904_s7 + $0x3f0] sm:$0xff] }
  0x7d   : > { %1404 = vmatprep.subr.mxu1 %v4665_v1  ;;  %1094 = vmatprep.mubr.f32.mxu0 %v293_v29  ;;  %v245_v29 = vld [vmem:[%s4904_s7 + $0x80] sm:$0xff] }
  0x7e   : > { %1334 = vmatprep.mubr.f32.mxu1 %v629_v30  ;;  %1405 = vmatpush2.msra.mxu1 %v739_v31  ;;  %v363_v30 = vld [vmem:[%s4904_s7 + $0x430] sm:$0xff]  ;;  %v253_v31 = vld [vmem:[%s4904_s7 + $0xc0] sm:$0xff] }
  0x7f   : > { %1095 = vmatmul.mubr.f32.gmra.mxu0 %v292_v32  ;;  %1335 = vmatmul.mubr.f32.gmra.mxu1 %v628_v33  ;;  %v782_v32 = vld [vmem:[%s7601_s1 + $0x348] sm:$0xff]  ;;  %v743_v33 = vld [vmem:[%s7601_s1 + $0x210] sm:$0xff] }
  0x80   : > { %1406 = vmatprep.subr.mxu1 %v4665_v1  ;;  %1767 = vmatprep.subr.mxu0 %v4665_v1 }
  0x81   : > { %1407 = vmatpush2.msra.mxu1 %v738_v34  ;;  %1099 = vmatprep.mubr.f32.mxu0 %v300_v35  ;;  %v362_v34 = vld [vmem:[%s4904_s7 + $0x428] sm:$0xff]  ;;  %v252_v35 = vld [vmem:[%s4904_s7 + $0xb8] sm:$0xff] }
  0x82   : > { %1408 = vmatprep.subr.mxu1 %v4665_v1  ;;  %1339 = vmatprep.mubr.f32.mxu1 %v636_v36  ;;  %v370_v36 = vld [vmem:[%s4904_s7 + $0x468] sm:$0xff] }
  0x83   : > { %1409 = vmatpush2.msra.mxu1 %v737_v37  ;;  %1768 = vmatpush1.msra.mxu0 %v750_v38  ;;  %v260_v37 = vld [vmem:[%s4904_s7 + $0xf8] sm:$0xff]  ;;  %v781_v38 = vld [vmem:[%s7601_s1 + $0x340] sm:$0xff] }
  0x84   : > { %1100 = vmatmul.mubr.f32.gmra.mxu0 %v299_v39  ;;  %1340 = vmatmul.mubr.f32.gmra.mxu1 %v635_v40  ;;  %v742_v39 = vld [vmem:[%s7601_s1 + $0x208] sm:$0xff]  ;;  %v369_v40 = vld [vmem:[%s4904_s7 + $0x460] sm:$0xff] }
  0x85   : > { %1410 = vmatprep.subr.mxu1 %v4665_v1  ;;  %1104 = vmatprep.mubr.f32.mxu0 %v307_v41  ;;  %v259_v41 = vld [vmem:[%s4904_s7 + $0xf0] sm:$0xff] }
  0x86   : > { %1411 = vmatpush2.msra.mxu1 %v736_v42  ;;  %1344 = vmatprep.mubr.f32.mxu1 %v643_v43  ;;  %v377_v42 = vld [vmem:[%s4904_s7 + $0x4a0] sm:$0xff]  ;;  %v267_v43 = vld [vmem:[%s4904_s7 + $0x130] sm:$0xff] }
  0x87   : > { %1412 = vmatprep.subr.mxu1 %v4665_v1  ;;  %1769 = vmatprep.subr.mxu0 %v4665_v1 }
  0x88   : > { %1413 = vmatpush2.msra.mxu1 %v735_v44  ;;  %1105 = vmatmul.mubr.f32.gmra.mxu0 %v306_v45  ;;  %v780_v44 = vld [vmem:[%s7601_s1 + $0x338] sm:$0xff]  ;;  %v741_v45 = vld [vmem:[%s7601_s1 + $0x200] sm:$0xff] }
  0x89   : > { %1345 = vmatmul.mubr.f32.gmra.mxu1 %v642_v46  ;;  %1414 = vmatprep.subr.mxu1 %v4665_v1  ;;  %v376_v46 = vld [vmem:[%s4904_s7 + $0x498] sm:$0xff] }
  0x8a   : > { %1415 = vmatpush2.msra.mxu1 %v734_v47  ;;  %1770 = vmatpush1.msra.mxu0 %v749_v48  ;;  %v266_v47 = vld [vmem:[%s4904_s7 + $0x128] sm:$0xff]  ;;  %v384_v48 = vld [vmem:[%s4904_s7 + $0x4d8] sm:$0xff] }
  0x8b   : > { %1416 = vmatprep.subr.mxu1 %v4665_v1  ;;  %1109 = vmatprep.mubr.f32.mxu0 %v314_v49  ;;  %v274_v49 = vld [vmem:[%s4904_s7 + $0x168] sm:$0xff] }
  0x8c   : > { %1349 = vmatprep.mubr.f32.mxu1 %v650_v50  ;;  %1417 = vmatpush2.msra.mxu1 %v733_v51  ;;  %v779_v50 = vld [vmem:[%s7601_s1 + $0x330] sm:$0xff]  ;;  %v772_v51 = vld [vmem:[%s7601_s1 + $0x2f8] sm:$0xff] }
  0x8d   : > { %1110 = vmatmul.mubr.f32.gmra.mxu0 %v313_v52  ;;  %1350 = vmatmul.mubr.f32.gmra.mxu1 %v649_v53  ;;  %v383_v52 = vld [vmem:[%s4904_s7 + $0x4d0] sm:$0xff]  ;;  %v273_v53 = vld [vmem:[%s4904_s7 + $0x160] sm:$0xff] }
  0x8e   : > { %1418 = vmatprep.subr.mxu1 %v4665_v1  ;;  %1771 = vmatprep.subr.mxu0 %v4665_v1 }
  0x8f   : > { %1419 = vmatpush2.msra.mxu1 %v732_v54  ;;  %1114 = vmatprep.mubr.f32.mxu0 %v321_v55  ;;  %v391_v54 = vld [vmem:[%s4904_s7 + $0x510] sm:$0xff]  ;;  %v281_v55 = vld [vmem:[%s4904_s7 + $0x1a0] sm:$0xff] }
  0x90   : > { %1420 = vmatprep.subr.mxu1 %v4665_v1  ;;  %1354 = vmatprep.mubr.f32.mxu1 %v657_v56  ;;  %v778_v56 = vld [vmem:[%s7601_s1 + $0x328] sm:$0xff] }
  0x91   : > { %1421 = vmatpush2.msra.mxu1 %v731_v57  ;;  %1772 = vmatpush1.msra.mxu0 %v748_v58  ;;  %v771_v57 = vld [vmem:[%s7601_s1 + $0x2f0] sm:$0xff]  ;;  %v390_v58 = vld [vmem:[%s4904_s7 + $0x508] sm:$0xff] }
  0x92   : > { %1115 = vmatmul.mubr.f32.gmra.mxu0 %v320_v59  ;;  %1355 = vmatmul.mubr.f32.gmra.mxu1 %v656_v60  ;;  %v280_v59 = vld [vmem:[%s4904_s7 + $0x198] sm:$0xff]  ;;  %v398_v60 = vld [vmem:[%s4904_s7 + $0x548] sm:$0xff] }
  0x93   : > { %1422 = vmatprep.subr.mxu1 %v4665_v1  ;;  %1119 = vmatprep.mubr.f32.mxu0 %v328_v61  ;;  %v288_v61 = vld [vmem:[%s4904_s7 + $0x1d8] sm:$0xff] }
  0x94   : > { %1423 = vmatpush2.msra.mxu1 %v730_v62  ;;  %1359 = vmatprep.mubr.f32.mxu1 %v664_v63  ;;  %v777_v62 = vld [vmem:[%s7601_s1 + $0x320] sm:$0xff]  ;;  %v770_v63 = vld [vmem:[%s7601_s1 + $0x2e8] sm:$0xff] }
  0x95   : > { %1424 = vmatprep.subr.mxu1 %v4665_v1  ;;  %1773 = vmatprep.subr.mxu0 %v4665_v1 }
  0x96   : > { %1425 = vmatpush2.msra.mxu1 %v729_v0  ;;  %1120 = vmatmul.mubr.f32.gmra.mxu0 %v327_v2  ;;  %v397_v0 = vld [vmem:[%s4904_s7 + $0x540] sm:$0xff]  ;;  %v287_v2 = vld [vmem:[%s4904_s7 + $0x1d0] sm:$0xff] }
  0x97   : > { %1360 = vmatmul.mubr.f32.gmra.mxu1 %v663_v3  ;;  %1426 = vmatprep.subr.mxu1 %v4665_v1  ;;  %v405_v3 = vld [vmem:[%s4904_s7 + $0x580] sm:$0xff] }
  0x98   : > { %1427 = vmatpush2.msra.mxu1 %v728_v4  ;;  %1774 = vmatpush1.msra.mxu0 %v747_v5  ;;  %v295_v4 = vld [vmem:[%s4904_s7 + $0x210] sm:$0xff]  ;;  %v769_v5 = vld [vmem:[%s7601_s1 + $0x2e0] sm:$0xff] }
  0x99   : > { %1428 = vmatprep.subr.mxu1 %v4665_v1  ;;  %1124 = vmatprep.mubr.f32.mxu0 %v335_v6  ;;  %v404_v6 = vld [vmem:[%s4904_s7 + $0x578] sm:$0xff] }
  0x9a   : > { %1364 = vmatprep.mubr.f32.mxu1 %v671_v7  ;;  %1429 = vmatpush2.msra.mxu1 %v727_v8  ;;  %v294_v7 = vld [vmem:[%s4904_s7 + $0x208] sm:$0xff]  ;;  %v412_v8 = vld [vmem:[%s4904_s7 + $0x5b8] sm:$0xff] }
  0x9b   : > { %1125 = vmatmul.mubr.f32.gmra.mxu0 %v334_v9  ;;  %1365 = vmatmul.mubr.f32.gmra.mxu1 %v670_v10  ;;  %v302_v9 = vld [vmem:[%s4904_s7 + $0x248] sm:$0xff]  ;;  %v768_v10 = vld [vmem:[%s7601_s1 + $0x2d8] sm:$0xff] }
  0x9c   : > { %1430 = vmatprep.subr.mxu1 %v4665_v1  ;;  %1775 = vmatprep.subr.mxu0 %v4665_v1 }
  0x9d   : > { %1431 = vmatpush2.msra.mxu1 %v726_v11  ;;  %1129 = vmatprep.mubr.f32.mxu0 %v342_v12  ;;  %v411_v11 = vld [vmem:[%s4904_s7 + $0x5b0] sm:$0xff]  ;;  %v301_v12 = vld [vmem:[%s4904_s7 + $0x240] sm:$0xff] }
  0x9e   : > { %1432 = vmatprep.subr.mxu1 %v4665_v1  ;;  %1434 = vmatprep.mubr.f32.mxu1 %v232_v13  ;;  %v419_v13 = vld [vmem:[%s4904_s7 + $0x5f0] sm:$0xff] }
  0x9f   : > { %1433 = vmatpush2.msra.mxu1 %v725_v14  ;;  %1776 = vmatpush1.msra.mxu0 %v746_v15  ;;  %v309_v14 = vld [vmem:[%s4904_s7 + $0x280] sm:$0xff]  ;;  %v767_v15 = vld [vmem:[%s7601_s1 + $0x2d0] sm:$0xff] }
  0xa0   : > { %1130 = vmatmul.mubr.f32.gmra.mxu0 %v341_v16  ;;  %1435 = vmatmul.mubr.f32.vlgmr.msra.gmra.mxu1 %v231_v17  ;;  %v418_v16 = vld [vmem:[%s4904_s7 + $0x5e8] sm:$0xff]  ;;  %v308_v17 = vld [vmem:[%s4904_s7 + $0x278] sm:$0xff] }
  0xa1   : > { %4117 = vmatprep.subr.mxu1 %v784_v18  ;;  %1134 = vmatprep.mubr.f32.mxu0 %v349_v19  ;;  %v426_v19 = vld [vmem:[%s4904_s7 + $0x628] sm:$0xff] }
  0xa2   : > { %4118 = vmatpush3.msra.mxu1 %v784_v18  ;;  %1439 = vmatprep.mubr.f32.mxu1 %v239_v20  ;;  %v776_v18 = vld [vmem:[%s7601_s1 + $0x318] sm:$0xff] }
  0xa3   : > { %1777 = vmatprep.subr.mxu0 %v4665_v1  ;;  %4119 = vmatprep.subr.mxu1 %v783_v21  ;;  %v316_v20 = vld [vmem:[%s4904_s7 + $0x2b8] sm:$0xff] }
  0xa4   : > { %1135 = vmatmul.mubr.f32.gmra.mxu0 %v348_v22  ;;  %1440 = vmatmul.mubr.f32.gmra.mxu1 %v238_v23  ;;  %v425_v22 = vld [vmem:[%s4904_s7 + $0x620] sm:$0xff]  ;;  %v315_v23 = vld [vmem:[%s4904_s7 + $0x2b0] sm:$0xff] }
  0xa5   : > { %1778 = vmatpush1.msra.mxu0 %v745_v24  ;;  %1139 = vmatprep.mubr.f32.mxu0 %v356_v25  ;;  %v433_v24 = vld [vmem:[%s4904_s7 + $0x660] sm:$0xff]  ;;  %v323_v25 = vld [vmem:[%s4904_s7 + $0x2f0] sm:$0xff] }
  0xa6   : > { %1444 = vmatprep.mubr.f32.mxu1 %v246_v26  ;;  %1779 = vmatprep.subr.mxu0 %v4665_v1  ;;  %v765_v26 = vld [vmem:[%s7601_s1 + $0x2c0] sm:$0xff] }
  0xa7   : > { %1780 = vmatpush1.msra.mxu0 %v744_v27  ;;  %4120 = vmatpush3.msra.mxu1 %v783_v21  ;;  %v766_v21 = vld [vmem:[%s7601_s1 + $0x2c8] sm:$0xff]  ;;  %v432_v27 = vld [vmem:[%s4904_s7 + $0x658] sm:$0xff] }
  0xa8   : > { %1140 = vmatmul.mubr.f32.gmra.mxu0 %v355_v28  ;;  %1445 = vmatmul.mubr.f32.gmra.mxu1 %v245_v29  ;;  %v322_v28 = vld [vmem:[%s4904_s7 + $0x2e8] sm:$0xff]  ;;  %v440_v29 = vld [vmem:[%s4904_s7 + $0x698] sm:$0xff] }
  0xa9   : > { %1144 = vmatprep.mubr.f32.mxu0 %v363_v30  ;;  %1449 = vmatprep.mubr.f32.mxu1 %v253_v31  ;;  %v330_v30 = vld [vmem:[%s4904_s7 + $0x328] sm:$0xff]  ;;  %v764_v31 = vld [vmem:[%s7601_s1 + $0x2b8] sm:$0xff] }
  0xaa   : > { %1781 = vmatprep.subr.mxu0 %v4665_v1  ;;  %4121 = vmatprep.subr.mxu1 %v782_v32 }
  0xab   : > { %1782 = vmatpush1.msra.mxu0 %v743_v33  ;;  %4122 = vmatpush3.msra.mxu1 %v782_v32  ;;  %v439_v32 = vld [vmem:[%s4904_s7 + $0x690] sm:$0xff]  ;;  %v329_v33 = vld [vmem:[%s4904_s7 + $0x320] sm:$0xff] }
  0xac   : > { %1145 = vmatmul.mubr.f32.gmra.mxu0 %v362_v34  ;;  %1450 = vmatmul.mubr.f32.gmra.mxu1 %v252_v35  ;;  %v447_v34 = vld [vmem:[%s4904_s7 + $0x6d0] sm:$0xff]  ;;  %v337_v35 = vld [vmem:[%s4904_s7 + $0x360] sm:$0xff] }
  0xad   : > { %1149 = vmatprep.mubr.f32.mxu0 %v370_v36  ;;  %1454 = vmatprep.mubr.f32.mxu1 %v260_v37  ;;  %v763_v36 = vld [vmem:[%s7601_s1 + $0x2b0] sm:$0xff]  ;;  %v446_v37 = vld [vmem:[%s4904_s7 + $0x6c8] sm:$0xff] }
  0xae   : > { %1783 = vmatprep.subr.mxu0 %v4665_v1  ;;  %4123 = vmatprep.subr.mxu1 %v781_v38 }
  0xaf   : > { %1784 = vmatpush1.msra.mxu0 %v742_v39  ;;  %4124 = vmatpush3.msra.mxu1 %v781_v38  ;;  %v336_v38 = vld [vmem:[%s4904_s7 + $0x358] sm:$0xff]  ;;  %v454_v39 = vld [vmem:[%s4904_s7 + $0x708] sm:$0xff] }
  0xb0   : > { %1150 = vmatmul.mubr.f32.gmra.mxu0 %v369_v40  ;;  %1455 = vmatmul.mubr.f32.gmra.mxu1 %v259_v41  ;;  %v344_v40 = vld [vmem:[%s4904_s7 + $0x398] sm:$0xff]  ;;  %v762_v41 = vld [vmem:[%s7601_s1 + $0x2a8] sm:$0xff] }
  0xb1   : > { %1154 = vmatprep.mubr.f32.mxu0 %v377_v42  ;;  %1459 = vmatprep.mubr.f32.mxu1 %v267_v43  ;;  %v453_v42 = vld [vmem:[%s4904_s7 + $0x700] sm:$0xff]  ;;  %v343_v43 = vld [vmem:[%s4904_s7 + $0x390] sm:$0xff] }
  0xb2   : > { %1785 = vmatprep.subr.mxu0 %v4665_v1  ;;  %4125 = vmatprep.subr.mxu1 %v780_v44 }
  0xb3   : > { %1786 = vmatpush1.msra.mxu0 %v741_v45  ;;  %4126 = vmatpush3.msra.mxu1 %v780_v44  ;;  %v461_v44 = vld [vmem:[%s4904_s7 + $0x740] sm:$0xff]  ;;  %v351_v45 = vld [vmem:[%s4904_s7 + $0x3d0] sm:$0xff] }
  0xb4   : > { %1155 = vmatmul.mubr.f32.gmra.mxu0 %v376_v46  ;;  %1460 = vmatmul.mubr.f32.gmra.mxu1 %v266_v47  ;;  %v761_v46 = vld [vmem:[%s7601_s1 + $0x2a0] sm:$0xff]  ;;  %v460_v47 = vld [vmem:[%s4904_s7 + $0x738] sm:$0xff] }
  0xb5   : > { %1159 = vmatprep.mubr.f32.mxu0 %v384_v48  ;;  %1464 = vmatprep.mubr.f32.mxu1 %v274_v49  ;;  %v350_v48 = vld [vmem:[%s4904_s7 + $0x3c8] sm:$0xff]  ;;  %v775_v49 = vld [vmem:[%s7601_s1 + $0x310] sm:$0xff] }
  0xb6   : > { %1787 = vmatprep.subr.mxu0 %v4665_v1  ;;  %4127 = vmatprep.subr.mxu1 %v779_v50 }
  0xb7   : > { %1788 = vmatpush2.msra.mxu0 %v772_v51  ;;  %4128 = vmatpush3.msra.mxu1 %v779_v50  ;;  %v468_v50 = vld [vmem:[%s4904_s7 + $0x778] sm:$0xff]  ;;  %v358_v51 = vld [vmem:[%s4904_s7 + $0x408] sm:$0xff] }
  0xb8   : > { %1160 = vmatmul.mubr.f32.gmra.mxu0 %v383_v52  ;;  %1465 = vmatmul.mubr.f32.gmra.mxu1 %v273_v53  ;;  %v760_v52 = vld [vmem:[%s7601_s1 + $0x298] sm:$0xff]  ;;  %v467_v53 = vld [vmem:[%s4904_s7 + $0x770] sm:$0xff] }
  0xb9   : > { %1164 = vmatprep.mubr.f32.mxu0 %v391_v54  ;;  %1469 = vmatprep.mubr.f32.mxu1 %v281_v55  ;;  %v357_v54 = vld [vmem:[%s4904_s7 + $0x400] sm:$0xff]  ;;  %v475_v55 = vld [vmem:[%s4904_s7 + $0x7b0] sm:$0xff] }
  0xba   : > { %1789 = vmatprep.subr.mxu0 %v4665_v1  ;;  %4129 = vmatprep.subr.mxu1 %v778_v56 }
  0xbb   : > { %1790 = vmatpush2.msra.mxu0 %v771_v57  ;;  %4130 = vmatpush3.msra.mxu1 %v778_v56  ;;  %v365_v56 = vld [vmem:[%s4904_s7 + $0x440] sm:$0xff]  ;;  %v759_v57 = vld [vmem:[%s7601_s1 + $0x290] sm:$0xff] }
  0xbc   : > { %1165 = vmatmul.mubr.f32.gmra.mxu0 %v390_v58  ;;  %1470 = vmatmul.mubr.f32.gmra.mxu1 %v280_v59  ;;  %v474_v58 = vld [vmem:[%s4904_s7 + $0x7a8] sm:$0xff]  ;;  %v364_v59 = vld [vmem:[%s4904_s7 + $0x438] sm:$0xff] }
  0xbd   : > { %1169 = vmatprep.mubr.f32.mxu0 %v398_v60  ;;  %1474 = vmatprep.mubr.f32.mxu1 %v288_v61  ;;  %v482_v60 = vld [vmem:[%s4904_s7 + $0x7e8] sm:$0xff]  ;;  %v372_v61 = vld [vmem:[%s4904_s7 + $0x478] sm:$0xff] }
  0xbe   : > { %1791 = vmatprep.subr.mxu0 %v4665_v1  ;;  %4131 = vmatprep.subr.mxu1 %v777_v62 }
  0xbf   : > { %1792 = vmatpush2.msra.mxu0 %v770_v63  ;;  %4132 = vmatpush3.msra.mxu1 %v777_v62  ;;  %v758_v62 = vld [vmem:[%s7601_s1 + $0x288] sm:$0xff]  ;;  %v481_v63 = vld [vmem:[%s4904_s7 + $0x7e0] sm:$0xff] }
  0xc0   : > { %1170 = vmatmul.mubr.f32.gmra.mxu0 %v397_v0  ;;  %1475 = vmatmul.mubr.f32.gmra.mxu1 %v287_v2  ;;  %v371_v0 = vld [vmem:[%s4904_s7 + $0x470] sm:$0xff]  ;;  %v489_v2 = vld [vmem:[%s4904_s7 + $0x820] sm:$0xff] }
  0xc1   : > { %1174 = vmatprep.mubr.f32.mxu0 %v405_v3  ;;  %1479 = vmatprep.mubr.f32.mxu1 %v295_v4  ;;  %v379_v3 = vld [vmem:[%s4904_s7 + $0x4b0] sm:$0xff]  ;;  %v757_v4 = vld [vmem:[%s7601_s1 + $0x280] sm:$0xff] }
  0xc2   : > { %1793 = vmatprep.subr.mxu0 %v4665_v1  ;;  %4133 = vmatprep.subr.mxu1 %v776_v18 }
  0xc3   : > { %1794 = vmatpush2.msra.mxu0 %v769_v5  ;;  %4134 = vmatpush3.msra.mxu1 %v776_v18  ;;  %v488_v5 = vld [vmem:[%s4904_s7 + $0x818] sm:$0xff]  ;;  %v399_v18 = vld [vmem:[%s4904_s7 + $0x550] sm:$0xff] }
  0xc4   : > { %1175 = vmatmul.mubr.f32.gmra.mxu0 %v404_v6  ;;  %1480 = vmatmul.mubr.f32.gmra.mxu1 %v294_v7  ;;  %v378_v6 = vld [vmem:[%s4904_s7 + $0x4a8] sm:$0xff]  ;;  %v496_v7 = vld [vmem:[%s4904_s7 + $0x858] sm:$0xff] }
  0xc5   : > { %1179 = vmatprep.mubr.f32.mxu0 %v412_v8  ;;  %1484 = vmatprep.mubr.f32.mxu1 %v302_v9  ;;  %v386_v8 = vld [vmem:[%s4904_s7 + $0x4e8] sm:$0xff]  ;;  %v495_v9 = vld [vmem:[%s4904_s7 + $0x850] sm:$0xff] }
  0xc6   : > { %1795 = vmatprep.subr.mxu0 %v4665_v1  ;;  %4135 = vmatprep.subr.mxu1 %v775_v49 }
  0xc7   : > { %1796 = vmatpush2.msra.mxu0 %v768_v10  ;;  %4136 = vmatpush3.msra.mxu1 %v775_v49  ;;  %v385_v10 = vld [vmem:[%s4904_s7 + $0x4e0] sm:$0xff] }
  0xc8   : > { %1180 = vmatmul.mubr.f32.gmra.mxu0 %v411_v11  ;;  %1485 = vmatmul.mubr.f32.gmra.mxu1 %v301_v12  ;;  %v503_v11 = vld [vmem:[%s4904_s7 + $0x890] sm:$0xff]  ;;  %v393_v12 = vld [vmem:[%s4904_s7 + $0x520] sm:$0xff] }
  0xc9   : > { %1184 = vmatprep.mubr.f32.mxu0 %v419_v13  ;;  %1489 = vmatprep.mubr.f32.mxu1 %v309_v14  ;;  %v774_v13 = vld [vmem:[%s7601_s1 + $0x308] sm:$0xff]  ;;  %v392_v14 = vld [vmem:[%s4904_s7 + $0x518] sm:$0xff] }
  0xca   : > { %1797 = vmatprep.subr.mxu0 %v4665_v1  ;;  %4137 = vmatprep.subr.mxu1 %v774_v13 }
  0xcb   : > { %1798 = vmatpush2.msra.mxu0 %v767_v15  ;;  %v510_v15 = vld [vmem:[%s4904_s7 + $0x8c8] sm:$0xff]  ;;  %4138 = vmatpush3.msra.mxu1 %v774_v13  ;;  %v477_v13 = vld [vmem:[%s4904_s7 + $0x7c0] sm:$0xff] }
  0xcc   : > { %1185 = vmatmul.mubr.f32.gmra.mxu0 %v418_v16  ;;  %1490 = vmatmul.mubr.f32.gmra.mxu1 %v308_v17  ;;  %v400_v16 = vld [vmem:[%s4904_s7 + $0x558] sm:$0xff]  ;;  %v509_v17 = vld [vmem:[%s4904_s7 + $0x8c0] sm:$0xff] }
  0xcd   : > { %1189 = vmatprep.mubr.f32.mxu0 %v426_v19  ;;  %1494 = vmatprep.mubr.f32.mxu1 %v316_v20  ;;  %v517_v19 = vld [vmem:[%s4904_s7 + $0x900] sm:$0xff]  ;;  %v407_v20 = vld [vmem:[%s4904_s7 + $0x590] sm:$0xff] }
  0xce   : > { %1799 = vmatprep.subr.mxu0 %v4665_v1 }
  0xcf   : > { %1800 = vmatpush2.msra.mxu0 %v766_v21  ;;  %v516_v21 = vld [vmem:[%s4904_s7 + $0x8f8] sm:$0xff] }
  0xd0   : > { %1190 = vmatmul.mubr.f32.gmra.mxu0 %v425_v22  ;;  %1495 = vmatmul.mubr.f32.gmra.mxu1 %v315_v23  ;;  %v406_v22 = vld [vmem:[%s4904_s7 + $0x588] sm:$0xff]  ;;  %v524_v23 = vld [vmem:[%s4904_s7 + $0x938] sm:$0xff] }
  0xd1   : > { %1194 = vmatprep.mubr.f32.mxu0 %v433_v24  ;;  %1499 = vmatprep.mubr.f32.mxu1 %v323_v25  ;;  %v414_v24 = vld [vmem:[%s4904_s7 + $0x5c8] sm:$0xff]  ;;  %v523_v25 = vld [vmem:[%s4904_s7 + $0x930] sm:$0xff] }
  0xd2   : > { %1801 = vmatprep.subr.mxu0 %v4665_v1 }
  0xd3   : > { %1802 = vmatpush2.msra.mxu0 %v765_v26  ;;  %v413_v26 = vld [vmem:[%s4904_s7 + $0x5c0] sm:$0xff] }
  0xd4   : > { %1195 = vmatmul.mubr.f32.gmra.mxu0 %v432_v27  ;;  %1500 = vmatmul.mubr.f32.gmra.mxu1 %v322_v28  ;;  %v531_v27 = vld [vmem:[%s4904_s7 + $0x970] sm:$0xff]  ;;  %v421_v28 = vld [vmem:[%s4904_s7 + $0x600] sm:$0xff] }
  0xd5   : > { %1199 = vmatprep.mubr.f32.mxu0 %v440_v29  ;;  %1504 = vmatprep.mubr.f32.mxu1 %v330_v30  ;;  %v530_v29 = vld [vmem:[%s4904_s7 + $0x968] sm:$0xff]  ;;  %v420_v30 = vld [vmem:[%s4904_s7 + $0x5f8] sm:$0xff] }
  0xd6   : > { %1803 = vmatprep.subr.mxu0 %v4665_v1 }
  0xd7   : > { %1804 = vmatpush2.msra.mxu0 %v764_v31  ;;  %v538_v31 = vld [vmem:[%s4904_s7 + $0x9a8] sm:$0xff] }
  0xd8   : > { %1200 = vmatmul.mubr.f32.gmra.mxu0 %v439_v32  ;;  %1505 = vmatmul.mubr.f32.gmra.mxu1 %v329_v33  ;;  %v428_v32 = vld [vmem:[%s4904_s7 + $0x638] sm:$0xff]  ;;  %v773_v33 = vld [vmem:[%s7601_s1 + $0x300] sm:$0xff] }
  0xd9   : > { %1204 = vmatprep.mubr.f32.mxu0 %v447_v34  ;;  %1509 = vmatprep.mubr.f32.mxu1 %v337_v35  ;;  %v537_v34 = vld [vmem:[%s4904_s7 + $0x9a0] sm:$0xff]  ;;  %v427_v35 = vld [vmem:[%s4904_s7 + $0x630] sm:$0xff] }
  0xda   : > { %1805 = vmatprep.subr.mxu0 %v4665_v1  ;;  %4139 = vmatprep.subr.mxu1 %v773_v33 }
  0xdb   : > { %1806 = vmatpush2.msra.mxu0 %v763_v36  ;;  %v545_v36 = vld [vmem:[%s4904_s7 + $0x9e0] sm:$0xff]  ;;  %4140 = vmatpush3.msra.mxu1 %v773_v33 }
  0xdc   : > { %1205 = vmatmul.mubr.f32.gmra.mxu0 %v446_v37  ;;  %1510 = vmatmul.mubr.f32.gmra.mxu1 %v336_v38  ;;  %v435_v37 = vld [vmem:[%s4904_s7 + $0x670] sm:$0xff]  ;;  %v544_v38 = vld [vmem:[%s4904_s7 + $0x9d8] sm:$0xff] }
  0xdd   : > { %1209 = vmatprep.mubr.f32.mxu0 %v454_v39  ;;  %1514 = vmatprep.mubr.f32.mxu1 %v344_v40  ;;  %v434_v39 = vld [vmem:[%s4904_s7 + $0x668] sm:$0xff]  ;;  %v552_v40 = vld [vmem:[%s4904_s7 + $0xa18] sm:$0xff] }
  0xde   : > { %1807 = vmatprep.subr.mxu0 %v4665_v1 }
  0xdf   : > { %1808 = vmatpush2.msra.mxu0 %v762_v41  ;;  %v442_v41 = vld [vmem:[%s4904_s7 + $0x6a8] sm:$0xff] }
  0xe0   : > { %1210 = vmatmul.mubr.f32.gmra.mxu0 %v453_v42  ;;  %1515 = vmatmul.mubr.f32.gmra.mxu1 %v343_v43  ;;  %v551_v42 = vld [vmem:[%s4904_s7 + $0xa10] sm:$0xff]  ;;  %v441_v43 = vld [vmem:[%s4904_s7 + $0x6a0] sm:$0xff] }
  0xe1   : > { %1214 = vmatprep.mubr.f32.mxu0 %v461_v44  ;;  %1519 = vmatprep.mubr.f32.mxu1 %v351_v45 }
  0xe2   : > { %1809 = vmatprep.subr.mxu0 %v4665_v1 }
  0xe3   : > { %1810 = vmatpush2.msra.mxu0 %v761_v46  ;;  %v559_v46 = vld [vmem:[%s4904_s7 + $0xa50] sm:$0xff] }
  0xe4   : > { %1215 = vmatmul.mubr.f32.gmra.mxu0 %v460_v47  ;;  %1520 = vmatmul.mubr.f32.gmra.mxu1 %v350_v48  ;;  %v449_v47 = vld [vmem:[%s4904_s7 + $0x6e0] sm:$0xff] }
  0xe5   : > { %1219 = vmatprep.mubr.f32.mxu0 %v468_v50  ;;  %1524 = vmatprep.mubr.f32.mxu1 %v358_v51  ;;  %v558_v50 = vld [vmem:[%s4904_s7 + $0xa48] sm:$0xff]  ;;  %v448_v51 = vld [vmem:[%s4904_s7 + $0x6d8] sm:$0xff] }
  0xe6   : > { %1811 = vmatprep.subr.mxu0 %v4665_v1 }
  0xe7   : > { %1812 = vmatpush2.msra.mxu0 %v760_v52  ;;  %v456_v52 = vld [vmem:[%s4904_s7 + $0x718] sm:$0xff] }
  0xe8   : > { %1220 = vmatmul.mubr.f32.gmra.mxu0 %v467_v53  ;;  %1525 = vmatmul.mubr.f32.gmra.mxu1 %v357_v54  ;;  %v234_v53 = vld [vmem:[%s4904_s7 + $0x28] sm:$0xff] }
  0xe9   : > { %1224 = vmatprep.mubr.f32.mxu0 %v475_v55  ;;  %1529 = vmatprep.mubr.f32.mxu1 %v365_v56 }
  0xea   : > { %1813 = vmatprep.subr.mxu0 %v4665_v1 }
  0xeb   : > { %1814 = vmatpush2.msra.mxu0 %v759_v57 }
  0xec   : > { %1225 = vmatmul.mubr.f32.gmra.mxu0 %v474_v58  ;;  %1530 = vmatmul.mubr.f32.gmra.mxu1 %v364_v59  ;;  %v455_v58 = vld [vmem:[%s4904_s7 + $0x710] sm:$0xff]  ;;  %v233_v59 = vld [vmem:[%s4904_s7 + $0x20] sm:$0xff] }
  0xed   : > { %1229 = vmatprep.mubr.f32.mxu0 %v482_v60  ;;  %1534 = vmatprep.mubr.f32.mxu1 %v372_v61  ;;  %v463_v60 = vld [vmem:[%s4904_s7 + $0x750] sm:$0xff]  ;;  %v241_v61 = vld [vmem:[%s4904_s7 + $0x60] sm:$0xff] }
  0xee   : > { %1815 = vmatprep.subr.mxu0 %v4665_v1 }
  0xef   : > { %1816 = vmatpush2.msra.mxu0 %v758_v62 }
  0xf0   : > { %1230 = vmatmul.mubr.f32.gmra.mxu0 %v481_v63  ;;  %1535 = vmatmul.mubr.f32.gmra.mxu1 %v371_v0 }
  0xf1   : > { %1234 = vmatprep.mubr.f32.mxu0 %v489_v2  ;;  %1539 = vmatprep.mubr.f32.mxu1 %v379_v3  ;;  %v462_v2 = vld [vmem:[%s4904_s7 + $0x748] sm:$0xff]  ;;  %v240_v3 = vld [vmem:[%s4904_s7 + $0x58] sm:$0xff] }
  0xf2   : > { %1817 = vmatprep.subr.mxu0 %v4665_v1  ;;  %v502_v1 = vld [vmem:[%s4904_s7 + $0x888] sm:$0xff] }
  0xf3   : > { %1818 = vmatpush2.msra.mxu0 %v757_v4 }
  0xf4   : > { %1235 = vmatmul.mubr.f32.gmra.mxu0 %v488_v5  ;;  %1540 = vmatmul.mubr.f32.gmra.mxu1 %v378_v6  ;;  %v470_v5 = vld [vmem:[%s4904_s7 + $0x788] sm:$0xff]  ;;  %v248_v6 = vld [vmem:[%s4904_s7 + $0x98] sm:$0xff] }
  0xf5   : > { %1239 = vmatprep.mubr.f32.mxu0 %v496_v7  ;;  %1544 = vmatprep.mubr.f32.mxu1 %v386_v8 }
  0xf8   : > { %1240 = vmatmul.mubr.f32.gmra.mxu0 %v495_v9  ;;  %1545 = vmatmul.mubr.f32.gmra.mxu1 %v385_v10  ;;  %v469_v9 = vld [vmem:[%s4904_s7 + $0x780] sm:$0xff]  ;;  %v247_v10 = vld [vmem:[%s4904_s7 + $0x90] sm:$0xff] }
  0xf9   : > { %1244 = vmatprep.mubr.f32.mxu0 %v503_v11  ;;  %1549 = vmatprep.mubr.f32.mxu1 %v393_v12 }
  0xfc   : > { %1245 = vmatmul.mubr.f32.gmra.mxu0 %v502_v1  ;;  %1550 = vmatmul.mubr.f32.gmra.mxu1 %v392_v14  ;;  %v255_v1 = vld [vmem:[%s4904_s7 + $0xd0] sm:$0xff] }
  0xfd   : > { %1249 = vmatprep.mubr.f32.mxu0 %v510_v15  ;;  %1554 = vmatprep.mubr.f32.mxu1 %v400_v16  ;;  %v476_v16 = vld [vmem:[%s4904_s7 + $0x7b8] sm:$0xff] }
 0x100   : > { %1250 = vmatmul.mubr.f32.gmra.mxu0 %v509_v17  ;;  %1555 = vmatmul.mubr.f32.gmra.mxu1 %v399_v18  ;;  %v254_v17 = vld [vmem:[%s4904_s7 + $0xc8] sm:$0xff]  ;;  %v484_v18 = vld [vmem:[%s4904_s7 + $0x7f8] sm:$0xff] }
 0x101   : > { %1254 = vmatprep.mubr.f32.mxu0 %v517_v19  ;;  %1559 = vmatprep.mubr.f32.mxu1 %v407_v20  ;;  %v262_v19 = vld [vmem:[%s4904_s7 + $0x108] sm:$0xff] }
 0x104   : > { %1255 = vmatmul.mubr.f32.gmra.mxu0 %v516_v21  ;;  %1560 = vmatmul.mubr.f32.gmra.mxu1 %v406_v22 }
 0x105   : > { %1259 = vmatprep.mubr.f32.mxu0 %v524_v23  ;;  %1564 = vmatprep.mubr.f32.mxu1 %v414_v24  ;;  %v483_v23 = vld [vmem:[%s4904_s7 + $0x7f0] sm:$0xff]  ;;  %v261_v24 = vld [vmem:[%s4904_s7 + $0x100] sm:$0xff] }
 0x108   : > { %1260 = vmatmul.mubr.f32.gmra.mxu0 %v523_v25  ;;  %1565 = vmatmul.mubr.f32.gmra.mxu1 %v413_v26  ;;  %v491_v26 = vld [vmem:[%s4904_s7 + $0x830] sm:$0xff] }
 0x109   : > { %1264 = vmatprep.mubr.f32.mxu0 %v531_v27  ;;  %1569 = vmatprep.mubr.f32.mxu1 %v421_v28  ;;  %v269_v27 = vld [vmem:[%s4904_s7 + $0x140] sm:$0xff] }
 0x10c   : > { %1265 = vmatmul.mubr.f32.gmra.mxu0 %v530_v29  ;;  %1570 = vmatmul.mubr.f32.gmra.mxu1 %v420_v30  ;;  %v490_v30 = vld [vmem:[%s4904_s7 + $0x828] sm:$0xff] }
 0x10d   : > { %1269 = vmatprep.mubr.f32.mxu0 %v538_v31  ;;  %1574 = vmatprep.mubr.f32.mxu1 %v428_v32  ;;  %v268_v31 = vld [vmem:[%s4904_s7 + $0x138] sm:$0xff] }
 0x110   : > { %1270 = vmatmul.mubr.f32.gmra.mxu0 %v537_v34  ;;  %1575 = vmatmul.mubr.f32.gmra.mxu1 %v427_v35  ;;  %v498_v34 = vld [vmem:[%s4904_s7 + $0x868] sm:$0xff]  ;;  %v276_v35 = vld [vmem:[%s4904_s7 + $0x178] sm:$0xff] }
 0x111   : > { %1274 = vmatprep.mubr.f32.mxu0 %v545_v36  ;;  %1579 = vmatprep.mubr.f32.mxu1 %v435_v37 }
 0x114   : > { %1275 = vmatmul.mubr.f32.gmra.mxu0 %v544_v38  ;;  %1580 = vmatmul.mubr.f32.gmra.mxu1 %v434_v39  ;;  %v497_v38 = vld [vmem:[%s4904_s7 + $0x860] sm:$0xff]  ;;  %v275_v39 = vld [vmem:[%s4904_s7 + $0x170] sm:$0xff] }
 0x115   : > { %1279 = vmatprep.mubr.f32.mxu0 %v552_v40  ;;  %1584 = vmatprep.mubr.f32.mxu1 %v442_v41  ;;  %v5393_v44 = vpop.f32.mrf.mxu0  ;;  %v5395_v45 = vpop.f32.mrf.mxu1  ;;  %v505_v40 = vld [vmem:[%s4904_s7 + $0x8a0] sm:$0xff]  ;;  %v283_v41 = vld [vmem:[%s4904_s7 + $0x1b0] sm:$0xff] }
 0x117   : > { %v1053_v48 = vpop.f32.mrf.mxu0  ;;  %v1293_v49 = vpop.f32.mrf.mxu1 }
 0x118   : > { %1280 = vmatmul.mubr.f32.gmra.mxu0 %v551_v42  ;;  %1585 = vmatmul.mubr.f32.gmra.mxu1 %v441_v43  ;;  %v504_v48 = vld [vmem:[%s4904_s7 + $0x898] sm:$0xff]  ;;  %v282_v49 = vld [vmem:[%s4904_s7 + $0x1a8] sm:$0xff] }
 0x119   : > { %1284 = vmatprep.mubr.f32.mxu0 %v559_v46  ;;  %1589 = vmatprep.mubr.f32.mxu1 %v449_v47 }
 0x11a   : > { %v5403_v54 = vpop.f32.mrf.mxu0  ;;  %v5405_v55 = vpop.f32.mrf.mxu1 }
 0x11c   : > { %1285 = vmatmul.mubr.f32.gmra.mxu0 %v558_v50  ;;  %1590 = vmatmul.mubr.f32.gmra.mxu1 %v448_v51  ;;  %v1058_v56 = vpop.f32.mrf.mxu0  ;;  %v1298_v57 = vpop.f32.mrf.mxu1  ;;  %v512_v50 = vld [vmem:[%s4904_s7 + $0x8d8] sm:$0xff]  ;;  %v290_v51 = vld [vmem:[%s4904_s7 + $0x1e8] sm:$0xff] }
 0x11d   : > { %1594 = vmatprep.mubr.f32.mxu1 %v456_v52  ;;  %1819 = vmatprep.mubr.f32.mxu0 %v234_v53  ;;  %v511_v57 = vld [vmem:[%s4904_s7 + $0x8d0] sm:$0xff] }
 0x11e   : > { %v5411_v62 = vpop.f32.mrf.mxu0 }
 0x11f   : > { %v5413_v63 = vpop.f32.mrf.mxu1 }
 0x120   : > { %1595 = vmatmul.mubr.f32.gmra.mxu1 %v455_v58  ;;  %1820 = vmatmul.mubr.f32.vlgmr.msra.gmra.mxu0 %v233_v59  ;;  %v1063_v0 = vpop.f32.mrf.mxu0  ;;  %v289_v58 = vld [vmem:[%s4904_s7 + $0x1e0] sm:$0xff] }
 0x121   : > { %1599 = vmatprep.mubr.f32.mxu1 %v463_v60  ;;  %1824 = vmatprep.mubr.f32.mxu0 %v241_v61  ;;  %v1303_v4 = vpop.f32.mrf.mxu1  ;;  %v519_v60 = vld [vmem:[%s4904_s7 + $0x910] sm:$0xff]  ;;  %v297_v61 = vld [vmem:[%s4904_s7 + $0x220] sm:$0xff] }
 0x122   : > { %v296_v4 = vld [vmem:[%s4904_s7 + $0x218] sm:$0xff] }
 0x123   : > { %v5419_v7 = vpop.f32.mrf.mxu0  ;;  %v5421_v8 = vpop.f32.mrf.mxu1 }
 0x124   : > { %1600 = vmatmul.mubr.f32.gmra.mxu1 %v462_v2  ;;  %1825 = vmatmul.mubr.f32.gmra.mxu0 %v240_v3  ;;  %v518_v3 = vld [vmem:[%s4904_s7 + $0x908] sm:$0xff] }
 0x125   : > { %1604 = vmatprep.mubr.f32.mxu1 %v470_v5  ;;  %1829 = vmatprep.mubr.f32.mxu0 %v248_v6  ;;  %v1068_v11 = vpop.f32.mrf.mxu0  ;;  %v1308_v12 = vpop.f32.mrf.mxu1 }
 0x128   : > { %1605 = vmatmul.mubr.f32.gmra.mxu1 %v469_v9  ;;  %1830 = vmatmul.mubr.f32.gmra.mxu0 %v247_v10  ;;  %v5427_v14 = vpop.f32.mrf.mxu0  ;;  %v5429_v15 = vpop.f32.mrf.mxu1  ;;  %v526_v9 = vld [vmem:[%s4904_s7 + $0x948] sm:$0xff]  ;;  %v304_v10 = vld [vmem:[%s4904_s7 + $0x258] sm:$0xff] }
 0x129   : > { %1609 = vmatprep.mubr.f32.mxu1 %v477_v13  ;;  %1834 = vmatprep.mubr.f32.mxu0 %v255_v1  ;;  %v525_v13 = vld [vmem:[%s4904_s7 + $0x940] sm:$0xff]  ;;  %v303_v1 = vld [vmem:[%s4904_s7 + $0x250] sm:$0xff] }
 0x12a   : > { %v1073_v20 = vpop.f32.mrf.mxu0  ;;  %v1313_v21 = vpop.f32.mrf.mxu1 }
 0x12c   : > { %1610 = vmatmul.mubr.f32.gmra.mxu1 %v476_v16  ;;  %1835 = vmatmul.mubr.f32.gmra.mxu0 %v254_v17  ;;  %v5435_v22 = vpop.f32.mrf.mxu0 }
 0x12d   : > { %1614 = vmatprep.mubr.f32.mxu1 %v484_v18  ;;  %1839 = vmatprep.mubr.f32.mxu0 %v262_v19  ;;  %v5439_v25 = vpop.f32.mrf.mxu1  ;;  %v533_v18 = vld [vmem:[%s4904_s7 + $0x980] sm:$0xff]  ;;  %v311_v19 = vld [vmem:[%s4904_s7 + $0x290] sm:$0xff] }
 0x12e   : > { %v1078_v28 = vpop.f32.mrf.mxu0 }
 0x12f   : > { %v1318_v29 = vpop.f32.mrf.mxu1  ;;  %v318_v28 = vld [vmem:[%s4904_s7 + $0x2c8] sm:$0xff] }
 0x130   : > { %1615 = vmatmul.mubr.f32.gmra.mxu1 %v483_v23  ;;  %1840 = vmatmul.mubr.f32.gmra.mxu0 %v261_v24  ;;  %v532_v23 = vld [vmem:[%s4904_s7 + $0x978] sm:$0xff]  ;;  %v310_v24 = vld [vmem:[%s4904_s7 + $0x288] sm:$0xff] }
 0x131   : > { %1619 = vmatprep.mubr.f32.mxu1 %v491_v26  ;;  %1844 = vmatprep.mubr.f32.mxu0 %v269_v27  ;;  %v5445_v32 = vpop.f32.mrf.mxu0  ;;  %v5447_v33 = vpop.f32.mrf.mxu1  ;;  %v540_v27 = vld [vmem:[%s4904_s7 + $0x9b8] sm:$0xff] }
 0x133   : > { %v1083_v36 = vpop.f32.mrf.mxu0  ;;  %v1323_v37 = vpop.f32.mrf.mxu1 }
 0x134   : > { %1620 = vmatmul.mubr.f32.gmra.mxu1 %v490_v30  ;;  %1845 = vmatmul.mubr.f32.gmra.mxu0 %v268_v31  ;;  %v547_v36 = vld [vmem:[%s4904_s7 + $0x9f0] sm:$0xff]  ;;  %v325_v37 = vld [vmem:[%s4904_s7 + $0x300] sm:$0xff] }
 0x135   : > { %1624 = vmatprep.mubr.f32.mxu1 %v498_v34  ;;  %1849 = vmatprep.mubr.f32.mxu0 %v276_v35  ;;  %v539_v34 = vld [vmem:[%s4904_s7 + $0x9b0] sm:$0xff]  ;;  %v317_v35 = vld [vmem:[%s4904_s7 + $0x2c0] sm:$0xff] }
 0x136   : > { %v5455_v42 = vpop.f32.mrf.mxu0  ;;  %v5457_v43 = vpop.f32.mrf.mxu1 }
 0x138   : > { %1625 = vmatmul.mubr.f32.gmra.mxu1 %v497_v38  ;;  %1850 = vmatmul.mubr.f32.gmra.mxu0 %v275_v39  ;;  %v1088_v46 = vpop.f32.mrf.mxu0  ;;  %v1328_v47 = vpop.f32.mrf.mxu1 }
 0x139   : > { %1629 = vmatprep.mubr.f32.mxu1 %v505_v40  ;;  %1854 = vmatprep.mubr.f32.mxu0 %v283_v41  ;;  %v546_v40 = vld [vmem:[%s4904_s7 + $0x9e8] sm:$0xff]  ;;  %v324_v41 = vld [vmem:[%s4904_s7 + $0x2f8] sm:$0xff] }
 0x13a   : > { %v5463_v52 = vpop.f32.mrf.mxu0 }
 0x13b   : > { %v5465_v53 = vpop.f32.mrf.mxu1 }
 0x13c   : > { %1630 = vmatmul.mubr.f32.gmra.mxu1 %v504_v48  ;;  %1855 = vmatmul.mubr.f32.gmra.mxu0 %v282_v49  ;;  %v1093_v56 = vpop.f32.mrf.mxu0  ;;  %v554_v48 = vld [vmem:[%s4904_s7 + $0xa28] sm:$0xff]  ;;  %v332_v49 = vld [vmem:[%s4904_s7 + $0x338] sm:$0xff] }
 0x13d   : > { %1634 = vmatprep.mubr.f32.mxu1 %v512_v50  ;;  %1859 = vmatprep.mubr.f32.mxu0 %v290_v51  ;;  %v1333_v59 = vpop.f32.mrf.mxu1  ;;  %v553_v56 = vld [vmem:[%s4904_s7 + $0xa20] sm:$0xff] }
 0x13e   : > { %v561_v59 = vld [vmem:[%s4904_s7 + $0xa60] sm:$0xff] }
 0x13f   : > { %v5471_v0 = vpop.f32.mrf.mxu0  ;;  %v5473_v2 = vpop.f32.mrf.mxu1 }
 0x140   : > { %7645 = vst [vmem:[#allocation5_spill] sm:$0xff] %v5473_v2  ;;  %1635 = vmatmul.mubr.f32.gmra.mxu1 %v511_v57  ;;  %1860 = vmatmul.mubr.f32.gmra.mxu0 %v289_v58  ;;  %v331_v57 = vld [vmem:[%s4904_s7 + $0x330] sm:$0xff] }
 0x141   : > { %1639 = vmatprep.mubr.f32.mxu1 %v519_v60  ;;  %1864 = vmatprep.mubr.f32.mxu0 %v297_v61  ;;  %v1098_v5 = vpop.f32.mrf.mxu0  ;;  %v1338_v6 = vpop.f32.mrf.mxu1  ;;  %v339_v60 = vld [vmem:[%s4904_s7 + $0x370] sm:$0xff] }
 0x142   : > { %v560_v5 = vld [vmem:[%s4904_s7 + $0xa58] sm:$0xff]  ;;  %v338_v6 = vld [vmem:[%s4904_s7 + $0x368] sm:$0xff] }
 0x144   : > { %1640 = vmatmul.mubr.f32.gmra.mxu1 %v518_v3  ;;  %1865 = vmatmul.mubr.f32.gmra.mxu0 %v296_v4  ;;  %v5479_v11 = vpop.f32.mrf.mxu0  ;;  %v5481_v12 = vpop.f32.mrf.mxu1 }
 0x145   : > { %7646 = vst [vmem:[#allocation6_spill] sm:$0xff] %v5481_v12  ;;  %1644 = vmatprep.mubr.f32.mxu1 %v526_v9  ;;  %1869 = vmatprep.mubr.f32.mxu0 %v304_v10  ;;  %v568_v9 = vld [vmem:[%s4904_s7 + $0xa98] sm:$0xff]  ;;  %v346_v10 = vld [vmem:[%s4904_s7 + $0x3a8] sm:$0xff] }
 0x146   : > { %v1103_v16 = vpop.f32.mrf.mxu0  ;;  %v1343_v17 = vpop.f32.mrf.mxu1 }
 0x148   : > { %1645 = vmatmul.mubr.f32.gmra.mxu1 %v525_v13  ;;  %1870 = vmatmul.mubr.f32.gmra.mxu0 %v303_v1  ;;  %v5487_v20 = vpop.f32.mrf.mxu0 }
 0x149   : > { %1649 = vmatprep.mubr.f32.mxu1 %v533_v18  ;;  %1874 = vmatprep.mubr.f32.mxu0 %v311_v19  ;;  %v5489_v21 = vpop.f32.mrf.mxu1  ;;  %v567_v18 = vld [vmem:[%s4904_s7 + $0xa90] sm:$0xff]  ;;  %v345_v19 = vld [vmem:[%s4904_s7 + $0x3a0] sm:$0xff] }
 0x14a   : > { %7647 = vst [vmem:[#allocation7_spill] sm:$0xff] %v5489_v21  ;;  %v1108_v26 = vpop.f32.mrf.mxu0 }
 0x14b   : > { %v1348_v29 = vpop.f32.mrf.mxu1  ;;  %v353_v26 = vld [vmem:[%s4904_s7 + $0x3e0] sm:$0xff] }
 0x14c   : > { %1650 = vmatmul.mubr.f32.gmra.mxu1 %v532_v23  ;;  %1875 = vmatmul.mubr.f32.gmra.mxu0 %v310_v24  ;;  %v5532_v23 = vld [vmem:[%s7602_s2] ss:$0 sm:$0xff]  ;;  %v575_v24 = vld [vmem:[%s4904_s7 + $0xad0] sm:$0xff] }
 0x14d   : > { %1654 = vmatprep.mubr.f32.mxu1 %v540_v27  ;;  %1879 = vmatprep.mubr.f32.mxu0 %v318_v28  ;;  %v5495_v30 = vpop.f32.mrf.mxu0  ;;  %v5497_v31 = vpop.f32.mrf.mxu1  ;;  %v1052_v27 = vadd.f32 %v5532_v23, %v5393_v44  ;;  %v1057_v44 = vadd.f32 %v5532_v23, %v5403_v54  ;;  %v1062_v54 = vadd.f32 %v5532_v23, %v5411_v62 }
 0x14e   : > { %7648 = vst [vmem:[#allocation8_spill] sm:$0xff] %v5497_v31  ;;  %v1067_v62 = vadd.f32 %v5532_v23, %v5419_v7  ;;  %v1072_v7 = vadd.f32 %v5532_v23, %v5427_v14  ;;  %v1077_v14 = vadd.f32 %v5532_v23, %v5435_v22  ;;  %v1082_v22 = vadd.f32 %v5532_v23, %v5445_v32 }
 0x14f   : > { %v1113_v38 = vpop.f32.mrf.mxu0  ;;  %v1353_v39 = vpop.f32.mrf.mxu1  ;;  %v1087_v32 = vadd.f32 %v5532_v23, %v5455_v42  ;;  %v1092_v42 = vadd.f32 %v5532_v23, %v5463_v52  ;;  %v1097_v52 = vadd.f32 %v5532_v23, %v5471_v0  ;;  %v1102_v0 = vadd.f32 %v5532_v23, %v5479_v11 }
 0x150   : > { %1655 = vmatmul.mubr.f32.gmra.mxu1 %v539_v34  ;;  %1880 = vmatmul.mubr.f32.gmra.mxu0 %v317_v35  ;;  %v574_v35 = vld [vmem:[%s4904_s7 + $0xac8] sm:$0xff]  ;;  %v1107_v11 = vadd.f32 %v5532_v23, %v5487_v20  ;;  %v1112_v20 = vadd.f32 %v5532_v23, %v5495_v30 }
 0x151   : > { %1659 = vmatprep.mubr.f32.mxu1 %v547_v36  ;;  %1884 = vmatprep.mubr.f32.mxu0 %v325_v37  ;;  %v352_v36 = vld [vmem:[%s4904_s7 + $0x3d8] sm:$0xff]  ;;  %v582_v39 = vld [vmem:[%s4904_s7 + $0xb08] sm:$0xff] }
 0x152   : > { %v5505_v46 = vpop.f32.mrf.mxu0  ;;  %v5507_v47 = vpop.f32.mrf.mxu1 }
 0x153   : > { %7649 = vst [vmem:[#allocation9_spill] sm:$0xff] %v5507_v47  ;;  %v1117_v30 = vadd.f32 %v5532_v23, %v5505_v46 }
 0x154   : > { %1660 = vmatmul.mubr.f32.gmra.mxu1 %v546_v40  ;;  %1885 = vmatmul.mubr.f32.gmra.mxu0 %v324_v41  ;;  %v1118_v50 = vpop.f32.mrf.mxu0  ;;  %v1358_v51 = vpop.f32.mrf.mxu1  ;;  %v360_v40 = vld [vmem:[%s4904_s7 + $0x418] sm:$0xff] }
 0x155   : > { %1664 = vmatprep.mubr.f32.mxu1 %v554_v48  ;;  %1889 = vmatprep.mubr.f32.mxu0 %v332_v49  ;;  %v581_v50 = vld [vmem:[%s4904_s7 + $0xb00] sm:$0xff]  ;;  %v359_v51 = vld [vmem:[%s4904_s7 + $0x410] sm:$0xff] }
 0x156   : > { %v5513_v58 = vpop.f32.mrf.mxu0 }
 0x157   : > { %v5517_v61 = vpop.f32.mrf.mxu1  ;;  %v1122_v46 = vadd.f32 %v5532_v23, %v5513_v58 }
 0x158   : > { %7650 = vst [vmem:[#allocation10_spill] sm:$0xff] %v5517_v61  ;;  %1665 = vmatmul.mubr.f32.gmra.mxu1 %v553_v56  ;;  %1890 = vmatmul.mubr.f32.gmra.mxu0 %v331_v57  ;;  %v1123_v3 = vpop.f32.mrf.mxu0 }
 0x159   : > { %v1363_v4 = vpop.f32.mrf.mxu1  ;;  %1669 = vmatprep.mubr.f32.mxu1 %v561_v59  ;;  %1894 = vmatprep.mubr.f32.mxu0 %v339_v60  ;;  %v589_v59 = vld [vmem:[%s4904_s7 + $0xb40] sm:$0xff]  ;;  %v367_v60 = vld [vmem:[%s4904_s7 + $0x450] sm:$0xff] }
 0x15b   : > { %v5523_v13 = vpop.f32.mrf.mxu0  ;;  %v5525_v1 = vpop.f32.mrf.mxu1 }
 0x15c   : > { %7651 = vst [vmem:[#allocation11_spill] sm:$0xff] %v5525_v1  ;;  %1670 = vmatmul.mubr.f32.gmra.mxu1 %v560_v5  ;;  %1895 = vmatmul.mubr.f32.gmra.mxu0 %v338_v6  ;;  %v588_v6 = vld [vmem:[%s4904_s7 + $0xb38] sm:$0xff]  ;;  %v1127_v58 = vadd.f32 %v5532_v23, %v5523_v13  ;;  %v249_v13 = vld [vmem:[%s4904_s7 + $0xa0] sm:$0xff] }
 0x15d   : > { %v1128_v16 = vpop.f32.mrf.mxu0  ;;  %v1368_v17 = vpop.f32.mrf.mxu1  ;;  %1674 = vmatprep.mubr.f32.mxu1 %v568_v9  ;;  %1899 = vmatprep.mubr.f32.mxu0 %v346_v10  ;;  %v366_v9 = vld [vmem:[%s4904_s7 + $0x448] sm:$0xff] }
 0x15e   : > { %v596_v17 = vld [vmem:[%s4904_s7 + $0xb78] sm:$0xff] }
 0x160   : > { %v5538_v28 = vpop.f32.mrf.mxu0  ;;  %v1436_v29 = vpop.f32.mrf.mxu1  ;;  %1675 = vmatmul.mubr.f32.gmra.mxu1 %v567_v18  ;;  %1900 = vmatmul.mubr.f32.gmra.mxu0 %v345_v19  ;;  %v374_v18 = vld [vmem:[%s4904_s7 + $0x488] sm:$0xff] }
 0x161   : > { %v5540_v34 = vadd.f32 %v1436_v29, %v1052_v27  ;;  %1679 = vmatprep.mubr.f32.mxu1 %v575_v24  ;;  %1904 = vmatprep.mubr.f32.mxu0 %v353_v26  ;;  %v595_v27 = vld [vmem:[%s4904_s7 + $0xb70] sm:$0xff]  ;;  %v373_v29 = vld [vmem:[%s4904_s7 + $0x480] sm:$0xff] }
 0x162   : > { %v1133_v37 = vpop.f32.mrf.mxu0  ;;  %v1438_v38 = vpop.f32.mrf.mxu1 }
 0x163   : > { %v603_v37 = vld [vmem:[%s4904_s7 + $0xbb0] sm:$0xff]  ;;  %v381_v38 = vld [vmem:[%s4904_s7 + $0x4c0] sm:$0xff] }
 0x164   : > { %v5548_v41 = vpop.f32.mrf.mxu0  ;;  %v1441_v48 = vpop.f32.mrf.mxu1  ;;  %1680 = vmatmul.mubr.f32.gmra.mxu1 %v574_v35  ;;  %1905 = vmatmul.mubr.f32.gmra.mxu0 %v352_v36 }
 0x165   : > { %v5550_v49 = vadd.f32 %v1441_v48, %v1057_v44  ;;  %1684 = vmatprep.mubr.f32.mxu1 %v582_v39  ;;  %1909 = vmatprep.mubr.f32.mxu0 %v360_v40  ;;  %v602_v48 = vld [vmem:[%s4904_s7 + $0xba8] sm:$0xff] }
 0x166   : > { %v1138_v56 = vpop.f32.mrf.mxu0  ;;  %v1443_v57 = vpop.f32.mrf.mxu1 }
 0x167   : > { %v610_v57 = vld [vmem:[%s4904_s7 + $0xbe8] sm:$0xff] }
 0x168   : > { %v5558_v3 = vpop.f32.mrf.mxu0  ;;  %v1446_v4 = vpop.f32.mrf.mxu1  ;;  %1685 = vmatmul.mubr.f32.gmra.mxu1 %v581_v50  ;;  %1910 = vmatmul.mubr.f32.gmra.mxu0 %v359_v51  ;;  %v380_v50 = vld [vmem:[%s4904_s7 + $0x4b8] sm:$0xff] }
 0x169   : > { %v5560_v5 = vadd.f32 %v1446_v4, %v1062_v54  ;;  %1689 = vmatprep.mubr.f32.mxu1 %v589_v59  ;;  %1914 = vmatprep.mubr.f32.mxu0 %v367_v60  ;;  %v388_v59 = vld [vmem:[%s4904_s7 + $0x4f8] sm:$0xff] }
 0x16a   : > { %v1143_v10 = vpop.f32.mrf.mxu0  ;;  %v1448_v16 = vpop.f32.mrf.mxu1 }
 0x16c   : > { %v5568_v19 = vpop.f32.mrf.mxu0  ;;  %v1451_v24 = vpop.f32.mrf.mxu1  ;;  %1690 = vmatmul.mubr.f32.gmra.mxu1 %v588_v6  ;;  %1915 = vmatmul.mubr.f32.gmra.mxu0 %v366_v9  ;;  %v609_v6 = vld [vmem:[%s4904_s7 + $0xbe0] sm:$0xff]  ;;  %v387_v9 = vld [vmem:[%s4904_s7 + $0x4f0] sm:$0xff] }
 0x16d   : > { %v5570_v26 = vadd.f32 %v1451_v24, %v1067_v62  ;;  %1694 = vmatprep.mubr.f32.mxu1 %v596_v17  ;;  %1919 = vmatprep.mubr.f32.mxu0 %v374_v18  ;;  %v617_v17 = vld [vmem:[%s4904_s7 + $0xc20] sm:$0xff]  ;;  %v395_v18 = vld [vmem:[%s4904_s7 + $0x530] sm:$0xff] }
 0x16e   : > { %v1148_v35 = vpop.f32.mrf.mxu0  ;;  %v1453_v36 = vpop.f32.mrf.mxu1 }
 0x16f   : > { %v394_v35 = vld [vmem:[%s4904_s7 + $0x528] sm:$0xff] }
 0x170   : > { %v5578_v39 = vpop.f32.mrf.mxu0  ;;  %v1456_v40 = vpop.f32.mrf.mxu1  ;;  %1695 = vmatmul.mubr.f32.gmra.mxu1 %v595_v27  ;;  %1920 = vmatmul.mubr.f32.gmra.mxu0 %v373_v29  ;;  %v616_v29 = vld [vmem:[%s4904_s7 + $0xc18] sm:$0xff] }
 0x171   : > { %v5580_v44 = vadd.f32 %v1456_v40, %v1072_v7  ;;  %1699 = vmatprep.mubr.f32.mxu1 %v603_v37  ;;  %1924 = vmatprep.mubr.f32.mxu0 %v381_v38  ;;  %v624_v38 = vld [vmem:[%s4904_s7 + $0xc58] sm:$0xff]  ;;  %v402_v7 = vld [vmem:[%s4904_s7 + $0x568] sm:$0xff] }
 0x172   : > { %v1153_v51 = vpop.f32.mrf.mxu0  ;;  %v1458_v56 = vpop.f32.mrf.mxu1 }
 0x173   : > { %v623_v51 = vld [vmem:[%s4904_s7 + $0xc50] sm:$0xff]  ;;  %v401_v56 = vld [vmem:[%s4904_s7 + $0x560] sm:$0xff] }
 0x174   : > { %v5588_v60 = vpop.f32.mrf.mxu0  ;;  %v1461_v54 = vpop.f32.mrf.mxu1  ;;  %1700 = vmatmul.mubr.f32.gmra.mxu1 %v602_v48  ;;  %1925 = vmatmul.mubr.f32.gmra.mxu0 %v380_v50 }
 0x175   : > { %v5590_v4 = vadd.f32 %v1461_v54, %v1077_v14  ;;  %1704 = vmatprep.mubr.f32.mxu1 %v610_v57  ;;  %1929 = vmatprep.mubr.f32.mxu0 %v388_v59  ;;  %v631_v14 = vld [vmem:[%s4904_s7 + $0xc90] sm:$0xff]  ;;  %v409_v54 = vld [vmem:[%s4904_s7 + $0x5a0] sm:$0xff] }
 0x176   : > { %v1158_v10 = vpop.f32.mrf.mxu0  ;;  %v1463_v16 = vpop.f32.mrf.mxu1 }
 0x177   : > { %v630_v16 = vld [vmem:[%s4904_s7 + $0xc88] sm:$0xff] }
 0x178   : > { %v5598_v62 = vpop.f32.mrf.mxu0  ;;  %v1466_v24 = vpop.f32.mrf.mxu1  ;;  %1705 = vmatmul.mubr.f32.gmra.mxu1 %v609_v6  ;;  %1930 = vmatmul.mubr.f32.gmra.mxu0 %v387_v9 }
 0x179   : > { %v5600_v27 = vadd.f32 %v1466_v24, %v1082_v22  ;;  %1709 = vmatprep.mubr.f32.mxu1 %v617_v17  ;;  %1934 = vmatprep.mubr.f32.mxu0 %v395_v18  ;;  %v408_v17 = vld [vmem:[%s4904_s7 + $0x598] sm:$0xff]  ;;  %v638_v24 = vld [vmem:[%s4904_s7 + $0xcc8] sm:$0xff] }
 0x17a   : > { %v1163_v36 = vpop.f32.mrf.mxu0  ;;  %v1468_v37 = vpop.f32.mrf.mxu1 }
 0x17c   : > { %v5608_v40 = vpop.f32.mrf.mxu0  ;;  %v1471_v48 = vpop.f32.mrf.mxu1  ;;  %1710 = vmatmul.mubr.f32.gmra.mxu1 %v616_v29  ;;  %1935 = vmatmul.mubr.f32.gmra.mxu0 %v394_v35  ;;  %v416_v29 = vld [vmem:[%s4904_s7 + $0x5d8] sm:$0xff] }
 0x17d   : > { %v5610_v50 = vadd.f32 %v1471_v48, %v1087_v32  ;;  %1714 = vmatprep.mubr.f32.mxu1 %v624_v38  ;;  %1939 = vmatprep.mubr.f32.mxu0 %v402_v7  ;;  %v637_v38 = vld [vmem:[%s4904_s7 + $0xcc0] sm:$0xff]  ;;  %v415_v7 = vld [vmem:[%s4904_s7 + $0x5d0] sm:$0xff] }
 0x17e   : > { %v1168_v57 = vpop.f32.mrf.mxu0  ;;  %v1473_v59 = vpop.f32.mrf.mxu1 }
 0x180   : > { %v5618_v6 = vpop.f32.mrf.mxu0  ;;  %v1476_v9 = vpop.f32.mrf.mxu1  ;;  %1715 = vmatmul.mubr.f32.gmra.mxu1 %v623_v51  ;;  %1940 = vmatmul.mubr.f32.gmra.mxu0 %v401_v56  ;;  %v645_v51 = vld [vmem:[%s4904_s7 + $0xd00] sm:$0xff]  ;;  %v423_v56 = vld [vmem:[%s4904_s7 + $0x610] sm:$0xff] }
 0x181   : > { %v5620_v10 = vadd.f32 %v1476_v9, %v1092_v42  ;;  %1719 = vmatprep.mubr.f32.mxu1 %v631_v14  ;;  %1944 = vmatprep.mubr.f32.mxu0 %v409_v54  ;;  %v644_v54 = vld [vmem:[%s4904_s7 + $0xcf8] sm:$0xff]  ;;  %v422_v42 = vld [vmem:[%s4904_s7 + $0x608] sm:$0xff] }
 0x182   : > { %v1173_v18 = vpop.f32.mrf.mxu0  ;;  %v1478_v22 = vpop.f32.mrf.mxu1 }
 0x183   : > { %v430_v18 = vld [vmem:[%s4904_s7 + $0x648] sm:$0xff] }
 0x184   : > { %v5628_v35 = vpop.f32.mrf.mxu0  ;;  %v1481_v36 = vpop.f32.mrf.mxu1  ;;  %1720 = vmatmul.mubr.f32.gmra.mxu1 %v630_v16  ;;  %1945 = vmatmul.mubr.f32.gmra.mxu0 %v408_v17  ;;  %v652_v17 = vld [vmem:[%s4904_s7 + $0xd38] sm:$0xff] }
 0x185   : > { %v5630_v37 = vadd.f32 %v1481_v36, %v1097_v52  ;;  %1724 = vmatprep.mubr.f32.mxu1 %v638_v24  ;;  %1949 = vmatprep.mubr.f32.mxu0 %v416_v29  ;;  %v651_v52 = vld [vmem:[%s4904_s7 + $0xd30] sm:$0xff]  ;;  %v429_v36 = vld [vmem:[%s4904_s7 + $0x640] sm:$0xff] }
 0x186   : > { %v1178_v32 = vpop.f32.mrf.mxu0  ;;  %v1483_v48 = vpop.f32.mrf.mxu1 }
 0x187   : > { %v659_v32 = vld [vmem:[%s4904_s7 + $0xd70] sm:$0xff]  ;;  %v437_v48 = vld [vmem:[%s4904_s7 + $0x680] sm:$0xff] }
 0x188   : > { %v5638_v57 = vpop.f32.mrf.mxu0  ;;  %v1486_v59 = vpop.f32.mrf.mxu1  ;;  %1725 = vmatmul.mubr.f32.gmra.mxu1 %v637_v38  ;;  %1950 = vmatmul.mubr.f32.gmra.mxu0 %v415_v7 }
 0x189   : > { %v5640_v14 = vadd.f32 %v1486_v59, %v1102_v0  ;;  %1729 = vmatprep.mubr.f32.mxu1 %v645_v51  ;;  %1954 = vmatprep.mubr.f32.mxu0 %v423_v56  ;;  %v658_v59 = vld [vmem:[%s4904_s7 + $0xd68] sm:$0xff] }
 0x18a   : > { %v1183_v9 = vpop.f32.mrf.mxu0  ;;  %v1488_v16 = vpop.f32.mrf.mxu1 }
 0x18b   : > { %v666_v16 = vld [vmem:[%s4904_s7 + $0xda8] sm:$0xff] }
 0x18c   : > { %v5648_v22 = vpop.f32.mrf.mxu0  ;;  %v1491_v24 = vpop.f32.mrf.mxu1  ;;  %1730 = vmatmul.mubr.f32.gmra.mxu1 %v644_v54  ;;  %1955 = vmatmul.mubr.f32.gmra.mxu0 %v422_v42  ;;  %v436_v54 = vld [vmem:[%s4904_s7 + $0x678] sm:$0xff] }
 0x18d   : > { %v5650_v29 = vadd.f32 %v1491_v24, %v1107_v11  ;;  %1734 = vmatprep.mubr.f32.mxu1 %v652_v17  ;;  %1959 = vmatprep.mubr.f32.mxu0 %v430_v18  ;;  %v444_v17 = vld [vmem:[%s4904_s7 + $0x6b8] sm:$0xff] }
 0x18e   : > { %v1188_v38 = vpop.f32.mrf.mxu0  ;;  %v1493_v7 = vpop.f32.mrf.mxu1 }
 0x190   : > { %v5658_v51 = vpop.f32.mrf.mxu0  ;;  %v1496_v56 = vpop.f32.mrf.mxu1  ;;  %1735 = vmatmul.mubr.f32.gmra.mxu1 %v651_v52  ;;  %1960 = vmatmul.mubr.f32.gmra.mxu0 %v429_v36  ;;  %v665_v52 = vld [vmem:[%s4904_s7 + $0xda0] sm:$0xff]  ;;  %v443_v36 = vld [vmem:[%s4904_s7 + $0x6b0] sm:$0xff] }
 0x191   : > { %v5660_v0 = vadd.f32 %v1496_v56, %v1112_v20  ;;  %1739 = vmatprep.mubr.f32.mxu1 %v659_v32  ;;  %1964 = vmatprep.mubr.f32.mxu0 %v437_v48  ;;  %v673_v32 = vld [vmem:[%s4904_s7 + $0xde0] sm:$0xff]  ;;  %v451_v48 = vld [vmem:[%s4904_s7 + $0x6f0] sm:$0xff] }
 0x192   : > { %v1193_v42 = vpop.f32.mrf.mxu0  ;;  %v1498_v9 = vpop.f32.mrf.mxu1 }
 0x193   : > { %v450_v42 = vld [vmem:[%s4904_s7 + $0x6e8] sm:$0xff] }
 0x194   : > { %v5668_v18 = vpop.f32.mrf.mxu0  ;;  %v1501_v11 = vpop.f32.mrf.mxu1  ;;  %1740 = vmatmul.mubr.f32.gmra.mxu1 %v658_v59  ;;  %1965 = vmatmul.mubr.f32.gmra.mxu0 %v436_v54  ;;  %v672_v54 = vld [vmem:[%s4904_s7 + $0xdd8] sm:$0xff] }
 0x195   : > { %v5670_v24 = vadd.f32 %v1501_v11, %v1117_v30  ;;  %1744 = vmatprep.mubr.f32.mxu1 %v666_v16  ;;  %1969 = vmatprep.mubr.f32.mxu0 %v444_v17  ;;  %v458_v17 = vld [vmem:[%s4904_s7 + $0x728] sm:$0xff]  ;;  %v235_v30 = vld [vmem:[%s4904_s7 + $0x30] sm:$0xff] }
 0x196   : > { %v1198_v38 = vpop.f32.mrf.mxu0  ;;  %v1503_v7 = vpop.f32.mrf.mxu1 }
 0x197   : > { %v457_v38 = vld [vmem:[%s4904_s7 + $0x720] sm:$0xff]  ;;  %v242_v7 = vld [vmem:[%s4904_s7 + $0x68] sm:$0xff] }
 0x198   : > { %v5678_v20 = vpop.f32.mrf.mxu0  ;;  %v1506_v56 = vpop.f32.mrf.mxu1  ;;  %1745 = vmatmul.mubr.f32.gmra.mxu1 %v665_v52  ;;  %1970 = vmatmul.mubr.f32.gmra.mxu0 %v443_v36 }
 0x199   : > { %v5680_v59 = vadd.f32 %v1506_v56, %v1122_v46  ;;  %1749 = vmatprep.mubr.f32.mxu1 %v673_v32  ;;  %1974 = vmatprep.mubr.f32.mxu0 %v451_v48  ;;  %v465_v46 = vld [vmem:[%s4904_s7 + $0x760] sm:$0xff]  ;;  %v1132_v56 = vadd.f32 %v5532_v23, %v5538_v28  ;;  %v472_v28 = vld [vmem:[%s4904_s7 + $0x798] sm:$0xff] }
 0x19a   : > { %v1203_v9 = vpop.f32.mrf.mxu0  ;;  %v1508_v16 = vpop.f32.mrf.mxu1 }
 0x19b   : > { %v464_v16 = vld [vmem:[%s4904_s7 + $0x758] sm:$0xff] }
 0x19c   : > { %v5688_v11 = vpop.f32.mrf.mxu0  ;;  %v1511_v52 = vpop.f32.mrf.mxu1  ;;  %1750 = vmatmul.mubr.f32.gmra.mxu1 %v672_v54  ;;  %1975 = vmatmul.mubr.f32.gmra.mxu0 %v450_v42 }
 0x19d   : > { %v5690_v36 = vadd.f32 %v1511_v52, %v1127_v58  ;;  %1979 = vmatprep.mubr.f32.mxu0 %v458_v17  ;;  %4141 = vmatprep.mubr.msk.f32.mxu1 %vm792_vm0, %v235_v30  ;;  %v256_v17 = vld [vmem:[%s4904_s7 + $0xd8] sm:$0xff]  ;;  %v263_v52 = vld [vmem:[%s4904_s7 + $0x110] sm:$0xff] }
 0x19e   : > { %v1208_v32 = vpop.f32.mrf.mxu0  ;;  %v1513_v48 = vpop.f32.mrf.mxu1 }
 0x1a0   : > { %v5699_v54 = vpop.f32.mrf.mxu0  ;;  %v1516_v42 = vpop.f32.mrf.mxu1  ;;  %1980 = vmatmul.mubr.f32.gmra.mxu0 %v457_v38  ;;  %4142 = vmatmul.mubr.msk.f32.vlgmr.msra.gmra.mxu1 %vm792_vm0, %v242_v7  ;;  %v1137_v38 = vadd.f32 %v5532_v23, %v5548_v41  ;;  %v479_v41 = vld [vmem:[%s4904_s7 + $0x7d0] sm:$0xff] }
 0x1a1   : > { %v5702_v9 = vadd.f32 %v1516_v42, %v1132_v56  ;;  %1984 = vmatprep.mubr.f32.mxu0 %v465_v46  ;;  %4144 = vmatprep.mubr.msk.f32.mxu1 %vm792_vm0, %v249_v13  ;;  %v471_v46 = vld [vmem:[%s4904_s7 + $0x790] sm:$0xff]  ;;  %v270_v13 = vld [vmem:[%s4904_s7 + $0x148] sm:$0xff] }
 0x1a2   : > { %v1213_v30 = vpop.f32.mrf.mxu0  ;;  %v1518_v58 = vpop.f32.mrf.mxu1 }
 0x1a3   : > { %v277_v30 = vld [vmem:[%s4904_s7 + $0x180] sm:$0xff] }
 0x1a4   : > { %v5711_v32 = vpop.f32.mrf.mxu0  ;;  %v1521_v7 = vpop.f32.mrf.mxu1  ;;  %1985 = vmatmul.mubr.f32.gmra.mxu0 %v464_v16  ;;  %4145 = vmatmul.mubr.msk.f32.gmra.mxu1 %vm792_vm0, %v256_v17  ;;  %v1142_v16 = vadd.f32 %v5532_v23, %v5558_v3  ;;  %v486_v3 = vld [vmem:[%s4904_s7 + $0x808] sm:$0xff] }
 0x1a5   : > { %v5714_v48 = vadd.f32 %v1521_v7, %v1137_v38  ;;  %1989 = vmatprep.mubr.f32.mxu0 %v472_v28  ;;  %4147 = vmatprep.mubr.msk.f32.mxu1 %vm792_vm0, %v263_v52  ;;  %v478_v52 = vld [vmem:[%s4904_s7 + $0x7c8] sm:$0xff]  ;;  %v284_v38 = vld [vmem:[%s4904_s7 + $0x1b8] sm:$0xff] }
 0x1a6   : > { %v1218_v56 = vpop.f32.mrf.mxu0  ;;  %v1523_v42 = vpop.f32.mrf.mxu1 }
 0x1a7   : > { %v291_v42 = vld [vmem:[%s4904_s7 + $0x1f0] sm:$0xff] }
 0x1a8   : > { %v5723_v58 = vpop.f32.mrf.mxu0  ;;  %v1526_v17 = vpop.f32.mrf.mxu1  ;;  %1990 = vmatmul.mubr.f32.gmra.mxu0 %v471_v46  ;;  %4148 = vmatmul.mubr.msk.f32.gmra.mxu1 %vm792_vm0, %v270_v13  ;;  %v1147_v46 = vadd.f32 %v5532_v23, %v5568_v19  ;;  %v493_v19 = vld [vmem:[%s4904_s7 + $0x840] sm:$0xff] }
 0x1a9   : > { %v5726_v28 = vadd.f32 %v1526_v17, %v1142_v16  ;;  %1994 = vmatprep.mubr.f32.mxu0 %v479_v41  ;;  %4150 = vmatprep.mubr.msk.f32.mxu1 %vm792_vm0, %v277_v30  ;;  %v485_v30 = vld [vmem:[%s4904_s7 + $0x800] sm:$0xff]  ;;  %v298_v16 = vld [vmem:[%s4904_s7 + $0x228] sm:$0xff] }
 0x1aa   : > { %v1223_v7 = vpop.f32.mrf.mxu0  ;;  %v1528_v56 = vpop.f32.mrf.mxu1 }
 0x1ab   : > { %v305_v56 = vld [vmem:[%s4904_s7 + $0x260] sm:$0xff] }
 0x1ac   : > { %v5735_v1 = vpop.f32.mrf.mxu0  ;;  %v1531_v13 = vpop.f32.mrf.mxu1  ;;  %1995 = vmatmul.mubr.f32.gmra.mxu0 %v478_v52  ;;  %4151 = vmatmul.mubr.msk.f32.gmra.mxu1 %vm792_vm0, %v284_v38  ;;  %v1152_v52 = vadd.f32 %v5532_v23, %v5578_v39  ;;  %v500_v39 = vld [vmem:[%s4904_s7 + $0x878] sm:$0xff] }
 0x1ad   : > { %v5738_v41 = vadd.f32 %v1531_v13, %v1147_v46  ;;  %1999 = vmatprep.mubr.f32.mxu0 %v486_v3  ;;  %4153 = vmatprep.mubr.msk.f32.mxu1 %vm792_vm0, %v291_v42  ;;  %v492_v42 = vld [vmem:[%s4904_s7 + $0x838] sm:$0xff] }
 0x1ae   : > { %v1228_v17 = vpop.f32.mrf.mxu0  ;;  %v1533_v7 = vpop.f32.mrf.mxu1  ;;  %v312_v46 = vld [vmem:[%s4904_s7 + $0x298] sm:$0xff] }
 0x1af   : > { %v319_v7 = vld [vmem:[%s4904_s7 + $0x2d0] sm:$0xff] }
 0x1b0   : > { %v5747_v61 = vpop.f32.mrf.mxu0  ;;  %v1536_v38 = vpop.f32.mrf.mxu1  ;;  %2000 = vmatmul.mubr.f32.gmra.mxu0 %v485_v30  ;;  %4154 = vmatmul.mubr.msk.f32.gmra.mxu1 %vm792_vm0, %v298_v16  ;;  %v1157_v30 = vadd.f32 %v5532_v23, %v5588_v60  ;;  %v507_v60 = vld [vmem:[%s4904_s7 + $0x8b0] sm:$0xff] }
 0x1b1   : > { %v5750_v3 = vadd.f32 %v1536_v38, %v1152_v52  ;;  %2004 = vmatprep.mubr.f32.mxu0 %v493_v19  ;;  %4156 = vmatprep.mubr.msk.f32.mxu1 %vm792_vm0, %v305_v56  ;;  %v499_v56 = vld [vmem:[%s4904_s7 + $0x870] sm:$0xff]  ;;  %v326_v52 = vld [vmem:[%s4904_s7 + $0x308] sm:$0xff] }
 0x1b2   : > { %v1233_v13 = vpop.f32.mrf.mxu0  ;;  %v1538_v17 = vpop.f32.mrf.mxu1 }
 0x1b3   : > { %v333_v17 = vld [vmem:[%s4904_s7 + $0x340] sm:$0xff] }
 0x1b4   : > { %v5759_v47 = vpop.f32.mrf.mxu0  ;;  %v1541_v16 = vpop.f32.mrf.mxu1  ;;  %2005 = vmatmul.mubr.f32.gmra.mxu0 %v492_v42  ;;  %4157 = vmatmul.mubr.msk.f32.gmra.mxu1 %vm792_vm0, %v312_v46  ;;  %v1162_v42 = vadd.f32 %v5532_v23, %v5598_v62  ;;  %v514_v62 = vld [vmem:[%s4904_s7 + $0x8e8] sm:$0xff] }
 0x1b5   : > { %v5762_v19 = vadd.f32 %v1541_v16, %v1157_v30  ;;  %2009 = vmatprep.mubr.f32.mxu0 %v500_v39  ;;  %4159 = vmatprep.mubr.msk.f32.mxu1 %vm792_vm0, %v319_v7  ;;  %v506_v7 = vld [vmem:[%s4904_s7 + $0x8a8] sm:$0xff]  ;;  %v340_v30 = vld [vmem:[%s4904_s7 + $0x378] sm:$0xff] }
 0x1b6   : > { %v1238_v38 = vpop.f32.mrf.mxu0  ;;  %v1543_v13 = vpop.f32.mrf.mxu1 }
 0x1b7   : > { %v347_v13 = vld [vmem:[%s4904_s7 + $0x3b0] sm:$0xff] }
 0x1b8   : > { %v5771_v31 = vpop.f32.mrf.mxu0  ;;  %v1546_v46 = vpop.f32.mrf.mxu1  ;;  %2010 = vmatmul.mubr.f32.gmra.mxu0 %v499_v56  ;;  %4160 = vmatmul.mubr.msk.f32.gmra.mxu1 %vm792_vm0, %v326_v52  ;;  %v1167_v56 = vadd.f32 %v5532_v23, %v5608_v40  ;;  %v521_v40 = vld [vmem:[%s4904_s7 + $0x920] sm:$0xff] }
 0x1b9   : > { %v5774_v39 = vadd.f32 %v1546_v46, %v1162_v42  ;;  %2014 = vmatprep.mubr.f32.mxu0 %v507_v60  ;;  %4162 = vmatprep.mubr.msk.f32.mxu1 %vm792_vm0, %v333_v17  ;;  %v513_v17 = vld [vmem:[%s4904_s7 + $0x8e0] sm:$0xff]  ;;  %v354_v42 = vld [vmem:[%s4904_s7 + $0x3e8] sm:$0xff] }
 0x1ba   : > { %v1243_v16 = vpop.f32.mrf.mxu0  ;;  %v1548_v38 = vpop.f32.mrf.mxu1 }
 0x1bb   : > { %v361_v38 = vld [vmem:[%s4904_s7 + $0x420] sm:$0xff] }
 0x1bc   : > { %v5783_v21 = vpop.f32.mrf.mxu0  ;;  %v1551_v52 = vpop.f32.mrf.mxu1  ;;  %2015 = vmatmul.mubr.f32.gmra.mxu0 %v506_v7  ;;  %4163 = vmatmul.mubr.msk.f32.gmra.mxu1 %vm792_vm0, %v340_v30  ;;  %v1172_v7 = vadd.f32 %v5532_v23, %v5618_v6  ;;  %v528_v6 = vld [vmem:[%s4904_s7 + $0x958] sm:$0xff] }
 0x1bd   : > { %v5786_v60 = vadd.f32 %v1551_v52, %v1167_v56  ;;  %2019 = vmatprep.mubr.f32.mxu0 %v514_v62  ;;  %4165 = vmatprep.mubr.msk.f32.mxu1 %vm792_vm0, %v347_v13  ;;  %v520_v13 = vld [vmem:[%s4904_s7 + $0x918] sm:$0xff] }
 0x1be   : > { %v1248_v46 = vpop.f32.mrf.mxu0  ;;  %v1553_v16 = vpop.f32.mrf.mxu1  ;;  %v368_v56 = vld [vmem:[%s4904_s7 + $0x458] sm:$0xff] }
 0x1bf   : > { %v375_v16 = vld [vmem:[%s4904_s7 + $0x490] sm:$0xff] }
 0x1c0   : > { %v5795_v12 = vpop.f32.mrf.mxu0  ;;  %v1556_v30 = vpop.f32.mrf.mxu1  ;;  %2020 = vmatmul.mubr.f32.gmra.mxu0 %v513_v17  ;;  %4166 = vmatmul.mubr.msk.f32.gmra.mxu1 %vm792_vm0, %v354_v42  ;;  %v1177_v17 = vadd.f32 %v5532_v23, %v5628_v35  ;;  %v535_v35 = vld [vmem:[%s4904_s7 + $0x990] sm:$0xff] }
 0x1c1   : > { %v5798_v62 = vadd.f32 %v1556_v30, %v1172_v7  ;;  %2024 = vmatprep.mubr.f32.mxu0 %v521_v40  ;;  %4168 = vmatprep.mubr.msk.f32.mxu1 %vm792_vm0, %v361_v38  ;;  %v527_v38 = vld [vmem:[%s4904_s7 + $0x950] sm:$0xff]  ;;  %v382_v7 = vld [vmem:[%s4904_s7 + $0x4c8] sm:$0xff] }
 0x1c2   : > { %v1253_v52 = vpop.f32.mrf.mxu0  ;;  %v1558_v46 = vpop.f32.mrf.mxu1 }
 0x1c3   : > { %7652 = vst [vmem:[#allocation12_spill] sm:$0xff] %v5798_v62  ;;  %v389_v46 = vld [vmem:[%s4904_s7 + $0x500] sm:$0xff] }
 0x1c4   : > { %v5807_v2 = vpop.f32.mrf.mxu0  ;;  %v1561_v42 = vpop.f32.mrf.mxu1  ;;  %2025 = vmatmul.mubr.f32.gmra.mxu0 %v520_v13  ;;  %4169 = vmatmul.mubr.msk.f32.gmra.mxu1 %vm792_vm0, %v368_v56  ;;  %v1182_v13 = vadd.f32 %v5532_v23, %v5638_v57  ;;  %v542_v57 = vld [vmem:[%s4904_s7 + $0x9c8] sm:$0xff] }
 0x1c5   : > { %v5810_v40 = vadd.f32 %v1561_v42, %v1177_v17  ;;  %2029 = vmatprep.mubr.f32.mxu0 %v528_v6  ;;  %4171 = vmatprep.mubr.msk.f32.mxu1 %vm792_vm0, %v375_v16  ;;  %v534_v16 = vld [vmem:[%s4904_s7 + $0x988] sm:$0xff]  ;;  %v396_v17 = vld [vmem:[%s4904_s7 + $0x538] sm:$0xff] }
 0x1c6   : > { %v1258_v30 = vpop.f32.mrf.mxu0  ;;  %v1563_v52 = vpop.f32.mrf.mxu1 }
 0x1c7   : > { %7653 = vst [vmem:[#allocation13_spill] sm:$0xff] %v5810_v40  ;;  %v403_v52 = vld [vmem:[%s4904_s7 + $0x570] sm:$0xff] }
 0x1c8   : > { %v5819_v62 = vpop.f32.mrf.mxu0  ;;  %v1566_v56 = vpop.f32.mrf.mxu1  ;;  %2030 = vmatmul.mubr.f32.gmra.mxu0 %v527_v38  ;;  %4172 = vmatmul.mubr.msk.f32.gmra.mxu1 %vm792_vm0, %v382_v7  ;;  %v1187_v38 = vadd.f32 %v5532_v23, %v5648_v22  ;;  %v549_v22 = vld [vmem:[%s4904_s7 + $0xa00] sm:$0xff] }
 0x1c9   : > { %v5822_v6 = vadd.f32 %v1566_v56, %v1182_v13  ;;  %2034 = vmatprep.mubr.f32.mxu0 %v535_v35  ;;  %4174 = vmatprep.mubr.msk.f32.mxu1 %vm792_vm0, %v389_v46  ;;  %v541_v46 = vld [vmem:[%s4904_s7 + $0x9c0] sm:$0xff]  ;;  %v410_v13 = vld [vmem:[%s4904_s7 + $0x5a8] sm:$0xff] }
 0x1ca   : > { %v1263_v42 = vpop.f32.mrf.mxu0  ;;  %v1568_v30 = vpop.f32.mrf.mxu1 }
 0x1cb   : > { %7654 = vst [vmem:[#allocation14_spill] sm:$0xff] %v5822_v6  ;;  %v417_v30 = vld [vmem:[%s4904_s7 + $0x5e0] sm:$0xff] }
 0x1cc   : > { %v5831_v40 = vpop.f32.mrf.mxu0  ;;  %v1571_v7 = vpop.f32.mrf.mxu1  ;;  %2035 = vmatmul.mubr.f32.gmra.mxu0 %v534_v16  ;;  %4175 = vmatmul.mubr.msk.f32.gmra.mxu1 %vm792_vm0, %v396_v17  ;;  %v1192_v16 = vadd.f32 %v5532_v23, %v5658_v51  ;;  %v556_v51 = vld [vmem:[%s4904_s7 + $0xa38] sm:$0xff] }
 0x1cd   : > { %v5834_v35 = vadd.f32 %v1571_v7, %v1187_v38  ;;  %2039 = vmatprep.mubr.f32.mxu0 %v542_v57  ;;  %4177 = vmatprep.mubr.msk.f32.mxu1 %vm792_vm0, %v403_v52  ;;  %v548_v52 = vld [vmem:[%s4904_s7 + $0x9f8] sm:$0xff] }
 0x1ce   : > { %v1268_v56 = vpop.f32.mrf.mxu0  ;;  %v1573_v42 = vpop.f32.mrf.mxu1  ;;  %v424_v38 = vld [vmem:[%s4904_s7 + $0x618] sm:$0xff] }
 0x1cf   : > { %7655 = vst [vmem:[#allocation15_spill] sm:$0xff] %v5834_v35  ;;  %v431_v42 = vld [vmem:[%s4904_s7 + $0x650] sm:$0xff] }
 0x1d0   : > { %v5843_v6 = vpop.f32.mrf.mxu0  ;;  %v1576_v17 = vpop.f32.mrf.mxu1  ;;  %2040 = vmatmul.mubr.f32.gmra.mxu0 %v541_v46  ;;  %4178 = vmatmul.mubr.msk.f32.gmra.mxu1 %vm792_vm0, %v410_v13  ;;  %v1197_v46 = vadd.f32 %v5532_v23, %v5668_v18  ;;  %v563_v18 = vld [vmem:[%s4904_s7 + $0xa70] sm:$0xff] }
 0x1d1   : > { %v5846_v57 = vadd.f32 %v1576_v17, %v1192_v16  ;;  %2044 = vmatprep.mubr.f32.mxu0 %v549_v22  ;;  %4180 = vmatprep.mubr.msk.f32.mxu1 %vm792_vm0, %v417_v30  ;;  %v555_v30 = vld [vmem:[%s4904_s7 + $0xa30] sm:$0xff]  ;;  %v438_v16 = vld [vmem:[%s4904_s7 + $0x688] sm:$0xff] }
 0x1d2   : > { %v1273_v7 = vpop.f32.mrf.mxu0  ;;  %v1578_v56 = vpop.f32.mrf.mxu1 }
 0x1d3   : > { %7656 = vst [vmem:[#allocation16_spill] sm:$0xff] %v5846_v57  ;;  %v445_v56 = vld [vmem:[%s4904_s7 + $0x6c0] sm:$0xff] }
 0x1d4   : > { %v5855_v35 = vpop.f32.mrf.mxu0  ;;  %v1581_v13 = vpop.f32.mrf.mxu1  ;;  %2045 = vmatmul.mubr.f32.gmra.mxu0 %v548_v52  ;;  %4181 = vmatmul.mubr.msk.f32.gmra.mxu1 %vm792_vm0, %v424_v38  ;;  %v1202_v52 = vadd.f32 %v5532_v23, %v5678_v20  ;;  %v570_v20 = vld [vmem:[%s4904_s7 + $0xaa8] sm:$0xff] }
 0x1d5   : > { %v5858_v22 = vadd.f32 %v1581_v13, %v1197_v46  ;;  %2049 = vmatprep.mubr.f32.mxu0 %v556_v51  ;;  %4183 = vmatprep.mubr.msk.f32.mxu1 %vm792_vm0, %v431_v42  ;;  %v562_v42 = vld [vmem:[%s4904_s7 + $0xa68] sm:$0xff]  ;;  %v452_v46 = vld [vmem:[%s4904_s7 + $0x6f8] sm:$0xff] }
 0x1d6   : > { %v1278_v17 = vpop.f32.mrf.mxu0  ;;  %v1583_v7 = vpop.f32.mrf.mxu1 }
 0x1d7   : > { %7657 = vst [vmem:[#allocation17_spill] sm:$0xff] %v5858_v22  ;;  %v459_v7 = vld [vmem:[%s4904_s7 + $0x730] sm:$0xff] }
 0x1d8   : > { %v5867_v57 = vpop.f32.mrf.mxu0  ;;  %v1586_v38 = vpop.f32.mrf.mxu1  ;;  %2050 = vmatmul.mubr.f32.gmra.mxu0 %v555_v30  ;;  %4184 = vmatmul.mubr.msk.f32.gmra.mxu1 %vm792_vm0, %v438_v16  ;;  %v1207_v30 = vadd.f32 %v5532_v23, %v5688_v11  ;;  %v473_v11 = vld [vmem:[%s4904_s7 + $0x7a0] sm:$0xff] }
 0x1d9   : > { %v5870_v51 = vadd.f32 %v1586_v38, %v1202_v52  ;;  %2054 = vmatprep.mubr.f32.mxu0 %v563_v18  ;;  %4186 = vmatprep.mubr.msk.f32.mxu1 %vm792_vm0, %v445_v56  ;;  %v569_v56 = vld [vmem:[%s4904_s7 + $0xaa0] sm:$0xff]  ;;  %v466_v52 = vld [vmem:[%s4904_s7 + $0x768] sm:$0xff] }
 0x1da   : > { %v1283_v13 = vpop.f32.mrf.mxu0  ;;  %v1588_v17 = vpop.f32.mrf.mxu1 }
 0x1db   : > { %7658 = vst [vmem:[#allocation18_spill] sm:$0xff] %v5870_v51  ;;  %v577_v17 = vld [vmem:[%s4904_s7 + $0xae0] sm:$0xff] }
 0x1dc   : > { %v5879_v22 = vpop.f32.mrf.mxu0  ;;  %v1591_v16 = vpop.f32.mrf.mxu1  ;;  %2055 = vmatmul.mubr.f32.gmra.mxu0 %v562_v42  ;;  %4187 = vmatmul.mubr.msk.f32.gmra.mxu1 %vm792_vm0, %v452_v46  ;;  %v1212_v42 = vadd.f32 %v5532_v23, %v5699_v54  ;;  %v584_v54 = vld [vmem:[%s4904_s7 + $0xb18] sm:$0xff] }
 0x1dd   : > { %v5882_v18 = vadd.f32 %v1591_v16, %v1207_v30  ;;  %2059 = vmatprep.mubr.f32.mxu0 %v570_v20  ;;  %4189 = vmatprep.mubr.msk.f32.mxu1 %vm792_vm0, %v459_v7  ;;  %v576_v30 = vld [vmem:[%s4904_s7 + $0xad8] sm:$0xff] }
 0x1de   : > { %v1288_v38 = vpop.f32.mrf.mxu0  ;;  %v1593_v13 = vpop.f32.mrf.mxu1  ;;  %v480_v16 = vld [vmem:[%s4904_s7 + $0x7d8] sm:$0xff] }
 0x1e0   : > { %v1596_v51 = vpop.f32.mrf.mxu1  ;;  %v1821_v46 = vpop.f32.mrf.mxu0  ;;  %2060 = vmatmul.mubr.f32.gmra.mxu0 %v569_v56  ;;  %4190 = vmatmul.mubr.msk.f32.gmra.mxu1 %vm792_vm0, %v466_v52  ;;  %v487_v56 = vld [vmem:[%s4904_s7 + $0x810] sm:$0xff] }
 0x1e1   : > { %v5892_v20 = vadd.f32 %v1596_v51, %v1212_v42  ;;  %v5895_v7 = vadd.f32 %v1821_v46, %v5540_v34  ;;  %2064 = vmatprep.mubr.f32.mxu0 %v577_v17  ;;  %4192 = vmatprep.mubr.msk.f32.mxu1 %vm792_vm0, %v473_v11  ;;  %v1217_v51 = vadd.f32 %v5532_v23, %v5711_v32  ;;  %v583_v11 = vld [vmem:[%s4904_s7 + $0xb10] sm:$0xff]  ;;  %v494_v46 = vld [vmem:[%s4904_s7 + $0x848] sm:$0xff] }
 0x1e2   : > { %v1598_v38 = vpop.f32.mrf.mxu1  ;;  %v1823_v13 = vpop.f32.mrf.mxu0  ;;  %v591_v32 = vld [vmem:[%s4904_s7 + $0xb50] sm:$0xff] }
 0x1e4   : > { %v1601_v52 = vpop.f32.mrf.mxu1  ;;  %v1826_v42 = vpop.f32.mrf.mxu0  ;;  %2065 = vmatmul.mubr.f32.gmra.mxu0 %v576_v30  ;;  %4193 = vmatmul.mubr.msk.f32.gmra.mxu1 %vm792_vm0, %v480_v16  ;;  %v501_v30 = vld [vmem:[%s4904_s7 + $0x880] sm:$0xff]  ;;  %v1222_v16 = vadd.f32 %v5532_v23, %v5723_v58  ;;  %v598_v58 = vld [vmem:[%s4904_s7 + $0xb88] sm:$0xff] }
 0x1e5   : > { %v5905_v34 = vadd.f32 %v1601_v52, %v1217_v51  ;;  %v5908_v17 = vadd.f32 %v1826_v42, %v5550_v49  ;;  %2069 = vmatprep.mubr.f32.mxu0 %v584_v54  ;;  %4195 = vmatprep.mubr.msk.f32.mxu1 %vm792_vm0, %v487_v56  ;;  %v590_v56 = vld [vmem:[%s4904_s7 + $0xb48] sm:$0xff]  ;;  %v508_v42 = vld [vmem:[%s4904_s7 + $0x8b8] sm:$0xff] }
 0x1e6   : > { %v1603_v38 = vpop.f32.mrf.mxu1  ;;  %v1828_v13 = vpop.f32.mrf.mxu0 }
 0x1e8   : > { %v1606_v51 = vpop.f32.mrf.mxu1  ;;  %v1831_v52 = vpop.f32.mrf.mxu0  ;;  %2070 = vmatmul.mubr.f32.gmra.mxu0 %v583_v11  ;;  %4196 = vmatmul.mubr.msk.f32.gmra.mxu1 %vm792_vm0, %v494_v46  ;;  %v515_v11 = vld [vmem:[%s4904_s7 + $0x8f0] sm:$0xff]  ;;  %v1227_v46 = vadd.f32 %v5532_v23, %v5735_v1  ;;  %v605_v1 = vld [vmem:[%s4904_s7 + $0xbc0] sm:$0xff] }
 0x1e9   : > { %v5918_v49 = vadd.f32 %v1606_v51, %v1222_v16  ;;  %v5921_v54 = vadd.f32 %v1831_v52, %v5560_v5  ;;  %2074 = vmatprep.mubr.f32.mxu0 %v591_v32  ;;  %4198 = vmatprep.mubr.msk.f32.mxu1 %vm792_vm0, %v501_v30  ;;  %v597_v30 = vld [vmem:[%s4904_s7 + $0xb80] sm:$0xff]  ;;  %v522_v52 = vld [vmem:[%s4904_s7 + $0x928] sm:$0xff] }
 0x1ea   : > { %v1608_v38 = vpop.f32.mrf.mxu1  ;;  %v1833_v13 = vpop.f32.mrf.mxu0  ;;  %v529_v23 = vld [vmem:[%s4904_s7 + $0x960] sm:$0xff] }
 0x1ec   : > { %v1611_v16 = vpop.f32.mrf.mxu1  ;;  %v1836_v51 = vpop.f32.mrf.mxu0  ;;  %2075 = vmatmul.mubr.f32.gmra.mxu0 %v590_v56  ;;  %4199 = vmatmul.mubr.msk.f32.gmra.mxu1 %vm792_vm0, %v508_v42  ;;  %v5944_v56 = vld [vmem:[%s7602_s2] ss:$0 sm:$0xff] }
 0x1ed   : > { %v5931_v5 = vadd.f32 %v1611_v16, %v1227_v46  ;;  %v5934_v32 = vadd.f32 %v1836_v51, %v5570_v26  ;;  %2079 = vmatprep.mubr.f32.mxu0 %v598_v58  ;;  %4201 = vmatprep.mubr.msk.f32.mxu1 %vm792_vm0, %v515_v11  ;;  %v1232_v26 = vadd.f32 %v5944_v56, %v5747_v61  ;;  %v604_v16 = vld [vmem:[%s4904_s7 + $0xbb8] sm:$0xff] }
 0x1ee   : > { %v1613_v38 = vpop.f32.mrf.mxu1  ;;  %v1838_v13 = vpop.f32.mrf.mxu0  ;;  %v536_v51 = vld [vmem:[%s4904_s7 + $0x998] sm:$0xff] }
 0x1ef   : > { %v612_v61 = vld [vmem:[%s4904_s7 + $0xbf8] sm:$0xff] }
 0x1f0   : > { %v1616_v42 = vpop.f32.mrf.mxu1  ;;  %v1841_v58 = vpop.f32.mrf.mxu0  ;;  %2080 = vmatmul.mubr.f32.gmra.mxu0 %v597_v30  ;;  %4202 = vmatmul.mubr.msk.f32.gmra.mxu1 %vm792_vm0, %v522_v52  ;;  %v543_v30 = vld [vmem:[%s4904_s7 + $0x9d0] sm:$0xff]  ;;  %v1237_v52 = vadd.f32 %v5944_v56, %v5759_v47 }
 0x1f1   : > { %v5949_v11 = vadd.f32 %v1616_v42, %v1232_v26  ;;  %v5952_v46 = vadd.f32 %v1841_v58, %v5580_v44  ;;  %2084 = vmatprep.mubr.f32.mxu0 %v605_v1  ;;  %4204 = vmatprep.mubr.msk.f32.mxu1 %vm792_vm0, %v529_v23  ;;  %v611_v23 = vld [vmem:[%s4904_s7 + $0xbf0] sm:$0xff]  ;;  %v550_v58 = vld [vmem:[%s4904_s7 + $0xa08] sm:$0xff] }
 0x1f2   : > { %v1618_v38 = vpop.f32.mrf.mxu1  ;;  %v1843_v13 = vpop.f32.mrf.mxu0  ;;  %v619_v47 = vld [vmem:[%s4904_s7 + $0xc30] sm:$0xff] }
 0x1f4   : > { %v1621_v26 = vpop.f32.mrf.mxu1  ;;  %v1846_v42 = vpop.f32.mrf.mxu0  ;;  %2085 = vmatmul.mubr.f32.gmra.mxu0 %v604_v16  ;;  %4205 = vmatmul.mubr.msk.f32.gmra.mxu1 %vm792_vm0, %v536_v51  ;;  %v557_v16 = vld [vmem:[%s4904_s7 + $0xa40] sm:$0xff]  ;;  %v1242_v51 = vadd.f32 %v5944_v56, %v5771_v31  ;;  %v626_v31 = vld [vmem:[%s4904_s7 + $0xc68] sm:$0xff] }
 0x1f5   : > { %v5962_v44 = vadd.f32 %v1621_v26, %v1237_v52  ;;  %v5965_v1 = vadd.f32 %v1846_v42, %v5590_v4  ;;  %2089 = vmatprep.mubr.f32.mxu0 %v612_v61  ;;  %4207 = vmatprep.mubr.msk.f32.mxu1 %vm792_vm0, %v543_v30  ;;  %v618_v30 = vld [vmem:[%s4904_s7 + $0xc28] sm:$0xff]  ;;  %v564_v42 = vld [vmem:[%s4904_s7 + $0xa78] sm:$0xff] }
 0x1f6   : > { %v1623_v38 = vpop.f32.mrf.mxu1  ;;  %v1848_v13 = vpop.f32.mrf.mxu0 }
 0x1f8   : > { %v1626_v52 = vpop.f32.mrf.mxu1  ;;  %v1851_v26 = vpop.f32.mrf.mxu0  ;;  %2090 = vmatmul.mubr.f32.gmra.mxu0 %v611_v23  ;;  %4208 = vmatmul.mubr.msk.f32.gmra.mxu1 %vm792_vm0, %v550_v58  ;;  %v571_v23 = vld [vmem:[%s4904_s7 + $0xab0] sm:$0xff]  ;;  %v1247_v58 = vadd.f32 %v5944_v56, %v5783_v21  ;;  %v633_v21 = vld [vmem:[%s4904_s7 + $0xca0] sm:$0xff] }
 0x1f9   : > { %v5975_v4 = vadd.f32 %v1626_v52, %v1242_v51  ;;  %v5978_v61 = vadd.f32 %v1851_v26, %v5600_v27  ;;  %2094 = vmatprep.mubr.f32.mxu0 %v619_v47  ;;  %4210 = vmatprep.mubr.msk.f32.mxu1 %vm792_vm0, %v557_v16  ;;  %v625_v16 = vld [vmem:[%s4904_s7 + $0xc60] sm:$0xff]  ;;  %v578_v26 = vld [vmem:[%s4904_s7 + $0xae8] sm:$0xff] }
 0x1fa   : > { %v1628_v38 = vpop.f32.mrf.mxu1  ;;  %v1853_v13 = vpop.f32.mrf.mxu0 }
 0x1fc   : > { %v1631_v51 = vpop.f32.mrf.mxu1  ;;  %v1856_v52 = vpop.f32.mrf.mxu0  ;;  %2095 = vmatmul.mubr.f32.gmra.mxu0 %v618_v30  ;;  %4211 = vmatmul.mubr.msk.f32.gmra.mxu1 %vm792_vm0, %v564_v42  ;;  %v585_v30 = vld [vmem:[%s4904_s7 + $0xb20] sm:$0xff]  ;;  %v1252_v42 = vadd.f32 %v5944_v56, %v5795_v12  ;;  %v640_v12 = vld [vmem:[%s4904_s7 + $0xcd8] sm:$0xff] }
 0x1fd   : > { %v5988_v27 = vadd.f32 %v1631_v51, %v1247_v58  ;;  %v5991_v47 = vadd.f32 %v1856_v52, %v5610_v50  ;;  %2099 = vmatprep.mubr.f32.mxu0 %v626_v31  ;;  %4213 = vmatprep.mubr.msk.f32.mxu1 %vm792_vm0, %v571_v23  ;;  %v632_v23 = vld [vmem:[%s4904_s7 + $0xc98] sm:$0xff] }
 0x1fe   : > { %v1633_v38 = vpop.f32.mrf.mxu1  ;;  %v1858_v13 = vpop.f32.mrf.mxu0  ;;  %v592_v52 = vld [vmem:[%s4904_s7 + $0xb58] sm:$0xff] }
 0x200   : > { %v1636_v58 = vpop.f32.mrf.mxu1  ;;  %v1861_v51 = vpop.f32.mrf.mxu0  ;;  %2100 = vmatmul.mubr.f32.gmra.mxu0 %v625_v16  ;;  %4214 = vmatmul.mubr.msk.f32.gmra.mxu1 %vm792_vm0, %v578_v26  ;;  %v599_v16 = vld [vmem:[%s4904_s7 + $0xb90] sm:$0xff]  ;;  %v1257_v26 = vadd.f32 %v5944_v56, %v5807_v2 }
 0x201   : > { %v6001_v50 = vadd.f32 %v1636_v58, %v1252_v42  ;;  %v6004_v31 = vadd.f32 %v1861_v51, %v5620_v10  ;;  %2104 = vmatprep.mubr.f32.mxu0 %v633_v21  ;;  %4216 = vmatprep.mubr.msk.f32.mxu1 %vm792_vm0, %v585_v30  ;;  %v639_v30 = vld [vmem:[%s4904_s7 + $0xcd0] sm:$0xff]  ;;  %v606_v51 = vld [vmem:[%s4904_s7 + $0xbc8] sm:$0xff] }
 0x202   : > { %v1638_v38 = vpop.f32.mrf.mxu1  ;;  %v1863_v13 = vpop.f32.mrf.mxu0  ;;  %v647_v2 = vld [vmem:[%s4904_s7 + $0xd10] sm:$0xff] }
 0x203   : > { %7659 = vst [vmem:[#allocation19_spill] sm:$0xff] %v6001_v50 }
 0x204   : > { %v1641_v42 = vpop.f32.mrf.mxu1  ;;  %v1866_v58 = vpop.f32.mrf.mxu0  ;;  %2105 = vmatmul.mubr.f32.gmra.mxu0 %v632_v23  ;;  %4217 = vmatmul.mubr.msk.f32.gmra.mxu1 %vm792_vm0, %v592_v52  ;;  %v613_v23 = vld [vmem:[%s4904_s7 + $0xc00] sm:$0xff]  ;;  %v1262_v52 = vadd.f32 %v5944_v56, %v5819_v62  ;;  %v654_v62 = vld [vmem:[%s4904_s7 + $0xd48] sm:$0xff] }
 0x205   : > { %v6014_v10 = vadd.f32 %v1641_v42, %v1257_v26  ;;  %v6017_v21 = vadd.f32 %v1866_v58, %v5630_v37  ;;  %2109 = vmatprep.mubr.f32.mxu0 %v640_v12  ;;  %4219 = vmatprep.mubr.msk.f32.mxu1 %vm792_vm0, %v599_v16  ;;  %v646_v16 = vld [vmem:[%s4904_s7 + $0xd08] sm:$0xff]  ;;  %v620_v58 = vld [vmem:[%s4904_s7 + $0xc38] sm:$0xff] }
 0x206   : > { %v1643_v38 = vpop.f32.mrf.mxu1  ;;  %v1868_v13 = vpop.f32.mrf.mxu0 }
 0x208   : > { %v1646_v26 = vpop.f32.mrf.mxu1  ;;  %v1871_v42 = vpop.f32.mrf.mxu0  ;;  %2110 = vmatmul.mubr.f32.gmra.mxu0 %v639_v30  ;;  %4220 = vmatmul.mubr.msk.f32.gmra.mxu1 %vm792_vm0, %v606_v51  ;;  %v627_v30 = vld [vmem:[%s4904_s7 + $0xc70] sm:$0xff]  ;;  %v1267_v51 = vadd.f32 %v5944_v56, %v5831_v40  ;;  %v661_v40 = vld [vmem:[%s4904_s7 + $0xd80] sm:$0xff] }
 0x209   : > { %v6027_v37 = vadd.f32 %v1646_v26, %v1262_v52  ;;  %v6030_v12 = vadd.f32 %v1871_v42, %v5640_v14  ;;  %2114 = vmatprep.mubr.f32.mxu0 %v647_v2  ;;  %4222 = vmatprep.mubr.msk.f32.mxu1 %vm792_vm0, %v613_v23  ;;  %v653_v23 = vld [vmem:[%s4904_s7 + $0xd40] sm:$0xff]  ;;  %v634_v42 = vld [vmem:[%s4904_s7 + $0xca8] sm:$0xff] }
 0x20a   : > { %v1648_v38 = vpop.f32.mrf.mxu1  ;;  %v1873_v13 = vpop.f32.mrf.mxu0 }
 0x20b   : > { %7660 = vst [vmem:[#allocation20_spill] sm:$0xff] %v6027_v37 }
 0x20c   : > { %v1651_v52 = vpop.f32.mrf.mxu1  ;;  %v1876_v26 = vpop.f32.mrf.mxu0  ;;  %2115 = vmatmul.mubr.f32.gmra.mxu0 %v646_v16  ;;  %4223 = vmatmul.mubr.msk.f32.gmra.mxu1 %vm792_vm0, %v620_v58  ;;  %v641_v16 = vld [vmem:[%s4904_s7 + $0xce0] sm:$0xff]  ;;  %v1272_v58 = vadd.f32 %v5944_v56, %v5843_v6  ;;  %v668_v6 = vld [vmem:[%s4904_s7 + $0xdb8] sm:$0xff] }
 0x20d   : > { %v6040_v14 = vadd.f32 %v1651_v52, %v1267_v51  ;;  %v6043_v2 = vadd.f32 %v1876_v26, %v5650_v29  ;;  %2119 = vmatprep.mubr.f32.mxu0 %v654_v62  ;;  %4225 = vmatprep.mubr.msk.f32.mxu1 %vm792_vm0, %v627_v30  ;;  %v660_v30 = vld [vmem:[%s4904_s7 + $0xd78] sm:$0xff] }
 0x20e   : > { %v1653_v38 = vpop.f32.mrf.mxu1  ;;  %v1878_v13 = vpop.f32.mrf.mxu0  ;;  %v648_v26 = vld [vmem:[%s4904_s7 + $0xd18] sm:$0xff] }
 0x20f   : > { %7661 = vst [vmem:[#allocation21_spill] sm:$0xff] %v6040_v14 }
 0x210   : > { %v1656_v51 = vpop.f32.mrf.mxu1  ;;  %v1881_v52 = vpop.f32.mrf.mxu0  ;;  %2120 = vmatmul.mubr.f32.gmra.mxu0 %v653_v23  ;;  %4226 = vmatmul.mubr.msk.f32.gmra.mxu1 %vm792_vm0, %v634_v42  ;;  %v655_v23 = vld [vmem:[%s4904_s7 + $0xd50] sm:$0xff]  ;;  %v1277_v42 = vadd.f32 %v5944_v56, %v5855_v35 }
 0x211   : > { %v6053_v29 = vadd.f32 %v1656_v51, %v1272_v58  ;;  %v6056_v62 = vadd.f32 %v1881_v52, %v5660_v0  ;;  %2124 = vmatprep.mubr.f32.mxu0 %v661_v40  ;;  %4228 = vmatprep.mubr.msk.f32.mxu1 %vm792_vm0, %v641_v16  ;;  %v667_v16 = vld [vmem:[%s4904_s7 + $0xdb0] sm:$0xff]  ;;  %v662_v52 = vld [vmem:[%s4904_s7 + $0xd88] sm:$0xff] }
 0x212   : > { %v1658_v38 = vpop.f32.mrf.mxu1  ;;  %v1883_v13 = vpop.f32.mrf.mxu0  ;;  %v675_v35 = vld [vmem:[%s4904_s7 + $0xdf0] sm:$0xff] }
 0x213   : > { %7662 = vst [vmem:[#allocation22_spill] sm:$0xff] %v6053_v29  ;;  %v669_v29 = vld [vmem:[%s4904_s7 + $0xdc0] sm:$0xff] }
 0x214   : > { %v1661_v58 = vpop.f32.mrf.mxu1  ;;  %v1886_v51 = vpop.f32.mrf.mxu0  ;;  %2125 = vmatmul.mubr.f32.gmra.mxu0 %v660_v30  ;;  %4229 = vmatmul.mubr.msk.f32.gmra.mxu1 %vm792_vm0, %v648_v26  ;;  %v1282_v30 = vadd.f32 %v5944_v56, %v5867_v57  ;;  %v1287_v57 = vadd.f32 %v5944_v56, %v5879_v22 }
 0x215   : > { %v6066_v0 = vadd.f32 %v1661_v58, %v1277_v42  ;;  %v6069_v40 = vadd.f32 %v1886_v51, %v5670_v24  ;;  %2129 = vmatprep.mubr.f32.mxu0 %v668_v6  ;;  %4231 = vmatprep.mubr.msk.f32.mxu1 %vm792_vm0, %v655_v23  ;;  %v674_v23 = vld [vmem:[%s4904_s7 + $0xde8] sm:$0xff]  ;;  %v676_v58 = vld [vmem:[%s4904_s7 + $0xdf8] sm:$0xff]  ;;  %s218_s7 = sand.u32 1, %s4655_s19  }
 0x216   : > { %v1663_v38 = vpop.f32.mrf.mxu1  ;;  %v1888_v13 = vpop.f32.mrf.mxu0  ;;  %s3965_s23 = sshll.u32 %s218_s7, 9  ;;  %s7560_s22 = scalar_lea.sflag [#allocation3], %s218_s7 }
 0x217   : > { %7663 = vst [vmem:[#allocation23_spill] sm:$0xff] %v6066_v0  ;;  %s7242_s25 = scalar_lea.vmem [#allocation2], %s3965_s23  ;;  %s4607_s23 = sshll.u32 %s4666_s17, 4  ;;  %s4608_s23 = int_to_ptr.vmem [resolvable:$false] %s4607_s23 }
 0x218   : > { %v1666_v26 = vpop.f32.mrf.mxu1  ;;  %v1891_v42 = vpop.f32.mrf.mxu0  ;;  %2130 = vmatmul.mubr.f32.gmra.mxu0 %v667_v16  ;;  %4232 = vmatmul.mubr.msk.f32.gmra.mxu1 %vm792_vm0, %v662_v52  ;;  %s3899_s12 = sshll.u32 %s7242_s25, 4  ;;  %s4609_s26 = scalar_lea.vmem %s4608_s23, 16384  ;;  %s7552_s12 = int_to_ptr.vmem [resolvable:$true] %s3899_s12 }
 0x219   : > { %v6079_v24 = vadd.f32 %v1666_v26, %v1282_v30  ;;  %v6082_v6 = vadd.f32 %v1891_v42, %v5680_v59  ;;  %2134 = vmatprep.mubr.f32.mxu0 %v675_v35  ;;  %4234 = vmatprep.mubr.msk.f32.mxu1 %vm792_vm0, %v669_v29  ;;  %v1292_v29 = vadd.f32 %v5944_v56, %v5395_v45  ;;  %s4603_s16 = scalar_lea.vmem %s7552_s12, 8192  ;;  %p4610_p0 = scmp.lt.s32.totalorder %s7552_s12, %s4608_s23 }
 0x21a   : > { %v1668_v51 = vpop.f32.mrf.mxu1  ;;  %v1893_v38 = vpop.f32.mrf.mxu0  ;;  %p4604_p11 = scmp.ne.s32.totalorder %s7552_s12, %s4603_s16  ;;  %p4611_p1 = scmp.lt.s32.totalorder %s4609_s26, %s4603_s16 }
 0x21b   : > { %7664 = vst [vmem:[#allocation24_spill] sm:$0xff] %v6079_v24 }
 0x21c   : > { %v1671_v13 = vpop.f32.mrf.mxu1  ;;  %v1896_v0 = vpop.f32.mrf.mxu0  ;;  %2135 = vmatmul.mubr.f32.gmra.mxu0 %v674_v23  ;;  %4235 = vmatmul.mubr.msk.f32.gmra.mxu1 %vm792_vm0, %v676_v58  ;;  %v1297_v58 = vadd.f32 %v5944_v56, %v5405_v55  ;;  %p4605_p12 = pnand %p4604_p11, %p4737_p5  ;;  %p4612_p2 = por %p4611_p1, %p4610_p0 }
 0x21d   : > { %v6090_v16 = vadd.f32 %v1671_v13, %v1287_v57  ;;  %v6093_v59 = vadd.f32 %v1896_v0, %v5690_v36 }
 0x21e   : > { %v1673_v52 = vpop.f32.mrf.mxu1  ;;  %v1898_v35 = vpop.f32.mrf.mxu0  ;;  %p4606_p13 = pneg %p4605_p12 }
 0x21f   : > { %7665 = vst [vmem:[#allocation25_spill] sm:$0xff] %v6090_v16  ;;  %v1302_v52 = vadd.f32 %v5944_v56, %v5413_v63 }
 0x220   : > { %v1676_v30 = vpop.f32.mrf.mxu1  ;;  %v1901_v26 = vpop.f32.mrf.mxu0  ;;  %p4613_p3 = pnand %p4612_p2, %p4606_p13 }
 0x221   : > { %v6097_v42 = vadd.f32 %v1676_v30, %v1292_v29  ;;  %v6100_v22 = vadd.f32 %v1901_v26, %v5702_v9 }
 0x222   : > { %v1678_v23 = vpop.f32.mrf.mxu1  ;;  %v1903_v51 = vpop.f32.mrf.mxu0 }
 0x223   : > { %7666 = vst [vmem:[#allocation26_spill] sm:$0xff] %v6097_v42  ;;  %v1307_v23 = vadd.f32 %v5944_v56, %v5421_v8  ;;  %v7694_v42 = vld [vmem:[#allocation11_spill] sm:$0xff] }
 0x224   : > { %v1681_v38 = vpop.f32.mrf.mxu1  ;;  %v1906_v36 = vpop.f32.mrf.mxu0 }
 0x225   : > { %v6104_v0 = vadd.f32 %v1681_v38, %v1297_v58  ;;  %v6107_v57 = vadd.f32 %v1906_v36, %v5714_v48 }
 0x226   : > { %v1683_v45 = vpop.f32.mrf.mxu1  ;;  %v1908_v13 = vpop.f32.mrf.mxu0 }
 0x227   : > { %7667 = vst [vmem:[#allocation27_spill] sm:$0xff] %v6104_v0  ;;  %v1312_v45 = vadd.f32 %v5944_v56, %v5429_v15 }
 0x228   : > { %v1686_v35 = vpop.f32.mrf.mxu1  ;;  %v1911_v9 = vpop.f32.mrf.mxu0 }
 0x229   : > { %v6111_v29 = vadd.f32 %v1686_v35, %v1302_v52  ;;  %v6114_v30 = vadd.f32 %v1911_v9, %v5726_v28 }
 0x22a   : > { %v1688_v55 = vpop.f32.mrf.mxu1  ;;  %v1913_v26 = vpop.f32.mrf.mxu0 }
 0x22b   : > { %7668 = vst [vmem:[#allocation28_spill] sm:$0xff] %v6111_v29  ;;  %v1317_v55 = vadd.f32 %v5944_v56, %v5439_v25  ;;  %v7688_v29 = vld [vmem:[#allocation9_spill] sm:$0xff] }
 0x22c   : > { %v1691_v51 = vpop.f32.mrf.mxu1  ;;  %v1916_v48 = vpop.f32.mrf.mxu0 }
 0x22d   : > { %v6118_v58 = vadd.f32 %v1691_v51, %v1307_v23  ;;  %v6121_v38 = vadd.f32 %v1916_v48, %v5738_v41 }
 0x22e   : > { %v1693_v63 = vpop.f32.mrf.mxu1  ;;  %v1918_v36 = vpop.f32.mrf.mxu0 }
 0x22f   : > { %7669 = vst [vmem:[#allocation29_spill] sm:$0xff] %v6118_v58  ;;  %v1322_v63 = vadd.f32 %v5944_v56, %v5447_v33  ;;  %v7691_v58 = vld [vmem:[#allocation10_spill] sm:$0xff] }
 0x230   : > { %v1696_v13 = vpop.f32.mrf.mxu1  ;;  %v1921_v28 = vpop.f32.mrf.mxu0 }
 0x231   : > { %v6125_v52 = vadd.f32 %v1696_v13, %v1312_v45  ;;  %v6128_v35 = vadd.f32 %v1921_v28, %v5750_v3 }
 0x232   : > { %v1698_v8 = vpop.f32.mrf.mxu1  ;;  %v1923_v9 = vpop.f32.mrf.mxu0 }
 0x233   : > { %7670 = vst [vmem:[#allocation30_spill] sm:$0xff] %v6125_v52  ;;  %v1327_v8 = vadd.f32 %v5944_v56, %v5457_v43  ;;  %v7682_v52 = vld [vmem:[#allocation7_spill] sm:$0xff] }
 0x234   : > { %v1701_v26 = vpop.f32.mrf.mxu1  ;;  %v1926_v41 = vpop.f32.mrf.mxu0 }
 0x235   : > { %v6132_v23 = vadd.f32 %v1701_v26, %v1317_v55  ;;  %v6135_v51 = vadd.f32 %v1926_v41, %v5762_v19 }
 0x236   : > { %v1703_v15 = vpop.f32.mrf.mxu1  ;;  %v1928_v48 = vpop.f32.mrf.mxu0 }
 0x237   : > { %7671 = vst [vmem:[#allocation31_spill] sm:$0xff] %v6132_v23  ;;  %v1332_v15 = vadd.f32 %v5944_v56, %v5465_v53  ;;  %v7685_v23 = vld [vmem:[#allocation8_spill] sm:$0xff] }
 0x238   : > { %v1706_v36 = vpop.f32.mrf.mxu1  ;;  %v1931_v3 = vpop.f32.mrf.mxu0 }
 0x239   : > { %v6139_v45 = vadd.f32 %v1706_v36, %v1322_v63  ;;  %v6142_v13 = vadd.f32 %v1931_v3, %v5774_v39  ;;  %v7675_v36 = vld [vmem:[#allocation12_spill] sm:$0xff] }
 0x23a   : > { %v1708_v25 = vpop.f32.mrf.mxu1  ;;  %v1933_v28 = vpop.f32.mrf.mxu0 }
 0x23b   : > { %7672 = vst [vmem:[#allocation32_spill] sm:$0xff] %v6139_v45  ;;  %v7676_v28 = vld [vmem:[#allocation5_spill] sm:$0xff] }
 0x23c   : > { %v1711_v9 = vpop.f32.mrf.mxu1  ;;  %v1936_v19 = vpop.f32.mrf.mxu0 }
 0x23d   : > { %v6146_v55 = vadd.f32 %v1711_v9, %v1327_v8  ;;  %v6149_v26 = vadd.f32 %v1936_v19, %v5786_v60  ;;  %v1337_v8 = vadd.f32 %v5944_v56, %v7676_v28 }
 0x23e   : > { %v1713_v33 = vpop.f32.mrf.mxu1  ;;  %v1938_v41 = vpop.f32.mrf.mxu0 }
 0x23f   : > { %7673 = vst [vmem:[#allocation33_spill] sm:$0xff] %v6146_v55  ;;  %v7678_v33 = vld [vmem:[#allocation13_spill] sm:$0xff]  ;;  %v7679_v55 = vld [vmem:[#allocation6_spill] sm:$0xff] }
 0x240   : > { %v1716_v48 = vpop.f32.mrf.mxu1  ;;  %v1941_v39 = vpop.f32.mrf.mxu0 }
 0x241   : > { %v6153_v63 = vadd.f32 %v1716_v48, %v1332_v15  ;;  %v6156_v3 = vadd.f32 %v1941_v39, %v7675_v36  ;;  %v1342_v15 = vadd.f32 %v5944_v56, %v7679_v55 }
 0x242   : > { %v1718_v43 = vpop.f32.mrf.mxu1  ;;  %v1943_v25 = vpop.f32.mrf.mxu0 }
 0x243   : > { %7674 = vst [vmem:[#allocation34_spill] sm:$0xff] %v6153_v63  ;;  %v7681_v43 = vld [vmem:[#allocation14_spill] sm:$0xff] }
 0x244   : > { %v1721_v9 = vpop.f32.mrf.mxu1  ;;  %v1946_v60 = vpop.f32.mrf.mxu0 }
 0x245   : > { %v6160_v19 = vadd.f32 %v1721_v9, %v1337_v8  ;;  %v6163_v41 = vadd.f32 %v1946_v60, %v7678_v33  ;;  %v1347_v8 = vadd.f32 %v5944_v56, %v7682_v52 }
 0x246   : > { %v1723_v53 = vpop.f32.mrf.mxu1  ;;  %v1948_v45 = vpop.f32.mrf.mxu0 }
 0x247   : > { %7677 = vst [vmem:[#allocation12_spill] sm:$0xff] %v6160_v19  ;;  %v7684_v45 = vld [vmem:[#allocation15_spill] sm:$0xff] }
 0x248   : > { %v1726_v48 = vpop.f32.mrf.mxu1  ;;  %v1951_v39 = vpop.f32.mrf.mxu0 }
 0x249   : > { %v6167_v36 = vadd.f32 %v1726_v48, %v1342_v15  ;;  %v6170_v25 = vadd.f32 %v1951_v39, %v7681_v43  ;;  %v1352_v15 = vadd.f32 %v5944_v56, %v7685_v23 }
 0x24a   : > { %v1728_v28 = vpop.f32.mrf.mxu1  ;;  %v1953_v63 = vpop.f32.mrf.mxu0 }
 0x24b   : > { %7680 = vst [vmem:[#allocation5_spill] sm:$0xff] %v6167_v36  ;;  %v7687_v63 = vld [vmem:[#allocation16_spill] sm:$0xff] }
 0x24c   : > { %v1731_v9 = vpop.f32.mrf.mxu1  ;;  %v1956_v60 = vpop.f32.mrf.mxu0 }
 0x24d   : > { %v6174_v33 = vadd.f32 %v1731_v9, %v1347_v8  ;;  %v6177_v53 = vadd.f32 %v1956_v60, %v7684_v45  ;;  %v1357_v8 = vadd.f32 %v5944_v56, %v7688_v29 }
 0x24e   : > { %v1733_v55 = vpop.f32.mrf.mxu1  ;;  %v1958_v19 = vpop.f32.mrf.mxu0 }
 0x24f   : > { %7683 = vst [vmem:[#allocation13_spill] sm:$0xff] %v6174_v33  ;;  %v7690_v19 = vld [vmem:[#allocation17_spill] sm:$0xff] }
 0x250   : > { %v1736_v48 = vpop.f32.mrf.mxu1  ;;  %v1961_v39 = vpop.f32.mrf.mxu0 }
 0x251   : > { %v6181_v43 = vadd.f32 %v1736_v48, %v1352_v15  ;;  %v6184_v28 = vadd.f32 %v1961_v39, %v7687_v63  ;;  %v1362_v15 = vadd.f32 %v5944_v56, %v7691_v58 }
 0x252   : > { %v1738_v52 = vpop.f32.mrf.mxu1  ;;  %v1963_v36 = vpop.f32.mrf.mxu0 }
 0x253   : > { %7686 = vst [vmem:[#allocation6_spill] sm:$0xff] %v6181_v43  ;;  %v7693_v36 = vld [vmem:[#allocation18_spill] sm:$0xff] }
 0x254   : > { %v1741_v9 = vpop.f32.mrf.mxu1  ;;  %v1966_v60 = vpop.f32.mrf.mxu0 }
 0x255   : > { %v6188_v45 = vadd.f32 %v1741_v9, %v1357_v8  ;;  %v6191_v55 = vadd.f32 %v1966_v60, %v7690_v19  ;;  %v1367_v8 = vadd.f32 %v5944_v56, %v7694_v42 }
 0x256   : > { %v1743_v23 = vpop.f32.mrf.mxu1  ;;  %v1968_v33 = vpop.f32.mrf.mxu0 }
 0x257   : > { %7689 = vst [vmem:[#allocation14_spill] sm:$0xff] %v6188_v45 }
 0x258   : > { %v1746_v48 = vpop.f32.mrf.mxu1  ;;  %v1971_v39 = vpop.f32.mrf.mxu0 }
 0x259   : > { %v6195_v63 = vadd.f32 %v1746_v48, %v1362_v15  ;;  %v6198_v52 = vadd.f32 %v1971_v39, %v7693_v36 }
 0x25a   : > { %v1748_v29 = vpop.f32.mrf.mxu1  ;;  %v1973_v43 = vpop.f32.mrf.mxu0 }
 0x25b   : > { %7692 = vst [vmem:[#allocation7_spill] sm:$0xff] %v6195_v63 }
 0x25c   : > { %v1751_v9 = vpop.f32.mrf.mxu1  ;;  %v1976_v60 = vpop.f32.mrf.mxu0 }
 0x25d   : > { %v6202_v19 = vadd.f32 %v1751_v9, %v1367_v8  ;;  %v6205_v33 = vadd.f32 %v1976_v60, %v5882_v18 }
 0x25e   : > { %v1753_v58 = vpop.f32.mrf.mxu1  ;;  %v1978_v23 = vpop.f32.mrf.mxu0 }
 0x25f   : > { %7695 = vst [vmem:[#allocation15_spill] sm:$0xff] %v6202_v19 }
 0x260   : > { %v1981_v45 = vpop.f32.mrf.mxu0  ;;  %v4143_v15 = vpop.f32.mrf.mxu1 }
 0x261   : > { %v6208_v48 = vadd.f32 %v1981_v45, %v5892_v20  ;;  %v2212_v39 = vadd.f32 %v4143_v15, %v5908_v17 }
 0x262   : > { %v1983_v43 = vpop.f32.mrf.mxu0  ;;  %v2206_v36 = vpop.f32.mrf.mxu1 }
 0x263   : > { %v2590_v29 = vmul.f32 0.70710677, %v2212_v39  ;;  %v2207_v56 = vadd.f32 %v2206_v36, %v5895_v7 }
 0x264   : > { %v6212_v42 = vpop.f32.mrf.mxu0  ;;  %v4146_v8 = vpop.f32.mrf.mxu1 }
 0x265   : > { %4344 = verf.f32 %v2590_v29  ;;  %v2589_v18 = vmul.f32 0.70710677, %v2207_v56  ;;  %v2222_v9 = vadd.f32 %v4146_v8, %v5934_v32 }
 0x266   : > { %v1988_v60 = vpop.f32.mrf.mxu0  ;;  %v2216_v58 = vpop.f32.mrf.mxu1 }
 0x267   : > { %4346 = verf.f32 %v2589_v18  ;;  %v2217_v20 = vadd.f32 %v2216_v58, %v5921_v54  ;;  %v2592_v45 = vmul.f32 0.70710677, %v2222_v9 }
 0x268   : > { %v6216_v23 = vpop.f32.mrf.mxu0  ;;  %v4149_v17 = vpop.f32.mrf.mxu1 }
 0x269   : > { %v2591_v15 = vmul.f32 0.70710677, %v2217_v20  ;;  %v6219_v43 = vadd.f32 %v4149_v17, %v5965_v1  ;;  %4348 = verf.f32 %v2592_v45 }
 0x26a   : > { %v1993_v7 = vpop.f32.mrf.mxu0  ;;  %v2226_v36 = vpop.f32.mrf.mxu1 }
 0x26b   : > { %4350 = verf.f32 %v2591_v15  ;;  %v2594_v29 = vmul.f32 0.70710677, %v6219_v43  ;;  %v6223_v32 = vadd.f32 %v2226_v36, %v5952_v46 }
 0x26c   : > { %v6225_v8 = vpop.f32.mrf.mxu0  ;;  %v4152_v54 = vpop.f32.mrf.mxu1 }
 0x26d   : > { %4352 = verf.f32 %v2594_v29  ;;  %v2593_v18 = vmul.f32 0.70710677, %v6223_v32  ;;  %v6229_v60 = vadd.f32 %v4152_v54, %v5991_v47 }
 0x26e   : > { %v1998_v1 = vpop.f32.mrf.mxu0  ;;  %v2236_v58 = vpop.f32.mrf.mxu1 }
 0x26f   : > { %4354 = verf.f32 %v2593_v18  ;;  %v6232_v45 = vadd.f32 %v2236_v58, %v5978_v61  ;;  %v2596_v17 = vmul.f32 0.70710677, %v6229_v60  ;;  %v2526_v58 = vmul.f32 0.5, %v2212_v39 }
 0x270   : > { %v6235_v15 = vpop.f32.mrf.mxu0  ;;  %v4155_v46 = vpop.f32.mrf.mxu1 }
 0x271   : > { %v2595_v7 = vmul.f32 0.70710677, %v6232_v45  ;;  %v6239_v36 = vadd.f32 %v4155_v46, %v6017_v21  ;;  %4356 = verf.f32 %v2596_v17 }
 0x272   : > { %v4345_v29 = vpop.eup %4344  ;;  %v2003_v47 = vpop.f32.mrf.mxu0 }
 0x273   : > { %v2246_v54 = vpop.f32.mrf.mxu1  ;;  %4358 = verf.f32 %v2595_v7  ;;  %v2598_v18 = vmul.f32 0.70710677, %v6239_v36  ;;  %v2718_v0 = vadd.f32 1.0, %v4345_v29  ;;  %v2528_v29 = vmul.f32 0.5, %v2222_v9 }
 0x274   : > { %v6243_v61 = vadd.f32 %v2246_v54, %v6004_v31  ;;  %v4347_v1 = vpop.eup %4346  ;;  %v6245_v19 = vpop.f32.mrf.mxu0  ;;  %v2525_v54 = vmul.f32 0.5, %v2207_v56 }
 0x275   : > { %v4158_v63 = vpop.f32.mrf.mxu1  ;;  %4360 = verf.f32 %v2598_v18  ;;  %v6251_v47 = vmul.f32 %v2718_v0, %v2526_v58  ;;  %v2717_v24 = vadd.f32 1.0, %v4347_v1  ;;  %v2527_v0 = vmul.f32 0.5, %v2217_v20 }
 0x276   : > { %v2597_v21 = vmul.f32 0.70710677, %v6243_v61  ;;  %v6249_v17 = vadd.f32 %v4158_v63, %v6043_v2  ;;  %v2008_v46 = vpop.f32.mrf.mxu0  ;;  %v4349_v31 = vpop.eup %4348 }
 0x277   : > { %v2256_v7 = vpop.f32.mrf.mxu1  ;;  %7696 = vst [vmem:[#allocation8_spill] sm:$0xff] %v6251_v47  ;;  %v2849_v2 = vsel %vm2845_vm1, %v6251_v47, 0.0  ;;  %v2720_v63 = vadd.f32 1.0, %v4349_v31  ;;  %v6267_v46 = vmul.f32 %v2717_v24, %v2525_v54  ;;  %v2529_v54 = vmul.f32 0.5, %v6223_v32 }
 0x278   : > { %4362 = verf.f32 %v2597_v21  ;;  %v6254_v39 = vadd.f32 %v2256_v7, %v6030_v12  ;;  %v4351_v16 = vpop.eup %4350  ;;  %v2600_v18 = vmul.f32 0.70710677, %v6249_v17  ;;  %v6257_v37 = vpop.f32.mrf.mxu0  ;;  %2850 = vadd.xlane.f32.xlu0 %v2849_v2 }
 0x279   : > { %v4161_v14 = vpop.f32.mrf.mxu1  ;;  %v6265_v21 = vmul.f32 %v2720_v63, %v2528_v29  ;;  %v2719_v7 = vadd.f32 1.0, %v4351_v16  ;;  %v2846_v29 = vsel %vm2845_vm1, %v6267_v46, 0.0 }
 0x27a   : > { %v2599_v1 = vmul.f32 0.70710677, %v6254_v39  ;;  %v6263_v56 = vadd.f32 %v4161_v14, %v6069_v40  ;;  %v4353_v12 = vpop.eup %4352  ;;  %4364 = verf.f32 %v2600_v18  ;;  %v2013_v58 = vpop.f32.mrf.mxu0 }
 0x27b   : > { %v2266_v9 = vpop.f32.mrf.mxu1  ;;  %v2855_v40 = vsel %vm2845_vm1, %v6265_v21, 0.0  ;;  %v6279_v18 = vmul.f32 %v2719_v7, %v2527_v0  ;;  %v2722_v24 = vadd.f32 1.0, %v4353_v12 }
 0x27c   : > { %4366 = verf.f32 %v2599_v1  ;;  %v2602_v47 = vmul.f32 0.70710677, %v6263_v56  ;;  %v6271_v20 = vadd.f32 %v2266_v9, %v6056_v62  ;;  %v4355_v31 = vpop.eup %4354  ;;  %v6273_v50 = vpop.f32.mrf.mxu0  ;;  %2856 = vadd.xlane.f32.xlu1 %v2855_v40  ;;  %2847 = vadd.xlane.f32.xlu0 %v2846_v29  ;;  %v2530_v62 = vmul.f32 0.5, %v6219_v43 }
 0x27d   : > { %v4164_v14 = vpop.f32.mrf.mxu1  ;;  %v2721_v58 = vadd.f32 1.0, %v4355_v31  ;;  %v2852_v43 = vsel %vm2845_vm1, %v6279_v18, 0.0  ;;  %v2532_v31 = vmul.f32 0.5, %v6229_v60 }
 0x27e   : > { %4368 = verf.f32 %v2602_v47  ;;  %v2601_v16 = vmul.f32 0.70710677, %v6271_v20  ;;  %v6285_v2 = vadd.f32 %v4164_v14, %v6093_v59  ;;  %v2018_v63 = vpop.f32.mrf.mxu0  ;;  %v4357_v9 = vpop.eup %4356  ;;  %v6297_v59 = vmul.f32 %v2722_v24, %v2530_v62 }
 0x27f   : > { %v2276_v1 = vpop.f32.mrf.mxu1  ;;  %v6295_v32 = vmul.f32 %v2721_v58, %v2529_v54  ;;  %v2531_v14 = vmul.f32 0.5, %v6232_v45  ;;  %v2724_v24 = vadd.f32 1.0, %v4357_v9  ;;  %v2534_v9 = vmul.f32 0.5, %v6239_v36 }
 0x280   : > { %4370 = verf.f32 %v2601_v16  ;;  %v6288_v0 = vadd.f32 %v2276_v1, %v6082_v6  ;;  %v4359_v47 = vpop.eup %4358  ;;  %v2604_v12 = vmul.f32 0.70710677, %v6285_v2  ;;  %v6291_v7 = vpop.f32.mrf.mxu0  ;;  %2853 = vadd.xlane.f32.xlu1 %v2852_v43 }
 0x281   : > { %v4167_v40 = vpop.f32.mrf.mxu1  ;;  %7697 = vst [vmem:[#allocation16_spill] sm:$0xff] %v6295_v32  ;;  %v2858_v54 = vsel %vm2845_vm1, %v6295_v32, 0.0  ;;  %v2723_v58 = vadd.f32 1.0, %v4359_v47 }
 0x282   : > { %v2603_v6 = vmul.f32 0.70710677, %v6288_v0  ;;  %v6303_v29 = vadd.f32 %v4167_v40, %v6107_v57  ;;  %v4361_v16 = vpop.eup %4360  ;;  %4372 = verf.f32 %v2604_v12  ;;  %v2023_v63 = vpop.f32.mrf.mxu0  ;;  %2859 = vadd.xlane.f32.xlu0 %v2858_v54  ;;  %v2861_v12 = vsel %vm2845_vm1, %v6297_v59, 0.0 }
 0x283   : > { %v2286_v1 = vpop.f32.mrf.mxu1  ;;  %v6315_v43 = vmul.f32 %v2723_v58, %v2531_v14  ;;  %v6317_v63 = vmul.f32 %v2724_v24, %v2532_v31  ;;  %v2726_v47 = vadd.f32 1.0, %v4361_v16 }
 0x284   : > { %4374 = verf.f32 %v2603_v6  ;;  %v2606_v60 = vmul.f32 0.70710677, %v6303_v29  ;;  %v6309_v45 = vadd.f32 %v2286_v1, %v6100_v22  ;;  %v6311_v57 = vpop.f32.mrf.mxu0  ;;  %2862 = vadd.xlane.f32.xlu1 %v2861_v12  ;;  %v2533_v22 = vmul.f32 0.5, %v6243_v61 }
 0x285   : > { %v4363_v62 = vpop.eup %4362  ;;  %v4170_v40 = vpop.f32.mrf.mxu1  ;;  %7698 = vst [vmem:[#allocation9_spill] sm:$0xff] %v6315_v43  ;;  %7699 = vst [vmem:[#allocation17_spill] sm:$0xff] %v6317_v63  ;;  %v2864_v14 = vsel %vm2845_vm1, %v6315_v43, 0.0  ;;  %v2867_v36 = vsel %vm2845_vm1, %v6317_v63, 0.0  ;;  %v6337_v12 = vmul.f32 %v2726_v47, %v2534_v9 }
 0x286   : > { %4376 = verf.f32 %v2606_v60  ;;  %v2605_v6 = vmul.f32 0.70710677, %v6309_v45  ;;  %v6323_v1 = vadd.f32 %v4170_v40, %v6121_v38  ;;  %v2028_v54 = vpop.f32.mrf.mxu0  ;;  %v2725_v58 = vadd.f32 1.0, %v4363_v62  ;;  %2865 = vadd.xlane.f32.xlu0 %v2864_v14 }
 0x287   : > { %v2296_v32 = vpop.f32.mrf.mxu1  ;;  %v4365_v31 = vpop.eup %4364  ;;  %v2535_v14 = vmul.f32 0.5, %v6254_v39  ;;  %v2873_v39 = vsel %vm2845_vm1, %v6337_v12, 0.0 }
 0x288   : > { %4378 = verf.f32 %v2605_v6  ;;  %v6328_v16 = vadd.f32 %v2296_v32, %v6114_v30  ;;  %v2608_v61 = vmul.f32 0.70710677, %v6323_v1  ;;  %v6333_v38 = vpop.f32.mrf.mxu0  ;;  %v6335_v40 = vmul.f32 %v2725_v58, %v2533_v22  ;;  %2868 = vadd.xlane.f32.xlu1 %v2867_v36 }
 0x289   : > { %v4367_v24 = vpop.eup %4366  ;;  %v4173_v60 = vpop.f32.mrf.mxu1  ;;  %v2728_v62 = vadd.f32 1.0, %v4365_v31  ;;  %v2536_v6 = vmul.f32 0.5, %v6249_v17 }
 0x28a   : > { %v2607_v30 = vmul.f32 0.70710677, %v6328_v16  ;;  %v6342_v32 = vadd.f32 %v4173_v60, %v6135_v51  ;;  %4380 = verf.f32 %v2608_v61  ;;  %v2033_v63 = vpop.f32.mrf.mxu0  ;;  %v2870_v22 = vsel %vm2845_vm1, %v6335_v40, 0.0 }
 0x28b   : > { %v4369_v54 = vpop.eup %4368  ;;  %v2306_v43 = vpop.f32.mrf.mxu1  ;;  %v2727_v47 = vadd.f32 1.0, %v4367_v24  ;;  %2871 = vadd.xlane.f32.xlu0 %v2870_v22  ;;  %v6357_v36 = vmul.f32 %v2728_v62, %v2536_v6  ;;  %v2538_v24 = vmul.f32 0.5, %v6263_v56 }
 0x28c   : > { %4382 = verf.f32 %v2607_v30  ;;  %v2610_v9 = vmul.f32 0.70710677, %v6342_v32  ;;  %v6349_v17 = vadd.f32 %v2306_v43, %v6128_v35  ;;  %v6351_v58 = vpop.f32.mrf.mxu0  ;;  %v2730_v61 = vadd.f32 1.0, %v4369_v54  ;;  %2874 = vadd.xlane.f32.xlu1 %v2873_v39 }
 0x28d   : > { %v4371_v51 = vpop.eup %4370  ;;  %v4176_v31 = vpop.f32.mrf.mxu1  ;;  %v6355_v63 = vmul.f32 %v2727_v47, %v2535_v14  ;;  %7701 = vst [vmem:[#allocation18_spill] sm:$0xff] %v6357_v36  ;;  %v2537_v35 = vmul.f32 0.5, %v6271_v20  ;;  %v2879_v56 = vsel %vm2845_vm1, %v6357_v36, 0.0 }
 0x28e   : > { %4384 = verf.f32 %v2610_v9  ;;  %v2609_v60 = vmul.f32 0.70710677, %v6349_v17  ;;  %v6363_v43 = vadd.f32 %v4176_v31, %v6149_v26  ;;  %v2038_v30 = vpop.f32.mrf.mxu0  ;;  %v2729_v47 = vadd.f32 1.0, %v4371_v51 }
 0x28f   : > { %7700 = vst [vmem:[#allocation10_spill] sm:$0xff] %v6355_v63  ;;  %v2316_v22 = vpop.f32.mrf.mxu1  ;;  %v2876_v14 = vsel %vm2845_vm1, %v6355_v63, 0.0  ;;  %v4373_v62 = vpop.eup %4372  ;;  %v6377_v39 = vmul.f32 %v2730_v61, %v2538_v24 }
 0x290   : > { %4386 = verf.f32 %v2609_v60  ;;  %v6368_v6 = vadd.f32 %v2316_v22, %v6142_v13  ;;  %2877 = vadd.xlane.f32.xlu0 %v2876_v14  ;;  %v2612_v20 = vmul.f32 0.70710677, %v6363_v43  ;;  %v6373_v26 = vpop.f32.mrf.mxu0  ;;  %v6375_v31 = vmul.f32 %v2729_v47, %v2537_v35  ;;  %2880 = vadd.xlane.f32.xlu1 %v2879_v56 }
 0x291   : > { %v4375_v54 = vpop.eup %4374  ;;  %v4179_v9 = vpop.f32.mrf.mxu1  ;;  %v2732_v51 = vadd.f32 1.0, %v4373_v62  ;;  %v2540_v60 = vmul.f32 0.5, %v6285_v2  ;;  %v2539_v14 = vmul.f32 0.5, %v6288_v0  ;;  %v2885_v0 = vsel %vm2845_vm1, %v6377_v39, 0.0 }
 0x292   : > { %v2611_v13 = vmul.f32 0.70710677, %v6368_v6  ;;  %v6382_v30 = vadd.f32 %v4179_v9, %v6163_v41  ;;  %4388 = verf.f32 %v2612_v20  ;;  %v2043_v36 = vpop.f32.mrf.mxu0  ;;  %v2882_v35 = vsel %vm2845_vm1, %v6375_v31, 0.0 }
 0x293   : > { %v4377_v22 = vpop.eup %4376  ;;  %v2326_v63 = vpop.f32.mrf.mxu1  ;;  %v2731_v61 = vadd.f32 1.0, %v4375_v54  ;;  %v6397_v56 = vmul.f32 %v2732_v51, %v2540_v60  ;;  %v2542_v54 = vmul.f32 0.5, %v6303_v29 }
 0x294   : > { %4390 = verf.f32 %v2611_v13  ;;  %v2614_v24 = vmul.f32 0.70710677, %v6382_v30  ;;  %v6389_v2 = vadd.f32 %v2326_v63, %v6156_v3  ;;  %2883 = vadd.xlane.f32.xlu0 %v2882_v35  ;;  %v6391_v47 = vpop.f32.mrf.mxu0  ;;  %v2734_v20 = vadd.f32 1.0, %v4377_v22  ;;  %2886 = vadd.xlane.f32.xlu1 %v2885_v0 }
 0x295   : > { %v4379_v41 = vpop.eup %4378  ;;  %v4182_v62 = vpop.f32.mrf.mxu1  ;;  %v6395_v36 = vmul.f32 %v2731_v61, %v2539_v14  ;;  %7703 = vst [vmem:[#allocation35_spill] sm:$0xff] %v6397_v56  ;;  %v2541_v3 = vmul.f32 0.5, %v6309_v45  ;;  %v2891_v29 = vsel %vm2845_vm1, %v6397_v56, 0.0 }
 0x296   : > { %4392 = verf.f32 %v2614_v24  ;;  %v2613_v9 = vmul.f32 0.70710677, %v6389_v2  ;;  %v6403_v63 = vadd.f32 %v4182_v62, %v6177_v53  ;;  %v2048_v13 = vpop.f32.mrf.mxu0  ;;  %v2733_v61 = vadd.f32 1.0, %v4379_v41 }
 0x297   : > { %7702 = vst [vmem:[#allocation11_spill] sm:$0xff] %v6395_v36  ;;  %v2336_v35 = vpop.f32.mrf.mxu1  ;;  %v2888_v14 = vsel %vm2845_vm1, %v6395_v36, 0.0  ;;  %v4381_v51 = vpop.eup %4380  ;;  %v6417_v0 = vmul.f32 %v2734_v20, %v2542_v54 }
 0x298   : > { %4394 = verf.f32 %v2613_v9  ;;  %v6408_v60 = vadd.f32 %v2336_v35, %v6170_v25  ;;  %2889 = vadd.xlane.f32.xlu0 %v2888_v14  ;;  %v2616_v45 = vmul.f32 0.70710677, %v6403_v63  ;;  %v6413_v53 = vpop.f32.mrf.mxu0  ;;  %v6415_v62 = vmul.f32 %v2733_v61, %v2541_v3  ;;  %2892 = vadd.xlane.f32.xlu1 %v2891_v29 }
 0x299   : > { %v4383_v22 = vpop.eup %4382  ;;  %v4185_v24 = vpop.f32.mrf.mxu1  ;;  %v2736_v41 = vadd.f32 1.0, %v4381_v51  ;;  %v2544_v9 = vmul.f32 0.5, %v6323_v1  ;;  %v2543_v14 = vmul.f32 0.5, %v6328_v16  ;;  %v2897_v16 = vsel %vm2845_vm1, %v6417_v0, 0.0 }
 0x29a   : > { %v2615_v25 = vmul.f32 0.70710677, %v6408_v60  ;;  %v6422_v13 = vadd.f32 %v4185_v24, %v6191_v55  ;;  %4396 = verf.f32 %v2616_v45  ;;  %v2053_v56 = vpop.f32.mrf.mxu0  ;;  %v2894_v3 = vsel %vm2845_vm1, %v6415_v62, 0.0 }
 0x29b   : > { %v4385_v35 = vpop.eup %4384  ;;  %v2346_v36 = vpop.f32.mrf.mxu1  ;;  %v2735_v20 = vadd.f32 1.0, %v4383_v22  ;;  %v6437_v29 = vmul.f32 %v2736_v41, %v2544_v9  ;;  %v2546_v22 = vmul.f32 0.5, %v6342_v32  ;;  %v1987_v9 = vadd.f32 %v6212_v42, %v5905_v34 }
 0x29c   : > { %4398 = verf.f32 %v2615_v25  ;;  %v2618_v54 = vmul.f32 0.70710677, %v6422_v13  ;;  %v6429_v1 = vadd.f32 %v2346_v36, %v6184_v28  ;;  %2895 = vadd.xlane.f32.xlu0 %v2894_v3  ;;  %v6431_v61 = vpop.f32.mrf.mxu0  ;;  %v2738_v45 = vadd.f32 1.0, %v4385_v35  ;;  %2898 = vadd.xlane.f32.xlu1 %v2897_v16 }
 0x29d   : > { %v4387_v55 = vpop.eup %4386  ;;  %v4188_v51 = vpop.f32.mrf.mxu1  ;;  %v6435_v56 = vmul.f32 %v2735_v20, %v2543_v14  ;;  %7704 = vst [vmem:[#allocation36_spill] sm:$0xff] %v6437_v29  ;;  %v2545_v28 = vmul.f32 0.5, %v6349_v17  ;;  %v2903_v17 = vsel %vm2845_vm1, %v6437_v29, 0.0  ;;  %v2548_v34 = vmul.f32 0.5, %v6363_v43 }
 0x29e   : > { %4400 = verf.f32 %v2618_v54  ;;  %v2617_v24 = vmul.f32 0.70710677, %v6429_v1  ;;  %v6443_v36 = vadd.f32 %v4188_v51, %v6205_v33  ;;  %v2058_v25 = vpop.f32.mrf.mxu0  ;;  %v2737_v20 = vadd.f32 1.0, %v4387_v55 }
 0x29f   : > { %v2356_v3 = vpop.f32.mrf.mxu1  ;;  %v2900_v14 = vsel %vm2845_vm1, %v6435_v56, 0.0  ;;  %v4389_v41 = vpop.eup %4388  ;;  %v6459_v55 = vmul.f32 %v2738_v45, %v2546_v22  ;;  %v1997_v45 = vadd.f32 %v6225_v8, %v5931_v5  ;;  %v1992_v5 = vadd.f32 %v6216_v23, %v5918_v49 }
 0x2a0   : > { %4402 = verf.f32 %v2617_v24  ;;  %v6450_v32 = vadd.f32 %v2356_v3, %v6198_v52  ;;  %2901 = vadd.xlane.f32.xlu0 %v2900_v14  ;;  %v2620_v35 = vmul.f32 0.70710677, %v6443_v36  ;;  %v6455_v54 = vpop.f32.mrf.mxu0  ;;  %v6457_v16 = vmul.f32 %v2737_v20, %v2545_v28  ;;  %2904 = vadd.xlane.f32.xlu1 %v2903_v17 }
 0x2a1   : > { %v4391_v33 = vpop.eup %4390  ;;  %v4191_v51 = vpop.f32.mrf.mxu1  ;;  %v2740_v25 = vadd.f32 1.0, %v4389_v41  ;;  %v2547_v3 = vmul.f32 0.5, %v6368_v6  ;;  %v2909_v17 = vsel %vm2845_vm1, %v6459_v55, 0.0  ;;  %v2550_v8 = vmul.f32 0.5, %v6382_v30 }
 0x2a2   : > { %v2619_v52 = vmul.f32 0.70710677, %v6450_v32  ;;  %v6463_v42 = vadd.f32 %v4191_v51, %v1987_v9  ;;  %4404 = verf.f32 %v2620_v35  ;;  %v2063_v14 = vpop.f32.mrf.mxu0  ;;  %v2906_v28 = vsel %vm2845_vm1, %v6457_v16, 0.0 }
 0x2a3   : > { %v4393_v24 = vpop.eup %4392  ;;  %v2366_v29 = vpop.f32.mrf.mxu1  ;;  %v2739_v20 = vadd.f32 1.0, %v4391_v33  ;;  %v6480_v33 = vmul.f32 %v2740_v25, %v2548_v34  ;;  %v2007_v49 = vadd.f32 %v6245_v19, %v5962_v44  ;;  %v2002_v44 = vadd.f32 %v6235_v15, %v5949_v11 }
 0x2a4   : > { %4406 = verf.f32 %v2619_v52  ;;  %v2622_v43 = vmul.f32 0.70710677, %v6463_v42  ;;  %v6472_v22 = vadd.f32 %v2366_v29, %v6208_v48  ;;  %2907 = vadd.xlane.f32.xlu0 %v2906_v28  ;;  %v6474_v9 = vpop.f32.mrf.mxu0  ;;  %v2742_v51 = vadd.f32 1.0, %v4393_v24  ;;  %2910 = vadd.xlane.f32.xlu1 %v2909_v17 }
 0x2a5   : > { %v4395_v41 = vpop.eup %4394  ;;  %v4194_v6 = vpop.f32.mrf.mxu1  ;;  %v6478_v35 = vmul.f32 %v2739_v20, %v2547_v3  ;;  %v2549_v29 = vmul.f32 0.5, %v6389_v2  ;;  %v2915_v30 = vsel %vm2845_vm1, %v6480_v33, 0.0  ;;  %v2552_v19 = vmul.f32 0.5, %v6403_v63 }
 0x2a6   : > { %4408 = verf.f32 %v2622_v43  ;;  %v2621_v48 = vmul.f32 0.70710677, %v6472_v22  ;;  %v6487_v52 = vadd.f32 %v4194_v6, %v1997_v45  ;;  %v2068_v14 = vpop.f32.mrf.mxu0  ;;  %v2741_v34 = vadd.f32 1.0, %v4395_v41 }
 0x2a7   : > { %v2376_v28 = vpop.f32.mrf.mxu1  ;;  %v2912_v25 = vsel %vm2845_vm1, %v6478_v35, 0.0  ;;  %v4397_v24 = vpop.eup %4396  ;;  %v6502_v41 = vmul.f32 %v2742_v51, %v2550_v8  ;;  %v2551_v14 = vmul.f32 0.5, %v6408_v60  ;;  %v2017_v11 = vadd.f32 %v6273_v50, %v5988_v27 }
 0x2a8   : > { %4410 = verf.f32 %v2621_v48  ;;  %v6493_v23 = vadd.f32 %v2376_v28, %v1992_v5  ;;  %2913 = vadd.xlane.f32.xlu0 %v2912_v25  ;;  %v2624_v3 = vmul.f32 0.70710677, %v6487_v52  ;;  %v6498_v20 = vpop.f32.mrf.mxu0  ;;  %v6500_v43 = vmul.f32 %v2741_v34, %v2549_v29  ;;  %2916 = vadd.xlane.f32.xlu1 %v2915_v30 }
 0x2a9   : > { %v4399_v2 = vpop.eup %4398  ;;  %v4197_v45 = vpop.f32.mrf.mxu1  ;;  %v2744_v6 = vadd.f32 1.0, %v4397_v24  ;;  %v2921_v24 = vsel %vm2845_vm1, %v6502_v41, 0.0  ;;  %v2012_v27 = vadd.f32 %v6257_v37, %v5975_v4  ;;  %v2554_v50 = vmul.f32 0.5, %v6422_v13 }
 0x2aa   : > { %v2623_v17 = vmul.f32 0.70710677, %v6493_v23  ;;  %v6508_v5 = vadd.f32 %v4197_v45, %v2007_v49  ;;  %4412 = verf.f32 %v2624_v3  ;;  %v2073_v28 = vpop.f32.mrf.mxu0  ;;  %v2918_v51 = vsel %vm2845_vm1, %v6500_v43, 0.0 }
 0x2ab   : > { %v4401_v48 = vpop.eup %4400  ;;  %v2386_v29 = vpop.f32.mrf.mxu1  ;;  %v2743_v8 = vadd.f32 1.0, %v4399_v2  ;;  %v6524_v30 = vmul.f32 %v2744_v6, %v2552_v19  ;;  %v2553_v45 = vmul.f32 0.5, %v6429_v1  ;;  %v2027_v4 = vadd.f32 %v6311_v57, %v6014_v10 }
 0x2ac   : > { %4414 = verf.f32 %v2623_v17  ;;  %v2626_v15 = vmul.f32 0.70710677, %v6508_v5  ;;  %v6516_v63 = vadd.f32 %v2386_v29, %v2002_v44  ;;  %2919 = vadd.xlane.f32.xlu0 %v2918_v51  ;;  %v6518_v34 = vpop.f32.mrf.mxu0  ;;  %v2746_v2 = vadd.f32 1.0, %v4401_v48  ;;  %2922 = vadd.xlane.f32.xlu1 %v2921_v24 }
 0x2ad   : > { %v4403_v25 = vpop.eup %4402  ;;  %v4200_v60 = vpop.f32.mrf.mxu1  ;;  %v6522_v49 = vmul.f32 %v2743_v8, %v2551_v14  ;;  %v2927_v13 = vsel %vm2845_vm1, %v6524_v30, 0.0  ;;  %v2556_v57 = vmul.f32 0.5, %v6443_v36 }
 0x2ae   : > { %4416 = verf.f32 %v2626_v15  ;;  %v2625_v3 = vmul.f32 0.70710677, %v6516_v63  ;;  %v6531_v44 = vadd.f32 %v4200_v60, %v2017_v11  ;;  %v2078_v17 = vpop.f32.mrf.mxu0  ;;  %v2745_v19 = vadd.f32 1.0, %v4403_v25  ;;  %v7705_v25 = vld [vmem:[#allocation19_spill] sm:$0xff] }
 0x2af   : > { %v2396_v28 = vpop.f32.mrf.mxu1  ;;  %v2924_v6 = vsel %vm2845_vm1, %v6522_v49, 0.0  ;;  %v4405_v48 = vpop.eup %4404  ;;  %v6546_v11 = vmul.f32 %v2746_v2, %v2554_v50  ;;  %v2022_v10 = vadd.f32 %v6291_v7, %v7705_v25  ;;  %v2558_v25 = vmul.f32 0.5, %v6463_v42 }
 0x2b0   : > { %4418 = verf.f32 %v2625_v3  ;;  %v6537_v37 = vadd.f32 %v2396_v28, %v2012_v27  ;;  %2925 = vadd.xlane.f32.xlu0 %v2924_v6  ;;  %v2628_v14 = vmul.f32 0.70710677, %v6531_v44  ;;  %v6542_v29 = vpop.f32.mrf.mxu0  ;;  %v6544_v8 = vmul.f32 %v2745_v19, %v2553_v45  ;;  %2928 = vadd.xlane.f32.xlu1 %v2927_v13  ;;  %v7706_v28 = vld [vmem:[#allocation21_spill] sm:$0xff] }
 0x2b1   : > { %v4407_v1 = vpop.eup %4406  ;;  %v4203_v51 = vpop.f32.mrf.mxu1  ;;  %v2748_v15 = vadd.f32 1.0, %v4405_v48  ;;  %v2555_v3 = vmul.f32 0.5, %v6450_v32  ;;  %v2037_v7 = vadd.f32 %v6351_v58, %v7706_v28 }
 0x2b2   : > { %v2627_v60 = vmul.f32 0.70710677, %v6537_v37  ;;  %v6552_v24 = vadd.f32 %v4203_v51, %v2027_v4  ;;  %4420 = verf.f32 %v2628_v14  ;;  %v2083_v17 = vpop.f32.mrf.mxu0  ;;  %v2930_v2 = vsel %vm2845_vm1, %v6544_v8, 0.0  ;;  %v7707_v51 = vld [vmem:[#allocation20_spill] sm:$0xff] }
 0x2b3   : > { %v4409_v27 = vpop.eup %4408  ;;  %v2406_v45 = vpop.f32.mrf.mxu1  ;;  %v2747_v50 = vadd.f32 1.0, %v4407_v1  ;;  %v2933_v4 = vsel %vm2845_vm1, %v6546_v11, 0.0  ;;  %v6568_v14 = vmul.f32 %v2748_v15, %v2556_v57  ;;  %v2032_v58 = vadd.f32 %v6333_v38, %v7707_v51  ;;  %v7710_v51 = vld [vmem:[#allocation22_spill] sm:$0xff] }
 0x2b4   : > { %4422 = verf.f32 %v2627_v60  ;;  %v2630_v36 = vmul.f32 0.70710677, %v6552_v24  ;;  %v6560_v6 = vadd.f32 %v2406_v45, %v2022_v10  ;;  %2931 = vadd.xlane.f32.xlu0 %v2930_v2  ;;  %v6562_v48 = vpop.f32.mrf.mxu0  ;;  %v2750_v1 = vadd.f32 1.0, %v4409_v27  ;;  %2934 = vadd.xlane.f32.xlu1 %v2933_v4 }
 0x2b5   : > { %v4411_v19 = vpop.eup %4410  ;;  %v4206_v32 = vpop.f32.mrf.mxu1  ;;  %v6566_v13 = vmul.f32 %v2747_v50, %v2555_v3  ;;  %v2557_v60 = vmul.f32 0.5, %v6472_v22  ;;  %v7708_v3 = vld [vmem:[#allocation23_spill] sm:$0xff]  ;;  %v2939_v50 = vsel %vm2845_vm1, %v6568_v14, 0.0 }
 0x2b6   : > { %4424 = verf.f32 %v2630_v36  ;;  %v2629_v10 = vmul.f32 0.70710677, %v6560_v6  ;;  %v6575_v17 = vadd.f32 %v4206_v32, %v2037_v7  ;;  %v2088_v45 = vpop.f32.mrf.mxu0  ;;  %v2749_v57 = vadd.f32 1.0, %v4411_v19 }
 0x2b7   : > { %v2416_v2 = vpop.f32.mrf.mxu1  ;;  %v2936_v15 = vsel %vm2845_vm1, %v6566_v13, 0.0  ;;  %v4413_v27 = vpop.eup %4412  ;;  %v2047_v38 = vadd.f32 %v6391_v47, %v7708_v3  ;;  %v6590_v19 = vmul.f32 %v2750_v1, %v2558_v25  ;;  %v2042_v47 = vadd.f32 %v6373_v26, %v7710_v51 }
 0x2b8   : > { %4426 = verf.f32 %v2629_v10  ;;  %v6581_v42 = vadd.f32 %v2416_v2, %v2032_v58  ;;  %2937 = vadd.xlane.f32.xlu0 %v2936_v15  ;;  %v2632_v28 = vmul.f32 0.70710677, %v6575_v17  ;;  %v6586_v7 = vpop.f32.mrf.mxu0  ;;  %v6588_v32 = vmul.f32 %v2749_v57, %v2557_v60  ;;  %2940 = vadd.xlane.f32.xlu1 %v2939_v50  ;;  %v7711_v57 = vld [vmem:[#allocation25_spill] sm:$0xff] }
 0x2b9   : > { %v4415_v22 = vpop.eup %4414  ;;  %v4209_v36 = vpop.f32.mrf.mxu1  ;;  %7709 = vst [vmem:[#allocation19_spill] sm:$0xff] %v6590_v19  ;;  %v2752_v4 = vadd.f32 1.0, %v4413_v27  ;;  %v2560_v58 = vmul.f32 0.5, %v6487_v52  ;;  %v2559_v15 = vmul.f32 0.5, %v6493_v23  ;;  %v2057_v26 = vadd.f32 %v6431_v61, %v7711_v57 }
 0x2ba   : > { %v2631_v10 = vmul.f32 0.70710677, %v6581_v42  ;;  %v6596_v45 = vadd.f32 %v4209_v36, %v2047_v38  ;;  %4428 = verf.f32 %v2632_v28  ;;  %v2093_v3 = vpop.f32.mrf.mxu0  ;;  %v2942_v1 = vsel %vm2845_vm1, %v6588_v32, 0.0 }
 0x2bb   : > { %v4417_v2 = vpop.eup %4416  ;;  %v2426_v60 = vpop.f32.mrf.mxu1  ;;  %v2751_v25 = vadd.f32 1.0, %v4415_v22  ;;  %v2945_v28 = vsel %vm2845_vm1, %v6590_v19, 0.0  ;;  %v6612_v51 = vmul.f32 %v2752_v4, %v2560_v58  ;;  %v7713_v3 = vld [vmem:[#allocation24_spill] sm:$0xff] }
 0x2bc   : > { %4430 = verf.f32 %v2631_v10  ;;  %v2634_v52 = vmul.f32 0.70710677, %v6596_v45  ;;  %v6604_v27 = vadd.f32 %v2426_v60, %v2042_v47  ;;  %2943 = vadd.xlane.f32.xlu0 %v2942_v1  ;;  %v6606_v50 = vpop.f32.mrf.mxu0  ;;  %v2754_v22 = vadd.f32 1.0, %v4417_v2  ;;  %2946 = vadd.xlane.f32.xlu1 %v2945_v28 }
 0x2bd   : > { %v4419_v38 = vpop.eup %4418  ;;  %v4212_v23 = vpop.f32.mrf.mxu1  ;;  %v6610_v36 = vmul.f32 %v2751_v25, %v2559_v15  ;;  %7712 = vst [vmem:[#allocation21_spill] sm:$0xff] %v6612_v51  ;;  %v2052_v61 = vadd.f32 %v6413_v53, %v7713_v3  ;;  %v2562_v10 = vmul.f32 0.5, %v6508_v5  ;;  %v2561_v60 = vmul.f32 0.5, %v6516_v63  ;;  %v7714_v15 = vld [vmem:[#allocation27_spill] sm:$0xff] }
 0x2be   : > { %4432 = verf.f32 %v2634_v52  ;;  %v2633_v47 = vmul.f32 0.70710677, %v6604_v27  ;;  %v6619_v1 = vadd.f32 %v4212_v23, %v2057_v26  ;;  %v2098_v57 = vpop.f32.mrf.mxu0  ;;  %v2753_v58 = vadd.f32 1.0, %v4419_v38 }
 0x2bf   : > { %v2436_v19 = vpop.f32.mrf.mxu1  ;;  %v2948_v4 = vsel %vm2845_vm1, %v6610_v36, 0.0  ;;  %v4421_v2 = vpop.eup %4420  ;;  %v2067_v53 = vadd.f32 %v6474_v9, %v7714_v15  ;;  %v2951_v25 = vsel %vm2845_vm1, %v6612_v51, 0.0  ;;  %v6634_v38 = vmul.f32 %v2754_v22, %v2562_v10  ;;  %v7716_v57 = vld [vmem:[#allocation26_spill] sm:$0xff] }
 0x2c0   : > { %4434 = verf.f32 %v2633_v47  ;;  %v6625_v5 = vadd.f32 %v2436_v19, %v2052_v61  ;;  %2949 = vadd.xlane.f32.xlu0 %v2948_v4  ;;  %v2636_v26 = vmul.f32 0.70710677, %v6619_v1  ;;  %v6630_v52 = vpop.f32.mrf.mxu0  ;;  %v6632_v28 = vmul.f32 %v2753_v58, %v2561_v60  ;;  %2952 = vadd.xlane.f32.xlu1 %v2951_v25  ;;  %v7717_v58 = vld [vmem:[#allocation29_spill] sm:$0xff] }
 0x2c1   : > { %v4423_v63 = vpop.eup %4422  ;;  %v4215_v23 = vpop.f32.mrf.mxu1  ;;  %7715 = vst [vmem:[#allocation20_spill] sm:$0xff] %v6634_v38  ;;  %v2756_v3 = vadd.f32 1.0, %v4421_v2  ;;  %v2062_v9 = vadd.f32 %v6455_v54, %v7716_v57  ;;  %v2564_v19 = vmul.f32 0.5, %v6531_v44  ;;  %v2563_v15 = vmul.f32 0.5, %v6537_v37  ;;  %v7719_v57 = vld [vmem:[#allocation28_spill] sm:$0xff] }
 0x2c2   : > { %v2635_v61 = vmul.f32 0.70710677, %v6625_v5  ;;  %v6640_v47 = vadd.f32 %v4215_v23, %v2067_v53  ;;  %4436 = verf.f32 %v2636_v26  ;;  %v2103_v51 = vpop.f32.mrf.mxu0  ;;  %v2954_v22 = vsel %vm2845_vm1, %v6632_v28, 0.0 }
 0x2c3   : > { %v4425_v4 = vpop.eup %4424  ;;  %v2446_v60 = vpop.f32.mrf.mxu1  ;;  %v2755_v10 = vadd.f32 1.0, %v4423_v63  ;;  %v2077_v54 = vadd.f32 %v6518_v34, %v7717_v58  ;;  %v2957_v51 = vsel %vm2845_vm1, %v6634_v38, 0.0  ;;  %v6656_v23 = vmul.f32 %v2756_v3, %v2564_v19 }
 0x2c4   : > { %4438 = verf.f32 %v2635_v61  ;;  %v2638_v44 = vmul.f32 0.70710677, %v6640_v47  ;;  %v6648_v2 = vadd.f32 %v2446_v60, %v2062_v9  ;;  %2955 = vadd.xlane.f32.xlu0 %v2954_v22  ;;  %v6650_v25 = vpop.f32.mrf.mxu0  ;;  %v2758_v63 = vadd.f32 1.0, %v4425_v4  ;;  %2958 = vadd.xlane.f32.xlu1 %v2957_v51 }
 0x2c5   : > { %v4427_v53 = vpop.eup %4426  ;;  %v4218_v37 = vpop.f32.mrf.mxu1  ;;  %v6654_v26 = vmul.f32 %v2755_v10, %v2563_v15  ;;  %7718 = vst [vmem:[#allocation23_spill] sm:$0xff] %v6656_v23  ;;  %v2072_v34 = vadd.f32 %v6498_v20, %v7719_v57  ;;  %v2566_v61 = vmul.f32 0.5, %v6552_v24  ;;  %v2565_v60 = vmul.f32 0.5, %v6560_v6  ;;  %v7720_v15 = vld [vmem:[#allocation31_spill] sm:$0xff] }
 0x2c6   : > { %4440 = verf.f32 %v2638_v44  ;;  %v2637_v9 = vmul.f32 0.70710677, %v6648_v2  ;;  %v6663_v22 = vadd.f32 %v4218_v37, %v2077_v54  ;;  %v2108_v58 = vpop.f32.mrf.mxu0  ;;  %v2757_v19 = vadd.f32 1.0, %v4427_v53 }
 0x2c7   : > { %v2456_v38 = vpop.f32.mrf.mxu1  ;;  %v2960_v3 = vsel %vm2845_vm1, %v6654_v26, 0.0  ;;  %v4429_v4 = vpop.eup %4428  ;;  %v2087_v20 = vadd.f32 %v6562_v48, %v7720_v15  ;;  %v2963_v10 = vsel %vm2845_vm1, %v6656_v23, 0.0  ;;  %v6678_v53 = vmul.f32 %v2758_v63, %v2566_v61  ;;  %v7722_v58 = vld [vmem:[#allocation30_spill] sm:$0xff] }
 0x2c8   : > { %4442 = verf.f32 %v2637_v9  ;;  %v6669_v24 = vadd.f32 %v2456_v38, %v2072_v34  ;;  %2961 = vadd.xlane.f32.xlu0 %v2960_v3  ;;  %v2640_v54 = vmul.f32 0.70710677, %v6663_v22  ;;  %v6674_v44 = vpop.f32.mrf.mxu0  ;;  %v6676_v51 = vmul.f32 %v2757_v19, %v2565_v60  ;;  %2964 = vadd.xlane.f32.xlu1 %v2963_v10  ;;  %v7723_v19 = vld [vmem:[#allocation33_spill] sm:$0xff] }
 0x2c9   : > { %v4431_v6 = vpop.eup %4430  ;;  %v4221_v37 = vpop.f32.mrf.mxu1  ;;  %7721 = vst [vmem:[#allocation22_spill] sm:$0xff] %v6678_v53  ;;  %v2760_v57 = vadd.f32 1.0, %v4429_v4  ;;  %v2082_v48 = vadd.f32 %v6542_v29, %v7722_v58  ;;  %v2568_v38 = vmul.f32 0.5, %v6575_v17  ;;  %v2567_v15 = vmul.f32 0.5, %v6581_v42  ;;  %v7725_v58 = vld [vmem:[#allocation32_spill] sm:$0xff] }
 0x2ca   : > { %v2639_v34 = vmul.f32 0.70710677, %v6669_v24  ;;  %v6684_v9 = vadd.f32 %v4221_v37, %v2087_v20  ;;  %4444 = verf.f32 %v2640_v54  ;;  %v2113_v23 = vpop.f32.mrf.mxu0  ;;  %v2966_v63 = vsel %vm2845_vm1, %v6676_v51, 0.0 }
 0x2cb   : > { %v4433_v3 = vpop.eup %4432  ;;  %v2466_v60 = vpop.f32.mrf.mxu1  ;;  %v2759_v61 = vadd.f32 1.0, %v4431_v6  ;;  %v2097_v29 = vadd.f32 %v6606_v50, %v7723_v19  ;;  %v2969_v42 = vsel %vm2845_vm1, %v6678_v53, 0.0  ;;  %v6698_v54 = vmul.f32 %v2760_v57, %v2568_v38 }
 0x2cc   : > { %4446 = verf.f32 %v2639_v34  ;;  %v2642_v17 = vmul.f32 0.70710677, %v6684_v9  ;;  %v6692_v4 = vadd.f32 %v2466_v60, %v2082_v48  ;;  %2967 = vadd.xlane.f32.xlu0 %v2966_v63  ;;  %v2116_v10 = vpop.f32.mrf.mxu0  ;;  %v2762_v6 = vadd.f32 1.0, %v4433_v3  ;;  %2970 = vadd.xlane.f32.xlu1 %v2969_v42 }
 0x2cd   : > { %v4435_v20 = vpop.eup %4434  ;;  %v4224_v37 = vpop.f32.mrf.mxu1  ;;  %v6696_v23 = vmul.f32 %v2759_v61, %v2567_v15  ;;  %7724 = vst [vmem:[#allocation25_spill] sm:$0xff] %v6698_v54  ;;  %v2092_v50 = vadd.f32 %v6586_v7, %v7725_v58  ;;  %v2570_v34 = vmul.f32 0.5, %v6596_v45  ;;  %v2569_v60 = vmul.f32 0.5, %v6604_v27  ;;  %v7726_v15 = vld [vmem:[#allocation12_spill] sm:$0xff] }
 0x2ce   : > { %4448 = verf.f32 %v2642_v17  ;;  %v2641_v48 = vmul.f32 0.70710677, %v6692_v4  ;;  %v6705_v63 = vadd.f32 %v4224_v37, %v2097_v29  ;;  %v2118_v19 = vpop.f32.mrf.mxu0  ;;  %v2761_v38 = vadd.f32 1.0, %v4435_v20 }
 0x2cf   : > { %v2476_v53 = vpop.f32.mrf.mxu1  ;;  %v2972_v57 = vsel %vm2845_vm1, %v6696_v23, 0.0  ;;  %v4437_v3 = vpop.eup %4436  ;;  %v2107_v7 = vadd.f32 %v6650_v25, %v7726_v15  ;;  %v2975_v61 = vsel %vm2845_vm1, %v6698_v54, 0.0  ;;  %v6718_v58 = vmul.f32 %v2762_v6, %v2570_v34  ;;  %v7728_v25 = vld [vmem:[#allocation34_spill] sm:$0xff] }
 0x2d0   : > { %4450 = verf.f32 %v2641_v48  ;;  %v6711_v45 = vadd.f32 %v2476_v53, %v2092_v50  ;;  %2973 = vadd.xlane.f32.xlu0 %v2972_v57  ;;  %v2644_v29 = vmul.f32 0.70710677, %v6705_v63  ;;  %v2121_v17 = vpop.f32.mrf.mxu0  ;;  %v6716_v42 = vmul.f32 %v2761_v38, %v2569_v60  ;;  %2976 = vadd.xlane.f32.xlu1 %v2975_v61  ;;  %v7729_v38 = vld [vmem:[#allocation13_spill] sm:$0xff] }
 0x2d1   : > { %v4439_v27 = vpop.eup %4438  ;;  %v4227_v37 = vpop.f32.mrf.mxu1  ;;  %7727 = vst [vmem:[#allocation24_spill] sm:$0xff] %v6718_v58  ;;  %v2764_v20 = vadd.f32 1.0, %v4437_v3  ;;  %v2572_v19 = vmul.f32 0.5, %v6619_v1  ;;  %v2102_v53 = vadd.f32 %v6630_v52, %v7728_v25  ;;  %v2571_v15 = vmul.f32 0.5, %v6625_v5 }
 0x2d2   : > { %v2643_v50 = vmul.f32 0.70710677, %v6711_v45  ;;  %v6724_v48 = vadd.f32 %v4227_v37, %v2107_v7  ;;  %4452 = verf.f32 %v2644_v29  ;;  %v2123_v54 = vpop.f32.mrf.mxu0  ;;  %v2978_v6 = vsel %vm2845_vm1, %v6716_v42, 0.0 }
 0x2d3   : > { %v4441_v57 = vpop.eup %4440  ;;  %v2486_v60 = vpop.f32.mrf.mxu1  ;;  %v2763_v34 = vadd.f32 1.0, %v4439_v27  ;;  %v2117_v1 = vadd.f32 %v2116_v10, %v7729_v38  ;;  %v2981_v5 = vsel %vm2845_vm1, %v6718_v58, 0.0  ;;  %v6737_v29 = vmul.f32 %v2764_v20, %v2572_v19  ;;  %v7732_v10 = vld [vmem:[#allocation5_spill] sm:$0xff] }
 0x2d4   : > { %4454 = verf.f32 %v2643_v50  ;;  %v2646_v52 = vmul.f32 0.70710677, %v6724_v48  ;;  %v6731_v3 = vadd.f32 %v2486_v60, %v2102_v53  ;;  %2979 = vadd.xlane.f32.xlu0 %v2978_v6  ;;  %v2126_v61 = vpop.f32.mrf.mxu0  ;;  %v2766_v25 = vadd.f32 1.0, %v4441_v57  ;;  %2982 = vadd.xlane.f32.xlu1 %v2981_v5 }
 0x2d5   : > { %v4443_v7 = vpop.eup %4442  ;;  %v4230_v37 = vpop.f32.mrf.mxu1  ;;  %v6735_v54 = vmul.f32 %v2763_v34, %v2571_v15  ;;  %7731 = vst [vmem:[#allocation26_spill] sm:$0xff] %v6737_v29  ;;  %v2574_v27 = vmul.f32 0.5, %v6640_v47  ;;  %v2112_v50 = vadd.f32 %v6674_v44, %v7732_v10  ;;  %v2573_v60 = vmul.f32 0.5, %v6648_v2  ;;  %v7733_v47 = vld [vmem:[#allocation14_spill] sm:$0xff] }
 0x2d6   : > { %4456 = verf.f32 %v2646_v52  ;;  %v2645_v53 = vmul.f32 0.70710677, %v6731_v3  ;;  %v6744_v6 = vadd.f32 %v4230_v37, %v2117_v1  ;;  %v2128_v38 = vpop.f32.mrf.mxu0  ;;  %v2765_v19 = vadd.f32 1.0, %v4443_v7 }
 0x2d7   : > { %7730 = vst [vmem:[#allocation27_spill] sm:$0xff] %v6735_v54  ;;  %v2496_v58 = vpop.f32.mrf.mxu1  ;;  %v2984_v20 = vsel %vm2845_vm1, %v6735_v54, 0.0  ;;  %v4445_v57 = vpop.eup %4444  ;;  %v2127_v15 = vadd.f32 %v2126_v61, %v7733_v47  ;;  %v2987_v44 = vsel %vm2845_vm1, %v6737_v29, 0.0  ;;  %v6756_v10 = vmul.f32 %v2766_v25, %v2574_v27  ;;  %v7735_v38 = vld [vmem:[#allocation6_spill] sm:$0xff] }
 0x2d8   : > { %4458 = verf.f32 %v2645_v53  ;;  %v6749_v34 = vadd.f32 %v2496_v58, %v2112_v50  ;;  %2985 = vadd.xlane.f32.xlu0 %v2984_v20  ;;  %v2648_v2 = vmul.f32 0.70710677, %v6744_v6  ;;  %v2131_v1 = vpop.f32.mrf.mxu0  ;;  %v6754_v5 = vmul.f32 %v2765_v19, %v2573_v60  ;;  %2988 = vadd.xlane.f32.xlu1 %v2987_v44 }
 0x2d9   : > { %v4447_v52 = vpop.eup %4446  ;;  %v4233_v37 = vpop.f32.mrf.mxu1  ;;  %7734 = vst [vmem:[#allocation29_spill] sm:$0xff] %v6756_v10  ;;  %v2768_v7 = vadd.f32 1.0, %v4445_v57  ;;  %v2576_v53 = vmul.f32 0.5, %v6663_v22  ;;  %v2122_v61 = vadd.f32 %v2121_v17, %v7735_v38  ;;  %v2575_v47 = vmul.f32 0.5, %v6669_v24  ;;  %v7737_v38 = vld [vmem:[#allocation15_spill] sm:$0xff] }
 0x2da   : > { %v2647_v58 = vmul.f32 0.70710677, %v6749_v34  ;;  %v6761_v50 = vadd.f32 %v4233_v37, %v2127_v15  ;;  %4460 = verf.f32 %v2648_v2  ;;  %v2133_v29 = vpop.f32.mrf.mxu0  ;;  %v2990_v25 = vsel %vm2845_vm1, %v6754_v5, 0.0 }
 0x2db   : > { %v4449_v20 = vpop.eup %4448  ;;  %v2506_v54 = vpop.f32.mrf.mxu1  ;;  %v2767_v27 = vadd.f32 1.0, %v4447_v52  ;;  %v2578_v60 = vmul.f32 0.5, %v6684_v9  ;;  %v2993_v24 = vsel %vm2845_vm1, %v6756_v10, 0.0  ;;  %v6774_v44 = vmul.f32 %v2768_v7, %v2576_v53  ;;  %v7736_v52 = vld [vmem:[#allocation7_spill] sm:$0xff] }
 0x2dc   : > { %4462 = verf.f32 %v2647_v58  ;;  %v2650_v22 = vmul.f32 0.70710677, %v6761_v50  ;;  %v6768_v17 = vadd.f32 %v2506_v54, %v2122_v61  ;;  %2991 = vadd.xlane.f32.xlu0 %v2990_v25  ;;  %v2136_v57 = vpop.f32.mrf.mxu0  ;;  %v2770_v2 = vadd.f32 1.0, %v4449_v20  ;;  %2994 = vadd.xlane.f32.xlu1 %v2993_v24 }
 0x2dd   : > { %v4451_v19 = vpop.eup %4450  ;;  %v4236_v15 = vpop.f32.mrf.mxu1  ;;  %v6772_v29 = vmul.f32 %v2767_v27, %v2575_v47  ;;  %v2132_v37 = vadd.f32 %v2131_v1, %v7736_v52  ;;  %v2137_v54 = vadd.f32 %v2136_v57, %v7737_v38  ;;  %v2577_v61 = vmul.f32 0.5, %v6692_v4 }
 0x2de   : > { %4464 = verf.f32 %v2650_v22  ;;  %v2649_v9 = vmul.f32 0.70710677, %v6768_v17  ;;  %v2138_v10 = vpop.f32.mrf.mxu0  ;;  %v2769_v47 = vadd.f32 1.0, %v4451_v19  ;;  %v6782_v1 = vmul.f32 %v2770_v2, %v2578_v60 }
 0x2df   : > { %v2516_v58 = vpop.f32.mrf.mxu1  ;;  %v2996_v25 = vsel %vm2845_vm1, %v6772_v29, 0.0  ;;  %v4453_v27 = vpop.eup %4452  ;;  %v2522_v7 = vadd.f32 %v4236_v15, %v2137_v54  ;;  %v2999_v22 = vsel %vm2845_vm1, %v6774_v44, 0.0  ;;  %v2580_v10 = vmul.f32 0.5, %v6705_v63 }
 0x2e0   : > { %4466 = verf.f32 %v2649_v9  ;;  %v2517_v53 = vadd.f32 %v2516_v58, %v2132_v37  ;;  %2997 = vadd.xlane.f32.xlu0 %v2996_v25  ;;  %v6786_v57 = vmul.f32 %v2769_v47, %v2577_v61  ;;  %v2772_v4 = vadd.f32 1.0, %v4453_v27  ;;  %3000 = vadd.xlane.f32.xlu1 %v2999_v22 }
 0x2e1   : > { %v4455_v20 = vpop.eup %4454  ;;  %v2652_v24 = vmul.f32 0.70710677, %v2522_v7  ;;  %v2579_v19 = vmul.f32 0.5, %v6711_v45  ;;  %v3005_v2 = vsel %vm2845_vm1, %v6782_v1, 0.0  ;;  %v2581_v63 = vmul.f32 0.5, %v6731_v3 }
 0x2e2   : > { %v2651_v52 = vmul.f32 0.70710677, %v2517_v53  ;;  %v3002_v15 = vsel %vm2845_vm1, %v6786_v57, 0.0  ;;  %v2771_v60 = vadd.f32 1.0, %v4455_v20  ;;  %v6796_v54 = vmul.f32 %v2772_v4, %v2580_v10 }
 0x2e3   : > { %v4457_v38 = vpop.eup %4456  ;;  %4468 = verf.f32 %v2652_v24  ;;  %v2582_v58 = vmul.f32 0.5, %v6724_v48  ;;  %v2583_v3 = vmul.f32 0.5, %v6749_v34  ;;  %v2584_v10 = vmul.f32 0.5, %v6744_v6 }
 0x2e4   : > { %3003 = vadd.xlane.f32.xlu0 %v3002_v15  ;;  %4470 = verf.f32 %v2651_v52  ;;  %v6794_v9 = vmul.f32 %v2771_v60, %v2579_v19  ;;  %v2774_v61 = vadd.f32 1.0, %v4457_v38  ;;  %3006 = vadd.xlane.f32.xlu1 %v3005_v2  ;;  %v3011_v22 = vsel %vm2845_vm1, %v6796_v54, 0.0 }
 0x2e5   : > { %v4459_v37 = vpop.eup %4458  ;;  %v2585_v34 = vmul.f32 0.5, %v6768_v17 }
 0x2e6   : > { %v2773_v45 = vadd.f32 1.0, %v4459_v37  ;;  %v3008_v25 = vsel %vm2845_vm1, %v6794_v9, 0.0  ;;  %v6806_v4 = vmul.f32 %v2774_v61, %v2582_v58 }
 0x2e7   : > { %v4461_v47 = vpop.eup %4460 }
 0x2e8   : > { %3009 = vadd.xlane.f32.xlu0 %v3008_v25  ;;  %v6802_v27 = vmul.f32 %v2773_v45, %v2581_v63  ;;  %v2776_v24 = vadd.f32 1.0, %v4461_v47  ;;  %3012 = vadd.xlane.f32.xlu1 %v3011_v22  ;;  %v3017_v60 = vsel %vm2845_vm1, %v6806_v4, 0.0  ;;  %v2586_v45 = vmul.f32 0.5, %v6761_v50 }
 0x2e9   : > { %v4463_v20 = vpop.eup %4462 }
 0x2ea   : > { %v3014_v48 = vsel %vm2845_vm1, %v6802_v27, 0.0  ;;  %v2775_v52 = vadd.f32 1.0, %v4463_v20  ;;  %v6816_v2 = vmul.f32 %v2776_v24, %v2584_v10  ;;  %v2588_v24 = vmul.f32 0.5, %v2522_v7 }
 0x2eb   : > { %v4465_v38 = vpop.eup %4464 }
 0x2ec   : > { %3015 = vadd.xlane.f32.xlu0 %v3014_v48  ;;  %v6812_v19 = vmul.f32 %v2775_v52, %v2583_v3  ;;  %v2778_v37 = vadd.f32 1.0, %v4465_v38  ;;  %3018 = vadd.xlane.f32.xlu1 %v3017_v60  ;;  %v3023_v25 = vsel %vm2845_vm1, %v6816_v2, 0.0  ;;  %v2587_v3 = vmul.f32 0.5, %v2517_v53  ;;  %v7738_v60 = vld [vmem:[#allocation8_spill] sm:$0xff] }
 0x2ed   : > { %v4467_v15 = vpop.eup %4466 }
 0x2ee   : > { %v3020_v61 = vsel %vm2845_vm1, %v6812_v19, 0.0  ;;  %v2777_v63 = vadd.f32 1.0, %v4467_v15  ;;  %v6826_v47 = vmul.f32 %v2778_v37, %v2586_v45 }
 0x2f0   : > { %3021 = vadd.xlane.f32.xlu0 %v3020_v61  ;;  %v6822_v6 = vmul.f32 %v2777_v63, %v2585_v34  ;;  %v4469_v58 = vpop.eup %4468  ;;  %3024 = vadd.xlane.f32.xlu1 %v3023_v25  ;;  %v3029_v50 = vsel %vm2845_vm1, %v6826_v47, 0.0 }
 0x2f1   : > { %v4471_v20 = vpop.eup %4470  ;;  %v2780_v22 = vadd.f32 1.0, %v4469_v58 }
 0x2f2   : > { %v3026_v17 = vsel %vm2845_vm1, %v6822_v6, 0.0  ;;  %v2779_v48 = vadd.f32 1.0, %v4471_v20 }
 0x2f3   : > { %v6834_v38 = vmul.f32 %v2780_v22, %v2588_v24 }
 0x2f4   : > { %3027 = vadd.xlane.f32.xlu0 %v3026_v17  ;;  %v6832_v52 = vmul.f32 %v2779_v48, %v2587_v3  ;;  %3030 = vadd.xlane.f32.xlu1 %v3029_v50 }
 0x2f5   : > { %v3035_v15 = vsel %vm2845_vm1, %v6834_v38, 0.0 }
 0x2f6   : > { %v3032_v10 = vsel %vm2845_vm1, %v6832_v52, 0.0 }
 0x2f8   : > { %3033 = vadd.xlane.f32.xlu0 %v3032_v10  ;;  %3036 = vadd.xlane.f32.xlu1 %v3035_v15 }
 0x301   : > { %v2851_v7 = vpop.xlane.xlu0 %2850 }
 0x302   : > { %v3040_v53 = vmul.f32 0.03125, %v2851_v7 }
 0x304   : > { %v6841_v37 = vsub.f32 %v7738_v60, %v3040_v53  ;;  %v7739_v53 = vld [vmem:[#allocation16_spill] sm:$0xff] }
 0x305   : > { %v2857_v34 = vpop.xlane.xlu1 %2856  ;;  %v2848_v61 = vpop.xlane.xlu0 %2847 }
 0x306   : > { %v3042_v63 = vmul.f32 0.03125, %v2857_v34  ;;  %v3039_v45 = vmul.f32 0.03125, %v2848_v61  ;;  %v3168_v58 = vmul.f32 %v6841_v37, %v6841_v37 }
 0x308   : > { %v6846_v25 = vsub.f32 %v6265_v21, %v3042_v63  ;;  %v6849_v20 = vsub.f32 %v6267_v46, %v3039_v45  ;;  %v3234_v17 = vsel %vm2845_vm1, %v3168_v58, 0.0 }
 0x309   : > { %v2854_v22 = vpop.xlane.xlu1 %2853  ;;  %3235 = vadd.xlane.f32.xlu1 %v3234_v17 }
 0x30a   : > { %v3041_v24 = vmul.f32 0.03125, %v2854_v22  ;;  %v3170_v3 = vmul.f32 %v6846_v25, %v6846_v25  ;;  %v3167_v48 = vmul.f32 %v6849_v20, %v6849_v20 }
 0x30b   : > { %v2860_v50 = vpop.xlane.xlu0 %2859 }
 0x30c   : > { %v6857_v10 = vsub.f32 %v6279_v18, %v3041_v24  ;;  %v3043_v21 = vmul.f32 0.03125, %v2860_v50  ;;  %v3240_v15 = vsel %vm2845_vm1, %v3170_v3, 0.0  ;;  %v3231_v46 = vsel %vm2845_vm1, %v3167_v48, 0.0  ;;  %v7740_v24 = vld [vmem:[#allocation9_spill] sm:$0xff] }
 0x30d   : > { %v2863_v7 = vpop.xlane.xlu1 %2862  ;;  %3241 = vadd.xlane.f32.xlu1 %v3240_v15  ;;  %3232 = vadd.xlane.f32.xlu0 %v3231_v46 }
 0x30e   : > { %v6862_v60 = vsub.f32 %v7739_v53, %v3043_v21  ;;  %v3044_v34 = vmul.f32 0.03125, %v2863_v7  ;;  %v3169_v61 = vmul.f32 %v6857_v10, %v6857_v10 }
 0x30f   : > { %v2866_v63 = vpop.xlane.xlu0 %2865 }
 0x310   : > { %v6867_v45 = vsub.f32 %v6297_v59, %v3044_v34  ;;  %v3045_v18 = vmul.f32 0.03125, %v2866_v63  ;;  %v3237_v58 = vsel %vm2845_vm1, %v3169_v61, 0.0  ;;  %v3171_v17 = vmul.f32 %v6862_v60, %v6862_v60  ;;  %v7741_v59 = vld [vmem:[#allocation17_spill] sm:$0xff] }
 0x311   : > { %v2869_v22 = vpop.xlane.xlu1 %2868  ;;  %3238 = vadd.xlane.f32.xlu0 %v3237_v58 }
 0x312   : > { %v6873_v3 = vsub.f32 %v7740_v24, %v3045_v18  ;;  %v3046_v48 = vmul.f32 0.03125, %v2869_v22  ;;  %v3172_v50 = vmul.f32 %v6867_v45, %v6867_v45  ;;  %v3243_v15 = vsel %vm2845_vm1, %v3171_v17, 0.0 }
 0x314   : > { %v2872_v21 = vpop.xlane.xlu0 %2871  ;;  %v6879_v46 = vsub.f32 %v7741_v59, %v3046_v48  ;;  %v3246_v53 = vsel %vm2845_vm1, %v3172_v50, 0.0  ;;  %v3173_v34 = vmul.f32 %v6873_v3, %v6873_v3 }
 0x315   : > { %v3047_v7 = vmul.f32 0.03125, %v2872_v21  ;;  %v2875_v61 = vpop.xlane.xlu1 %2874  ;;  %3247 = vadd.xlane.f32.xlu1 %v3246_v53  ;;  %3244 = vadd.xlane.f32.xlu0 %v3243_v15 }
 0x316   : > { %v3048_v18 = vmul.f32 0.03125, %v2875_v61  ;;  %v3174_v58 = vmul.f32 %v6879_v46, %v6879_v46  ;;  %v3249_v22 = vsel %vm2845_vm1, %v3173_v34, 0.0  ;;  %v7744_v61 = vld [vmem:[#allocation18_spill] sm:$0xff] }
 0x317   : > { %v6885_v63 = vsub.f32 %v6335_v40, %v3047_v7  ;;  %v7742_v40 = vld [vmem:[#allocation10_spill] sm:$0xff] }
 0x318   : > { %v6891_v24 = vsub.f32 %v6337_v12, %v3048_v18  ;;  %v3252_v50 = vsel %vm2845_vm1, %v3174_v58, 0.0 }
 0x319   : > { %v2878_v17 = vpop.xlane.xlu0 %2877  ;;  %v3175_v21 = vmul.f32 %v6885_v63, %v6885_v63  ;;  %v2881_v15 = vpop.xlane.xlu1 %2880  ;;  %3253 = vadd.xlane.f32.xlu1 %v3252_v50  ;;  %3250 = vadd.xlane.f32.xlu0 %v3249_v22 }
 0x31a   : > { %v3049_v48 = vmul.f32 0.03125, %v2878_v17  ;;  %v3050_v7 = vmul.f32 0.03125, %v2881_v15  ;;  %v3176_v53 = vmul.f32 %v6891_v24, %v6891_v24 }
 0x31b   : > { %v3255_v12 = vsel %vm2845_vm1, %v3175_v21, 0.0 }
 0x31c   : > { %v6897_v59 = vsub.f32 %v7742_v40, %v3049_v48  ;;  %v6903_v18 = vsub.f32 %v7744_v61, %v3050_v7  ;;  %v3258_v17 = vsel %vm2845_vm1, %v3176_v53, 0.0 }
 0x31d   : > { %v2884_v34 = vpop.xlane.xlu0 %2883  ;;  %v2887_v22 = vpop.xlane.xlu1 %2886  ;;  %3259 = vadd.xlane.f32.xlu1 %v3258_v17  ;;  %3256 = vadd.xlane.f32.xlu0 %v3255_v12 }
 0x31e   : > { %7743 = vst [vmem:[#allocation28_spill] sm:$0xff] %v6897_v59  ;;  %7745 = vst [vmem:[#allocation31_spill] sm:$0xff] %v6903_v18  ;;  %v3051_v58 = vmul.f32 0.03125, %v2884_v34  ;;  %v3177_v50 = vmul.f32 %v6897_v59, %v6897_v59  ;;  %v3052_v15 = vmul.f32 0.03125, %v2887_v22  ;;  %v3178_v40 = vmul.f32 %v6903_v18, %v6903_v18 }
 0x320   : > { %v6909_v48 = vsub.f32 %v6375_v31, %v3051_v58  ;;  %v3261_v7 = vsel %vm2845_vm1, %v3177_v50, 0.0  ;;  %v6915_v34 = vsub.f32 %v6377_v39, %v3052_v15  ;;  %v3264_v61 = vsel %vm2845_vm1, %v3178_v40, 0.0  ;;  %v7746_v31 = vld [vmem:[#allocation11_spill] sm:$0xff] }
 0x321   : > { %v2890_v21 = vpop.xlane.xlu0 %2889  ;;  %v2893_v12 = vpop.xlane.xlu1 %2892  ;;  %3265 = vadd.xlane.f32.xlu1 %v3264_v61  ;;  %3262 = vadd.xlane.f32.xlu0 %v3261_v7  ;;  %v7748_v15 = vld [vmem:[#allocation35_spill] sm:$0xff] }
 0x322   : > { %v3053_v53 = vmul.f32 0.03125, %v2890_v21  ;;  %v3179_v17 = vmul.f32 %v6909_v48, %v6909_v48  ;;  %v3054_v22 = vmul.f32 0.03125, %v2893_v12  ;;  %v3180_v59 = vmul.f32 %v6915_v34, %v6915_v34 }
 0x324   : > { %v6921_v58 = vsub.f32 %v7746_v31, %v3053_v53  ;;  %v3267_v39 = vsel %vm2845_vm1, %v3179_v17, 0.0  ;;  %v6927_v21 = vsub.f32 %v7748_v15, %v3054_v22  ;;  %v3270_v18 = vsel %vm2845_vm1, %v3180_v59, 0.0 }
 0x325   : > { %v2896_v50 = vpop.xlane.xlu0 %2895  ;;  %v2899_v7 = vpop.xlane.xlu1 %2898  ;;  %3271 = vadd.xlane.f32.xlu1 %v3270_v18  ;;  %3268 = vadd.xlane.f32.xlu0 %v3267_v39 }
 0x326   : > { %7747 = vst [vmem:[#allocation30_spill] sm:$0xff] %v6921_v58  ;;  %v3055_v40 = vmul.f32 0.03125, %v2896_v50  ;;  %v3181_v61 = vmul.f32 %v6921_v58, %v6921_v58  ;;  %v3056_v12 = vmul.f32 0.03125, %v2899_v7  ;;  %v3182_v31 = vmul.f32 %v6927_v21, %v6927_v21 }
 0x328   : > { %v6933_v53 = vsub.f32 %v6415_v62, %v3055_v40  ;;  %v3273_v22 = vsel %vm2845_vm1, %v3181_v61, 0.0  ;;  %v6939_v50 = vsub.f32 %v6417_v0, %v3056_v12  ;;  %v3276_v15 = vsel %vm2845_vm1, %v3182_v31, 0.0  ;;  %v7749_v12 = vld [vmem:[#allocation36_spill] sm:$0xff] }
 0x329   : > { %v2902_v17 = vpop.xlane.xlu0 %2901  ;;  %v2905_v39 = vpop.xlane.xlu1 %2904  ;;  %3277 = vadd.xlane.f32.xlu1 %v3276_v15  ;;  %3274 = vadd.xlane.f32.xlu0 %v3273_v22 }
 0x32a   : > { %v3057_v59 = vmul.f32 0.03125, %v2902_v17  ;;  %v3183_v18 = vmul.f32 %v6933_v53, %v6933_v53  ;;  %v3058_v40 = vmul.f32 0.03125, %v2905_v39  ;;  %v3184_v7 = vmul.f32 %v6939_v50, %v6939_v50 }
 0x32c   : > { %v6945_v62 = vsub.f32 %v6435_v56, %v3057_v59  ;;  %v3279_v0 = vsel %vm2845_vm1, %v3183_v18, 0.0  ;;  %v6951_v17 = vsub.f32 %v7749_v12, %v3058_v40  ;;  %v3282_v58 = vsel %vm2845_vm1, %v3184_v7, 0.0 }
 0x32d   : > { %v2908_v61 = vpop.xlane.xlu0 %2907  ;;  %v2911_v22 = vpop.xlane.xlu1 %2910  ;;  %3283 = vadd.xlane.f32.xlu1 %v3282_v58  ;;  %3280 = vadd.xlane.f32.xlu0 %v3279_v0 }
 0x32e   : > { %v3059_v31 = vmul.f32 0.03125, %v2908_v61  ;;  %v3185_v15 = vmul.f32 %v6945_v62, %v6945_v62  ;;  %v3060_v59 = vmul.f32 0.03125, %v2911_v22  ;;  %v3186_v39 = vmul.f32 %v6951_v17, %v6951_v17 }
 0x330   : > { %v6957_v56 = vsub.f32 %v6457_v16, %v3059_v31  ;;  %v3285_v40 = vsel %vm2845_vm1, %v3185_v15, 0.0  ;;  %v6963_v61 = vsub.f32 %v6459_v55, %v3060_v59  ;;  %v3288_v12 = vsel %vm2845_vm1, %v3186_v39, 0.0 }
 0x331   : > { %v2914_v18 = vpop.xlane.xlu0 %2913  ;;  %v2917_v0 = vpop.xlane.xlu1 %2916  ;;  %3289 = vadd.xlane.f32.xlu1 %v3288_v12  ;;  %3286 = vadd.xlane.f32.xlu0 %v3285_v40 }
 0x332   : > { %v3061_v7 = vmul.f32 0.03125, %v2914_v18  ;;  %v3187_v58 = vmul.f32 %v6957_v56, %v6957_v56  ;;  %v3062_v31 = vmul.f32 0.03125, %v2917_v0  ;;  %v3188_v22 = vmul.f32 %v6963_v61, %v6963_v61 }
 0x334   : > { %v6969_v16 = vsub.f32 %v6478_v35, %v3061_v7  ;;  %v3291_v55 = vsel %vm2845_vm1, %v3187_v58, 0.0  ;;  %v6975_v59 = vsub.f32 %v6480_v33, %v3062_v31  ;;  %v3294_v18 = vsel %vm2845_vm1, %v3188_v22, 0.0 }
 0x335   : > { %v2920_v15 = vpop.xlane.xlu0 %2919  ;;  %v2923_v40 = vpop.xlane.xlu1 %2922  ;;  %3295 = vadd.xlane.f32.xlu1 %v3294_v18  ;;  %3292 = vadd.xlane.f32.xlu0 %v3291_v55 }
 0x336   : > { %v3063_v39 = vmul.f32 0.03125, %v2920_v15  ;;  %v3189_v12 = vmul.f32 %v6969_v16, %v6969_v16  ;;  %v3064_v7 = vmul.f32 0.03125, %v2923_v40  ;;  %v3190_v0 = vmul.f32 %v6975_v59, %v6975_v59 }
 0x338   : > { %v6981_v35 = vsub.f32 %v6500_v43, %v3063_v39  ;;  %v3297_v33 = vsel %vm2845_vm1, %v3189_v12, 0.0  ;;  %v6987_v31 = vsub.f32 %v6502_v41, %v3064_v7  ;;  %v3300_v15 = vsel %vm2845_vm1, %v3190_v0, 0.0 }
 0x339   : > { %v2926_v58 = vpop.xlane.xlu0 %2925  ;;  %v2929_v55 = vpop.xlane.xlu1 %2928  ;;  %3301 = vadd.xlane.f32.xlu1 %v3300_v15  ;;  %3298 = vadd.xlane.f32.xlu0 %v3297_v33 }
 0x33a   : > { %v3065_v22 = vmul.f32 0.03125, %v2926_v58  ;;  %v3191_v18 = vmul.f32 %v6981_v35, %v6981_v35  ;;  %v3066_v39 = vmul.f32 0.03125, %v2929_v55  ;;  %v3192_v40 = vmul.f32 %v6987_v31, %v6987_v31 }
 0x33c   : > { %v6993_v43 = vsub.f32 %v6522_v49, %v3065_v22  ;;  %v3303_v41 = vsel %vm2845_vm1, %v3191_v18, 0.0  ;;  %v6999_v7 = vsub.f32 %v6524_v30, %v3066_v39  ;;  %v3306_v58 = vsel %vm2845_vm1, %v3192_v40, 0.0 }
 0x33d   : > { %v2932_v12 = vpop.xlane.xlu0 %2931  ;;  %v2935_v33 = vpop.xlane.xlu1 %2934  ;;  %3307 = vadd.xlane.f32.xlu1 %v3306_v58  ;;  %3304 = vadd.xlane.f32.xlu0 %v3303_v41 }
 0x33e   : > { %v3067_v0 = vmul.f32 0.03125, %v2932_v12  ;;  %v3193_v15 = vmul.f32 %v6993_v43, %v6993_v43  ;;  %v3068_v22 = vmul.f32 0.03125, %v2935_v33  ;;  %v3194_v55 = vmul.f32 %v6999_v7, %v6999_v7 }
 0x340   : > { %v7005_v49 = vsub.f32 %v6544_v8, %v3067_v0  ;;  %v3309_v30 = vsel %vm2845_vm1, %v3193_v15, 0.0  ;;  %v7011_v39 = vsub.f32 %v6546_v11, %v3068_v22  ;;  %v3312_v12 = vsel %vm2845_vm1, %v3194_v55, 0.0 }
 0x341   : > { %v2938_v18 = vpop.xlane.xlu0 %2937  ;;  %v2941_v41 = vpop.xlane.xlu1 %2940  ;;  %3313 = vadd.xlane.f32.xlu1 %v3312_v12  ;;  %3310 = vadd.xlane.f32.xlu0 %v3309_v30 }
 0x342   : > { %7750 = vst [vmem:[#allocation33_spill] sm:$0xff] %v7005_v49  ;;  %v3069_v40 = vmul.f32 0.03125, %v2938_v18  ;;  %v3195_v58 = vmul.f32 %v7005_v49, %v7005_v49  ;;  %v3070_v0 = vmul.f32 0.03125, %v2941_v41  ;;  %v3196_v33 = vmul.f32 %v7011_v39, %v7011_v39 }
 0x344   : > { %v7017_v8 = vsub.f32 %v6566_v13, %v3069_v40  ;;  %v3315_v11 = vsel %vm2845_vm1, %v3195_v58, 0.0  ;;  %v7023_v22 = vsub.f32 %v6568_v14, %v3070_v0  ;;  %v3318_v18 = vsel %vm2845_vm1, %v3196_v33, 0.0  ;;  %v7753_v0 = vld [vmem:[#allocation19_spill] sm:$0xff] }
 0x345   : > { %v2944_v15 = vpop.xlane.xlu0 %2943  ;;  %v2947_v30 = vpop.xlane.xlu1 %2946  ;;  %3319 = vadd.xlane.f32.xlu1 %v3318_v18  ;;  %3316 = vadd.xlane.f32.xlu0 %v3315_v11 }
 0x346   : > { %7751 = vst [vmem:[#allocation32_spill] sm:$0xff] %v7017_v8  ;;  %v3071_v55 = vmul.f32 0.03125, %v2944_v15  ;;  %v3197_v12 = vmul.f32 %v7017_v8, %v7017_v8  ;;  %v3072_v40 = vmul.f32 0.03125, %v2947_v30  ;;  %v3198_v41 = vmul.f32 %v7023_v22, %v7023_v22 }
 0x348   : > { %v7029_v13 = vsub.f32 %v6588_v32, %v3071_v55  ;;  %v3321_v14 = vsel %vm2845_vm1, %v3197_v12, 0.0  ;;  %v7035_v15 = vsub.f32 %v7753_v0, %v3072_v40  ;;  %v3324_v49 = vsel %vm2845_vm1, %v3198_v41, 0.0  ;;  %v7755_v0 = vld [vmem:[#allocation21_spill] sm:$0xff] }
 0x349   : > { %v2950_v58 = vpop.xlane.xlu0 %2949  ;;  %v2953_v11 = vpop.xlane.xlu1 %2952  ;;  %3325 = vadd.xlane.f32.xlu1 %v3324_v49  ;;  %3322 = vadd.xlane.f32.xlu0 %v3321_v14 }
 0x34a   : > { %7752 = vst [vmem:[#allocation12_spill] sm:$0xff] %v7029_v13  ;;  %v3073_v33 = vmul.f32 0.03125, %v2950_v58  ;;  %v3199_v18 = vmul.f32 %v7029_v13, %v7029_v13  ;;  %v3074_v55 = vmul.f32 0.03125, %v2953_v11  ;;  %v3200_v30 = vmul.f32 %v7035_v15, %v7035_v15 }
 0x34c   : > { %v7041_v32 = vsub.f32 %v6610_v36, %v3073_v33  ;;  %v3327_v40 = vsel %vm2845_vm1, %v3199_v18, 0.0  ;;  %v7047_v58 = vsub.f32 %v7755_v0, %v3074_v55  ;;  %v3330_v8 = vsel %vm2845_vm1, %v3200_v30, 0.0  ;;  %v7757_v0 = vld [vmem:[#allocation20_spill] sm:$0xff] }
 0x34d   : > { %v2956_v12 = vpop.xlane.xlu0 %2955  ;;  %v2959_v14 = vpop.xlane.xlu1 %2958  ;;  %3331 = vadd.xlane.f32.xlu1 %v3330_v8  ;;  %3328 = vadd.xlane.f32.xlu0 %v3327_v40 }
 0x34e   : > { %7754 = vst [vmem:[#allocation34_spill] sm:$0xff] %v7041_v32  ;;  %v3075_v41 = vmul.f32 0.03125, %v2956_v12  ;;  %v3201_v49 = vmul.f32 %v7041_v32, %v7041_v32  ;;  %v3076_v33 = vmul.f32 0.03125, %v2959_v14  ;;  %v3202_v11 = vmul.f32 %v7047_v58, %v7047_v58 }
 0x350   : > { %v7053_v36 = vsub.f32 %v6632_v28, %v3075_v41  ;;  %v3333_v55 = vsel %vm2845_vm1, %v3201_v49, 0.0  ;;  %v7059_v12 = vsub.f32 %v7757_v0, %v3076_v33  ;;  %v3336_v13 = vsel %vm2845_vm1, %v3202_v11, 0.0  ;;  %v7759_v0 = vld [vmem:[#allocation23_spill] sm:$0xff] }
 0x351   : > { %v2962_v18 = vpop.xlane.xlu0 %2961  ;;  %v2965_v40 = vpop.xlane.xlu1 %2964  ;;  %3337 = vadd.xlane.f32.xlu1 %v3336_v13  ;;  %3334 = vadd.xlane.f32.xlu0 %v3333_v55 }
 0x352   : > { %7756 = vst [vmem:[#allocation13_spill] sm:$0xff] %v7053_v36  ;;  %v3077_v30 = vmul.f32 0.03125, %v2962_v18  ;;  %v3203_v8 = vmul.f32 %v7053_v36, %v7053_v36  ;;  %v3078_v41 = vmul.f32 0.03125, %v2965_v40  ;;  %v3204_v14 = vmul.f32 %v7059_v12, %v7059_v12 }
 0x354   : > { %v7065_v28 = vsub.f32 %v6654_v26, %v3077_v30  ;;  %v3339_v33 = vsel %vm2845_vm1, %v3203_v8, 0.0  ;;  %v7071_v18 = vsub.f32 %v7759_v0, %v3078_v41  ;;  %v3342_v32 = vsel %vm2845_vm1, %v3204_v14, 0.0  ;;  %v7761_v0 = vld [vmem:[#allocation22_spill] sm:$0xff] }
 0x355   : > { %v2968_v49 = vpop.xlane.xlu0 %2967  ;;  %v2971_v55 = vpop.xlane.xlu1 %2970  ;;  %3343 = vadd.xlane.f32.xlu1 %v3342_v32  ;;  %3340 = vadd.xlane.f32.xlu0 %v3339_v33 }
 0x356   : > { %7758 = vst [vmem:[#allocation5_spill] sm:$0xff] %v7065_v28  ;;  %v3079_v11 = vmul.f32 0.03125, %v2968_v49  ;;  %v3205_v13 = vmul.f32 %v7065_v28, %v7065_v28  ;;  %v3080_v30 = vmul.f32 0.03125, %v2971_v55  ;;  %v3206_v40 = vmul.f32 %v7071_v18, %v7071_v18 }
 0x358   : > { %v7077_v26 = vsub.f32 %v6676_v51, %v3079_v11  ;;  %v3345_v41 = vsel %vm2845_vm1, %v3205_v13, 0.0  ;;  %v7083_v49 = vsub.f32 %v7761_v0, %v3080_v30  ;;  %v3348_v36 = vsel %vm2845_vm1, %v3206_v40, 0.0  ;;  %v7763_v0 = vld [vmem:[#allocation25_spill] sm:$0xff] }
 0x359   : > { %v2974_v8 = vpop.xlane.xlu0 %2973  ;;  %v2977_v33 = vpop.xlane.xlu1 %2976  ;;  %3349 = vadd.xlane.f32.xlu1 %v3348_v36  ;;  %3346 = vadd.xlane.f32.xlu0 %v3345_v41 }
 0x35a   : > { %7760 = vst [vmem:[#allocation14_spill] sm:$0xff] %v7077_v26  ;;  %v3081_v14 = vmul.f32 0.03125, %v2974_v8  ;;  %v3207_v32 = vmul.f32 %v7077_v26, %v7077_v26  ;;  %v3082_v11 = vmul.f32 0.03125, %v2977_v33  ;;  %v3208_v55 = vmul.f32 %v7083_v49, %v7083_v49 }
 0x35c   : > { %v7089_v51 = vsub.f32 %v6696_v23, %v3081_v14  ;;  %v3351_v30 = vsel %vm2845_vm1, %v3207_v32, 0.0  ;;  %v7095_v8 = vsub.f32 %v7763_v0, %v3082_v11  ;;  %v3354_v28 = vsel %vm2845_vm1, %v3208_v55, 0.0  ;;  %v7766_v0 = vld [vmem:[#allocation24_spill] sm:$0xff] }
 0x35d   : > { %v2980_v13 = vpop.xlane.xlu0 %2979  ;;  %v2983_v41 = vpop.xlane.xlu1 %2982  ;;  %3355 = vadd.xlane.f32.xlu1 %v3354_v28  ;;  %3352 = vadd.xlane.f32.xlu0 %v3351_v30 }
 0x35e   : > { %7762 = vst [vmem:[#allocation6_spill] sm:$0xff] %v7089_v51  ;;  %7764 = vst [vmem:[#allocation7_spill] sm:$0xff] %v7095_v8  ;;  %v3083_v40 = vmul.f32 0.03125, %v2980_v13  ;;  %v3209_v36 = vmul.f32 %v7089_v51, %v7089_v51  ;;  %v3084_v14 = vmul.f32 0.03125, %v2983_v41  ;;  %v3210_v33 = vmul.f32 %v7095_v8, %v7095_v8 }
 0x360   : > { %v7101_v23 = vsub.f32 %v6716_v42, %v3083_v40  ;;  %v3357_v11 = vsel %vm2845_vm1, %v3209_v36, 0.0  ;;  %v7107_v13 = vsub.f32 %v7766_v0, %v3084_v14  ;;  %v3360_v26 = vsel %vm2845_vm1, %v3210_v33, 0.0  ;;  %v7767_v42 = vld [vmem:[#allocation27_spill] sm:$0xff]  ;;  %v7768_v0 = vld [vmem:[#allocation26_spill] sm:$0xff] }
 0x361   : > { %v2986_v32 = vpop.xlane.xlu0 %2985  ;;  %v2989_v30 = vpop.xlane.xlu1 %2988  ;;  %3361 = vadd.xlane.f32.xlu1 %v3360_v26  ;;  %3358 = vadd.xlane.f32.xlu0 %v3357_v11 }
 0x362   : > { %7765 = vst [vmem:[#allocation15_spill] sm:$0xff] %v7101_v23  ;;  %v3085_v55 = vmul.f32 0.03125, %v2986_v32  ;;  %v3211_v28 = vmul.f32 %v7101_v23, %v7101_v23  ;;  %v3086_v41 = vmul.f32 0.03125, %v2989_v30  ;;  %v3212_v51 = vmul.f32 %v7107_v13, %v7107_v13 }
 0x364   : > { %v7113_v40 = vsub.f32 %v7767_v42, %v3085_v55  ;;  %v3363_v14 = vsel %vm2845_vm1, %v3211_v28, 0.0  ;;  %v7119_v32 = vsub.f32 %v7768_v0, %v3086_v41  ;;  %v3366_v8 = vsel %vm2845_vm1, %v3212_v51, 0.0  ;;  %v7769_v0 = vld [vmem:[#allocation29_spill] sm:$0xff] }
 0x365   : > { %v2992_v36 = vpop.xlane.xlu0 %2991  ;;  %v2995_v11 = vpop.xlane.xlu1 %2994  ;;  %3367 = vadd.xlane.f32.xlu1 %v3366_v8  ;;  %3364 = vadd.xlane.f32.xlu0 %v3363_v14 }
 0x366   : > { %v3087_v33 = vmul.f32 0.03125, %v2992_v36  ;;  %v3213_v26 = vmul.f32 %v7113_v40, %v7113_v40  ;;  %v3088_v30 = vmul.f32 0.03125, %v2995_v11  ;;  %v3214_v42 = vmul.f32 %v7119_v32, %v7119_v32 }
 0x368   : > { %v7125_v55 = vsub.f32 %v6754_v5, %v3087_v33  ;;  %v3369_v41 = vsel %vm2845_vm1, %v3213_v26, 0.0  ;;  %v7131_v36 = vsub.f32 %v7769_v0, %v3088_v30  ;;  %v3372_v23 = vsel %vm2845_vm1, %v3214_v42, 0.0 }
 0x369   : > { %v2998_v28 = vpop.xlane.xlu0 %2997  ;;  %v3001_v14 = vpop.xlane.xlu1 %3000  ;;  %3373 = vadd.xlane.f32.xlu1 %v3372_v23  ;;  %3370 = vadd.xlane.f32.xlu0 %v3369_v41 }
 0x36a   : > { %v3089_v51 = vmul.f32 0.03125, %v2998_v28  ;;  %v3215_v8 = vmul.f32 %v7125_v55, %v7125_v55  ;;  %v3090_v33 = vmul.f32 0.03125, %v3001_v14  ;;  %v3216_v11 = vmul.f32 %v7131_v36, %v7131_v36 }
 0x36c   : > { %v7137_v5 = vsub.f32 %v6772_v29, %v3089_v51  ;;  %v3375_v30 = vsel %vm2845_vm1, %v3215_v8, 0.0  ;;  %v7143_v28 = vsub.f32 %v6774_v44, %v3090_v33  ;;  %v3378_v0 = vsel %vm2845_vm1, %v3216_v11, 0.0 }
 0x36d   : > { %v3004_v26 = vpop.xlane.xlu0 %3003  ;;  %v3007_v41 = vpop.xlane.xlu1 %3006  ;;  %3379 = vadd.xlane.f32.xlu1 %v3378_v0  ;;  %3376 = vadd.xlane.f32.xlu0 %v3375_v30 }
 0x36e   : > { %v3091_v42 = vmul.f32 0.03125, %v3004_v26  ;;  %v3217_v23 = vmul.f32 %v7137_v5, %v7137_v5  ;;  %v3092_v51 = vmul.f32 0.03125, %v3007_v41  ;;  %v3218_v14 = vmul.f32 %v7143_v28, %v7143_v28 }
 0x370   : > { %v7149_v29 = vsub.f32 %v6786_v57, %v3091_v42  ;;  %v3381_v44 = vsel %vm2845_vm1, %v3217_v23, 0.0  ;;  %v7155_v33 = vsub.f32 %v6782_v1, %v3092_v51  ;;  %v3384_v26 = vsel %vm2845_vm1, %v3218_v14, 0.0 }
 0x371   : > { %v3010_v8 = vpop.xlane.xlu0 %3009  ;;  %v3013_v30 = vpop.xlane.xlu1 %3012  ;;  %3385 = vadd.xlane.f32.xlu1 %v3384_v26  ;;  %3382 = vadd.xlane.f32.xlu0 %v3381_v44 }
 0x372   : > { %v3093_v11 = vmul.f32 0.03125, %v3010_v8  ;;  %v3219_v0 = vmul.f32 %v7149_v29, %v7149_v29  ;;  %v3094_v42 = vmul.f32 0.03125, %v3013_v30  ;;  %v3220_v41 = vmul.f32 %v7155_v33, %v7155_v33 }
 0x374   : > { %v7161_v57 = vsub.f32 %v6794_v9, %v3093_v11  ;;  %v3387_v1 = vsel %vm2845_vm1, %v3219_v0, 0.0  ;;  %v7167_v51 = vsub.f32 %v6796_v54, %v3094_v42  ;;  %v3390_v8 = vsel %vm2845_vm1, %v3220_v41, 0.0 }
 0x375   : > { %v3016_v23 = vpop.xlane.xlu0 %3015  ;;  %v3019_v44 = vpop.xlane.xlu1 %3018  ;;  %3391 = vadd.xlane.f32.xlu1 %v3390_v8  ;;  %3388 = vadd.xlane.f32.xlu0 %v3387_v1 }
 0x376   : > { %v3095_v14 = vmul.f32 0.03125, %v3016_v23  ;;  %v3221_v26 = vmul.f32 %v7161_v57, %v7161_v57  ;;  %v3096_v11 = vmul.f32 0.03125, %v3019_v44  ;;  %v3222_v30 = vmul.f32 %v7167_v51, %v7167_v51 }
 0x378   : > { %v7173_v9 = vsub.f32 %v6802_v27, %v3095_v14  ;;  %v3393_v54 = vsel %vm2845_vm1, %v3221_v26, 0.0  ;;  %v7179_v42 = vsub.f32 %v6806_v4, %v3096_v11  ;;  %v3396_v23 = vsel %vm2845_vm1, %v3222_v30, 0.0 }
 0x379   : > { %v3022_v0 = vpop.xlane.xlu0 %3021  ;;  %v3025_v1 = vpop.xlane.xlu1 %3024  ;;  %3397 = vadd.xlane.f32.xlu1 %v3396_v23  ;;  %3394 = vadd.xlane.f32.xlu0 %v3393_v54 }
 0x37a   : > { %v3097_v41 = vmul.f32 0.03125, %v3022_v0  ;;  %v3223_v8 = vmul.f32 %v7173_v9, %v7173_v9  ;;  %v3098_v14 = vmul.f32 0.03125, %v3025_v1  ;;  %v3224_v44 = vmul.f32 %v7179_v42, %v7179_v42 }
 0x37c   : > { %v7185_v27 = vsub.f32 %v6812_v19, %v3097_v41  ;;  %v3399_v4 = vsel %vm2845_vm1, %v3223_v8, 0.0  ;;  %v7191_v11 = vsub.f32 %v6816_v2, %v3098_v14  ;;  %v3402_v0 = vsel %vm2845_vm1, %v3224_v44, 0.0 }
 0x37d   : > { %v3028_v26 = vpop.xlane.xlu0 %3027  ;;  %v3031_v54 = vpop.xlane.xlu1 %3030  ;;  %3403 = vadd.xlane.f32.xlu1 %v3402_v0  ;;  %3400 = vadd.xlane.f32.xlu0 %v3399_v4 }
 0x37e   : > { %7770 = vst [vmem:[#allocation8_spill] sm:$0xff] %v7185_v27  ;;  %v3099_v30 = vmul.f32 0.03125, %v3028_v26  ;;  %v3225_v23 = vmul.f32 %v7185_v27, %v7185_v27  ;;  %v3100_v41 = vmul.f32 0.03125, %v3031_v54  ;;  %v3226_v1 = vmul.f32 %v7191_v11, %v7191_v11 }
 0x380   : > { %v7197_v19 = vsub.f32 %v6822_v6, %v3099_v30  ;;  %v3405_v2 = vsel %vm2845_vm1, %v3225_v23, 0.0  ;;  %v7203_v14 = vsub.f32 %v6826_v47, %v3100_v41  ;;  %v3408_v26 = vsel %vm2845_vm1, %v3226_v1, 0.0 }
 0x381   : > { %v3034_v8 = vpop.xlane.xlu0 %3033  ;;  %v3037_v4 = vpop.xlane.xlu1 %3036  ;;  %3409 = vadd.xlane.f32.xlu1 %v3408_v26  ;;  %3406 = vadd.xlane.f32.xlu0 %v3405_v2 }
 0x382   : > { %7771 = vst [vmem:[#allocation16_spill] sm:$0xff] %v7197_v19  ;;  %7772 = vst [vmem:[#allocation9_spill] sm:$0xff] %v7203_v14  ;;  %v3101_v44 = vmul.f32 0.03125, %v3034_v8  ;;  %v3227_v0 = vmul.f32 %v7197_v19, %v7197_v19  ;;  %v3102_v30 = vmul.f32 0.03125, %v3037_v4  ;;  %v3228_v54 = vmul.f32 %v7203_v14, %v7203_v14 }
 0x384   : > { %v7209_v6 = vsub.f32 %v6832_v52, %v3101_v44  ;;  %v7214_v23 = vsub.f32 %v6834_v38, %v3102_v30  ;;  %v3414_v47 = vsel %vm2845_vm1, %v3228_v54, 0.0  ;;  %v3411_v41 = vsel %vm2845_vm1, %v3227_v0, 0.0 }
 0x385   : > { %3415 = vadd.xlane.f32.xlu1 %v3414_v47  ;;  %3412 = vadd.xlane.f32.xlu0 %v3411_v41 }
 0x386   : > { %7773 = vst [vmem:[#allocation17_spill] sm:$0xff] %v7209_v6  ;;  %7774 = vst [vmem:[#allocation10_spill] sm:$0xff] %v7214_v23  ;;  %v3229_v1 = vmul.f32 %v7209_v6, %v7209_v6  ;;  %v3230_v52 = vmul.f32 %v7214_v23, %v7214_v23 }
 0x388   : > { %v3420_v8 = vsel %vm2845_vm1, %v3230_v52, 0.0  ;;  %v3417_v2 = vsel %vm2845_vm1, %v3229_v1, 0.0 }
 0x389   : > { %3421 = vadd.xlane.f32.xlu1 %v3420_v8  ;;  %3418 = vadd.xlane.f32.xlu0 %v3417_v2 }
 0x392   : > { %v3236_v38 = vpop.xlane.xlu1 %3235 }
 0x393   : > { %v3424_v44 = vmul.f32 0.03125, %v3236_v38 }
 0x395   : > { %v3488_v26 = vadd.f32 1e-05, %v3424_v44 }
 0x396   : > { %v3242_v4 = vpop.xlane.xlu1 %3241  ;;  %v3233_v30 = vpop.xlane.xlu0 %3232 }
 0x397   : > { %4472 = vrsqrt.f32 %v3488_v26  ;;  %v3426_v0 = vmul.f32 0.03125, %v3242_v4  ;;  %v3423_v54 = vmul.f32 0.03125, %v3233_v30 }
 0x399   : > { %v3490_v47 = vadd.f32 1e-05, %v3426_v0  ;;  %v3487_v41 = vadd.f32 1e-05, %v3423_v54 }
 0x39a   : > { %v3239_v6 = vpop.xlane.xlu0 %3238 }
 0x39b   : > { %4474 = vrsqrt.f32 %v3490_v47  ;;  %v3425_v23 = vmul.f32 0.03125, %v3239_v6  ;;  %v7228_v6 = vld [vmem:[%s7603_s3] ss:$0 sm:$0xff] }
 0x39c   : > { %4476 = vrsqrt.f32 %v3487_v41  ;;  %v7236_v41 = vld [vmem:[%s7604_s4] ss:$0 sm:$0xff] }
 0x39d   : > { %v3489_v52 = vadd.f32 1e-05, %v3425_v23 }
 0x39e   : > { %v3248_v19 = vpop.xlane.xlu1 %3247  ;;  %v3245_v1 = vpop.xlane.xlu0 %3244 }
 0x39f   : > { %4478 = vrsqrt.f32 %v3489_v52  ;;  %v3428_v8 = vmul.f32 0.03125, %v3248_v19  ;;  %v3427_v2 = vmul.f32 0.03125, %v3245_v1 }
 0x3a1   : > { %v3492_v38 = vadd.f32 1e-05, %v3428_v8  ;;  %v3491_v44 = vadd.f32 1e-05, %v3427_v2 }
 0x3a2   : > { %v3254_v26 = vpop.xlane.xlu1 %3253  ;;  %v3251_v4 = vpop.xlane.xlu0 %3250 }
 0x3a3   : > { %4480 = vrsqrt.f32 %v3492_v38  ;;  %v3430_v30 = vmul.f32 0.03125, %v3254_v26  ;;  %v3429_v0 = vmul.f32 0.03125, %v3251_v4 }
 0x3a4   : > { %v4473_v54 = vpop.eup %4472  ;;  %4482 = vrsqrt.f32 %v3491_v44 }
 0x3a5   : > { %v3616_v19 = vmul.f32 %v4473_v54, %v6841_v37  ;;  %v3494_v23 = vadd.f32 1e-05, %v3430_v30  ;;  %v3493_v47 = vadd.f32 1e-05, %v3429_v0 }
 0x3a6   : > { %v3260_v52 = vpop.xlane.xlu1 %3259  ;;  %v3257_v1 = vpop.xlane.xlu0 %3256 }
 0x3a7   : > { %v3687_v8 = vmul.f32 %v7228_v6, %v3616_v19  ;;  %4484 = vrsqrt.f32 %v3494_v23  ;;  %v3432_v2 = vmul.f32 0.03125, %v3260_v52  ;;  %v3431_v38 = vmul.f32 0.03125, %v3257_v1 }
 0x3a8   : > { %v4475_v26 = vpop.eup %4474  ;;  %4486 = vrsqrt.f32 %v3493_v47 }
 0x3a9   : > { %v4477_v44 = vpop.eup %4476  ;;  %v3758_v4 = vadd.f32 %v7236_v41, %v3687_v8  ;;  %v3618_v37 = vmul.f32 %v4475_v26, %v6846_v25  ;;  %v3496_v30 = vadd.f32 1e-05, %v3432_v2  ;;  %v3495_v0 = vadd.f32 1e-05, %v3431_v38 }
 0x3aa   : > { %v3615_v54 = vmul.f32 %v4477_v44, %v6849_v20  ;;  %v3266_v14 = vpop.xlane.xlu1 %3265  ;;  %v3263_v27 = vpop.xlane.xlu0 %3262 }
 0x3ab   : > { %3822 = vst.msk [vmem:[%s7242_s25 + $0x8] sm:$0xff] %vm2845_vm1, %v3758_v4  ;;  %v3689_v19 = vmul.f32 %v7228_v6, %v3618_v37  ;;  %4488 = vrsqrt.f32 %v3496_v30  ;;  %v3434_v23 = vmul.f32 0.03125, %v3266_v14  ;;  %v3433_v47 = vmul.f32 0.03125, %v3263_v27 }
 0x3ac   : > { %v4479_v52 = vpop.eup %4478  ;;  %v3686_v25 = vmul.f32 %v7228_v6, %v3615_v54  ;;  %4490 = vrsqrt.f32 %v3495_v0 }
 0x3ad   : > { %v3760_v20 = vadd.f32 %v7236_v41, %v3689_v19  ;;  %v3617_v1 = vmul.f32 %v4479_v52, %v6857_v10  ;;  %v3498_v8 = vadd.f32 1e-05, %v3434_v23  ;;  %v3497_v2 = vadd.f32 1e-05, %v3433_v47 }
 0x3ae   : > { %v3757_v38 = vadd.f32 %v7236_v41, %v3686_v25  ;;  %v3272_v26 = vpop.xlane.xlu1 %3271  ;;  %v3269_v44 = vpop.xlane.xlu0 %3268 }
 0x3af   : > { %3824 = vst.msk [vmem:[%s7242_s25 + $0x18] sm:$0xff] %vm2845_vm1, %v3760_v20  ;;  %v3688_v27 = vmul.f32 %v7228_v6, %v3617_v1  ;;  %4492 = vrsqrt.f32 %v3498_v8  ;;  %v3436_v14 = vmul.f32 0.03125, %v3272_v26  ;;  %v3435_v4 = vmul.f32 0.03125, %v3269_v44 }
 0x3b0   : > { %v4481_v37 = vpop.eup %4480  ;;  %3821 = vst.msk [vmem:[%s7242_s25] sm:$0xff] %vm2845_vm1, %v3757_v38  ;;  %4494 = vrsqrt.f32 %v3497_v2 }
 0x3b1   : > { %v4483_v30 = vpop.eup %4482  ;;  %v3759_v10 = vadd.f32 %v7236_v41, %v3688_v27  ;;  %v3620_v0 = vmul.f32 %v4481_v37, %v6867_v45  ;;  %v3500_v54 = vadd.f32 1e-05, %v3436_v14  ;;  %v3499_v19 = vadd.f32 1e-05, %v3435_v4 }
 0x3b2   : > { %v3619_v23 = vmul.f32 %v4483_v30, %v6862_v60  ;;  %v3278_v47 = vpop.xlane.xlu1 %3277  ;;  %v3275_v52 = vpop.xlane.xlu0 %3274 }
 0x3b3   : > { %3823 = vst.msk [vmem:[%s7242_s25 + $0x10] sm:$0xff] %vm2845_vm1, %v3759_v10  ;;  %v3691_v25 = vmul.f32 %v7228_v6, %v3620_v0  ;;  %4496 = vrsqrt.f32 %v3500_v54  ;;  %v3438_v20 = vmul.f32 0.03125, %v3278_v47  ;;  %v3437_v1 = vmul.f32 0.03125, %v3275_v52 }
 0x3b4   : > { %v4485_v8 = vpop.eup %4484  ;;  %v3690_v2 = vmul.f32 %v7228_v6, %v3619_v23  ;;  %4498 = vrsqrt.f32 %v3499_v19 }
 0x3b5   : > { %v4487_v45 = vpop.eup %4486  ;;  %v3762_v38 = vadd.f32 %v7236_v41, %v3691_v25  ;;  %v3622_v60 = vmul.f32 %v4485_v8, %v6879_v46  ;;  %v3502_v26 = vadd.f32 1e-05, %v3438_v20  ;;  %v3501_v44 = vadd.f32 1e-05, %v3437_v1 }
 0x3b6   : > { %v3761_v27 = vadd.f32 %v7236_v41, %v3690_v2  ;;  %v3621_v14 = vmul.f32 %v4487_v45, %v6873_v3  ;;  %v3284_v4 = vpop.xlane.xlu1 %3283  ;;  %v3281_v37 = vpop.xlane.xlu0 %3280 }
 0x3b7   : > { %3826 = vst.msk [vmem:[%s7242_s25 + $0x28] sm:$0xff] %vm2845_vm1, %v3762_v38  ;;  %v3693_v30 = vmul.f32 %v7228_v6, %v3622_v60  ;;  %4500 = vrsqrt.f32 %v3502_v26  ;;  %v3440_v10 = vmul.f32 0.03125, %v3284_v4  ;;  %v3439_v0 = vmul.f32 0.03125, %v3281_v37 }
 0x3b8   : > { %v4489_v54 = vpop.eup %4488  ;;  %3825 = vst.msk [vmem:[%s7242_s25 + $0x20] sm:$0xff] %vm2845_vm1, %v3761_v27  ;;  %v3692_v46 = vmul.f32 %v7228_v6, %v3621_v14  ;;  %4502 = vrsqrt.f32 %v3501_v44  ;;  %v7775_v44 = vld [vmem:[#allocation31_spill] sm:$0xff] }
 0x3b9   : > { %v4491_v19 = vpop.eup %4490  ;;  %v3764_v3 = vadd.f32 %v7236_v41, %v3693_v30  ;;  %v3624_v23 = vmul.f32 %v4489_v54, %v6891_v24  ;;  %v3504_v47 = vadd.f32 1e-05, %v3440_v10  ;;  %v3503_v52 = vadd.f32 1e-05, %v3439_v0  ;;  %v7776_v30 = vld [vmem:[#allocation28_spill] sm:$0xff] }
 0x3ba   : > { %v3763_v25 = vadd.f32 %v7236_v41, %v3692_v46  ;;  %v3623_v20 = vmul.f32 %v4491_v19, %v6885_v63  ;;  %v3290_v1 = vpop.xlane.xlu1 %3289  ;;  %v3287_v8 = vpop.xlane.xlu0 %3286 }
 0x3bb   : > { %3828 = vst.msk [vmem:[%s7242_s25 + $0x38] sm:$0xff] %vm2845_vm1, %v3764_v3  ;;  %v3695_v2 = vmul.f32 %v7228_v6, %v3624_v23  ;;  %4504 = vrsqrt.f32 %v3504_v47  ;;  %v3442_v45 = vmul.f32 0.03125, %v3290_v1  ;;  %v3441_v38 = vmul.f32 0.03125, %v3287_v8 }
 0x3bc   : > { %v4493_v60 = vpop.eup %4492  ;;  %3827 = vst.msk [vmem:[%s7242_s25 + $0x30] sm:$0xff] %vm2845_vm1, %v3763_v25  ;;  %v3694_v24 = vmul.f32 %v7228_v6, %v3623_v20  ;;  %4506 = vrsqrt.f32 %v3503_v52 }
 0x3bd   : > { %v4495_v26 = vpop.eup %4494  ;;  %v3766_v63 = vadd.f32 %v7236_v41, %v3695_v2  ;;  %v3626_v27 = vmul.f32 %v4493_v60, %v7775_v44  ;;  %v3506_v14 = vadd.f32 1e-05, %v3442_v45  ;;  %v3505_v4 = vadd.f32 1e-05, %v3441_v38 }
 0x3be   : > { %v3765_v37 = vadd.f32 %v7236_v41, %v3694_v24  ;;  %v3625_v10 = vmul.f32 %v4495_v26, %v7776_v30  ;;  %v3296_v0 = vpop.xlane.xlu1 %3295  ;;  %v3293_v54 = vpop.xlane.xlu0 %3292 }
 0x3bf   : > { %3830 = vst.msk [vmem:[%s7242_s25 + $0x48] sm:$0xff] %vm2845_vm1, %v3766_v63  ;;  %v3697_v46 = vmul.f32 %v7228_v6, %v3626_v27  ;;  %4508 = vrsqrt.f32 %v3506_v14  ;;  %v3444_v19 = vmul.f32 0.03125, %v3296_v0  ;;  %v3443_v3 = vmul.f32 0.03125, %v3293_v54 }
 0x3c0   : > { %v4497_v23 = vpop.eup %4496  ;;  %3829 = vst.msk [vmem:[%s7242_s25 + $0x40] sm:$0xff] %vm2845_vm1, %v3765_v37  ;;  %v3696_v47 = vmul.f32 %v7228_v6, %v3625_v10  ;;  %4510 = vrsqrt.f32 %v3505_v4  ;;  %v7777_v10 = vld [vmem:[#allocation30_spill] sm:$0xff] }
 0x3c1   : > { %v4499_v52 = vpop.eup %4498  ;;  %v3768_v25 = vadd.f32 %v7236_v41, %v3697_v46  ;;  %v3628_v20 = vmul.f32 %v4497_v23, %v6915_v34  ;;  %v3508_v1 = vadd.f32 1e-05, %v3444_v19  ;;  %v3507_v8 = vadd.f32 1e-05, %v3443_v3 }
 0x3c2   : > { %v3767_v2 = vadd.f32 %v7236_v41, %v3696_v47  ;;  %v3627_v45 = vmul.f32 %v4499_v52, %v6909_v48  ;;  %v3302_v38 = vpop.xlane.xlu1 %3301  ;;  %v3299_v60 = vpop.xlane.xlu0 %3298 }
 0x3c3   : > { %3832 = vst.msk [vmem:[%s7242_s25 + $0x58] sm:$0xff] %vm2845_vm1, %v3768_v25  ;;  %v3699_v24 = vmul.f32 %v7228_v6, %v3628_v20  ;;  %4512 = vrsqrt.f32 %v3508_v1  ;;  %v3446_v26 = vmul.f32 0.03125, %v3302_v38  ;;  %v3445_v63 = vmul.f32 0.03125, %v3299_v60 }
 0x3c4   : > { %v4501_v44 = vpop.eup %4500  ;;  %3831 = vst.msk [vmem:[%s7242_s25 + $0x50] sm:$0xff] %vm2845_vm1, %v3767_v2  ;;  %v3698_v34 = vmul.f32 %v7228_v6, %v3627_v45  ;;  %4514 = vrsqrt.f32 %v3507_v8 }
 0x3c5   : > { %v4503_v27 = vpop.eup %4502  ;;  %v3770_v48 = vadd.f32 %v7236_v41, %v3699_v24  ;;  %v3630_v14 = vmul.f32 %v4501_v44, %v6927_v21  ;;  %v3510_v4 = vadd.f32 1e-05, %v3446_v26  ;;  %v3509_v37 = vadd.f32 1e-05, %v3445_v63 }
 0x3c6   : > { %v3769_v30 = vadd.f32 %v7236_v41, %v3698_v34  ;;  %v3629_v0 = vmul.f32 %v4503_v27, %v7777_v10  ;;  %v3308_v54 = vpop.xlane.xlu1 %3307  ;;  %v3305_v46 = vpop.xlane.xlu0 %3304 }
 0x3c7   : > { %3834 = vst.msk [vmem:[%s7242_s25 + $0x68] sm:$0xff] %vm2845_vm1, %v3770_v48  ;;  %v3701_v19 = vmul.f32 %v7228_v6, %v3630_v14  ;;  %4516 = vrsqrt.f32 %v3510_v4  ;;  %v3448_v3 = vmul.f32 0.03125, %v3308_v54  ;;  %v3447_v23 = vmul.f32 0.03125, %v3305_v46 }
 0x3c8   : > { %v4505_v47 = vpop.eup %4504  ;;  %3833 = vst.msk [vmem:[%s7242_s25 + $0x60] sm:$0xff] %vm2845_vm1, %v3769_v30  ;;  %v3700_v21 = vmul.f32 %v7228_v6, %v3629_v0  ;;  %4518 = vrsqrt.f32 %v3509_v37 }
 0x3c9   : > { %v4507_v52 = vpop.eup %4506  ;;  %v3772_v25 = vadd.f32 %v7236_v41, %v3701_v19  ;;  %v3632_v20 = vmul.f32 %v4505_v47, %v6939_v50  ;;  %v3512_v1 = vadd.f32 1e-05, %v3448_v3  ;;  %v3511_v8 = vadd.f32 1e-05, %v3447_v23 }
 0x3ca   : > { %v3771_v2 = vadd.f32 %v7236_v41, %v3700_v21  ;;  %v3631_v45 = vmul.f32 %v4507_v52, %v6933_v53  ;;  %v3314_v38 = vpop.xlane.xlu1 %3313  ;;  %v3311_v60 = vpop.xlane.xlu0 %3310 }
 0x3cb   : > { %3836 = vst.msk [vmem:[%s7242_s25 + $0x78] sm:$0xff] %vm2845_vm1, %v3772_v25  ;;  %v3703_v24 = vmul.f32 %v7228_v6, %v3632_v20  ;;  %4520 = vrsqrt.f32 %v3512_v1  ;;  %v3450_v26 = vmul.f32 0.03125, %v3314_v38  ;;  %v3449_v63 = vmul.f32 0.03125, %v3311_v60 }
 0x3cc   : > { %v4509_v44 = vpop.eup %4508  ;;  %3835 = vst.msk [vmem:[%s7242_s25 + $0x70] sm:$0xff] %vm2845_vm1, %v3771_v2  ;;  %v3702_v50 = vmul.f32 %v7228_v6, %v3631_v45  ;;  %4522 = vrsqrt.f32 %v3511_v8 }
 0x3cd   : > { %v4511_v34 = vpop.eup %4510  ;;  %v3774_v53 = vadd.f32 %v7236_v41, %v3703_v24  ;;  %v3634_v27 = vmul.f32 %v4509_v44, %v6951_v17  ;;  %v3514_v48 = vadd.f32 1e-05, %v3450_v26  ;;  %v3513_v14 = vadd.f32 1e-05, %v3449_v63 }
 0x3ce   : > { %v3773_v4 = vadd.f32 %v7236_v41, %v3702_v50  ;;  %v3633_v37 = vmul.f32 %v4511_v34, %v6945_v62  ;;  %v3320_v30 = vpop.xlane.xlu1 %3319  ;;  %v3317_v10 = vpop.xlane.xlu0 %3316 }
 0x3cf   : > { %3838 = vst.msk [vmem:[%s7242_s25 + $0x88] sm:$0xff] %vm2845_vm1, %v3774_v53  ;;  %v3705_v0 = vmul.f32 %v7228_v6, %v3634_v27  ;;  %4524 = vrsqrt.f32 %v3514_v48  ;;  %v3452_v54 = vmul.f32 0.03125, %v3320_v30  ;;  %v3451_v46 = vmul.f32 0.03125, %v3317_v10 }
 0x3d0   : > { %v4513_v19 = vpop.eup %4512  ;;  %3837 = vst.msk [vmem:[%s7242_s25 + $0x80] sm:$0xff] %vm2845_vm1, %v3773_v4  ;;  %v3704_v17 = vmul.f32 %v7228_v6, %v3633_v37  ;;  %4526 = vrsqrt.f32 %v3513_v14 }
 0x3d1   : > { %v4515_v3 = vpop.eup %4514  ;;  %v3776_v62 = vadd.f32 %v7236_v41, %v3705_v0  ;;  %v3636_v23 = vmul.f32 %v4513_v19, %v6963_v61  ;;  %v3516_v47 = vadd.f32 1e-05, %v3452_v54  ;;  %v3515_v21 = vadd.f32 1e-05, %v3451_v46 }
 0x3d2   : > { %v3775_v52 = vadd.f32 %v7236_v41, %v3704_v17  ;;  %v3635_v25 = vmul.f32 %v4515_v3, %v6957_v56  ;;  %v3326_v20 = vpop.xlane.xlu1 %3325  ;;  %v3323_v1 = vpop.xlane.xlu0 %3322 }
 0x3d3   : > { %3840 = vst.msk [vmem:[%s7242_s25 + $0x98] sm:$0xff] %vm2845_vm1, %v3776_v62  ;;  %v3707_v8 = vmul.f32 %v7228_v6, %v3636_v23  ;;  %4528 = vrsqrt.f32 %v3516_v47  ;;  %v3454_v2 = vmul.f32 0.03125, %v3326_v20  ;;  %v3453_v45 = vmul.f32 0.03125, %v3323_v1 }
 0x3d4   : > { %v4517_v38 = vpop.eup %4516  ;;  %3839 = vst.msk [vmem:[%s7242_s25 + $0x90] sm:$0xff] %vm2845_vm1, %v3775_v52  ;;  %v3706_v61 = vmul.f32 %v7228_v6, %v3635_v25  ;;  %4530 = vrsqrt.f32 %v3515_v21 }
 0x3d5   : > { %v4519_v60 = vpop.eup %4518  ;;  %v3778_v56 = vadd.f32 %v7236_v41, %v3707_v8  ;;  %v3638_v24 = vmul.f32 %v4517_v38, %v6975_v59  ;;  %v3518_v26 = vadd.f32 1e-05, %v3454_v2  ;;  %v3517_v63 = vadd.f32 1e-05, %v3453_v45 }
 0x3d6   : > { %v3777_v44 = vadd.f32 %v7236_v41, %v3706_v61  ;;  %v3637_v50 = vmul.f32 %v4519_v60, %v6969_v16  ;;  %v3332_v34 = vpop.xlane.xlu1 %3331  ;;  %v3329_v53 = vpop.xlane.xlu0 %3328 }
 0x3d7   : > { %3842 = vst.msk [vmem:[%s7242_s25 + $0xa8] sm:$0xff] %vm2845_vm1, %v3778_v56  ;;  %v3709_v27 = vmul.f32 %v7228_v6, %v3638_v24  ;;  %4532 = vrsqrt.f32 %v3518_v26  ;;  %v3456_v48 = vmul.f32 0.03125, %v3332_v34  ;;  %v3455_v14 = vmul.f32 0.03125, %v3329_v53  ;;  %v7778_v34 = vld [vmem:[#allocation33_spill] sm:$0xff] }
 0x3d8   : > { %v4521_v4 = vpop.eup %4520  ;;  %3841 = vst.msk [vmem:[%s7242_s25 + $0xa0] sm:$0xff] %vm2845_vm1, %v3777_v44  ;;  %v3708_v59 = vmul.f32 %v7228_v6, %v3637_v50  ;;  %4534 = vrsqrt.f32 %v3517_v63 }
 0x3d9   : > { %v4523_v37 = vpop.eup %4522  ;;  %v3780_v16 = vadd.f32 %v7236_v41, %v3709_v27  ;;  %v3640_v30 = vmul.f32 %v4521_v4, %v6987_v31  ;;  %v3520_v10 = vadd.f32 1e-05, %v3456_v48  ;;  %v3519_v0 = vadd.f32 1e-05, %v3455_v14 }
 0x3da   : > { %v3779_v54 = vadd.f32 %v7236_v41, %v3708_v59  ;;  %v3639_v46 = vmul.f32 %v4523_v37, %v6981_v35  ;;  %v3338_v19 = vpop.xlane.xlu1 %3337  ;;  %v3335_v17 = vpop.xlane.xlu0 %3334 }
 0x3db   : > { %3844 = vst.msk [vmem:[%s7242_s25 + $0xb8] sm:$0xff] %vm2845_vm1, %v3780_v16  ;;  %v3711_v3 = vmul.f32 %v7228_v6, %v3640_v30  ;;  %4536 = vrsqrt.f32 %v3520_v10  ;;  %v3458_v62 = vmul.f32 0.03125, %v3338_v19  ;;  %v3457_v23 = vmul.f32 0.03125, %v3335_v17  ;;  %v7779_v19 = vld [vmem:[#allocation32_spill] sm:$0xff] }
 0x3dc   : > { %v4525_v47 = vpop.eup %4524  ;;  %3843 = vst.msk [vmem:[%s7242_s25 + $0xb0] sm:$0xff] %vm2845_vm1, %v3779_v54  ;;  %v3710_v31 = vmul.f32 %v7228_v6, %v3639_v46  ;;  %4538 = vrsqrt.f32 %v3519_v0 }
 0x3dd   : > { %v4527_v21 = vpop.eup %4526  ;;  %v3782_v35 = vadd.f32 %v7236_v41, %v3711_v3  ;;  %v3642_v52 = vmul.f32 %v4525_v47, %v6999_v7  ;;  %v3522_v25 = vadd.f32 1e-05, %v3458_v62  ;;  %v3521_v20 = vadd.f32 1e-05, %v3457_v23 }
 0x3de   : > { %v3781_v1 = vadd.f32 %v7236_v41, %v3710_v31  ;;  %v3641_v8 = vmul.f32 %v4527_v21, %v6993_v43  ;;  %v3344_v2 = vpop.xlane.xlu1 %3343  ;;  %v3341_v45 = vpop.xlane.xlu0 %3340 }
 0x3df   : > { %3846 = vst.msk [vmem:[%s7242_s25 + $0xc8] sm:$0xff] %vm2845_vm1, %v3782_v35  ;;  %v3713_v38 = vmul.f32 %v7228_v6, %v3642_v52  ;;  %4540 = vrsqrt.f32 %v3522_v25  ;;  %v3460_v61 = vmul.f32 0.03125, %v3344_v2  ;;  %v3459_v60 = vmul.f32 0.03125, %v3341_v45  ;;  %v7780_v2 = vld [vmem:[#allocation12_spill] sm:$0xff] }
 0x3e0   : > { %v4529_v56 = vpop.eup %4528  ;;  %3845 = vst.msk [vmem:[%s7242_s25 + $0xc0] sm:$0xff] %vm2845_vm1, %v3781_v1  ;;  %v3712_v7 = vmul.f32 %v7228_v6, %v3641_v8  ;;  %4542 = vrsqrt.f32 %v3521_v20 }
 0x3e1   : > { %v4531_v24 = vpop.eup %4530  ;;  %v3784_v43 = vadd.f32 %v7236_v41, %v3713_v38  ;;  %v3644_v26 = vmul.f32 %v4529_v56, %v7011_v39  ;;  %v3524_v63 = vadd.f32 1e-05, %v3460_v61  ;;  %v3523_v44 = vadd.f32 1e-05, %v3459_v60 }
 0x3e2   : > { %v3783_v50 = vadd.f32 %v7236_v41, %v3712_v7  ;;  %v3643_v53 = vmul.f32 %v4531_v24, %v7778_v34  ;;  %v3350_v27 = vpop.xlane.xlu1 %3349  ;;  %v3347_v48 = vpop.xlane.xlu0 %3346 }
 0x3e3   : > { %3848 = vst.msk [vmem:[%s7242_s25 + $0xd8] sm:$0xff] %vm2845_vm1, %v3784_v43  ;;  %v3715_v14 = vmul.f32 %v7228_v6, %v3644_v26  ;;  %4544 = vrsqrt.f32 %v3524_v63  ;;  %v3462_v4 = vmul.f32 0.03125, %v3350_v27  ;;  %v3461_v59 = vmul.f32 0.03125, %v3347_v48 }
 0x3e4   : > { %v4533_v37 = vpop.eup %4532  ;;  %3847 = vst.msk [vmem:[%s7242_s25 + $0xd0] sm:$0xff] %vm2845_vm1, %v3783_v50  ;;  %v3714_v39 = vmul.f32 %v7228_v6, %v3643_v53  ;;  %4546 = vrsqrt.f32 %v3523_v44  ;;  %v7781_v53 = vld [vmem:[#allocation34_spill] sm:$0xff] }
 0x3e5   : > { %v4535_v16 = vpop.eup %4534  ;;  %v3786_v30 = vadd.f32 %v7236_v41, %v3715_v14  ;;  %v3646_v10 = vmul.f32 %v4533_v37, %v7023_v22  ;;  %v3526_v0 = vadd.f32 1e-05, %v3462_v4  ;;  %v3525_v54 = vadd.f32 1e-05, %v3461_v59 }
 0x3e6   : > { %v3785_v46 = vadd.f32 %v7236_v41, %v3714_v39  ;;  %v3645_v17 = vmul.f32 %v4535_v16, %v7779_v19  ;;  %v3356_v3 = vpop.xlane.xlu1 %3355  ;;  %v3353_v62 = vpop.xlane.xlu0 %3352  ;;  %v7782_v19 = vld [vmem:[#allocation13_spill] sm:$0xff] }
 0x3e7   : > { %3850 = vst.msk [vmem:[%s7242_s25 + $0xe8] sm:$0xff] %vm2845_vm1, %v3786_v30  ;;  %v3717_v23 = vmul.f32 %v7228_v6, %v3646_v10  ;;  %4548 = vrsqrt.f32 %v3526_v0  ;;  %v3464_v47 = vmul.f32 0.03125, %v3356_v3  ;;  %v3463_v31 = vmul.f32 0.03125, %v3353_v62 }
 0x3e8   : > { %v4537_v21 = vpop.eup %4536  ;;  %3849 = vst.msk [vmem:[%s7242_s25 + $0xe0] sm:$0xff] %vm2845_vm1, %v3785_v46  ;;  %v3716_v22 = vmul.f32 %v7228_v6, %v3645_v17  ;;  %4550 = vrsqrt.f32 %v3525_v54 }
 0x3e9   : > { %v4539_v35 = vpop.eup %4538  ;;  %v3788_v52 = vadd.f32 %v7236_v41, %v3717_v23  ;;  %v3648_v25 = vmul.f32 %v4537_v21, %v7035_v15  ;;  %v3528_v20 = vadd.f32 1e-05, %v3464_v47  ;;  %v3527_v1 = vadd.f32 1e-05, %v3463_v31 }
 0x3ea   : > { %v3787_v8 = vadd.f32 %v7236_v41, %v3716_v22  ;;  %v3647_v45 = vmul.f32 %v4539_v35, %v7780_v2  ;;  %v3362_v38 = vpop.xlane.xlu1 %3361  ;;  %v3359_v61 = vpop.xlane.xlu0 %3358 }
 0x3eb   : > { %3852 = vst.msk [vmem:[%s7242_s25 + $0xf8] sm:$0xff] %vm2845_vm1, %v3788_v52  ;;  %v3719_v60 = vmul.f32 %v7228_v6, %v3648_v25  ;;  %4552 = vrsqrt.f32 %v3528_v20  ;;  %v3466_v56 = vmul.f32 0.03125, %v3362_v38  ;;  %v3465_v7 = vmul.f32 0.03125, %v3359_v61 }
 0x3ec   : > { %v4541_v24 = vpop.eup %4540  ;;  %3851 = vst.msk [vmem:[%s7242_s25 + $0xf0] sm:$0xff] %vm2845_vm1, %v3787_v8  ;;  %v3718_v15 = vmul.f32 %v7228_v6, %v3647_v45  ;;  %4554 = vrsqrt.f32 %v3527_v1  ;;  %v7783_v8 = vld [vmem:[#allocation5_spill] sm:$0xff] }
 0x3ed   : > { %v4543_v43 = vpop.eup %4542  ;;  %v3790_v26 = vadd.f32 %v7236_v41, %v3719_v60  ;;  %v3650_v63 = vmul.f32 %v4541_v24, %v7047_v58  ;;  %v3530_v44 = vadd.f32 1e-05, %v3466_v56  ;;  %v3529_v50 = vadd.f32 1e-05, %v3465_v7 }
 0x3ee   : > { %v3789_v34 = vadd.f32 %v7236_v41, %v3718_v15  ;;  %v3649_v27 = vmul.f32 %v4543_v43, %v7781_v53  ;;  %v3368_v48 = vpop.xlane.xlu1 %3367  ;;  %v3365_v14 = vpop.xlane.xlu0 %3364 }
 0x3ef   : > { %3854 = vst.msk [vmem:[%s7242_s25 + $0x108] sm:$0xff] %vm2845_vm1, %v3790_v26  ;;  %v3721_v4 = vmul.f32 %v7228_v6, %v3650_v63  ;;  %4556 = vrsqrt.f32 %v3530_v44  ;;  %v3468_v59 = vmul.f32 0.03125, %v3368_v48  ;;  %v3467_v37 = vmul.f32 0.03125, %v3365_v14 }
 0x3f0   : > { %v4545_v39 = vpop.eup %4544  ;;  %3853 = vst.msk [vmem:[%s7242_s25 + $0x100] sm:$0xff] %vm2845_vm1, %v3789_v34  ;;  %v3720_v58 = vmul.f32 %v7228_v6, %v3649_v27  ;;  %4558 = vrsqrt.f32 %v3529_v50  ;;  %v7784_v50 = vld [vmem:[#allocation14_spill] sm:$0xff] }
 0x3f1   : > { %v4547_v16 = vpop.eup %4546  ;;  %v3792_v30 = vadd.f32 %v7236_v41, %v3721_v4  ;;  %v3652_v10 = vmul.f32 %v4545_v39, %v7059_v12  ;;  %v3532_v0 = vadd.f32 1e-05, %v3468_v59  ;;  %v3531_v54 = vadd.f32 1e-05, %v3467_v37 }
 0x3f2   : > { %v3791_v46 = vadd.f32 %v7236_v41, %v3720_v58  ;;  %v3651_v17 = vmul.f32 %v4547_v16, %v7782_v19  ;;  %v3374_v3 = vpop.xlane.xlu1 %3373  ;;  %v3371_v62 = vpop.xlane.xlu0 %3370  ;;  %v7785_v58 = vld [vmem:[#allocation7_spill] sm:$0xff] }
 0x3f3   : > { %3856 = vst.msk [vmem:[%s7242_s25 + $0x118] sm:$0xff] %vm2845_vm1, %v3792_v30  ;;  %v3723_v23 = vmul.f32 %v7228_v6, %v3652_v10  ;;  %4560 = vrsqrt.f32 %v3532_v0  ;;  %v3470_v47 = vmul.f32 0.03125, %v3374_v3  ;;  %v3469_v31 = vmul.f32 0.03125, %v3371_v62 }
 0x3f4   : > { %v4549_v21 = vpop.eup %4548  ;;  %3855 = vst.msk [vmem:[%s7242_s25 + $0x110] sm:$0xff] %vm2845_vm1, %v3791_v46  ;;  %v3722_v12 = vmul.f32 %v7228_v6, %v3651_v17  ;;  %4562 = vrsqrt.f32 %v3531_v54  ;;  %v7786_v54 = vld [vmem:[#allocation6_spill] sm:$0xff] }
 0x3f5   : > { %v4551_v22 = vpop.eup %4550  ;;  %v3794_v35 = vadd.f32 %v7236_v41, %v3723_v23  ;;  %v3654_v52 = vmul.f32 %v4549_v21, %v7071_v18  ;;  %v3534_v25 = vadd.f32 1e-05, %v3470_v47  ;;  %v3533_v20 = vadd.f32 1e-05, %v3469_v31 }
 0x3f6   : > { %v3793_v1 = vadd.f32 %v7236_v41, %v3722_v12  ;;  %v3653_v2 = vmul.f32 %v4551_v22, %v7783_v8  ;;  %v3380_v45 = vpop.xlane.xlu1 %3379  ;;  %v3377_v38 = vpop.xlane.xlu0 %3376 }
 0x3f7   : > { %3858 = vst.msk [vmem:[%s7242_s25 + $0x128] sm:$0xff] %vm2845_vm1, %v3794_v35  ;;  %v3725_v61 = vmul.f32 %v7228_v6, %v3654_v52  ;;  %4564 = vrsqrt.f32 %v3534_v25  ;;  %v3472_v60 = vmul.f32 0.03125, %v3380_v45  ;;  %v3471_v56 = vmul.f32 0.03125, %v3377_v38 }
 0x3f8   : > { %v4553_v7 = vpop.eup %4552  ;;  %3857 = vst.msk [vmem:[%s7242_s25 + $0x120] sm:$0xff] %vm2845_vm1, %v3793_v1  ;;  %v3724_v18 = vmul.f32 %v7228_v6, %v3653_v2  ;;  %4566 = vrsqrt.f32 %v3533_v20  ;;  %v7787_v20 = vld [vmem:[#allocation15_spill] sm:$0xff] }
 0x3f9   : > { %v4555_v24 = vpop.eup %4554  ;;  %v3796_v15 = vadd.f32 %v7236_v41, %v3725_v61  ;;  %v3656_v43 = vmul.f32 %v4553_v7, %v7083_v49  ;;  %v3536_v26 = vadd.f32 1e-05, %v3472_v60  ;;  %v3535_v63 = vadd.f32 1e-05, %v3471_v56 }
 0x3fa   : > { %v3795_v44 = vadd.f32 %v7236_v41, %v3724_v18  ;;  %v3655_v34 = vmul.f32 %v4555_v24, %v7784_v50  ;;  %v3386_v53 = vpop.xlane.xlu1 %3385  ;;  %v3383_v27 = vpop.xlane.xlu0 %3382 }
 0x3fb   : > { %3860 = vst.msk [vmem:[%s7242_s25 + $0x138] sm:$0xff] %vm2845_vm1, %v3796_v15  ;;  %v3727_v48 = vmul.f32 %v7228_v6, %v3656_v43  ;;  %4568 = vrsqrt.f32 %v3536_v26  ;;  %v3474_v14 = vmul.f32 0.03125, %v3386_v53  ;;  %v3473_v4 = vmul.f32 0.03125, %v3383_v27 }
 0x3fc   : > { %v4557_v59 = vpop.eup %4556  ;;  %3859 = vst.msk [vmem:[%s7242_s25 + $0x130] sm:$0xff] %vm2845_vm1, %v3795_v44  ;;  %v3726_v49 = vmul.f32 %v7228_v6, %v3655_v34  ;;  %4570 = vrsqrt.f32 %v3535_v63 }
 0x3fd   : > { %v4559_v37 = vpop.eup %4558  ;;  %v3798_v39 = vadd.f32 %v7236_v41, %v3727_v48  ;;  %v3658_v16 = vmul.f32 %v4557_v59, %v7785_v58  ;;  %v3538_v30 = vadd.f32 1e-05, %v3474_v14  ;;  %v3537_v10 = vadd.f32 1e-05, %v3473_v4 }
 0x3fe   : > { %v3797_v0 = vadd.f32 %v7236_v41, %v3726_v49  ;;  %v3657_v46 = vmul.f32 %v4559_v37, %v7786_v54  ;;  %v3392_v19 = vpop.xlane.xlu1 %3391  ;;  %v3389_v17 = vpop.xlane.xlu0 %3388 }
 0x3ff   : > { %3862 = vst.msk [vmem:[%s7242_s25 + $0x148] sm:$0xff] %vm2845_vm1, %v3798_v39  ;;  %v3729_v3 = vmul.f32 %v7228_v6, %v3658_v16  ;;  %4572 = vrsqrt.f32 %v3538_v30  ;;  %v3476_v62 = vmul.f32 0.03125, %v3392_v19  ;;  %v3475_v23 = vmul.f32 0.03125, %v3389_v17 }
 0x400   : > { %v4561_v47 = vpop.eup %4560  ;;  %3861 = vst.msk [vmem:[%s7242_s25 + $0x140] sm:$0xff] %vm2845_vm1, %v3797_v0  ;;  %v3728_v31 = vmul.f32 %v7228_v6, %v3657_v46  ;;  %4574 = vrsqrt.f32 %v3537_v10 }
 0x401   : > { %v4563_v21 = vpop.eup %4562  ;;  %v3800_v12 = vadd.f32 %v7236_v41, %v3729_v3  ;;  %v3660_v22 = vmul.f32 %v4561_v47, %v7107_v13  ;;  %v3540_v35 = vadd.f32 1e-05, %v3476_v62  ;;  %v3539_v52 = vadd.f32 1e-05, %v3475_v23 }
 0x402   : > { %v3799_v25 = vadd.f32 %v7236_v41, %v3728_v31  ;;  %v3659_v1 = vmul.f32 %v4563_v21, %v7787_v20  ;;  %v3398_v8 = vpop.xlane.xlu1 %3397  ;;  %v3395_v2 = vpop.xlane.xlu0 %3394 }
 0x403   : > { %3864 = vst.msk [vmem:[%s7242_s25 + $0x158] sm:$0xff] %vm2845_vm1, %v3800_v12  ;;  %v3731_v45 = vmul.f32 %v7228_v6, %v3660_v22  ;;  %4576 = vrsqrt.f32 %v3540_v35  ;;  %v3478_v38 = vmul.f32 0.03125, %v3398_v8  ;;  %v3477_v61 = vmul.f32 0.03125, %v3395_v2 }
 0x404   : > { %v4565_v60 = vpop.eup %4564  ;;  %3863 = vst.msk [vmem:[%s7242_s25 + $0x150] sm:$0xff] %vm2845_vm1, %v3799_v25  ;;  %v3730_v13 = vmul.f32 %v7228_v6, %v3659_v1  ;;  %4578 = vrsqrt.f32 %v3539_v52 }
 0x405   : > { %v4567_v56 = vpop.eup %4566  ;;  %v3802_v7 = vadd.f32 %v7236_v41, %v3731_v45  ;;  %v3662_v18 = vmul.f32 %v4565_v60, %v7119_v32  ;;  %v3542_v24 = vadd.f32 1e-05, %v3478_v38  ;;  %v3541_v15 = vadd.f32 1e-05, %v3477_v61 }
 0x406   : > { %v3801_v43 = vadd.f32 %v7236_v41, %v3730_v13  ;;  %v3661_v26 = vmul.f32 %v4567_v56, %v7113_v40  ;;  %v3404_v63 = vpop.xlane.xlu1 %3403  ;;  %v3401_v44 = vpop.xlane.xlu0 %3400 }
 0x407   : > { %3866 = vst.msk [vmem:[%s7242_s25 + $0x168] sm:$0xff] %vm2845_vm1, %v3802_v7  ;;  %v3733_v50 = vmul.f32 %v7228_v6, %v3662_v18  ;;  %4580 = vrsqrt.f32 %v3542_v24  ;;  %v3480_v34 = vmul.f32 0.03125, %v3404_v63  ;;  %v3479_v53 = vmul.f32 0.03125, %v3401_v44 }
 0x408   : > { %v4569_v27 = vpop.eup %4568  ;;  %3865 = vst.msk [vmem:[%s7242_s25 + $0x160] sm:$0xff] %vm2845_vm1, %v3801_v43  ;;  %v3732_v32 = vmul.f32 %v7228_v6, %v3661_v26  ;;  %4582 = vrsqrt.f32 %v3541_v15 }
 0x409   : > { %v4571_v48 = vpop.eup %4570  ;;  %v3804_v40 = vadd.f32 %v7236_v41, %v3733_v50  ;;  %v3664_v14 = vmul.f32 %v4569_v27, %v7131_v36  ;;  %v3544_v4 = vadd.f32 1e-05, %v3480_v34  ;;  %v3543_v59 = vadd.f32 1e-05, %v3479_v53  ;;  %v4601_v27 = vld [vmem:[%s7603_s3] ss:$0 sm:$0xff] }
 0x40a   : > { %v3803_v49 = vadd.f32 %v7236_v41, %v3732_v32  ;;  %v3663_v37 = vmul.f32 %v4571_v48, %v7125_v55  ;;  %v3410_v39 = vpop.xlane.xlu1 %3409  ;;  %v3407_v58 = vpop.xlane.xlu0 %3406 }
 0x40b   : > { %3868 = vst.msk [vmem:[%s7242_s25 + $0x178] sm:$0xff] %vm2845_vm1, %v3804_v40  ;;  %v3735_v16 = vmul.f32 %v7228_v6, %v3664_v14  ;;  %4584 = vrsqrt.f32 %v3544_v4  ;;  %v3482_v30 = vmul.f32 0.03125, %v3410_v39  ;;  %v3481_v10 = vmul.f32 0.03125, %v3407_v58  ;;  %v7788_v4 = vld [vmem:[#allocation8_spill] sm:$0xff] }
 0x40c   : > { %v4573_v0 = vpop.eup %4572  ;;  %3867 = vst.msk [vmem:[%s7242_s25 + $0x170] sm:$0xff] %vm2845_vm1, %v3803_v49  ;;  %v3734_v36 = vmul.f32 %v7228_v6, %v3663_v37  ;;  %4586 = vrsqrt.f32 %v3543_v59 }
 0x40d   : > { %v4575_v54 = vpop.eup %4574  ;;  %v3806_v55 = vadd.f32 %v7236_v41, %v3735_v16  ;;  %v3666_v46 = vmul.f32 %v4573_v0, %v7143_v28  ;;  %v3546_v19 = vadd.f32 1e-05, %v3482_v30  ;;  %v3545_v17 = vadd.f32 1e-05, %v3481_v10  ;;  %v7789_v30 = vld [vmem:[#allocation9_spill] sm:$0xff] }
 0x40e   : > { %v3805_v3 = vadd.f32 %v7236_v41, %v3734_v36  ;;  %v3665_v62 = vmul.f32 %v4575_v54, %v7137_v5  ;;  %v3416_v23 = vpop.xlane.xlu1 %3415  ;;  %v3413_v47 = vpop.xlane.xlu0 %3412 }
 0x40f   : > { %3870 = vst.msk [vmem:[%s7242_s25 + $0x188] sm:$0xff] %vm2845_vm1, %v3806_v55  ;;  %v3737_v31 = vmul.f32 %v7228_v6, %v3666_v46  ;;  %4588 = vrsqrt.f32 %v3546_v19  ;;  %v3484_v21 = vmul.f32 0.03125, %v3416_v23  ;;  %v3483_v12 = vmul.f32 0.03125, %v3413_v47  ;;  %v7792_v47 = vld [vmem:[#allocation17_spill] sm:$0xff] }
 0x410   : > { %v4577_v22 = vpop.eup %4576  ;;  %3869 = vst.msk [vmem:[%s7242_s25 + $0x180] sm:$0xff] %vm2845_vm1, %v3805_v3  ;;  %v3736_v28 = vmul.f32 %v7228_v6, %v3665_v62  ;;  %4590 = vrsqrt.f32 %v3545_v17  ;;  %v7791_v3 = vld [vmem:[#allocation10_spill] sm:$0xff] }
 0x411   : > { %v4579_v35 = vpop.eup %4578  ;;  %v3808_v5 = vadd.f32 %v7236_v41, %v3737_v31  ;;  %v3668_v52 = vmul.f32 %v4577_v22, %v7155_v33  ;;  %v3548_v25 = vadd.f32 1e-05, %v3484_v21  ;;  %v3547_v20 = vadd.f32 1e-05, %v3483_v12 }
 0x412   : > { %v3807_v1 = vadd.f32 %v7236_v41, %v3736_v28  ;;  %v3667_v8 = vmul.f32 %v4579_v35, %v7149_v29  ;;  %v3422_v2 = vpop.xlane.xlu1 %3421  ;;  %v3419_v45 = vpop.xlane.xlu0 %3418 }
 0x413   : > { %3872 = vst.msk [vmem:[%s7242_s25 + $0x198] sm:$0xff] %vm2845_vm1, %v3808_v5  ;;  %v3739_v38 = vmul.f32 %v7228_v6, %v3668_v52  ;;  %4592 = vrsqrt.f32 %v3548_v25  ;;  %v3486_v61 = vmul.f32 0.03125, %v3422_v2  ;;  %v3485_v60 = vmul.f32 0.03125, %v3419_v45 }
 0x414   : > { %v4581_v13 = vpop.eup %4580  ;;  %3871 = vst.msk [vmem:[%s7242_s25 + $0x190] sm:$0xff] %vm2845_vm1, %v3807_v1  ;;  %v3738_v33 = vmul.f32 %v7228_v6, %v3667_v8  ;;  %4594 = vrsqrt.f32 %v3547_v20 }
 0x415   : > { %v4583_v56 = vpop.eup %4582  ;;  %v3810_v29 = vadd.f32 %v7236_v41, %v3739_v38  ;;  %v3670_v7 = vmul.f32 %v4581_v13, %v7167_v51  ;;  %v3550_v18 = vadd.f32 1e-05, %v3486_v61  ;;  %v3549_v24 = vadd.f32 1e-05, %v3485_v60 }
 0x416   : > { %v3809_v15 = vadd.f32 %v7236_v41, %v3738_v33  ;;  %v3669_v43 = vmul.f32 %v4583_v56, %v7161_v57 }
 0x417   : > { %3874 = vst.msk [vmem:[%s7242_s25 + $0x1a8] sm:$0xff] %vm2845_vm1, %v3810_v29  ;;  %v3741_v26 = vmul.f32 %v7228_v6, %v3670_v7  ;;  %4596 = vrsqrt.f32 %v3550_v18 }
 0x418   : > { %v4585_v63 = vpop.eup %4584  ;;  %3873 = vst.msk [vmem:[%s7242_s25 + $0x1a0] sm:$0xff] %vm2845_vm1, %v3809_v15  ;;  %v3740_v44 = vmul.f32 %v7228_v6, %v3669_v43  ;;  %4598 = vrsqrt.f32 %v3549_v24 }
 0x419   : > { %v4587_v51 = vpop.eup %4586  ;;  %v3812_v50 = vadd.f32 %v7236_v41, %v3741_v26  ;;  %v3672_v34 = vmul.f32 %v4585_v63, %v7179_v42  ;;  %v4602_v42 = vld [vmem:[%s7604_s4] ss:$0 sm:$0xff] }
 0x41a   : > { %v3811_v57 = vadd.f32 %v7236_v41, %v3740_v44  ;;  %v3671_v53 = vmul.f32 %v4587_v51, %v7173_v9 }
 0x41b   : > { %3876 = vst.msk [vmem:[%s7242_s25 + $0x1b8] sm:$0xff] %vm2845_vm1, %v3812_v50  ;;  %v3743_v32 = vmul.f32 %v4601_v27, %v3672_v34 }
 0x41c   : > { %v4589_v6 = vpop.eup %4588  ;;  %3875 = vst.msk [vmem:[%s7242_s25 + $0x1b0] sm:$0xff] %vm2845_vm1, %v3811_v57  ;;  %v3742_v48 = vmul.f32 %v4601_v27, %v3671_v53 }
 0x41d   : > { %v4591_v40 = vpop.eup %4590  ;;  %v3814_v41 = vadd.f32 %v4602_v42, %v3743_v32  ;;  %v3674_v9 = vmul.f32 %v4589_v6, %v7191_v11  ;;  %v7790_v11 = vld [vmem:[#allocation16_spill] sm:$0xff] }
 0x41e   : > { %v3813_v14 = vadd.f32 %v4602_v42, %v3742_v48  ;;  %v3673_v59 = vmul.f32 %v4591_v40, %v7788_v4 }
 0x41f   : > { %3878 = vst.msk [vmem:[%s7242_s25 + $0x1c8] sm:$0xff] %vm2845_vm1, %v3814_v41  ;;  %v3745_v49 = vmul.f32 %v4601_v27, %v3674_v9 }
 0x420   : > { %v4593_v37 = vpop.eup %4592  ;;  %3877 = vst.msk [vmem:[%s7242_s25 + $0x1c0] sm:$0xff] %vm2845_vm1, %v3813_v14  ;;  %v3744_v39 = vmul.f32 %v4601_v27, %v3673_v59 }
 0x421   : > { %v4595_v58 = vpop.eup %4594  ;;  %v3816_v16 = vadd.f32 %v4602_v42, %v3745_v49  ;;  %v3676_v10 = vmul.f32 %v4593_v37, %v7789_v30 }
 0x422   : > { %v3815_v0 = vadd.f32 %v4602_v42, %v3744_v39  ;;  %v3675_v36 = vmul.f32 %v4595_v58, %v7790_v11 }
 0x423   : > { %3880 = vst.msk [vmem:[%s7242_s25 + $0x1d8] sm:$0xff] %vm2845_vm1, %v3816_v16  ;;  %v3747_v54 = vmul.f32 %v4601_v27, %v3676_v10 }
 0x424   : > { %v4597_v55 = vpop.eup %4596  ;;  %3879 = vst.msk [vmem:[%s7242_s25 + $0x1d0] sm:$0xff] %vm2845_vm1, %v3815_v0  ;;  %v3746_v46 = vmul.f32 %v4601_v27, %v3675_v36 }
 0x425   : > { %v4599_v19 = vpop.eup %4598  ;;  %v3818_v17 = vadd.f32 %v4602_v42, %v3747_v54  ;;  %v3678_v62 = vmul.f32 %v4597_v55, %v7791_v3 }
 0x426   : > { %v3817_v23 = vadd.f32 %v4602_v42, %v3746_v46  ;;  %v3677_v31 = vmul.f32 %v4599_v19, %v7792_v47 }
 0x427   : > { %3882 = vst.msk [vmem:[%s7242_s25 + $0x1e8] sm:$0xff] %vm2845_vm1, %v3818_v17  ;;  %v3749_v21 = vmul.f32 %v4601_v27, %v3678_v62 }
 0x428   : > { %3881 = vst.msk [vmem:[%s7242_s25 + $0x1e0] sm:$0xff] %vm2845_vm1, %v3817_v23  ;;  %v3748_v12 = vmul.f32 %v4601_v27, %v3677_v31 }
 0x429   : > { %v3820_v22 = vadd.f32 %v4602_v42, %v3749_v21 }
 0x42a   : > { %v3819_v28 = vadd.f32 %v4602_v42, %v3748_v12 }
 0x42b   : > { %3884 = vst.msk [vmem:[%s7242_s25 + $0x1f8] sm:$0xff] %vm2845_vm1, %v3820_v22 }
 0x42c   : > { %3883 = vst.msk [vmem:[%s7242_s25 + $0x1f0] sm:$0xff] %vm2845_vm1, %v3819_v28 }
 0x42d   : > { %4616 = shalt.err (!%p4613_p3)
}
 0x42e   : > { %s4617_s7 = scalar_lea.hbm %s7550_s15, 8192  ;;  %s4621_s6 = scalar_lea.hbm %s7605_s5, 16384 }
 0x42f   : > { %p4618_p4 = scmp.ne.s32.totalorder %s7550_s15, %s4617_s7  ;;  %p4622_p9 = scmp.lt.s32.totalorder %s7550_s15, %s7605_s5 }
 0x430   : > { %p4623_p10 = scmp.lt.s32.totalorder %s4621_s6, %s4617_s7 }
 0x431   : > { %p4619_p7 = pnand %p4618_p4, %p4737_p5 }
 0x432   : > { %p4624_p11 = por %p4623_p10, %p4622_p9 }
 0x433   : > { %p4620_p8 = pneg %p4619_p7 }
 0x435   : > { %p4625_p12 = pnand %p4624_p11, %p4620_p8 }
 0x437   : > { %4628 = shalt.err (!%p4625_p12)
}
 0x438   : > { %s4667_s10 = smov 128   ;;  %s4668_s11 = smov 8  }
 0x439   : > { %4302 = dma.vmem_to_hbm [thread:$0]  (%p4737_p5), %s7552_s12, 8192, %s7550_s15, %s7560_s22, %s4667_s10, %s4667_s10, %s4668_s11  }
 0x43a PF: > { %p4308_p13 = scmp.ge.s32.totalorder %s4663_s21, 2  ;;  %s3914_s13 = sand.u32 1, %s4651_s18  }
 0x43b   : > { %s3915_s14 = scalar_lea.sflag [#allocation3], %s3914_s13 }
 0x43c   : > { %p4305_p0 = pnand %p4308_p13, %p4741_p6 }
 0x43e   : > { %p4306_p1 = pneg %p4305_p0 }
 0x440   : > { %4646 = dma.done.wait (%p4306_p1), %s3915_s14, 8192  }
 0x441   : > { %4648 = vsyncadd (%p4306_p1), %s3915_s14, 4294959104  ;;  %p15_p2 = scmp.ge.s32.totalorder %s4724_s24, 4   ;;  %s7793_s18 = smov %s4655_s19 }
 0x442   : > { %s7794_s19 = smov %s4659_s20  ;;  %s7795_s20 = smov %s4735_s27 }
 0x443   : > { %s7796_s21 = smov %s4724_s24  ;;  %17 = sbr.rel (!%p15_p2) target bundleno = 3 (0x3), region = 75 }
 0x448   :  { %3920 = vsyncpa [#allocation3], 1 }
 0x449   :  { %3922 = vsyncpa [#allocation3 + $0x1], 1 }

</bundles_post_ra>
